<compile_context>
chip_gen: v7x
topology: tpu7x:2x2x1
jax: 0.10.0
libtpu: 0.0.40
codegen_flags: <defaults>
</compile_context>

<pallas_src>
import jax
import jax.numpy as jnp
from jax.experimental import pallas as pl
from jax.experimental.pallas import tpu as pltpu

# ---- model hyper-parameters (small, consistent with the module's structure) ----
VOCAB    = 32
D_MODEL  = 128          # module default 512; reduced for the small test
N_HEAD   = 4
HEAD_DIM = D_MODEL // N_HEAD
D_FF     = 2048         # nn.TransformerEncoderLayer default dim_feedforward
N_ENC    = 2            # module default 4; reduced for the small test
N_DEC    = 2            # module default 6; reduced for the small test
SPEC_DIM = 4096         # fixed by nn.Linear(4096, d_model)
LN_EPS   = 1e-5
NEG_INF  = -1e30        # additive mask value (≈ -inf after softmax)


# ============================ in-kernel helpers ============================

def _ln(x, g, b):
    """LayerNorm over the last axis, f32 statistics."""
    mu = jnp.mean(x, axis=-1, keepdims=True)
    xc = x - mu
    var = jnp.mean(xc * xc, axis=-1, keepdims=True)
    return xc * jax.lax.rsqrt(var + LN_EPS) * g + b


def _bdot(x, w, b=None):
    """x(f32) @ w(bf16) with f32 accumulation; optional f32 bias."""
    y = jnp.dot(x.astype(jnp.bfloat16), w, preferred_element_type=jnp.float32)
    if b is not None:
        y = y + b
    return y


# ============================ fused forward kernel ============================
# Packed per-layer vector layouts:
#   encoder  e_vec (N_ENC, 8, D):  [bv, bo, ln1g, ln1b, ff_b2, ln2g, ln2b, pad]
#   decoder  d_vec (N_DEC, 16, D): [bq, bk, bv, sa_bo, ln1g, ln1b, ca_bv, ca_bo,
#                                   ln2g, ln2b, ff_b2, ln3g, ln3b, pad, pad, pad]

def _fused_forward_kernel(
        # constant-index inputs
        spec_x_ref, spec_w_ref, spec_b_ref, dec_in_ref, bias_ref,
        # encoder per-layer weights (index clamp: min(l, N_ENC-1))
        e_wv_ref, e_wo_ref, e_w1_ref, e_w2_ref, e_vec_ref, e_b1_ref,
        # decoder per-layer weights (index clamp: max(l - N_ENC, 0))
        d_wqkv_ref, d_sawo_ref, d_cawv_ref, d_cawo_ref, d_w1_ref, d_w2_ref,
        d_vec_ref, d_b1_ref,
        # output heads (constant index)
        h_wcat_ref, h_vb1_ref, h_vw2_ref, h_vb2_ref,
        # outputs
        logits_ref, value_ref,
        # scratch (persist across grid steps)
        mem_ref, x_ref):
    l = pl.program_id(0)
    B, T, _ = bias_ref.shape
    D, H, Dh = D_MODEL, N_HEAD, HEAD_DIM

    # -------- layer 0 prologue: spectrum projection (Linear + ReLU, dropout=id) --------
    @pl.when(l == 0)
    def _():
        mem_ref[...] = jnp.maximum(
            _bdot(spec_x_ref[...], spec_w_ref[...], spec_b_ref[...]), 0.0)

    # -------- encoder layer (length-1 sequence: attention == V-path, exactly) --------
    @pl.when(l < N_ENC)
    def _():
        vec = e_vec_ref[...]                                  # (8, D) f32
        x = mem_ref[...]                                      # (B, D) f32
        v = _bdot(x, e_wv_ref[...], vec[0:1])
        a = _bdot(v, e_wo_ref[...], vec[1:2])
        x = _ln(x + a, vec[2:3], vec[3:4])
        hid = jnp.maximum(_bdot(x, e_w1_ref[...], e_b1_ref[...]), 0.0)
        f = _bdot(hid, e_w2_ref[...], vec[4:5])
        x = _ln(x + f, vec[5:6], vec[6:7])
        mem_ref[...] = x

    # -------- decoder state init (token + positional embeddings, embedded outside) -----
    @pl.when(l == N_ENC)
    def _():
        x_ref[...] = dec_in_ref[...]

    # -------- decoder layer --------
    @pl.when(l >= N_ENC)
    def _():
        vec = d_vec_ref[...]                                  # (16, D) f32
        x = x_ref[...]                                        # (B*T, D) f32
        bias = bias_ref[...]                                  # (B, T, T) f32

        # masked multi-head self-attention (fused QKV projection, bf16 MXU, f32 acc)
        qkv = _bdot(x, d_wqkv_ref[...])                       # (B*T, 3D)
        q_all = qkv[:, 0 * D:1 * D] + vec[0:1]                # tile-aligned lane slices
        k_all = qkv[:, 1 * D:2 * D] + vec[1:2]
        v_all = qkv[:, 2 * D:3 * D] + vec[2:3]
        scale = 1.0 / (Dh ** 0.5)

        attn_proj = jnp.zeros((B * T, D), jnp.float32)
        for hh in range(H):                                   # static unroll, H=4
            sl = slice(hh * Dh, (hh + 1) * Dh)
            q = q_all[:, sl].reshape(B, T, Dh).astype(jnp.bfloat16)
            k = k_all[:, sl].reshape(B, T, Dh).astype(jnp.bfloat16)
            v = v_all[:, sl].reshape(B, T, Dh).astype(jnp.bfloat16)
            s = jnp.einsum('bqd,bkd->bqk', q, k,
                           preferred_element_type=jnp.float32) * scale + bias
            s = s - jnp.max(s, axis=-1, keepdims=True)
            p = jnp.exp(s)
            p = p * pl.reciprocal(jnp.sum(p, axis=-1, keepdims=True), approx=True)
            o = jnp.einsum('bqk,bkd->bqd', p.astype(jnp.bfloat16), v,
                           preferred_element_type=jnp.float32)          # (B, T, Dh)
            # fold this head straight through its rows of the output projection
            # (no 32-lane concat re-stitching of the 4 head outputs).
            attn_proj = attn_proj + _bdot(o.reshape(B * T, Dh), d_sawo_ref[sl, :])
        a = attn_proj + vec[3:4]
        x = _ln(x + a, vec[4:5], vec[5:6])

        # cross-attention over a length-1 memory: softmax over one key == 1,
        # so the result is exactly the (broadcast) V projection of the memory.
        vmem = _bdot(mem_ref[...], d_cawv_ref[...], vec[6:7])           # (B, D)
        cmem = _bdot(vmem, d_cawo_ref[...], vec[7:8])                   # (B, D)
        c = jnp.broadcast_to(cmem[:, None, :], (B, T, D)).reshape(B * T, D)
        x = _ln(x + c, vec[8:9], vec[9:10])

        # fused feed-forward: the (B*T, D_FF) intermediate never leaves VMEM
        hid = jnp.maximum(_bdot(x, d_w1_ref[...], d_b1_ref[...]), 0.0)
        f = _bdot(hid, d_w2_ref[...], vec[10:11])
        x = _ln(x + f, vec[11:12], vec[12:13])
        x_ref[...] = x

    # -------- last layer epilogue: output heads fused in --------
    @pl.when(l == N_ENC + N_DEC - 1)
    def _():
        last = x_ref[...].reshape(B, T, D)[:, T - 1, :]                 # (B, D)
        # one lane-dense matmul: cols [0:D) = value_head layer-1, [D:D+VOCAB) = logits
        y = _bdot(last, h_wcat_ref[...])                                # (B, D+VOCAB)
        logits_ref[...] = y[:, D:]                                      # no bias
        hdn = jnp.tanh(y[:, :D] + h_vb1_ref[...])
        # value layer-2: VPU lane reduction instead of a 1-lane MXU matmul
        value_ref[...] = (jnp.sum(hdn * h_vw2_ref[...], axis=-1, keepdims=True)
                          + h_vb2_ref[...])


def fused_forward(spec_x, dec_in_flat, attn_bias, params):
    e, d = params["enc"], params["dec"]
    B = spec_x.shape[0]
    T = attn_bias.shape[1]
    D, F = D_MODEL, D_FF
    n_steps = N_ENC + N_DEC

    def cidx2(l): return (0, 0)
    def cidx3(l): return (0, 0, 0)
    # clamped layer indices: decoder layer-0 weights are fetched during the encoder
    # phase (prefetch), last encoder layer's weights simply stay resident afterwards.
    def eidx(l): return (jnp.minimum(l, N_ENC - 1), 0, 0)
    def didx(l): return (jnp.maximum(l - N_ENC, 0), 0, 0)

    in_specs = [
        pl.BlockSpec((B, SPEC_DIM), cidx2),          # spectrum embed
        pl.BlockSpec((SPEC_DIM, D), cidx2),          # spec_proj W
        pl.BlockSpec((1, D), cidx2),                 # spec_proj b
        pl.BlockSpec((B * T, D), cidx2),             # decoder input embeddings
        pl.BlockSpec((B, T, T), cidx3),              # causal + key-pad additive bias
        pl.BlockSpec((None, D, D), eidx),            # enc wv
        pl.BlockSpec((None, D, D), eidx),            # enc wo
        pl.BlockSpec((None, D, F), eidx),            # enc ff w1
        pl.BlockSpec((None, F, D), eidx),            # enc ff w2
        pl.BlockSpec((None, 8, D), eidx),            # enc packed vectors
        pl.BlockSpec((None, 1, F), eidx),            # enc ff b1
        pl.BlockSpec((None, D, 3 * D), didx),        # dec fused qkv W
        pl.BlockSpec((None, D, D), didx),            # dec self-attn out W
        pl.BlockSpec((None, D, D), didx),            # dec cross-attn V W
        pl.BlockSpec((None, D, D), didx),            # dec cross-attn out W
        pl.BlockSpec((None, D, F), didx),            # dec ff w1
        pl.BlockSpec((None, F, D), didx),            # dec ff w2
        pl.BlockSpec((None, 16, D), didx),           # dec packed vectors
        pl.BlockSpec((None, 1, F), didx),            # dec ff b1
        pl.BlockSpec((D, D + VOCAB), cidx2),         # [value_w1 | action_w]
        pl.BlockSpec((1, D), cidx2),                 # value b1
        pl.BlockSpec((1, D), cidx2),                 # value w2 (stored transposed)
        pl.BlockSpec((1, 1), cidx2),                 # value b2
    ]
    out_specs = (pl.BlockSpec((B, VOCAB), cidx2),
                 pl.BlockSpec((B, 1), cidx2))

    return pl.pallas_call(
        _fused_forward_kernel,
        grid=(n_steps,),
        in_specs=in_specs,
        out_specs=out_specs,
        out_shape=(jax.ShapeDtypeStruct((B, VOCAB), jnp.float32),
                   jax.ShapeDtypeStruct((B, 1), jnp.float32)),
        scratch_shapes=[pltpu.VMEM((B, D), jnp.float32),       # encoder state / memory
                        pltpu.VMEM((B * T, D), jnp.float32)],  # decoder state
        compiler_params=pltpu.CompilerParams(
            dimension_semantics=("arbitrary",),                # serial layer carry
            # ~7 MB double-buffered at D=128; explicit limit leaves headroom for the
            # v5e 16 MiB default if the model is scaled back up (D=512, N_DEC=6).
            vmem_limit_bytes=32 * 1024 * 1024),
    )(spec_x, params["spec_w"], params["spec_b"], dec_in_flat, attn_bias,
      e["wv"], e["wo"], e["w1"], e["w2"], e["vec"], e["b1"],
      d["wqkv"], d["sa_wo"], d["ca_wv"], d["ca_wo"], d["w1"], d["w2"], d["vec"], d["b1"],
      params["head_wcat"], params["val_b1"], params["val_w2"], params["val_b2"])


# ============================ forward ============================

def forward(params, spectrum_embed, tgt_tokens, tgt_mask):
    B, T = tgt_tokens.shape

    # decoder input embeddings (gathers stay in plain JAX glue)
    pos_ids = jnp.arange(T)
    dec_in = params["tok_emb"][tgt_tokens] + params["pos_emb"][pos_ids][None, :, :]
    dec_in = dec_in.reshape(B * T, D_MODEL)

    # causal + key-padding additive bias, built ONCE (not per decoder layer)
    rows = jnp.arange(T)[:, None]
    cols = jnp.arange(T)[None, :]
    causal = jnp.where(cols > rows, NEG_INF, 0.0).astype(jnp.float32)       # (T, T)
    pad = jnp.where(tgt_mask == 0, NEG_INF, 0.0).astype(jnp.float32)        # (B, T)
    attn_bias = causal[None, :, :] + pad[:, None, :]                        # (B, T, T)

    logits, value = fused_forward(spectrum_embed, dec_in, attn_bias, params)
    return logits, value[:, 0]


# ============================ parameter init ============================

def init_params(key):
    keys = iter(jax.random.split(key, 64))

    def nrm(shape, scale=0.02):
        return (scale * jax.random.normal(next(keys), shape)).astype(jnp.float32)

    def bf16(x):
        return x.astype(jnp.bfloat16)

    D, F = D_MODEL, D_FF
    ones = lambda n: jnp.ones((n, D), jnp.float32)
    zeros = lambda n: jnp.zeros((n, D), jnp.float32)

    # encoder packed vectors: [bv, bo, ln1g, ln1b, ff_b2, ln2g, ln2b, pad]
    e_vec = jnp.stack([nrm((N_ENC, D)), nrm((N_ENC, D)),
                       ones(N_ENC), zeros(N_ENC),
                       nrm((N_ENC, D)),
                       ones(N_ENC), zeros(N_ENC),
                       zeros(N_ENC)], axis=1)                       # (N_ENC, 8, D)
    enc = dict(
        wv=bf16(nrm((N_ENC, D, D))), wo=bf16(nrm((N_ENC, D, D))),
        w1=bf16(nrm((N_ENC, D, F))), w2=bf16(nrm((N_ENC, F, D))),
        vec=e_vec, b1=nrm((N_ENC, 1, F)),
    )

    # decoder packed vectors:
    # [bq, bk, bv, sa_bo, ln1g, ln1b, ca_bv, ca_bo, ln2g, ln2b, ff_b2, ln3g, ln3b, 3x pad]
    d_vec = jnp.stack([nrm((N_DEC, D)), nrm((N_DEC, D)), nrm((N_DEC, D)),
                       nrm((N_DEC, D)),
                       ones(N_DEC), zeros(N_DEC),
                       nrm((N_DEC, D)), nrm((N_DEC, D)),
                       ones(N_DEC), zeros(N_DEC),
                       nrm((N_DEC, D)),
                       ones(N_DEC), zeros(N_DEC),
                       zeros(N_DEC), zeros(N_DEC), zeros(N_DEC)], axis=1)   # (N_DEC,16,D)
    dec = dict(
        wqkv=bf16(nrm((N_DEC, D, 3 * D))), sa_wo=bf16(nrm((N_DEC, D, D))),
        ca_wv=bf16(nrm((N_DEC, D, D))), ca_wo=bf16(nrm((N_DEC, D, D))),
        w1=bf16(nrm((N_DEC, D, F))), w2=bf16(nrm((N_DEC, F, D))),
        vec=d_vec, b1=nrm((N_DEC, 1, F)),
    )

    val_w1 = nrm((D, D))
    act_w = nrm((D, VOCAB))
    return dict(
        spec_w=bf16(nrm((SPEC_DIM, D))), spec_b=nrm((1, D)),
        tok_emb=nrm((VOCAB, D)), pos_emb=nrm((1024, D)),
        enc=enc, dec=dec,
        head_wcat=bf16(jnp.concatenate([val_w1, act_w], axis=1)),   # (D, D+VOCAB)
        val_b1=nrm((1, D)),
        val_w2=nrm((1, D)),                                         # (D,1) stored as (1,D)
        val_b2=nrm((1, 1)),
    )


# ============================ test driver ============================

if __name__ == "__main__":
    B, T = 2, 8
    key = jax.random.PRNGKey(0)
    k_param, k_spec, k_tok = jax.random.split(key, 3)

    params = init_params(k_param)
    spectrum_embed = jax.random.normal(k_spec, (B, SPEC_DIM), dtype=jnp.float32)
    tgt_tokens = jax.random.randint(k_tok, (B, T), 0, VOCAB)
    tgt_mask = jnp.array([[1, 1, 1, 1, 1, 1, 0, 0],
                          [1, 1, 1, 1, 1, 1, 1, 1]], dtype=jnp.int32)

    fwd = jax.jit(forward)
    logits, value = fwd(params, spectrum_embed, tgt_tokens, tgt_mask)
    jax.block_until_ready((logits, value))

    assert logits.shape == (B, VOCAB), logits.shape
    assert value.shape == (B,), value.shape
    assert bool(jnp.all(jnp.isfinite(logits))) and bool(jnp.all(jnp.isfinite(value)))
    print("KERNEL_OK")
</pallas_src>

<mosaic_0001>
module attributes {stable_mosaic.version = 11 : i64} {
  func.func @_fused_forward_kernel(%arg0: i32, %arg1: memref<2x4096xf32, #tpu.memory_space<vmem>>, %arg2: memref<4096x128xbf16, #tpu.memory_space<vmem>>, %arg3: memref<1x128xf32, #tpu.memory_space<vmem>>, %arg4: memref<16x128xf32, #tpu.memory_space<vmem>>, %arg5: memref<2x8x8xf32, #tpu.memory_space<vmem>>, %arg6: memref<1x128x128xbf16, #tpu.memory_space<vmem>>, %arg7: memref<1x128x128xbf16, #tpu.memory_space<vmem>>, %arg8: memref<1x128x2048xbf16, #tpu.memory_space<vmem>>, %arg9: memref<1x2048x128xbf16, #tpu.memory_space<vmem>>, %arg10: memref<1x8x128xf32, #tpu.memory_space<vmem>>, %arg11: memref<1x1x2048xf32, #tpu.memory_space<vmem>>, %arg12: memref<1x128x384xbf16, #tpu.memory_space<vmem>>, %arg13: memref<1x128x128xbf16, #tpu.memory_space<vmem>>, %arg14: memref<1x128x128xbf16, #tpu.memory_space<vmem>>, %arg15: memref<1x128x128xbf16, #tpu.memory_space<vmem>>, %arg16: memref<1x128x2048xbf16, #tpu.memory_space<vmem>>, %arg17: memref<1x2048x128xbf16, #tpu.memory_space<vmem>>, %arg18: memref<1x16x128xf32, #tpu.memory_space<vmem>>, %arg19: memref<1x1x2048xf32, #tpu.memory_space<vmem>>, %arg20: memref<128x160xbf16, #tpu.memory_space<vmem>>, %arg21: memref<1x128xf32, #tpu.memory_space<vmem>>, %arg22: memref<1x128xf32, #tpu.memory_space<vmem>>, %arg23: memref<1x1xf32, #tpu.memory_space<vmem>>, %arg24: memref<2x32xf32, #tpu.memory_space<vmem>>, %arg25: memref<2x1xf32, #tpu.memory_space<vmem>>, %arg26: memref<2x128xf32, #tpu.memory_space<vmem>>, %arg27: memref<16x128xf32, #tpu.memory_space<vmem>>) attributes {dimension_semantics = [#tpu.dimension_semantics<arbitrary>], iteration_bounds = array<i64: 4>, scalar_prefetch = 0 : i64, scratch_operands = 2 : i64, tpu.core_type = #tpu.core_type<tc>, window_params = [{pipeline_mode = #tpu.pipeline_mode<synchronous>, transform_indices = @transform_0, window_bounds = array<i64: 2, 4096>}, {pipeline_mode = #tpu.pipeline_mode<synchronous>, transform_indices = @transform_1, window_bounds = array<i64: 4096, 128>}, {pipeline_mode = #tpu.pipeline_mode<synchronous>, transform_indices = @transform_2, window_bounds = array<i64: 1, 128>}, {pipeline_mode = #tpu.pipeline_mode<synchronous>, transform_indices = @transform_3, window_bounds = array<i64: 16, 128>}, {pipeline_mode = #tpu.pipeline_mode<synchronous>, transform_indices = @transform_4, window_bounds = array<i64: 2, 8, 8>}, {transform_indices = @transform_5, window_bounds = array<i64: 1, 128, 128>}, {transform_indices = @transform_6, window_bounds = array<i64: 1, 128, 128>}, {transform_indices = @transform_7, window_bounds = array<i64: 1, 128, 2048>}, {transform_indices = @transform_8, window_bounds = array<i64: 1, 2048, 128>}, {transform_indices = @transform_9, window_bounds = array<i64: 1, 8, 128>}, {transform_indices = @transform_10, window_bounds = array<i64: 1, 1, 2048>}, {transform_indices = @transform_11, window_bounds = array<i64: 1, 128, 384>}, {transform_indices = @transform_12, window_bounds = array<i64: 1, 128, 128>}, {transform_indices = @transform_13, window_bounds = array<i64: 1, 128, 128>}, {transform_indices = @transform_14, window_bounds = array<i64: 1, 128, 128>}, {transform_indices = @transform_15, window_bounds = array<i64: 1, 128, 2048>}, {transform_indices = @transform_16, window_bounds = array<i64: 1, 2048, 128>}, {transform_indices = @transform_17, window_bounds = array<i64: 1, 16, 128>}, {transform_indices = @transform_18, window_bounds = array<i64: 1, 1, 2048>}, {pipeline_mode = #tpu.pipeline_mode<synchronous>, transform_indices = @transform_19, window_bounds = array<i64: 128, 160>}, {pipeline_mode = #tpu.pipeline_mode<synchronous>, transform_indices = @transform_20, window_bounds = array<i64: 1, 128>}, {pipeline_mode = #tpu.pipeline_mode<synchronous>, transform_indices = @transform_21, window_bounds = array<i64: 1, 128>}, {pipeline_mode = #tpu.pipeline_mode<synchronous>, transform_indices = @transform_22, window_bounds = array<i64: 1, 1>}, {pipeline_mode = #tpu.pipeline_mode<synchronous>, transform_indices = @transform_23, window_bounds = array<i64: 2, 32>}, {pipeline_mode = #tpu.pipeline_mode<synchronous>, transform_indices = @transform_24, window_bounds = array<i64: 2, 1>}]} {
    %c0_i32 = arith.constant 0 : i32
    %0 = arith.cmpi eq, %arg0, %c0_i32 : i32
    %1 = arith.extui %0 : i1 to i32
    %c0_i32_0 = arith.constant 0 : i32
    %2 = arith.cmpi ne, %1, %c0_i32_0 : i32
    scf.if %2 {
      %c0 = arith.constant 0 : index
      %c0_7 = arith.constant 0 : index
      %15 = vector.load %arg1[%c0, %c0_7] : memref<2x4096xf32, #tpu.memory_space<vmem>>, vector<2x4096xf32>
      %c0_8 = arith.constant 0 : index
      %c0_9 = arith.constant 0 : index
      %16 = vector.load %arg2[%c0_8, %c0_9] : memref<4096x128xbf16, #tpu.memory_space<vmem>>, vector<4096x128xbf16>
      %c0_10 = arith.constant 0 : index
      %c0_11 = arith.constant 0 : index
      %17 = vector.load %arg3[%c0_10, %c0_11] : memref<1x128xf32, #tpu.memory_space<vmem>>, vector<1x128xf32>
      %18 = arith.truncf %15 : vector<2x4096xf32> to vector<2x4096xbf16>
      %cst = arith.constant dense<0.000000e+00> : vector<2x128xf32>
      %19 = tpu.matmul %18, %16, %cst {dimension_numbers = #tpu.dot_dimension_numbers<[1], [0], [0], [1], [0, 0, 1, 1], [], []>} : vector<2x4096xbf16>, vector<4096x128xbf16>, vector<2x128xf32> -> vector<2x128xf32>
      %20 = vector.broadcast %17 : vector<1x128xf32> to vector<2x128xf32>
      %21 = arith.addf %19, %20 : vector<2x128xf32>
      %cst_12 = arith.constant 0.000000e+00 : f32
      %22 = vector.broadcast %cst_12 : f32 to vector<2x128xf32>
      %23 = arith.maximumf %21, %22 : vector<2x128xf32>
      %c0_13 = arith.constant 0 : index
      %c0_14 = arith.constant 0 : index
      %24 = vector.load %arg26[%c0_13, %c0_14] : memref<2x128xf32, #tpu.memory_space<vmem>>, vector<2x128xf32>
      tpu.vector_store %arg26[%c0_13, %c0_14], %23 {strides = array<i32>} : memref<2x128xf32, #tpu.memory_space<vmem>>, vector<2x128xf32>,
    } else {
    }
    %c2_i32 = arith.constant 2 : i32
    %3 = arith.cmpi slt, %arg0, %c2_i32 : i32
    %4 = arith.extui %3 : i1 to i32
    %c0_i32_1 = arith.constant 0 : i32
    %5 = arith.cmpi ne, %4, %c0_i32_1 : i32
    scf.if %5 {
      %c0 = arith.constant 0 : index
      %c0_7 = arith.constant 0 : index
      %c0_8 = arith.constant 0 : index
      %15 = vector.load %arg10[%c0, %c0_7, %c0_8] : memref<1x8x128xf32, #tpu.memory_space<vmem>>, vector<1x8x128xf32>
      %16 = vector.shape_cast %15 : vector<1x8x128xf32> to vector<8x128xf32>
      %c0_9 = arith.constant 0 : index
      %c0_10 = arith.constant 0 : index
      %17 = vector.load %arg26[%c0_9, %c0_10] : memref<2x128xf32, #tpu.memory_space<vmem>>, vector<2x128xf32>
      %c0_11 = arith.constant 0 : index
      %c0_12 = arith.constant 0 : index
      %c0_13 = arith.constant 0 : index
      %18 = vector.load %arg6[%c0_11, %c0_12, %c0_13] : memref<1x128x128xbf16, #tpu.memory_space<vmem>>, vector<1x128x128xbf16>
      %19 = vector.shape_cast %18 : vector<1x128x128xbf16> to vector<128x128xbf16>
      %20 = vector.extract_strided_slice %16 {offsets = [0, 0], sizes = [1, 128], strides = [1, 1]} : vector<8x128xf32> to vector<1x128xf32>
      %21 = arith.truncf %17 : vector<2x128xf32> to vector<2x128xbf16>
      %cst = arith.constant dense<0.000000e+00> : vector<2x128xf32>
      %22 = tpu.matmul %21, %19, %cst {dimension_numbers = #tpu.dot_dimension_numbers<[1], [0], [0], [1], [0, 0, 1, 1], [], []>} : vector<2x128xbf16>, vector<128x128xbf16>, vector<2x128xf32> -> vector<2x128xf32>
      %23 = vector.broadcast %20 : vector<1x128xf32> to vector<2x128xf32>
      %24 = arith.addf %22, %23 : vector<2x128xf32>
      %c0_14 = arith.constant 0 : index
      %c0_15 = arith.constant 0 : index
      %c0_16 = arith.constant 0 : index
      %25 = vector.load %arg7[%c0_14, %c0_15, %c0_16] : memref<1x128x128xbf16, #tpu.memory_space<vmem>>, vector<1x128x128xbf16>
      %26 = vector.shape_cast %25 : vector<1x128x128xbf16> to vector<128x128xbf16>
      %27 = vector.extract_strided_slice %16 {offsets = [1, 0], sizes = [1, 128], strides = [1, 1]} : vector<8x128xf32> to vector<1x128xf32>
      %28 = arith.truncf %24 : vector<2x128xf32> to vector<2x128xbf16>
      %cst_17 = arith.constant dense<0.000000e+00> : vector<2x128xf32>
      %29 = tpu.matmul %28, %26, %cst_17 {dimension_numbers = #tpu.dot_dimension_numbers<[1], [0], [0], [1], [0, 0, 1, 1], [], []>} : vector<2x128xbf16>, vector<128x128xbf16>, vector<2x128xf32> -> vector<2x128xf32>
      %30 = vector.broadcast %27 : vector<1x128xf32> to vector<2x128xf32>
      %31 = arith.addf %29, %30 : vector<2x128xf32>
      %32 = arith.addf %17, %31 : vector<2x128xf32>
      %33 = vector.extract_strided_slice %16 {offsets = [2, 0], sizes = [1, 128], strides = [1, 1]} : vector<8x128xf32> to vector<1x128xf32>
      %34 = vector.extract_strided_slice %16 {offsets = [3, 0], sizes = [1, 128], strides = [1, 1]} : vector<8x128xf32> to vector<1x128xf32>
      %cst_18 = arith.constant dense<0.000000e+00> : vector<2xf32>
      %35 = vector.multi_reduction <add>, %32, %cst_18 [1] : vector<2x128xf32> to vector<2xf32>
      %36 = vector.shape_cast %35 : vector<2xf32> to vector<2x1xf32>
      %cst_19 = arith.constant 1.280000e+02 : f32
      %37 = vector.broadcast %cst_19 : f32 to vector<2x1xf32>
      %38 = arith.divf %36, %37 : vector<2x1xf32>
      %39 = vector.broadcast %38 : vector<2x1xf32> to vector<2x128xf32>
      %40 = arith.subf %32, %39 : vector<2x128xf32>
      %41 = arith.mulf %40, %40 : vector<2x128xf32>
      %cst_20 = arith.constant dense<0.000000e+00> : vector<2xf32>
      %42 = vector.multi_reduction <add>, %41, %cst_20 [1] : vector<2x128xf32> to vector<2xf32>
      %43 = vector.shape_cast %42 : vector<2xf32> to vector<2x1xf32>
      %cst_21 = arith.constant 1.280000e+02 : f32
      %44 = vector.broadcast %cst_21 : f32 to vector<2x1xf32>
      %45 = arith.divf %43, %44 : vector<2x1xf32>
      %cst_22 = arith.constant 9.99999974E-6 : f32
      %46 = vector.broadcast %cst_22 : f32 to vector<2x1xf32>
      %47 = arith.addf %45, %46 : vector<2x1xf32>
      %48 = math.rsqrt %47 : vector<2x1xf32>
      %49 = vector.broadcast %48 : vector<2x1xf32> to vector<2x128xf32>
      %50 = arith.mulf %40, %49 : vector<2x128xf32>
      %51 = vector.broadcast %33 : vector<1x128xf32> to vector<2x128xf32>
      %52 = arith.mulf %50, %51 : vector<2x128xf32>
      %53 = vector.broadcast %34 : vector<1x128xf32> to vector<2x128xf32>
      %54 = arith.addf %52, %53 : vector<2x128xf32>
      %c0_23 = arith.constant 0 : index
      %c0_24 = arith.constant 0 : index
      %c0_25 = arith.constant 0 : index
      %55 = vector.load %arg8[%c0_23, %c0_24, %c0_25] : memref<1x128x2048xbf16, #tpu.memory_space<vmem>>, vector<1x128x2048xbf16>
      %56 = vector.shape_cast %55 : vector<1x128x2048xbf16> to vector<128x2048xbf16>
      %c0_26 = arith.constant 0 : index
      %c0_27 = arith.constant 0 : index
      %c0_28 = arith.constant 0 : index
      %57 = vector.load %arg11[%c0_26, %c0_27, %c0_28] : memref<1x1x2048xf32, #tpu.memory_space<vmem>>, vector<1x1x2048xf32>
      %58 = vector.shape_cast %57 : vector<1x1x2048xf32> to vector<1x2048xf32>
      %59 = arith.truncf %54 : vector<2x128xf32> to vector<2x128xbf16>
      %cst_29 = arith.constant dense<0.000000e+00> : vector<2x2048xf32>
      %60 = tpu.matmul %59, %56, %cst_29 {dimension_numbers = #tpu.dot_dimension_numbers<[1], [0], [0], [1], [0, 0, 1, 1], [], []>} : vector<2x128xbf16>, vector<128x2048xbf16>, vector<2x2048xf32> -> vector<2x2048xf32>
      %61 = vector.broadcast %58 : vector<1x2048xf32> to vector<2x2048xf32>
      %62 = arith.addf %60, %61 : vector<2x2048xf32>
      %cst_30 = arith.constant 0.000000e+00 : f32
      %63 = vector.broadcast %cst_30 : f32 to vector<2x2048xf32>
      %64 = arith.maximumf %62, %63 : vector<2x2048xf32>
      %c0_31 = arith.constant 0 : index
      %c0_32 = arith.constant 0 : index
      %c0_33 = arith.constant 0 : index
      %65 = vector.load %arg9[%c0_31, %c0_32, %c0_33] : memref<1x2048x128xbf16, #tpu.memory_space<vmem>>, vector<1x2048x128xbf16>
      %66 = vector.shape_cast %65 : vector<1x2048x128xbf16> to vector<2048x128xbf16>
      %67 = vector.extract_strided_slice %16 {offsets = [4, 0], sizes = [1, 128], strides = [1, 1]} : vector<8x128xf32> to vector<1x128xf32>
      %68 = arith.truncf %64 : vector<2x2048xf32> to vector<2x2048xbf16>
      %cst_34 = arith.constant dense<0.000000e+00> : vector<2x128xf32>
      %69 = tpu.matmul %68, %66, %cst_34 {dimension_numbers = #tpu.dot_dimension_numbers<[1], [0], [0], [1], [0, 0, 1, 1], [], []>} : vector<2x2048xbf16>, vector<2048x128xbf16>, vector<2x128xf32> -> vector<2x128xf32>
      %70 = vector.broadcast %67 : vector<1x128xf32> to vector<2x128xf32>
      %71 = arith.addf %69, %70 : vector<2x128xf32>
      %72 = arith.addf %54, %71 : vector<2x128xf32>
      %73 = vector.extract_strided_slice %16 {offsets = [5, 0], sizes = [1, 128], strides = [1, 1]} : vector<8x128xf32> to vector<1x128xf32>
      %74 = vector.extract_strided_slice %16 {offsets = [6, 0], sizes = [1, 128], strides = [1, 1]} : vector<8x128xf32> to vector<1x128xf32>
      %cst_35 = arith.constant dense<0.000000e+00> : vector<2xf32>
      %75 = vector.multi_reduction <add>, %72, %cst_35 [1] : vector<2x128xf32> to vector<2xf32>
      %76 = vector.shape_cast %75 : vector<2xf32> to vector<2x1xf32>
      %cst_36 = arith.constant 1.280000e+02 : f32
      %77 = vector.broadcast %cst_36 : f32 to vector<2x1xf32>
      %78 = arith.divf %76, %77 : vector<2x1xf32>
      %79 = vector.broadcast %78 : vector<2x1xf32> to vector<2x128xf32>
      %80 = arith.subf %72, %79 : vector<2x128xf32>
      %81 = arith.mulf %80, %80 : vector<2x128xf32>
      %cst_37 = arith.constant dense<0.000000e+00> : vector<2xf32>
      %82 = vector.multi_reduction <add>, %81, %cst_37 [1] : vector<2x128xf32> to vector<2xf32>
      %83 = vector.shape_cast %82 : vector<2xf32> to vector<2x1xf32>
      %cst_38 = arith.constant 1.280000e+02 : f32
      %84 = vector.broadcast %cst_38 : f32 to vector<2x1xf32>
      %85 = arith.divf %83, %84 : vector<2x1xf32>
      %cst_39 = arith.constant 9.99999974E-6 : f32
      %86 = vector.broadcast %cst_39 : f32 to vector<2x1xf32>
      %87 = arith.addf %85, %86 : vector<2x1xf32>
      %88 = math.rsqrt %87 : vector<2x1xf32>
      %89 = vector.broadcast %88 : vector<2x1xf32> to vector<2x128xf32>
      %90 = arith.mulf %80, %89 : vector<2x128xf32>
      %91 = vector.broadcast %73 : vector<1x128xf32> to vector<2x128xf32>
      %92 = arith.mulf %90, %91 : vector<2x128xf32>
      %93 = vector.broadcast %74 : vector<1x128xf32> to vector<2x128xf32>
      %94 = arith.addf %92, %93 : vector<2x128xf32>
      %c0_40 = arith.constant 0 : index
      %c0_41 = arith.constant 0 : index
      %95 = vector.load %arg26[%c0_40, %c0_41] : memref<2x128xf32, #tpu.memory_space<vmem>>, vector<2x128xf32>
      tpu.vector_store %arg26[%c0_40, %c0_41], %94 {strides = array<i32>} : memref<2x128xf32, #tpu.memory_space<vmem>>, vector<2x128xf32>,
    } else {
    }
    %c2_i32_2 = arith.constant 2 : i32
    %6 = arith.cmpi eq, %arg0, %c2_i32_2 : i32
    %7 = arith.extui %6 : i1 to i32
    %c0_i32_3 = arith.constant 0 : i32
    %8 = arith.cmpi ne, %7, %c0_i32_3 : i32
    scf.if %8 {
      %c0 = arith.constant 0 : index
      %c0_7 = arith.constant 0 : index
      %15 = vector.load %arg4[%c0, %c0_7] : memref<16x128xf32, #tpu.memory_space<vmem>>, vector<16x128xf32>
      %c0_8 = arith.constant 0 : index
      %c0_9 = arith.constant 0 : index
      %16 = vector.load %arg27[%c0_8, %c0_9] : memref<16x128xf32, #tpu.memory_space<vmem>>, vector<16x128xf32>
      tpu.vector_store %arg27[%c0_8, %c0_9], %15 {strides = array<i32>} : memref<16x128xf32, #tpu.memory_space<vmem>>, vector<16x128xf32>,
    } else {
    }
    %c2_i32_4 = arith.constant 2 : i32
    %9 = arith.cmpi sge, %arg0, %c2_i32_4 : i32
    %10 = arith.extui %9 : i1 to i32
    %c0_i32_5 = arith.constant 0 : i32
    %11 = arith.cmpi ne, %10, %c0_i32_5 : i32
    scf.if %11 {
      %c0 = arith.constant 0 : index
      %c0_7 = arith.constant 0 : index
      %c0_8 = arith.constant 0 : index
      %15 = vector.load %arg18[%c0, %c0_7, %c0_8] : memref<1x16x128xf32, #tpu.memory_space<vmem>>, vector<1x16x128xf32>
      %16 = vector.shape_cast %15 : vector<1x16x128xf32> to vector<16x128xf32>
      %c0_9 = arith.constant 0 : index
      %c0_10 = arith.constant 0 : index
      %17 = vector.load %arg27[%c0_9, %c0_10] : memref<16x128xf32, #tpu.memory_space<vmem>>, vector<16x128xf32>
      %c0_11 = arith.constant 0 : index
      %c0_12 = arith.constant 0 : index
      %c0_13 = arith.constant 0 : index
      %18 = vector.load %arg5[%c0_11, %c0_12, %c0_13] : memref<2x8x8xf32, #tpu.memory_space<vmem>>, vector<2x8x8xf32>
      %c0_14 = arith.constant 0 : index
      %c0_15 = arith.constant 0 : index
      %c0_16 = arith.constant 0 : index
      %19 = vector.load %arg12[%c0_14, %c0_15, %c0_16] : memref<1x128x384xbf16, #tpu.memory_space<vmem>>, vector<1x128x384xbf16>
      %20 = vector.shape_cast %19 : vector<1x128x384xbf16> to vector<128x384xbf16>
      %21 = arith.truncf %17 : vector<16x128xf32> to vector<16x128xbf16>
      %cst = arith.constant dense<0.000000e+00> : vector<16x384xf32>
      %22 = tpu.matmul %21, %20, %cst {dimension_numbers = #tpu.dot_dimension_numbers<[1], [0], [0], [1], [0, 0, 1, 1], [], []>} : vector<16x128xbf16>, vector<128x384xbf16>, vector<16x384xf32> -> vector<16x384xf32>
      %23 = vector.extract_strided_slice %22 {offsets = [0, 0], sizes = [16, 128], strides = [1, 1]} : vector<16x384xf32> to vector<16x128xf32>
      %24 = vector.extract_strided_slice %16 {offsets = [0, 0], sizes = [1, 128], strides = [1, 1]} : vector<16x128xf32> to vector<1x128xf32>
      %25 = vector.broadcast %24 : vector<1x128xf32> to vector<16x128xf32>
      %26 = arith.addf %23, %25 : vector<16x128xf32>
      %27 = vector.extract_strided_slice %22 {offsets = [0, 128], sizes = [16, 128], strides = [1, 1]} : vector<16x384xf32> to vector<16x128xf32>
      %28 = vector.extract_strided_slice %16 {offsets = [1, 0], sizes = [1, 128], strides = [1, 1]} : vector<16x128xf32> to vector<1x128xf32>
      %29 = vector.broadcast %28 : vector<1x128xf32> to vector<16x128xf32>
      %30 = arith.addf %27, %29 : vector<16x128xf32>
      %31 = vector.extract_strided_slice %22 {offsets = [0, 256], sizes = [16, 128], strides = [1, 1]} : vector<16x384xf32> to vector<16x128xf32>
      %32 = vector.extract_strided_slice %16 {offsets = [2, 0], sizes = [1, 128], strides = [1, 1]} : vector<16x128xf32> to vector<1x128xf32>
      %33 = vector.broadcast %32 : vector<1x128xf32> to vector<16x128xf32>
      %34 = arith.addf %31, %33 : vector<16x128xf32>
      %cst_17 = arith.constant 0.000000e+00 : f32
      %35 = vector.broadcast %cst_17 : f32 to vector<16x128xf32>
      %36 = vector.extract_strided_slice %26 {offsets = [0, 0], sizes = [16, 32], strides = [1, 1]} : vector<16x128xf32> to vector<16x32xf32>
      %37 = vector.shape_cast %36 : vector<16x32xf32> to vector<2x8x32xf32>
      %38 = arith.truncf %37 : vector<2x8x32xf32> to vector<2x8x32xbf16>
      %39 = vector.extract_strided_slice %30 {offsets = [0, 0], sizes = [16, 32], strides = [1, 1]} : vector<16x128xf32> to vector<16x32xf32>
      %40 = vector.shape_cast %39 : vector<16x32xf32> to vector<2x8x32xf32>
      %41 = arith.truncf %40 : vector<2x8x32xf32> to vector<2x8x32xbf16>
      %42 = vector.extract_strided_slice %34 {offsets = [0, 0], sizes = [16, 32], strides = [1, 1]} : vector<16x128xf32> to vector<16x32xf32>
      %43 = vector.shape_cast %42 : vector<16x32xf32> to vector<2x8x32xf32>
      %44 = arith.truncf %43 : vector<2x8x32xf32> to vector<2x8x32xbf16>
      "tpu.trace_start"() <{level = 10 : i32, message = "bqd,bkd->bqk"}> : () -> ()
      %cst_18 = arith.constant dense<0.000000e+00> : vector<2x8x8xf32>
      %45 = tpu.matmul %38, %41, %cst_18 {dimension_numbers = #tpu.dot_dimension_numbers<[2], [2], [1], [1], [0, 0, 0, 1, 1, 1], [0], [0]>} : vector<2x8x32xbf16>, vector<2x8x32xbf16>, vector<2x8x8xf32> -> vector<2x8x8xf32>
      "tpu.trace_stop"() : () -> ()
      %cst_19 = arith.constant 0.176776692 : f32
      %46 = vector.broadcast %cst_19 : f32 to vector<2x8x8xf32>
      %47 = arith.mulf %45, %46 : vector<2x8x8xf32>
      %48 = arith.addf %47, %18 : vector<2x8x8xf32>
      %cst_20 = arith.constant dense<0xFF800000> : vector<2x8xf32>
      %49 = vector.multi_reduction <maximumf>, %48, %cst_20 [2] : vector<2x8x8xf32> to vector<2x8xf32>
      %50 = vector.shape_cast %49 : vector<2x8xf32> to vector<2x8x1xf32>
      %51 = vector.broadcast %50 : vector<2x8x1xf32> to vector<2x8x8xf32>
      %52 = arith.subf %48, %51 : vector<2x8x8xf32>
      %53 = math.exp %52 : vector<2x8x8xf32>
      %cst_21 = arith.constant dense<0.000000e+00> : vector<2x8xf32>
      %54 = vector.multi_reduction <add>, %53, %cst_21 [2] : vector<2x8x8xf32> to vector<2x8xf32>
      %55 = vector.shape_cast %54 : vector<2x8xf32> to vector<2x8x1xf32>
      %56 = tpu.reciprocal %55 {approx = true} : vector<2x8x1xf32> -> vector<2x8x1xf32>
      %57 = vector.broadcast %56 : vector<2x8x1xf32> to vector<2x8x8xf32>
      %58 = arith.mulf %53, %57 : vector<2x8x8xf32>
      %59 = arith.truncf %58 : vector<2x8x8xf32> to vector<2x8x8xbf16>
      "tpu.trace_start"() <{level = 10 : i32, message = "bqk,bkd->bqd"}> : () -> ()
      %cst_22 = arith.constant dense<0.000000e+00> : vector<2x8x32xf32>
      %60 = tpu.matmul %59, %44, %cst_22 {dimension_numbers = #tpu.dot_dimension_numbers<[2], [1], [1], [2], [0, 0, 0, 1, 1, 2], [0], [0]>} : vector<2x8x8xbf16>, vector<2x8x32xbf16>, vector<2x8x32xf32> -> vector<2x8x32xf32>
      "tpu.trace_stop"() : () -> ()
      %61 = vector.shape_cast %60 : vector<2x8x32xf32> to vector<16x32xf32>
      %c0_23 = arith.constant 0 : index
      %c0_24 = arith.constant 0 : index
      %c0_25 = arith.constant 0 : index
      %62 = vector.load %arg13[%c0_23, %c0_24, %c0_25] : memref<1x128x128xbf16, #tpu.memory_space<vmem>>, vector<1x32x128xbf16>
      %63 = vector.shape_cast %62 : vector<1x32x128xbf16> to vector<32x128xbf16>
      %64 = arith.truncf %61 : vector<16x32xf32> to vector<16x32xbf16>
      %cst_26 = arith.constant dense<0.000000e+00> : vector<16x128xf32>
      %65 = tpu.matmul %64, %63, %cst_26 {dimension_numbers = #tpu.dot_dimension_numbers<[1], [0], [0], [1], [0, 0, 1, 1], [], []>} : vector<16x32xbf16>, vector<32x128xbf16>, vector<16x128xf32> -> vector<16x128xf32>
      %66 = arith.addf %35, %65 : vector<16x128xf32>
      %67 = vector.extract_strided_slice %26 {offsets = [0, 32], sizes = [16, 32], strides = [1, 1]} : vector<16x128xf32> to vector<16x32xf32>
      %68 = vector.shape_cast %67 : vector<16x32xf32> to vector<2x8x32xf32>
      %69 = arith.truncf %68 : vector<2x8x32xf32> to vector<2x8x32xbf16>
      %70 = vector.extract_strided_slice %30 {offsets = [0, 32], sizes = [16, 32], strides = [1, 1]} : vector<16x128xf32> to vector<16x32xf32>
      %71 = vector.shape_cast %70 : vector<16x32xf32> to vector<2x8x32xf32>
      %72 = arith.truncf %71 : vector<2x8x32xf32> to vector<2x8x32xbf16>
      %73 = vector.extract_strided_slice %34 {offsets = [0, 32], sizes = [16, 32], strides = [1, 1]} : vector<16x128xf32> to vector<16x32xf32>
      %74 = vector.shape_cast %73 : vector<16x32xf32> to vector<2x8x32xf32>
      %75 = arith.truncf %74 : vector<2x8x32xf32> to vector<2x8x32xbf16>
      "tpu.trace_start"() <{level = 10 : i32, message = "bqd,bkd->bqk"}> : () -> ()
      %cst_27 = arith.constant dense<0.000000e+00> : vector<2x8x8xf32>
      %76 = tpu.matmul %69, %72, %cst_27 {dimension_numbers = #tpu.dot_dimension_numbers<[2], [2], [1], [1], [0, 0, 0, 1, 1, 1], [0], [0]>} : vector<2x8x32xbf16>, vector<2x8x32xbf16>, vector<2x8x8xf32> -> vector<2x8x8xf32>
      "tpu.trace_stop"() : () -> ()
      %cst_28 = arith.constant 0.176776692 : f32
      %77 = vector.broadcast %cst_28 : f32 to vector<2x8x8xf32>
      %78 = arith.mulf %76, %77 : vector<2x8x8xf32>
      %79 = arith.addf %78, %18 : vector<2x8x8xf32>
      %cst_29 = arith.constant dense<0xFF800000> : vector<2x8xf32>
      %80 = vector.multi_reduction <maximumf>, %79, %cst_29 [2] : vector<2x8x8xf32> to vector<2x8xf32>
      %81 = vector.shape_cast %80 : vector<2x8xf32> to vector<2x8x1xf32>
      %82 = vector.broadcast %81 : vector<2x8x1xf32> to vector<2x8x8xf32>
      %83 = arith.subf %79, %82 : vector<2x8x8xf32>
      %84 = math.exp %83 : vector<2x8x8xf32>
      %cst_30 = arith.constant dense<0.000000e+00> : vector<2x8xf32>
      %85 = vector.multi_reduction <add>, %84, %cst_30 [2] : vector<2x8x8xf32> to vector<2x8xf32>
      %86 = vector.shape_cast %85 : vector<2x8xf32> to vector<2x8x1xf32>
      %87 = tpu.reciprocal %86 {approx = true} : vector<2x8x1xf32> -> vector<2x8x1xf32>
      %88 = vector.broadcast %87 : vector<2x8x1xf32> to vector<2x8x8xf32>
      %89 = arith.mulf %84, %88 : vector<2x8x8xf32>
      %90 = arith.truncf %89 : vector<2x8x8xf32> to vector<2x8x8xbf16>
      "tpu.trace_start"() <{level = 10 : i32, message = "bqk,bkd->bqd"}> : () -> ()
      %cst_31 = arith.constant dense<0.000000e+00> : vector<2x8x32xf32>
      %91 = tpu.matmul %90, %75, %cst_31 {dimension_numbers = #tpu.dot_dimension_numbers<[2], [1], [1], [2], [0, 0, 0, 1, 1, 2], [0], [0]>} : vector<2x8x8xbf16>, vector<2x8x32xbf16>, vector<2x8x32xf32> -> vector<2x8x32xf32>
      "tpu.trace_stop"() : () -> ()
      %92 = vector.shape_cast %91 : vector<2x8x32xf32> to vector<16x32xf32>
      %c0_32 = arith.constant 0 : index
      %c32 = arith.constant 32 : index
      %c0_33 = arith.constant 0 : index
      %93 = vector.load %arg13[%c0_32, %c32, %c0_33] : memref<1x128x128xbf16, #tpu.memory_space<vmem>>, vector<1x32x128xbf16>
      %94 = vector.shape_cast %93 : vector<1x32x128xbf16> to vector<32x128xbf16>
      %95 = arith.truncf %92 : vector<16x32xf32> to vector<16x32xbf16>
      %cst_34 = arith.constant dense<0.000000e+00> : vector<16x128xf32>
      %96 = tpu.matmul %95, %94, %cst_34 {dimension_numbers = #tpu.dot_dimension_numbers<[1], [0], [0], [1], [0, 0, 1, 1], [], []>} : vector<16x32xbf16>, vector<32x128xbf16>, vector<16x128xf32> -> vector<16x128xf32>
      %97 = arith.addf %66, %96 : vector<16x128xf32>
      %98 = vector.extract_strided_slice %26 {offsets = [0, 64], sizes = [16, 32], strides = [1, 1]} : vector<16x128xf32> to vector<16x32xf32>
      %99 = vector.shape_cast %98 : vector<16x32xf32> to vector<2x8x32xf32>
      %100 = arith.truncf %99 : vector<2x8x32xf32> to vector<2x8x32xbf16>
      %101 = vector.extract_strided_slice %30 {offsets = [0, 64], sizes = [16, 32], strides = [1, 1]} : vector<16x128xf32> to vector<16x32xf32>
      %102 = vector.shape_cast %101 : vector<16x32xf32> to vector<2x8x32xf32>
      %103 = arith.truncf %102 : vector<2x8x32xf32> to vector<2x8x32xbf16>
      %104 = vector.extract_strided_slice %34 {offsets = [0, 64], sizes = [16, 32], strides = [1, 1]} : vector<16x128xf32> to vector<16x32xf32>
      %105 = vector.shape_cast %104 : vector<16x32xf32> to vector<2x8x32xf32>
      %106 = arith.truncf %105 : vector<2x8x32xf32> to vector<2x8x32xbf16>
      "tpu.trace_start"() <{level = 10 : i32, message = "bqd,bkd->bqk"}> : () -> ()
      %cst_35 = arith.constant dense<0.000000e+00> : vector<2x8x8xf32>
      %107 = tpu.matmul %100, %103, %cst_35 {dimension_numbers = #tpu.dot_dimension_numbers<[2], [2], [1], [1], [0, 0, 0, 1, 1, 1], [0], [0]>} : vector<2x8x32xbf16>, vector<2x8x32xbf16>, vector<2x8x8xf32> -> vector<2x8x8xf32>
      "tpu.trace_stop"() : () -> ()
      %cst_36 = arith.constant 0.176776692 : f32
      %108 = vector.broadcast %cst_36 : f32 to vector<2x8x8xf32>
      %109 = arith.mulf %107, %108 : vector<2x8x8xf32>
      %110 = arith.addf %109, %18 : vector<2x8x8xf32>
      %cst_37 = arith.constant dense<0xFF800000> : vector<2x8xf32>
      %111 = vector.multi_reduction <maximumf>, %110, %cst_37 [2] : vector<2x8x8xf32> to vector<2x8xf32>
      %112 = vector.shape_cast %111 : vector<2x8xf32> to vector<2x8x1xf32>
      %113 = vector.broadcast %112 : vector<2x8x1xf32> to vector<2x8x8xf32>
      %114 = arith.subf %110, %113 : vector<2x8x8xf32>
      %115 = math.exp %114 : vector<2x8x8xf32>
      %cst_38 = arith.constant dense<0.000000e+00> : vector<2x8xf32>
      %116 = vector.multi_reduction <add>, %115, %cst_38 [2] : vector<2x8x8xf32> to vector<2x8xf32>
      %117 = vector.shape_cast %116 : vector<2x8xf32> to vector<2x8x1xf32>
      %118 = tpu.reciprocal %117 {approx = true} : vector<2x8x1xf32> -> vector<2x8x1xf32>
      %119 = vector.broadcast %118 : vector<2x8x1xf32> to vector<2x8x8xf32>
      %120 = arith.mulf %115, %119 : vector<2x8x8xf32>
      %121 = arith.truncf %120 : vector<2x8x8xf32> to vector<2x8x8xbf16>
      "tpu.trace_start"() <{level = 10 : i32, message = "bqk,bkd->bqd"}> : () -> ()
      %cst_39 = arith.constant dense<0.000000e+00> : vector<2x8x32xf32>
      %122 = tpu.matmul %121, %106, %cst_39 {dimension_numbers = #tpu.dot_dimension_numbers<[2], [1], [1], [2], [0, 0, 0, 1, 1, 2], [0], [0]>} : vector<2x8x8xbf16>, vector<2x8x32xbf16>, vector<2x8x32xf32> -> vector<2x8x32xf32>
      "tpu.trace_stop"() : () -> ()
      %123 = vector.shape_cast %122 : vector<2x8x32xf32> to vector<16x32xf32>
      %c0_40 = arith.constant 0 : index
      %c64 = arith.constant 64 : index
      %c0_41 = arith.constant 0 : index
      %124 = vector.load %arg13[%c0_40, %c64, %c0_41] : memref<1x128x128xbf16, #tpu.memory_space<vmem>>, vector<1x32x128xbf16>
      %125 = vector.shape_cast %124 : vector<1x32x128xbf16> to vector<32x128xbf16>
      %126 = arith.truncf %123 : vector<16x32xf32> to vector<16x32xbf16>
      %cst_42 = arith.constant dense<0.000000e+00> : vector<16x128xf32>
      %127 = tpu.matmul %126, %125, %cst_42 {dimension_numbers = #tpu.dot_dimension_numbers<[1], [0], [0], [1], [0, 0, 1, 1], [], []>} : vector<16x32xbf16>, vector<32x128xbf16>, vector<16x128xf32> -> vector<16x128xf32>
      %128 = arith.addf %97, %127 : vector<16x128xf32>
      %129 = vector.extract_strided_slice %26 {offsets = [0, 96], sizes = [16, 32], strides = [1, 1]} : vector<16x128xf32> to vector<16x32xf32>
      %130 = vector.shape_cast %129 : vector<16x32xf32> to vector<2x8x32xf32>
      %131 = arith.truncf %130 : vector<2x8x32xf32> to vector<2x8x32xbf16>
      %132 = vector.extract_strided_slice %30 {offsets = [0, 96], sizes = [16, 32], strides = [1, 1]} : vector<16x128xf32> to vector<16x32xf32>
      %133 = vector.shape_cast %132 : vector<16x32xf32> to vector<2x8x32xf32>
      %134 = arith.truncf %133 : vector<2x8x32xf32> to vector<2x8x32xbf16>
      %135 = vector.extract_strided_slice %34 {offsets = [0, 96], sizes = [16, 32], strides = [1, 1]} : vector<16x128xf32> to vector<16x32xf32>
      %136 = vector.shape_cast %135 : vector<16x32xf32> to vector<2x8x32xf32>
      %137 = arith.truncf %136 : vector<2x8x32xf32> to vector<2x8x32xbf16>
      "tpu.trace_start"() <{level = 10 : i32, message = "bqd,bkd->bqk"}> : () -> ()
      %cst_43 = arith.constant dense<0.000000e+00> : vector<2x8x8xf32>
      %138 = tpu.matmul %131, %134, %cst_43 {dimension_numbers = #tpu.dot_dimension_numbers<[2], [2], [1], [1], [0, 0, 0, 1, 1, 1], [0], [0]>} : vector<2x8x32xbf16>, vector<2x8x32xbf16>, vector<2x8x8xf32> -> vector<2x8x8xf32>
      "tpu.trace_stop"() : () -> ()
      %cst_44 = arith.constant 0.176776692 : f32
      %139 = vector.broadcast %cst_44 : f32 to vector<2x8x8xf32>
      %140 = arith.mulf %138, %139 : vector<2x8x8xf32>
      %141 = arith.addf %140, %18 : vector<2x8x8xf32>
      %cst_45 = arith.constant dense<0xFF800000> : vector<2x8xf32>
      %142 = vector.multi_reduction <maximumf>, %141, %cst_45 [2] : vector<2x8x8xf32> to vector<2x8xf32>
      %143 = vector.shape_cast %142 : vector<2x8xf32> to vector<2x8x1xf32>
      %144 = vector.broadcast %143 : vector<2x8x1xf32> to vector<2x8x8xf32>
      %145 = arith.subf %141, %144 : vector<2x8x8xf32>
      %146 = math.exp %145 : vector<2x8x8xf32>
      %cst_46 = arith.constant dense<0.000000e+00> : vector<2x8xf32>
      %147 = vector.multi_reduction <add>, %146, %cst_46 [2] : vector<2x8x8xf32> to vector<2x8xf32>
      %148 = vector.shape_cast %147 : vector<2x8xf32> to vector<2x8x1xf32>
      %149 = tpu.reciprocal %148 {approx = true} : vector<2x8x1xf32> -> vector<2x8x1xf32>
      %150 = vector.broadcast %149 : vector<2x8x1xf32> to vector<2x8x8xf32>
      %151 = arith.mulf %146, %150 : vector<2x8x8xf32>
      %152 = arith.truncf %151 : vector<2x8x8xf32> to vector<2x8x8xbf16>
      "tpu.trace_start"() <{level = 10 : i32, message = "bqk,bkd->bqd"}> : () -> ()
      %cst_47 = arith.constant dense<0.000000e+00> : vector<2x8x32xf32>
      %153 = tpu.matmul %152, %137, %cst_47 {dimension_numbers = #tpu.dot_dimension_numbers<[2], [1], [1], [2], [0, 0, 0, 1, 1, 2], [0], [0]>} : vector<2x8x8xbf16>, vector<2x8x32xbf16>, vector<2x8x32xf32> -> vector<2x8x32xf32>
      "tpu.trace_stop"() : () -> ()
      %154 = vector.shape_cast %153 : vector<2x8x32xf32> to vector<16x32xf32>
      %c0_48 = arith.constant 0 : index
      %c96 = arith.constant 96 : index
      %c0_49 = arith.constant 0 : index
      %155 = vector.load %arg13[%c0_48, %c96, %c0_49] : memref<1x128x128xbf16, #tpu.memory_space<vmem>>, vector<1x32x128xbf16>
      %156 = vector.shape_cast %155 : vector<1x32x128xbf16> to vector<32x128xbf16>
      %157 = arith.truncf %154 : vector<16x32xf32> to vector<16x32xbf16>
      %cst_50 = arith.constant dense<0.000000e+00> : vector<16x128xf32>
      %158 = tpu.matmul %157, %156, %cst_50 {dimension_numbers = #tpu.dot_dimension_numbers<[1], [0], [0], [1], [0, 0, 1, 1], [], []>} : vector<16x32xbf16>, vector<32x128xbf16>, vector<16x128xf32> -> vector<16x128xf32>
      %159 = arith.addf %128, %158 : vector<16x128xf32>
      %160 = vector.extract_strided_slice %16 {offsets = [3, 0], sizes = [1, 128], strides = [1, 1]} : vector<16x128xf32> to vector<1x128xf32>
      %161 = vector.broadcast %160 : vector<1x128xf32> to vector<16x128xf32>
      %162 = arith.addf %159, %161 : vector<16x128xf32>
      %163 = arith.addf %17, %162 : vector<16x128xf32>
      %164 = vector.extract_strided_slice %16 {offsets = [4, 0], sizes = [1, 128], strides = [1, 1]} : vector<16x128xf32> to vector<1x128xf32>
      %165 = vector.extract_strided_slice %16 {offsets = [5, 0], sizes = [1, 128], strides = [1, 1]} : vector<16x128xf32> to vector<1x128xf32>
      %cst_51 = arith.constant dense<0.000000e+00> : vector<16xf32>
      %166 = vector.multi_reduction <add>, %163, %cst_51 [1] : vector<16x128xf32> to vector<16xf32>
      %167 = vector.shape_cast %166 : vector<16xf32> to vector<16x1xf32>
      %cst_52 = arith.constant 1.280000e+02 : f32
      %168 = vector.broadcast %cst_52 : f32 to vector<16x1xf32>
      %169 = arith.divf %167, %168 : vector<16x1xf32>
      %170 = vector.broadcast %169 : vector<16x1xf32> to vector<16x128xf32>
      %171 = arith.subf %163, %170 : vector<16x128xf32>
      %172 = arith.mulf %171, %171 : vector<16x128xf32>
      %cst_53 = arith.constant dense<0.000000e+00> : vector<16xf32>
      %173 = vector.multi_reduction <add>, %172, %cst_53 [1] : vector<16x128xf32> to vector<16xf32>
      %174 = vector.shape_cast %173 : vector<16xf32> to vector<16x1xf32>
      %cst_54 = arith.constant 1.280000e+02 : f32
      %175 = vector.broadcast %cst_54 : f32 to vector<16x1xf32>
      %176 = arith.divf %174, %175 : vector<16x1xf32>
      %cst_55 = arith.constant 9.99999974E-6 : f32
      %177 = vector.broadcast %cst_55 : f32 to vector<16x1xf32>
      %178 = arith.addf %176, %177 : vector<16x1xf32>
      %179 = math.rsqrt %178 : vector<16x1xf32>
      %180 = vector.broadcast %179 : vector<16x1xf32> to vector<16x128xf32>
      %181 = arith.mulf %171, %180 : vector<16x128xf32>
      %182 = vector.broadcast %164 : vector<1x128xf32> to vector<16x128xf32>
      %183 = arith.mulf %181, %182 : vector<16x128xf32>
      %184 = vector.broadcast %165 : vector<1x128xf32> to vector<16x128xf32>
      %185 = arith.addf %183, %184 : vector<16x128xf32>
      %c0_56 = arith.constant 0 : index
      %c0_57 = arith.constant 0 : index
      %186 = vector.load %arg26[%c0_56, %c0_57] : memref<2x128xf32, #tpu.memory_space<vmem>>, vector<2x128xf32>
      %c0_58 = arith.constant 0 : index
      %c0_59 = arith.constant 0 : index
      %c0_60 = arith.constant 0 : index
      %187 = vector.load %arg14[%c0_58, %c0_59, %c0_60] : memref<1x128x128xbf16, #tpu.memory_space<vmem>>, vector<1x128x128xbf16>
      %188 = vector.shape_cast %187 : vector<1x128x128xbf16> to vector<128x128xbf16>
      %189 = vector.extract_strided_slice %16 {offsets = [6, 0], sizes = [1, 128], strides = [1, 1]} : vector<16x128xf32> to vector<1x128xf32>
      %190 = arith.truncf %186 : vector<2x128xf32> to vector<2x128xbf16>
      %cst_61 = arith.constant dense<0.000000e+00> : vector<2x128xf32>
      %191 = tpu.matmul %190, %188, %cst_61 {dimension_numbers = #tpu.dot_dimension_numbers<[1], [0], [0], [1], [0, 0, 1, 1], [], []>} : vector<2x128xbf16>, vector<128x128xbf16>, vector<2x128xf32> -> vector<2x128xf32>
      %192 = vector.broadcast %189 : vector<1x128xf32> to vector<2x128xf32>
      %193 = arith.addf %191, %192 : vector<2x128xf32>
      %c0_62 = arith.constant 0 : index
      %c0_63 = arith.constant 0 : index
      %c0_64 = arith.constant 0 : index
      %194 = vector.load %arg15[%c0_62, %c0_63, %c0_64] : memref<1x128x128xbf16, #tpu.memory_space<vmem>>, vector<1x128x128xbf16>
      %195 = vector.shape_cast %194 : vector<1x128x128xbf16> to vector<128x128xbf16>
      %196 = vector.extract_strided_slice %16 {offsets = [7, 0], sizes = [1, 128], strides = [1, 1]} : vector<16x128xf32> to vector<1x128xf32>
      %197 = arith.truncf %193 : vector<2x128xf32> to vector<2x128xbf16>
      %cst_65 = arith.constant dense<0.000000e+00> : vector<2x128xf32>
      %198 = tpu.matmul %197, %195, %cst_65 {dimension_numbers = #tpu.dot_dimension_numbers<[1], [0], [0], [1], [0, 0, 1, 1], [], []>} : vector<2x128xbf16>, vector<128x128xbf16>, vector<2x128xf32> -> vector<2x128xf32>
      %199 = vector.broadcast %196 : vector<1x128xf32> to vector<2x128xf32>
      %200 = arith.addf %198, %199 : vector<2x128xf32>
      %201 = vector.shape_cast %200 : vector<2x128xf32> to vector<2x1x128xf32>
      %202 = vector.shape_cast %201 : vector<2x1x128xf32> to vector<2x1x128xf32>
      %203 = vector.broadcast %202 : vector<2x1x128xf32> to vector<2x8x128xf32>
      %204 = vector.shape_cast %203 : vector<2x8x128xf32> to vector<16x128xf32>
      %205 = arith.addf %185, %204 : vector<16x128xf32>
      %206 = vector.extract_strided_slice %16 {offsets = [8, 0], sizes = [1, 128], strides = [1, 1]} : vector<16x128xf32> to vector<1x128xf32>
      %207 = vector.extract_strided_slice %16 {offsets = [9, 0], sizes = [1, 128], strides = [1, 1]} : vector<16x128xf32> to vector<1x128xf32>
      %cst_66 = arith.constant dense<0.000000e+00> : vector<16xf32>
      %208 = vector.multi_reduction <add>, %205, %cst_66 [1] : vector<16x128xf32> to vector<16xf32>
      %209 = vector.shape_cast %208 : vector<16xf32> to vector<16x1xf32>
      %cst_67 = arith.constant 1.280000e+02 : f32
      %210 = vector.broadcast %cst_67 : f32 to vector<16x1xf32>
      %211 = arith.divf %209, %210 : vector<16x1xf32>
      %212 = vector.broadcast %211 : vector<16x1xf32> to vector<16x128xf32>
      %213 = arith.subf %205, %212 : vector<16x128xf32>
      %214 = arith.mulf %213, %213 : vector<16x128xf32>
      %cst_68 = arith.constant dense<0.000000e+00> : vector<16xf32>
      %215 = vector.multi_reduction <add>, %214, %cst_68 [1] : vector<16x128xf32> to vector<16xf32>
      %216 = vector.shape_cast %215 : vector<16xf32> to vector<16x1xf32>
      %cst_69 = arith.constant 1.280000e+02 : f32
      %217 = vector.broadcast %cst_69 : f32 to vector<16x1xf32>
      %218 = arith.divf %216, %217 : vector<16x1xf32>
      %cst_70 = arith.constant 9.99999974E-6 : f32
      %219 = vector.broadcast %cst_70 : f32 to vector<16x1xf32>
      %220 = arith.addf %218, %219 : vector<16x1xf32>
      %221 = math.rsqrt %220 : vector<16x1xf32>
      %222 = vector.broadcast %221 : vector<16x1xf32> to vector<16x128xf32>
      %223 = arith.mulf %213, %222 : vector<16x128xf32>
      %224 = vector.broadcast %206 : vector<1x128xf32> to vector<16x128xf32>
      %225 = arith.mulf %223, %224 : vector<16x128xf32>
      %226 = vector.broadcast %207 : vector<1x128xf32> to vector<16x128xf32>
      %227 = arith.addf %225, %226 : vector<16x128xf32>
      %c0_71 = arith.constant 0 : index
      %c0_72 = arith.constant 0 : index
      %c0_73 = arith.constant 0 : index
      %228 = vector.load %arg16[%c0_71, %c0_72, %c0_73] : memref<1x128x2048xbf16, #tpu.memory_space<vmem>>, vector<1x128x2048xbf16>
      %229 = vector.shape_cast %228 : vector<1x128x2048xbf16> to vector<128x2048xbf16>
      %c0_74 = arith.constant 0 : index
      %c0_75 = arith.constant 0 : index
      %c0_76 = arith.constant 0 : index
      %230 = vector.load %arg19[%c0_74, %c0_75, %c0_76] : memref<1x1x2048xf32, #tpu.memory_space<vmem>>, vector<1x1x2048xf32>
      %231 = vector.shape_cast %230 : vector<1x1x2048xf32> to vector<1x2048xf32>
      %232 = arith.truncf %227 : vector<16x128xf32> to vector<16x128xbf16>
      %cst_77 = arith.constant dense<0.000000e+00> : vector<16x2048xf32>
      %233 = tpu.matmul %232, %229, %cst_77 {dimension_numbers = #tpu.dot_dimension_numbers<[1], [0], [0], [1], [0, 0, 1, 1], [], []>} : vector<16x128xbf16>, vector<128x2048xbf16>, vector<16x2048xf32> -> vector<16x2048xf32>
      %234 = vector.broadcast %231 : vector<1x2048xf32> to vector<16x2048xf32>
      %235 = arith.addf %233, %234 : vector<16x2048xf32>
      %cst_78 = arith.constant 0.000000e+00 : f32
      %236 = vector.broadcast %cst_78 : f32 to vector<16x2048xf32>
      %237 = arith.maximumf %235, %236 : vector<16x2048xf32>
      %c0_79 = arith.constant 0 : index
      %c0_80 = arith.constant 0 : index
      %c0_81 = arith.constant 0 : index
      %238 = vector.load %arg17[%c0_79, %c0_80, %c0_81] : memref<1x2048x128xbf16, #tpu.memory_space<vmem>>, vector<1x2048x128xbf16>
      %239 = vector.shape_cast %238 : vector<1x2048x128xbf16> to vector<2048x128xbf16>
      %240 = vector.extract_strided_slice %16 {offsets = [10, 0], sizes = [1, 128], strides = [1, 1]} : vector<16x128xf32> to vector<1x128xf32>
      %241 = arith.truncf %237 : vector<16x2048xf32> to vector<16x2048xbf16>
      %cst_82 = arith.constant dense<0.000000e+00> : vector<16x128xf32>
      %242 = tpu.matmul %241, %239, %cst_82 {dimension_numbers = #tpu.dot_dimension_numbers<[1], [0], [0], [1], [0, 0, 1, 1], [], []>} : vector<16x2048xbf16>, vector<2048x128xbf16>, vector<16x128xf32> -> vector<16x128xf32>
      %243 = vector.broadcast %240 : vector<1x128xf32> to vector<16x128xf32>
      %244 = arith.addf %242, %243 : vector<16x128xf32>
      %245 = arith.addf %227, %244 : vector<16x128xf32>
      %246 = vector.extract_strided_slice %16 {offsets = [11, 0], sizes = [1, 128], strides = [1, 1]} : vector<16x128xf32> to vector<1x128xf32>
      %247 = vector.extract_strided_slice %16 {offsets = [12, 0], sizes = [1, 128], strides = [1, 1]} : vector<16x128xf32> to vector<1x128xf32>
      %cst_83 = arith.constant dense<0.000000e+00> : vector<16xf32>
      %248 = vector.multi_reduction <add>, %245, %cst_83 [1] : vector<16x128xf32> to vector<16xf32>
      %249 = vector.shape_cast %248 : vector<16xf32> to vector<16x1xf32>
      %cst_84 = arith.constant 1.280000e+02 : f32
      %250 = vector.broadcast %cst_84 : f32 to vector<16x1xf32>
      %251 = arith.divf %249, %250 : vector<16x1xf32>
      %252 = vector.broadcast %251 : vector<16x1xf32> to vector<16x128xf32>
      %253 = arith.subf %245, %252 : vector<16x128xf32>
      %254 = arith.mulf %253, %253 : vector<16x128xf32>
      %cst_85 = arith.constant dense<0.000000e+00> : vector<16xf32>
      %255 = vector.multi_reduction <add>, %254, %cst_85 [1] : vector<16x128xf32> to vector<16xf32>
      %256 = vector.shape_cast %255 : vector<16xf32> to vector<16x1xf32>
      %cst_86 = arith.constant 1.280000e+02 : f32
      %257 = vector.broadcast %cst_86 : f32 to vector<16x1xf32>
      %258 = arith.divf %256, %257 : vector<16x1xf32>
      %cst_87 = arith.constant 9.99999974E-6 : f32
      %259 = vector.broadcast %cst_87 : f32 to vector<16x1xf32>
      %260 = arith.addf %258, %259 : vector<16x1xf32>
      %261 = math.rsqrt %260 : vector<16x1xf32>
      %262 = vector.broadcast %261 : vector<16x1xf32> to vector<16x128xf32>
      %263 = arith.mulf %253, %262 : vector<16x128xf32>
      %264 = vector.broadcast %246 : vector<1x128xf32> to vector<16x128xf32>
      %265 = arith.mulf %263, %264 : vector<16x128xf32>
      %266 = vector.broadcast %247 : vector<1x128xf32> to vector<16x128xf32>
      %267 = arith.addf %265, %266 : vector<16x128xf32>
      %c0_88 = arith.constant 0 : index
      %c0_89 = arith.constant 0 : index
      %268 = vector.load %arg27[%c0_88, %c0_89] : memref<16x128xf32, #tpu.memory_space<vmem>>, vector<16x128xf32>
      tpu.vector_store %arg27[%c0_88, %c0_89], %267 {strides = array<i32>} : memref<16x128xf32, #tpu.memory_space<vmem>>, vector<16x128xf32>,
    } else {
    }
    %c3_i32 = arith.constant 3 : i32
    %12 = arith.cmpi eq, %arg0, %c3_i32 : i32
    %13 = arith.extui %12 : i1 to i32
    %c0_i32_6 = arith.constant 0 : i32
    %14 = arith.cmpi ne, %13, %c0_i32_6 : i32
    scf.if %14 {
      %c0 = arith.constant 0 : index
      %c0_7 = arith.constant 0 : index
      %15 = vector.load %arg27[%c0, %c0_7] : memref<16x128xf32, #tpu.memory_space<vmem>>, vector<16x128xf32>
      %16 = vector.shape_cast %15 : vector<16x128xf32> to vector<2x8x128xf32>
      %17 = vector.extract_strided_slice %16 {offsets = [0, 7, 0], sizes = [2, 1, 128], strides = [1, 1, 1]} : vector<2x8x128xf32> to vector<2x1x128xf32>
      %18 = vector.shape_cast %17 : vector<2x1x128xf32> to vector<2x128xf32>
      %c0_8 = arith.constant 0 : index
      %c0_9 = arith.constant 0 : index
      %19 = vector.load %arg20[%c0_8, %c0_9] : memref<128x160xbf16, #tpu.memory_space<vmem>>, vector<128x160xbf16>
      %20 = arith.truncf %18 : vector<2x128xf32> to vector<2x128xbf16>
      %cst = arith.constant dense<0.000000e+00> : vector<2x160xf32>
      %21 = tpu.matmul %20, %19, %cst {dimension_numbers = #tpu.dot_dimension_numbers<[1], [0], [0], [1], [0, 0, 1, 1], [], []>} : vector<2x128xbf16>, vector<128x160xbf16>, vector<2x160xf32> -> vector<2x160xf32>
      %22 = vector.extract_strided_slice %21 {offsets = [0, 128], sizes = [2, 32], strides = [1, 1]} : vector<2x160xf32> to vector<2x32xf32>
      %c0_10 = arith.constant 0 : index
      %c0_11 = arith.constant 0 : index
      %23 = vector.load %arg24[%c0_10, %c0_11] : memref<2x32xf32, #tpu.memory_space<vmem>>, vector<2x32xf32>
      tpu.vector_store %arg24[%c0_10, %c0_11], %22 {strides = array<i32>} : memref<2x32xf32, #tpu.memory_space<vmem>>, vector<2x32xf32>,
      %24 = vector.extract_strided_slice %21 {offsets = [0, 0], sizes = [2, 128], strides = [1, 1]} : vector<2x160xf32> to vector<2x128xf32>
      %c0_12 = arith.constant 0 : index
      %c0_13 = arith.constant 0 : index
      %25 = vector.load %arg21[%c0_12, %c0_13] : memref<1x128xf32, #tpu.memory_space<vmem>>, vector<1x128xf32>
      %26 = vector.broadcast %25 : vector<1x128xf32> to vector<2x128xf32>
      %27 = arith.addf %24, %26 : vector<2x128xf32>
      %28 = math.tanh %27 : vector<2x128xf32>
      %c0_14 = arith.constant 0 : index
      %c0_15 = arith.constant 0 : index
      %29 = vector.load %arg22[%c0_14, %c0_15] : memref<1x128xf32, #tpu.memory_space<vmem>>, vector<1x128xf32>
      %30 = vector.broadcast %29 : vector<1x128xf32> to vector<2x128xf32>
      %31 = arith.mulf %28, %30 : vector<2x128xf32>
      %cst_16 = arith.constant dense<0.000000e+00> : vector<2xf32>
      %32 = vector.multi_reduction <add>, %31, %cst_16 [1] : vector<2x128xf32> to vector<2xf32>
      %33 = vector.shape_cast %32 : vector<2xf32> to vector<2x1xf32>
      %c0_17 = arith.constant 0 : index
      %c0_18 = arith.constant 0 : index
      %34 = vector.load %arg23[%c0_17, %c0_18] : memref<1x1xf32, #tpu.memory_space<vmem>>, vector<1x1xf32>
      %35 = vector.broadcast %34 : vector<1x1xf32> to vector<2x1xf32>
      %36 = arith.addf %33, %35 : vector<2x1xf32>
      %c0_19 = arith.constant 0 : index
      %c0_20 = arith.constant 0 : index
      %37 = vector.load %arg25[%c0_19, %c0_20] : memref<2x1xf32, #tpu.memory_space<vmem>>, vector<2x1xf32>
      tpu.vector_store %arg25[%c0_19, %c0_20], %36 {strides = array<i32>} : memref<2x1xf32, #tpu.memory_space<vmem>>, vector<2x1xf32>,
    } else {
    }
    return
  }
  func.func @transform_0(%arg0: i32) -> (i32, i32) {
    %c0_i32 = arith.constant 0 : i32
    %c0_i32_0 = arith.constant 0 : i32
    %c0_i32_1 = arith.constant 0 : i32
    return %c0_i32, %c0_i32_0 : i32, i32
  }
  func.func @transform_1(%arg0: i32) -> (i32, i32) {
    %c0_i32 = arith.constant 0 : i32
    %c0_i32_0 = arith.constant 0 : i32
    %c0_i32_1 = arith.constant 0 : i32
    return %c0_i32, %c0_i32_0 : i32, i32
  }
  func.func @transform_2(%arg0: i32) -> (i32, i32) {
    %c0_i32 = arith.constant 0 : i32
    %c0_i32_0 = arith.constant 0 : i32
    %c0_i32_1 = arith.constant 0 : i32
    return %c0_i32, %c0_i32_0 : i32, i32
  }
  func.func @transform_3(%arg0: i32) -> (i32, i32) {
    %c0_i32 = arith.constant 0 : i32
    %c0_i32_0 = arith.constant 0 : i32
    %c0_i32_1 = arith.constant 0 : i32
    return %c0_i32, %c0_i32_0 : i32, i32
  }
  func.func @transform_4(%arg0: i32) -> (i32, i32, i32) {
    %c0_i32 = arith.constant 0 : i32
    %c0_i32_0 = arith.constant 0 : i32
    %c0_i32_1 = arith.constant 0 : i32
    %c0_i32_2 = arith.constant 0 : i32
    return %c0_i32, %c0_i32_0, %c0_i32_1 : i32, i32, i32
  }
  func.func @transform_5(%arg0: i32) -> (i32, i32, i32) {
    %c1_i32 = arith.constant 1 : i32
    %0 = arith.minsi %arg0, %c1_i32 : i32
    %c0_i32 = arith.constant 0 : i32
    %c0_i32_0 = arith.constant 0 : i32
    %c0_i32_1 = arith.constant 0 : i32
    return %0, %c0_i32, %c0_i32_0 : i32, i32, i32
  }
  func.func @transform_6(%arg0: i32) -> (i32, i32, i32) {
    %c1_i32 = arith.constant 1 : i32
    %0 = arith.minsi %arg0, %c1_i32 : i32
    %c0_i32 = arith.constant 0 : i32
    %c0_i32_0 = arith.constant 0 : i32
    %c0_i32_1 = arith.constant 0 : i32
    return %0, %c0_i32, %c0_i32_0 : i32, i32, i32
  }
  func.func @transform_7(%arg0: i32) -> (i32, i32, i32) {
    %c1_i32 = arith.constant 1 : i32
    %0 = arith.minsi %arg0, %c1_i32 : i32
    %c0_i32 = arith.constant 0 : i32
    %c0_i32_0 = arith.constant 0 : i32
    %c0_i32_1 = arith.constant 0 : i32
    return %0, %c0_i32, %c0_i32_0 : i32, i32, i32
  }
  func.func @transform_8(%arg0: i32) -> (i32, i32, i32) {
    %c1_i32 = arith.constant 1 : i32
    %0 = arith.minsi %arg0, %c1_i32 : i32
    %c0_i32 = arith.constant 0 : i32
    %c0_i32_0 = arith.constant 0 : i32
    %c0_i32_1 = arith.constant 0 : i32
    return %0, %c0_i32, %c0_i32_0 : i32, i32, i32
  }
  func.func @transform_9(%arg0: i32) -> (i32, i32, i32) {
    %c1_i32 = arith.constant 1 : i32
    %0 = arith.minsi %arg0, %c1_i32 : i32
    %c0_i32 = arith.constant 0 : i32
    %c0_i32_0 = arith.constant 0 : i32
    %c0_i32_1 = arith.constant 0 : i32
    return %0, %c0_i32, %c0_i32_0 : i32, i32, i32
  }
  func.func @transform_10(%arg0: i32) -> (i32, i32, i32) {
    %c1_i32 = arith.constant 1 : i32
    %0 = arith.minsi %arg0, %c1_i32 : i32
    %c0_i32 = arith.constant 0 : i32
    %c0_i32_0 = arith.constant 0 : i32
    %c0_i32_1 = arith.constant 0 : i32
    return %0, %c0_i32, %c0_i32_0 : i32, i32, i32
  }
  func.func @transform_11(%arg0: i32) -> (i32, i32, i32) {
    %c2_i32 = arith.constant 2 : i32
    %0 = arith.subi %arg0, %c2_i32 : i32
    %c0_i32 = arith.constant 0 : i32
    %1 = arith.maxsi %0, %c0_i32 : i32
    %c0_i32_0 = arith.constant 0 : i32
    %c0_i32_1 = arith.constant 0 : i32
    %c0_i32_2 = arith.constant 0 : i32
    return %1, %c0_i32_0, %c0_i32_1 : i32, i32, i32
  }
  func.func @transform_12(%arg0: i32) -> (i32, i32, i32) {
    %c2_i32 = arith.constant 2 : i32
    %0 = arith.subi %arg0, %c2_i32 : i32
    %c0_i32 = arith.constant 0 : i32
    %1 = arith.maxsi %0, %c0_i32 : i32
    %c0_i32_0 = arith.constant 0 : i32
    %c0_i32_1 = arith.constant 0 : i32
    %c0_i32_2 = arith.constant 0 : i32
    return %1, %c0_i32_0, %c0_i32_1 : i32, i32, i32
  }
  func.func @transform_13(%arg0: i32) -> (i32, i32, i32) {
    %c2_i32 = arith.constant 2 : i32
    %0 = arith.subi %arg0, %c2_i32 : i32
    %c0_i32 = arith.constant 0 : i32
    %1 = arith.maxsi %0, %c0_i32 : i32
    %c0_i32_0 = arith.constant 0 : i32
    %c0_i32_1 = arith.constant 0 : i32
    %c0_i32_2 = arith.constant 0 : i32
    return %1, %c0_i32_0, %c0_i32_1 : i32, i32, i32
  }
  func.func @transform_14(%arg0: i32) -> (i32, i32, i32) {
    %c2_i32 = arith.constant 2 : i32
    %0 = arith.subi %arg0, %c2_i32 : i32
    %c0_i32 = arith.constant 0 : i32
    %1 = arith.maxsi %0, %c0_i32 : i32
    %c0_i32_0 = arith.constant 0 : i32
    %c0_i32_1 = arith.constant 0 : i32
    %c0_i32_2 = arith.constant 0 : i32
    return %1, %c0_i32_0, %c0_i32_1 : i32, i32, i32
  }
  func.func @transform_15(%arg0: i32) -> (i32, i32, i32) {
    %c2_i32 = arith.constant 2 : i32
    %0 = arith.subi %arg0, %c2_i32 : i32
    %c0_i32 = arith.constant 0 : i32
    %1 = arith.maxsi %0, %c0_i32 : i32
    %c0_i32_0 = arith.constant 0 : i32
    %c0_i32_1 = arith.constant 0 : i32
    %c0_i32_2 = arith.constant 0 : i32
    return %1, %c0_i32_0, %c0_i32_1 : i32, i32, i32
  }
  func.func @transform_16(%arg0: i32) -> (i32, i32, i32) {
    %c2_i32 = arith.constant 2 : i32
    %0 = arith.subi %arg0, %c2_i32 : i32
    %c0_i32 = arith.constant 0 : i32
    %1 = arith.maxsi %0, %c0_i32 : i32
    %c0_i32_0 = arith.constant 0 : i32
    %c0_i32_1 = arith.constant 0 : i32
    %c0_i32_2 = arith.constant 0 : i32
    return %1, %c0_i32_0, %c0_i32_1 : i32, i32, i32
  }
  func.func @transform_17(%arg0: i32) -> (i32, i32, i32) {
    %c2_i32 = arith.constant 2 : i32
    %0 = arith.subi %arg0, %c2_i32 : i32
    %c0_i32 = arith.constant 0 : i32
    %1 = arith.maxsi %0, %c0_i32 : i32
    %c0_i32_0 = arith.constant 0 : i32
    %c0_i32_1 = arith.constant 0 : i32
    %c0_i32_2 = arith.constant 0 : i32
    return %1, %c0_i32_0, %c0_i32_1 : i32, i32, i32
  }
  func.func @transform_18(%arg0: i32) -> (i32, i32, i32) {
    %c2_i32 = arith.constant 2 : i32
    %0 = arith.subi %arg0, %c2_i32 : i32
    %c0_i32 = arith.constant 0 : i32
    %1 = arith.maxsi %0, %c0_i32 : i32
    %c0_i32_0 = arith.constant 0 : i32
    %c0_i32_1 = arith.constant 0 : i32
    %c0_i32_2 = arith.constant 0 : i32
    return %1, %c0_i32_0, %c0_i32_1 : i32, i32, i32
  }
  func.func @transform_19(%arg0: i32) -> (i32, i32) {
    %c0_i32 = arith.constant 0 : i32
    %c0_i32_0 = arith.constant 0 : i32
    %c0_i32_1 = arith.constant 0 : i32
    return %c0_i32, %c0_i32_0 : i32, i32
  }
  func.func @transform_20(%arg0: i32) -> (i32, i32) {
    %c0_i32 = arith.constant 0 : i32
    %c0_i32_0 = arith.constant 0 : i32
    %c0_i32_1 = arith.constant 0 : i32
    return %c0_i32, %c0_i32_0 : i32, i32
  }
  func.func @transform_21(%arg0: i32) -> (i32, i32) {
    %c0_i32 = arith.constant 0 : i32
    %c0_i32_0 = arith.constant 0 : i32
    %c0_i32_1 = arith.constant 0 : i32
    return %c0_i32, %c0_i32_0 : i32, i32
  }
  func.func @transform_22(%arg0: i32) -> (i32, i32) {
    %c0_i32 = arith.constant 0 : i32
    %c0_i32_0 = arith.constant 0 : i32
    %c0_i32_1 = arith.constant 0 : i32
    return %c0_i32, %c0_i32_0 : i32, i32
  }
  func.func @transform_23(%arg0: i32) -> (i32, i32) {
    %c0_i32 = arith.constant 0 : i32
    %c0_i32_0 = arith.constant 0 : i32
    %c0_i32_1 = arith.constant 0 : i32
    return %c0_i32, %c0_i32_0 : i32, i32
  }
  func.func @transform_24(%arg0: i32) -> (i32, i32) {
    %c0_i32 = arith.constant 0 : i32
    %c0_i32_0 = arith.constant 0 : i32
    %c0_i32_1 = arith.constant 0 : i32
    return %c0_i32, %c0_i32_0 : i32, i32
  }
}

</mosaic_0001>

<bundles_post_ra>
// kernel: forward.1
= control target key start
LH: loop header
LB: loop body
LE: loop exit
PB: predicated region body
PF: predicated region fallthrough
CT: control target
= control target key end

     0   :  { %s17527_s0 = inlined_call_operand.vmem [shape: f32[2,4096], index: 0, kind: input, shape index: {}]   ;;  %s17528_s1 = inlined_call_operand.hbm [shape: bf16[4096,128], index: 1, kind: input, shape index: {}]   ;;  %s17529_s2 = inlined_call_operand.hbm [shape: f32[1,128], index: 2, kind: input, shape index: {}]   ;;  %s17530_s3 = inlined_call_operand.vmem [shape: f32[16,128], index: 3, kind: input, shape index: {}]   ;;  %s17531_s4 = inlined_call_operand.vmem [shape: f32[2,8,8], index: 4, kind: input, shape index: {}]   ;;  %s17532_s5 = inlined_call_operand.hbm [shape: bf16[2,128,128], index: 5, kind: input, shape index: {}]   ;;  %s17533_s6 = inlined_call_operand.hbm [shape: bf16[2,128,128], index: 6, kind: input, shape index: {}]   ;;  %s17534_s7 = inlined_call_operand.hbm [shape: bf16[2,128,2048], index: 7, kind: input, shape index: {}]   ;;  %s17535_s8 = inlined_call_operand.hbm [shape: bf16[2,2048,128], index: 8, kind: input, shape index: {}]   ;;  %s17536_s9 = inlined_call_operand.vmem [shape: f32[2,8,128], index: 9, kind: input, shape index: {}]   ;;  %s17537_s10 = inlined_call_operand.vmem [shape: f32[2,1,2048], index: 10, kind: input, shape index: {}]   ;;  %s17538_s11 = inlined_call_operand.vmem [shape: bf16[2,128,384], index: 11, kind: input, shape index: {}]   ;;  %s17539_s12 = inlined_call_operand.hbm [shape: bf16[2,128,128], index: 12, kind: input, shape index: {}]   ;;  %s17540_s13 = inlined_call_operand.hbm [shape: bf16[2,128,128], index: 13, kind: input, shape index: {}]   ;;  %s17541_s14 = inlined_call_operand.hbm [shape: bf16[2,128,128], index: 14, kind: input, shape index: {}]   ;;  %s17542_s15 = inlined_call_operand.hbm [shape: bf16[2,128,2048], index: 15, kind: input, shape index: {}]   ;;  %s17543_s16 = inlined_call_operand.hbm [shape: bf16[2,2048,128], index: 16, kind: input, shape index: {}]   ;;  %s17544_s17 = inlined_call_operand.hbm [shape: f32[2,16,128], index: 17, kind: input, shape index: {}]   ;;  %s17545_s18 = inlined_call_operand.hbm [shape: f32[2,1,2048], index: 18, kind: input, shape index: {}]   ;;  %s17546_s19 = inlined_call_operand.vmem [shape: bf16[128,160], index: 19, kind: input, shape index: {}]   ;;  %s17547_s20 = inlined_call_operand.hbm [shape: f32[1,128], index: 20, kind: input, shape index: {}]   ;;  %s17548_s21 = inlined_call_operand.hbm [shape: f32[1,128], index: 21, kind: input, shape index: {}]   ;;  %s17549_s22 = inlined_call_operand.<no memory space> [shape: f32[1,1], index: 22, kind: input, shape index: {}]   ;;  %s17550_s23 = inlined_call_operand.hbm [shape: f32[2,32], index: 23, kind: output, shape index: {0}]   ;;  %s17551_s24 = inlined_call_operand.vmem [shape: f32[2,1], index: 24, kind: output, shape index: {1}]  }
   0x1   :  { %17613 = sst [smem:[#allocation43_spill]] %s17527_s0  ;;  %v30_v0 = vstv %s17549_s22 }
   0x2   :  { %17614 = sst [smem:[#allocation44_spill]] %s17528_s1  ;;  %31 = vst [vmem:[#allocation4] sm:$0x1] %v30_v0 }
   0x3   :  { %17615 = sst [smem:[#allocation45_spill]] %s17529_s2 }
   0x4   :  { %17616 = sst [smem:[#allocation46_spill]] %s17530_s3 }
   0x5   :  { %17617 = sst [smem:[#allocation47_spill]] %s17531_s4 }
   0x6   :  { %17618 = sst [smem:[#allocation48_spill]] %s17532_s5 }
   0x7   :  { %17619 = sst [smem:[#allocation49_spill]] %s17533_s6 }
   0x8   :  { %17620 = sst [smem:[#allocation50_spill]] %s17534_s7 }
   0x9   :  { %17621 = sst [smem:[#allocation51_spill]] %s17535_s8 }
   0xa   :  { %17622 = sst [smem:[#allocation52_spill]] %s17536_s9 }
   0xb   :  { %17623 = sst [smem:[#allocation53_spill]] %s17537_s10 }
   0xc   :  { %17624 = sst [smem:[#allocation54_spill]] %s17538_s11 }
   0xd   :  { %17625 = sst [smem:[#allocation55_spill]] %s17539_s12 }
   0xe   :  { %17626 = sst [smem:[#allocation56_spill]] %s17540_s13 }
   0xf   :  { %17627 = sst [smem:[#allocation57_spill]] %s17541_s14 }
  0x10   :  { %17628 = sst [smem:[#allocation58_spill]] %s17542_s15 }
  0x11   :  { %17629 = sst [smem:[#allocation59_spill]] %s17543_s16 }
  0x12   :  { %17630 = sst [smem:[#allocation60_spill]] %s17544_s17 }
  0x13   :  { %17631 = sst [smem:[#allocation61_spill]] %s17545_s18 }
  0x14   :  { %17632 = sst [smem:[#allocation62_spill]] %s17546_s19 }
  0x15   :  { %17633 = sst [smem:[#allocation63_spill]] %s17547_s20 }
  0x16   :  { %17634 = sst [smem:[#allocation64_spill]] %s17548_s21 }
  0x17   :  { %17635 = sst [smem:[#allocation65_spill]] %s17550_s23 }
  0x18   :  { %17636 = sst [smem:[#allocation66_spill]] %s17551_s24 }
  0x19   :  { %32 = vsyncpa [#allocation6], 0 }
  0x1a   :  { %33 = vsyncpa [#allocation9], 0 }
  0x1b   :  { %34 = vsyncpa [#allocation23], 0 }
  0x1c   :  { %35 = vsyncpa [#allocation7], 0  ;;  %s15629_s27 = smov 0   ;;  %s15631_s28 = smov 0  }
  0x1d   :  { %s15633_s6 = smov 0   ;;  %s15635_s2 = smov 0  }
  0x1e   :  { %s15637_s29 = smov 0   ;;  %s15639_s0 = smov 0  }
  0x1f   :  { %s15641_s7 = smov 0  }
  0x20 LB: > { %17637 = sst [smem:[#allocation32_spill]] %s15458_s29  ;;  %s15661_s22 = sadd.s32 4294967295, %s15466_s7   ;;  %s15466_s7 = sphi %s15641_s7, %s17723_s7   ;;  %s15462_s0 = sphi %s15639_s0, %s17727_s0   ;;  %s15458_s29 = sphi %s15637_s29, %s17726_s29   ;;  %s15454_s2 = sphi %s15635_s2, %s17725_s2   ;;  %s15450_s6 = sphi %s15633_s6, %s17730_s6   ;;  %s15446_s28 = sphi %s15631_s28, %s17729_s28   ;;  %s15442_s27 = sphi %s15629_s27, %s17728_s27  }
  0x21   : > { %17638 = sst [smem:[#allocation33_spill]] %s15462_s0  ;;  %p170_p0 = scmp.ne.s32.totalorder %s15458_s29, %s15454_s2 }
  0x22   : > { %17639 = sst [smem:[#allocation34_spill]] %s15661_s22  ;;  %p17563_p1 = scmp.eq.s32.totalorder %s15661_s22, 0 }
  0x23   : > { %p384_p2 = scmp.ne.s32.totalorder %s15446_s28, %s15442_s27  ;;  %p12075_p3 = scmp.ge.s32.totalorder %s15466_s7, 1 }
  0x24   : > { %p713_p4 = scmp.lt.s32.totalorder %s15466_s7, 5  ;;  %p15670_p5 = por %p17563_p1, %p170_p0 }
  0x25   : > { %p15676_p6 = por %p384_p2, %p17563_p1  ;;  %s15468_s8 = smov [#allocation5]  }
  0x26   : > { %s17640_s30 = scalar_select %p15670_p5, 1, 0 }
  0x27   : > { %s17642_s3 = scalar_select %p15676_p6, 1, 0 }
  0x28   : > { %17641 = sst [smem:[#allocation35_spill]] %s17640_s30  ;;  %p15680_p7 = pnand %p12075_p3, %p713_p4 }
  0x29   : > { %17643 = sst [smem:[#allocation36_spill]] %s17642_s3  ;;  %s728_s4 = sshll.u32 %s15468_s8, 4  ;;  %s729_s4 = int_to_ptr.vmem [resolvable:$true] %s728_s4 }
  0x2a   : > { %s17644_s25 = scalar_select %p15680_p7, 1, 0 }
  0x2b   : > { %p14110_p9 = pneg %p15680_p7  ;;  %s15694_s5 = sadd.s32 1, %s15466_s7  }
  0x2c   : > { %17645 = sst [smem:[#allocation37_spill]] %s17644_s25  ;;  %s17649_s2 = sld [smem:[#allocation44_spill]] }
  0x2d   : > { %p15689_p10 = pnand %p14110_p9, %p17563_p1  ;;  %17648 = sst [smem:[#allocation39_spill]] %s15694_s5 }
  0x2f   : > { %s17646_s1 = scalar_select %p15689_p10, 1, 0 }
  0x30   : > { %p15704_p12 = pneg %p15689_p10 }
  0x31   : > { %17647 = sst [smem:[#allocation38_spill]] %s17646_s1 }
  0x32   : > { %s17650_s23 = smov %s17649_s2  ;;  %s14916_s24 = scalar_lea.hbm %s17649_s2, 32768 }
  0x33   : > { %p14917_p11 = scmp.ne.s32.totalorder %s17650_s23, %s14916_s24  ;;  %p14923_p2 = scmp.lt.u32.totalorder %s14916_s24, %s17650_s23 }
  0x34   : > { %s17651_s8 = scalar_select %p15704_p12, 1, 0 }
  0x35   : > { %p14919_p13 = pnand %p15704_p12, %p14917_p11 }
  0x36   : > { %17652 = sst [smem:[#allocation40_spill]] %s17651_s8 }
  0x37   : > { %p14920_p0 = pneg %p14919_p13 }
  0x39   : > { %p14925_p3 = pnand %p14923_p2, %p14920_p0 }
  0x3b   : > { %14928 = shalt.err (!%p14925_p3)
}
  0x3c   : > { %s14929_s26 = scalar_lea.vmem %s729_s4, 32768  ;;  %p14937_p1 = scmp.lt.s32.totalorder %s729_s4, %s729_s4 }
  0x3d   : > { %p14930_p4 = scmp.ne.s32.totalorder %s729_s4, %s14929_s26  ;;  %p14938_p6 = scmp.lt.s32.totalorder %s14929_s26, %s14929_s26 }
  0x3f   : > { %p14932_p9 = pnand %p14930_p4, %p15704_p12  ;;  %p14939_p5 = por %p14938_p6, %p14937_p1 }
  0x41   : > { %p14933_p8 = pneg %p14932_p9 }
  0x43   : > { %p14940_p7 = pnand %p14939_p5, %p14933_p8 }
  0x45   : > { %14943 = shalt.err (!%p14940_p7)
}
  0x46   : > { %s17569_s11 = smov 64   ;;  %s17571_s9 = smov 4  }
  0x47   : > { %14113 = dma.hbm_to_vmem [thread:$0]  (!%p15689_p10), %s17650_s23, 32768, %s729_s4, [#allocation6], %s17569_s11, %s17569_s11, %s17571_s9  }
  0x48   : > { %p150_p1 = scmp.lt.s32.totalorder %s15466_s7, 1  ;;  %p152_p5 = scmp.lt.s32.totalorder %s15694_s5, 1 }
  0x49   : > { %s157_s24 = sadd.s32 1, %s15462_s0  ;;  %p164_p6 = scmp.ne.s32.totalorder %s15462_s0, %s15458_s29 }
  0x4a   : > { %s15729_s27 = scalar_select %p150_p1, %s15466_s7, 1 }
  0x4b   : > { %s153_s2 = scalar_select %p152_p5, %s15694_s5, 1 }
  0x4c   : > { %p17588_p7 = scmp.eq.s32.totalorder %s15466_s7, 0  ;;  %s12062_s26 = sadd.s32 4294967294, %s15694_s5 }
  0x4d   : > { %s154_s3 = ssub.s32 %s15729_s27, %s153_s2  ;;  %p366_p8 = scmp.gt.s32.totalorder %s12062_s26, 0 }
  0x4e   : > { %p155_p11 = scmp.eq.s32.totalorder %s154_s3, 0  ;;  %p166_p13 = por %p17588_p7, %p164_p6 }
  0x4f   : > { %s17732_s26 = smov (!%p366_p8, %s12062_s26), 0  ;;  %p17587_p0 = scmp.lt.s32.totalorder %s15466_s7, 4 }
  0x50   : > { %s15740_s4 = scalar_select %p155_p11, %s15462_s0, %s157_s24  }
  0x51   : > { %s787_s10 = sand.u32 1, %s15466_s7   ;;  %s17578_s19 = sand.u32 1, %s15462_s0  }
  0x52   : > { %17653 = sst [smem:[#allocation41_spill]] %s15740_s4  ;;  %s15747_s11 = sshll.u32 %s17578_s19, 6 }
  0x53   : > { %s13033_s9 = sshll.u32 %s15729_s27, 10  ;;  %s17654_s5 = sld [smem:[#allocation48_spill]] }
  0x54   : > { %s791_s3 = scalar_lea.vmem [#allocation10], %s15747_s11  ;;  %p15758_p2 = pnand %p17587_p0, %p166_p13 }
  0x55   : > { %s800_s24 = sshll.u32 %s791_s3, 4  ;;  %s17656_s22 = sld [smem:[#allocation49_spill]]  ;;  %s15762_s24 = int_to_ptr.vmem [resolvable:$true] %s800_s24 }
  0x56   : > { %s15769_s30 = scalar_lea.sflag [#allocation6], %s787_s10  ;;  %p15775_p4 = pneg %p15758_p2 }
  0x59   : > { %s15753_s2 = scalar_lea.hbm %s17654_s5, %s13033_s9  ;;  %s14949_s20 = scalar_lea.hbm %s17654_s5, 2048 }
  0x5a   : > { %s14944_s25 = scalar_lea.hbm %s15753_s2, 1024  ;;  %p14950_p5 = scmp.lt.u32.totalorder %s15753_s2, %s17654_s5 }
  0x5b   : > { %s15767_s23 = scalar_lea.hbm %s17656_s22, %s13033_s9  ;;  %p14945_p3 = scmp.ne.s32.totalorder %s15753_s2, %s14944_s25 }
  0x5c   : > { %p14951_p6 = scmp.lt.u32.totalorder %s14949_s20, %s14944_s25  ;;  %p14953_p11 = scmp.lt.u32.totalorder %s14944_s25, %s15753_s2 }
  0x5d   : > { %p14947_p9 = pnand %p15775_p4, %p14945_p3 }
  0x5e   : > { %p14952_p8 = por %p14951_p6, %p14950_p5 }
  0x5f   : > { %p14948_p1 = pneg %p14947_p9 }
  0x60   : > { %p14954_p13 = por %p14953_p11, %p14952_p8 }
  0x62   : > { %p14955_p0 = pnand %p14954_p13, %p14948_p1 }
  0x64   : > { %14958 = shalt.err (!%p14955_p0)
}
  0x65   : > { %s14959_s10 = scalar_lea.vmem %s15762_s24, 1024  ;;  %s15471_s18 = smov [#allocation10]  }
  0x66   : > { %p14960_p3 = scmp.ne.s32.totalorder %s15762_s24, %s14959_s10  ;;  %s14964_s21 = sshll.u32 %s15471_s18, 4  ;;  %s14965_s21 = int_to_ptr.vmem [resolvable:$false] %s14964_s21 }
  0x67   : > { %s14966_s19 = scalar_lea.vmem %s14965_s21, 2048  ;;  %p14967_p10 = scmp.lt.s32.totalorder %s15762_s24, %s14965_s21 }
  0x68   : > { %p14962_p9 = pnand %p14960_p3, %p15775_p4  ;;  %p14968_p12 = scmp.lt.s32.totalorder %s14966_s19, %s14959_s10 }
  0x6a   : > { %p14963_p7 = pneg %p14962_p9  ;;  %p14969_p5 = por %p14968_p12, %p14967_p10 }
  0x6c   : > { %p14970_p6 = pnand %p14969_p5, %p14963_p7 }
  0x6e   : > { %14973 = shalt.err (!%p14970_p6)
}
  0x6f   : > { %s17658_s20 = smov 4   ;;  %s17659_s25 = smov 64  }
  0x70   : > { %14126 = dma.hbm_to_vmem [thread:$0]  (!%p15758_p2), %s15753_s2, 1024, %s15762_s24, %s15769_s30, %s17659_s25, %s17659_s25, %s17658_s20  }
  0x71   : > { %s814_s29 = scalar_lea.vmem [#allocation11], %s15747_s11  ;;  %s17660_s10 = sand.u32 1, %s15462_s0  }
  0x72   : > { %s823_s9 = sshll.u32 %s814_s29, 4  ;;  %s15805_s18 = sshll.u32 %s17660_s10, 10  ;;  %s15807_s9 = int_to_ptr.vmem [resolvable:$true] %s823_s9 }
  0x73   : > { %s14974_s21 = scalar_lea.hbm %s15767_s23, 1024  ;;  %s14979_s17 = scalar_lea.hbm %s17656_s22, 2048 }
  0x74   : > { %p14975_p10 = scmp.ne.s32.totalorder %s15767_s23, %s14974_s21  ;;  %p14980_p0 = scmp.lt.u32.totalorder %s15767_s23, %s17656_s22 }
  0x75   : > { %p14981_p1 = scmp.lt.u32.totalorder %s14979_s17, %s14974_s21  ;;  %p14983_p11 = scmp.lt.u32.totalorder %s14974_s21, %s15767_s23 }
  0x76   : > { %p14977_p12 = pnand %p14975_p10, %p15775_p4 }
  0x77   : > { %p14982_p8 = por %p14981_p1, %p14980_p0 }
  0x78   : > { %p14978_p7 = pneg %p14977_p12 }
  0x79   : > { %p14984_p13 = por %p14983_p11, %p14982_p8 }
  0x7b   : > { %p14985_p3 = pnand %p14984_p13, %p14978_p7 }
  0x7d   : > { %14988 = shalt.err (!%p14985_p3)
}
  0x7e   : > { %s14989_s11 = scalar_lea.vmem %s15807_s9, 1024  ;;  %s15472_s5 = smov [#allocation11]  }
  0x7f   : > { %p14990_p9 = scmp.ne.s32.totalorder %s15807_s9, %s14989_s11  ;;  %s14994_s2 = sshll.u32 %s15472_s5, 4  ;;  %s14995_s2 = int_to_ptr.vmem [resolvable:$false] %s14994_s2 }
  0x80   : > { %s14996_s1 = scalar_lea.vmem %s14995_s2, 2048  ;;  %p14997_p10 = scmp.lt.s32.totalorder %s15807_s9, %s14995_s2 }
  0x81   : > { %p14992_p5 = pnand %p14990_p9, %p15775_p4  ;;  %p14998_p12 = scmp.lt.s32.totalorder %s14996_s1, %s14989_s11 }
  0x83   : > { %p14993_p6 = pneg %p14992_p5  ;;  %p14999_p0 = por %p14998_p12, %p14997_p10 }
  0x85   : > { %p15000_p1 = pnand %p14999_p0, %p14993_p6 }
  0x87   : > { %15003 = shalt.err (!%p15000_p1)
}
  0x88   : > { %14129 = dma.hbm_to_vmem [thread:$0]  (!%p15758_p2), %s15767_s23, 1024, %s15807_s9, %s15769_s30, %s17659_s25, %s17659_s25, %s17658_s20  }
  0x89   : > { %s13035_s17 = sshll.u32 %s15729_s27, 14  ;;  %s837_s8 = scalar_lea.vmem [#allocation12], %s15805_s18 }
  0x8a   : > { %s846_s24 = sshll.u32 %s837_s8, 4  ;;  %s17661_s21 = sld [smem:[#allocation50_spill]]  ;;  %s15843_s24 = int_to_ptr.vmem [resolvable:$true] %s846_s24 }
  0x90   : > { %s15841_s19 = scalar_lea.hbm %s17661_s21, %s13035_s17  ;;  %s15009_s5 = scalar_lea.hbm %s17661_s21, 32768 }
  0x91   : > { %s15004_s11 = scalar_lea.hbm %s15841_s19, 16384  ;;  %p15010_p13 = scmp.lt.u32.totalorder %s15841_s19, %s17661_s21 }
  0x92   : > { %p15005_p7 = scmp.ne.s32.totalorder %s15841_s19, %s15004_s11  ;;  %p15011_p3 = scmp.lt.u32.totalorder %s15009_s5, %s15004_s11 }
  0x93   : > { %p15013_p5 = scmp.lt.u32.totalorder %s15004_s11, %s15841_s19 }
  0x94   : > { %p15007_p8 = pnand %p15005_p7, %p15775_p4  ;;  %p15012_p9 = por %p15011_p3, %p15010_p13 }
  0x96   : > { %p15008_p11 = pneg %p15007_p8  ;;  %p15014_p6 = por %p15013_p5, %p15012_p9 }
  0x98   : > { %p15015_p10 = pnand %p15014_p6, %p15008_p11 }
  0x9a   : > { %15018 = shalt.err (!%p15015_p10)
}
  0x9b   : > { %s15019_s8 = scalar_lea.vmem %s15843_s24, 16384  ;;  %s15473_s29 = smov [#allocation12]  }
  0x9c   : > { %p15020_p12 = scmp.ne.s32.totalorder %s15843_s24, %s15019_s8  ;;  %s15024_s10 = sshll.u32 %s15473_s29, 4  ;;  %s15025_s10 = int_to_ptr.vmem [resolvable:$false] %s15024_s10 }
  0x9d   : > { %s15026_s23 = scalar_lea.vmem %s15025_s10, 32768  ;;  %p15027_p7 = scmp.lt.s32.totalorder %s15843_s24, %s15025_s10 }
  0x9e   : > { %p15022_p0 = pnand %p15020_p12, %p15775_p4  ;;  %p15028_p8 = scmp.lt.s32.totalorder %s15026_s23, %s15019_s8 }
  0xa0   : > { %p15023_p1 = pneg %p15022_p0  ;;  %p15029_p13 = por %p15028_p8, %p15027_p7 }
  0xa2   : > { %p15030_p3 = pnand %p15029_p13, %p15023_p1 }
  0xa4   : > { %15033 = shalt.err (!%p15030_p3)
}
  0xa5   : > { %s17599_s11 = smov 1024   ;;  %s17662_s2 = sld [smem:[#allocation51_spill]] }
  0xa6   : > { %14132 = dma.hbm_to_vmem [thread:$0]  (!%p15758_p2), %s15841_s19, 16384, %s15843_s24, %s15769_s30, %s17599_s11, %s17599_s11, %s17659_s25  }
  0xa7   : > { %s860_s29 = scalar_lea.vmem [#allocation13], %s15805_s18 }
  0xa8   : > { %s869_s10 = sshll.u32 %s860_s29, 4  ;;  %s15878_s10 = int_to_ptr.vmem [resolvable:$true] %s869_s10 }
  0xab   : > { %s17663_s1 = smov %s17662_s2  ;;  %s15875_s8 = scalar_lea.hbm %s17662_s2, %s13035_s17 }
  0xac   : > { %s15034_s23 = scalar_lea.hbm %s15875_s8, 16384  ;;  %s15039_s19 = scalar_lea.hbm %s17663_s1, 32768 }
  0xad   : > { %p15035_p11 = scmp.ne.s32.totalorder %s15875_s8, %s15034_s23  ;;  %p15040_p6 = scmp.lt.u32.totalorder %s15875_s8, %s17663_s1 }
  0xae   : > { %p15041_p10 = scmp.lt.u32.totalorder %s15039_s19, %s15034_s23  ;;  %p15043_p0 = scmp.lt.u32.totalorder %s15034_s23, %s15875_s8 }
  0xaf   : > { %p15037_p9 = pnand %p15035_p11, %p15775_p4 }
  0xb0   : > { %p15042_p12 = por %p15041_p10, %p15040_p6 }
  0xb1   : > { %p15038_p5 = pneg %p15037_p9 }
  0xb2   : > { %p15044_p1 = por %p15043_p0, %p15042_p12 }
  0xb4   : > { %p15045_p7 = pnand %p15044_p1, %p15038_p5 }
  0xb6   : > { %15048 = shalt.err (!%p15045_p7)
}
  0xb7   : > { %s15049_s18 = scalar_lea.vmem %s15878_s10, 16384  ;;  %s15475_s5 = smov [#allocation13]  }
  0xb8   : > { %p15050_p8 = scmp.ne.s32.totalorder %s15878_s10, %s15049_s18  ;;  %s15054_s2 = sshll.u32 %s15475_s5, 4  ;;  %s15055_s2 = int_to_ptr.vmem [resolvable:$false] %s15054_s2 }
  0xb9   : > { %s15056_s29 = scalar_lea.vmem %s15055_s2, 32768  ;;  %p15057_p11 = scmp.lt.s32.totalorder %s15878_s10, %s15055_s2 }
  0xba   : > { %p15052_p13 = pnand %p15050_p8, %p15775_p4  ;;  %p15058_p9 = scmp.lt.s32.totalorder %s15056_s29, %s15049_s18 }
  0xbc   : > { %p15053_p3 = pneg %p15052_p13  ;;  %p15059_p6 = por %p15058_p9, %p15057_p11 }
  0xbe   : > { %p15060_p10 = pnand %p15059_p6, %p15053_p3 }
  0xc0   : > { %15063 = shalt.err (!%p15060_p10)
}
  0xc1   : > { %14135 = dma.hbm_to_vmem [thread:$0]  (!%p15758_p2), %s15875_s8, 16384, %s15878_s10, %s15769_s30, %s17659_s25, %s17659_s25, %s17658_s20  }
  0xc2   : > { %s12061_s3 = sadd.s32 4294967294, %s15466_s7  ;;  %s371_s23 = sadd.s32 1, %s15450_s6 }
  0xc3   : > { %p363_p4 = scmp.gt.s32.totalorder %s12061_s3, 0  ;;  %p378_p5 = scmp.ne.s32.totalorder %s15450_s6, %s15446_s28 }
  0xc4   : > { %s15910_s4 = sand.u32 1, %s15450_s6   ;;  %p17664_p12 = scmp.eq.s32.totalorder %s15466_s7, 0 }
  0xc5   : > { %s17734_s3 = smov (!%p363_p4, %s12061_s3), 0  ;;  %s15917_s24 = sshll.u32 %s15910_s4, 6 }
  0xc6   : > { %p380_p0 = por %p378_p5, %p17664_p12  ;;  %s368_s27 = ssub.s32 %s17734_s3, %s17732_s26 }
  0xc7   : > { %p369_p2 = scmp.eq.s32.totalorder %s368_s27, 0  ;;  %s15922_s8 = sshll.u32 %s17734_s3, 10 }
  0xc8   : > { %s17665_s12 = sld [smem:[#allocation55_spill]]  ;;  %s919_s17 = scalar_lea.vmem [#allocation14], %s15917_s24 }
  0xc9   : > { %s929_s18 = sshll.u32 %s919_s17, 4  ;;  %p17667_p1 = scmp.lt.s32.totalorder %s15466_s7, 4  ;;  %s15934_s18 = int_to_ptr.vmem [resolvable:$true] %s929_s18 }
  0xca   : > { %s15932_s5 = scalar_select %p369_p2, %s15450_s6, %s371_s23  }
  0xcb   : > { %p15938_p7 = pnand %p17667_p1, %p380_p0  ;;  %s17669_s13 = sld [smem:[#allocation56_spill]] }
  0xcc   : > { %17666 = sst [smem:[#allocation42_spill]] %s15932_s5  ;;  %s943_s10 = scalar_lea.vmem [#allocation15], %s15917_s24 }
  0xcd   : > { %s17668_s26 = scalar_select %p15938_p7, 1, 0 }
  0xce   : > { %s15928_s9 = scalar_lea.hbm %s17665_s12, %s15922_s8  ;;  %s15949_s19 = sshll.u32 %s943_s10, 4  ;;  %s15983_s19 = int_to_ptr.vmem [resolvable:$true] %s15949_s19 }
  0xcf   : > { %s15064_s17 = scalar_lea.hbm %s15928_s9, 1024  ;;  %p15955_p13 = pneg %p15938_p7 }
  0xd0   : > { %p15065_p8 = scmp.ne.s32.totalorder %s15928_s9, %s15064_s17  ;;  %s15069_s2 = scalar_lea.hbm %s17665_s12, 2048 }
  0xd1   : > { %s15946_s27 = scalar_lea.hbm %s17669_s13, %s15922_s8  ;;  %p15070_p9 = scmp.lt.u32.totalorder %s15928_s9, %s17665_s12 }
  0xd2   : > { %p15067_p3 = pnand %p15955_p13, %p15065_p8  ;;  %p15071_p6 = scmp.lt.u32.totalorder %s15069_s2, %s15064_s17 }
  0xd3   : > { %p15073_p4 = scmp.lt.u32.totalorder %s15064_s17, %s15928_s9 }
  0xd4   : > { %p15068_p11 = pneg %p15067_p3  ;;  %p15072_p10 = por %p15071_p6, %p15070_p9 }
  0xd6   : > { %p15074_p5 = por %p15073_p4, %p15072_p10 }
  0xd8   : > { %p15075_p12 = pnand %p15074_p5, %p15068_p11 }
  0xda   : > { %15078 = shalt.err (!%p15075_p12)
}
  0xdb   : > { %s15079_s10 = scalar_lea.vmem %s15934_s18, 1024  ;;  %s15476_s11 = smov [#allocation14]  }
  0xdc   : > { %p15080_p0 = scmp.ne.s32.totalorder %s15934_s18, %s15079_s10  ;;  %s15084_s7 = sshll.u32 %s15476_s11, 4  ;;  %s15085_s7 = int_to_ptr.vmem [resolvable:$false] %s15084_s7 }
  0xdd   : > { %s15086_s1 = scalar_lea.vmem %s15085_s7, 2048  ;;  %p15087_p8 = scmp.lt.s32.totalorder %s15934_s18, %s15085_s7 }
  0xde   : > { %p15082_p2 = pnand %p15080_p0, %p15955_p13  ;;  %p15088_p3 = scmp.lt.s32.totalorder %s15086_s1, %s15079_s10 }
  0xe0   : > { %p15083_p1 = pneg %p15082_p2  ;;  %p15089_p9 = por %p15088_p3, %p15087_p8 }
  0xe2   : > { %p15090_p6 = pnand %p15089_p9, %p15083_p1 }
  0xe4   : > { %15093 = shalt.err (!%p15090_p6)
}
  0xe5   : > { %14138 = dma.hbm_to_vmem [thread:$0]  (!%p15938_p7), %s15928_s9, 1024, %s15934_s18, %s15769_s30, %s17659_s25, %s17659_s25, %s17658_s20  }
  0xe6   : > { %s15094_s17 = scalar_lea.hbm %s15946_s27, 1024  ;;  %s15099_s10 = scalar_lea.hbm %s17669_s13, 2048 }
  0xe7   : > { %p15095_p11 = scmp.ne.s32.totalorder %s15946_s27, %s15094_s17  ;;  %p15100_p5 = scmp.lt.u32.totalorder %s15946_s27, %s17669_s13 }
  0xe8   : > { %p15101_p12 = scmp.lt.u32.totalorder %s15099_s10, %s15094_s17  ;;  %p15103_p2 = scmp.lt.u32.totalorder %s15094_s17, %s15946_s27 }
  0xe9   : > { %p15097_p10 = pnand %p15095_p11, %p15955_p13 }
  0xea   : > { %p15102_p0 = por %p15101_p12, %p15100_p5 }
  0xeb   : > { %p15098_p4 = pneg %p15097_p10 }
  0xec   : > { %p15104_p1 = por %p15103_p2, %p15102_p0 }
  0xee   : > { %p15105_p8 = pnand %p15104_p1, %p15098_p4 }
  0xf0   : > { %15108 = shalt.err (!%p15105_p8)
}
  0xf1   : > { %s15109_s9 = scalar_lea.vmem %s15983_s19, 1024  ;;  %s15477_s18 = smov [#allocation15]  }
  0xf2   : > { %p15110_p3 = scmp.ne.s32.totalorder %s15983_s19, %s15109_s9  ;;  %s15114_s1 = sshll.u32 %s15477_s18, 4  ;;  %s15115_s1 = int_to_ptr.vmem [resolvable:$false] %s15114_s1 }
  0xf3   : > { %s15116_s2 = scalar_lea.vmem %s15115_s1, 2048  ;;  %p15117_p11 = scmp.lt.s32.totalorder %s15983_s19, %s15115_s1 }
  0xf4   : > { %p15112_p9 = pnand %p15110_p3, %p15955_p13  ;;  %p15118_p10 = scmp.lt.s32.totalorder %s15116_s2, %s15109_s9 }
  0xf6   : > { %p15113_p6 = pneg %p15112_p9  ;;  %p15119_p5 = por %p15118_p10, %p15117_p11 }
  0xf8   : > { %p15120_p12 = pnand %p15119_p5, %p15113_p6 }
  0xfa   : > { %15123 = shalt.err (!%p15120_p12)
}
  0xfb   : > { %14141 = dma.hbm_to_vmem [thread:$0]  (!%p15938_p7), %s15946_s27, 1024, %s15983_s19, %s15769_s30, %s17659_s25, %s17659_s25, %s17658_s20  }
  0xfc   : > { %s17671_s14 = sld [smem:[#allocation57_spill]]  ;;  %s967_s11 = scalar_lea.vmem [#allocation16], %s15917_s24 }
  0xfd   : > { %s977_s7 = sshll.u32 %s967_s11, 4  ;;  %s12105_s9 = sshll.u32 %s15910_s4, 10  ;;  %s16017_s7 = int_to_ptr.vmem [resolvable:$true] %s977_s7 }
 0x102   : > { %s16014_s10 = scalar_lea.hbm %s17671_s14, %s15922_s8  ;;  %s15129_s1 = scalar_lea.hbm %s17671_s14, 2048 }
 0x103   : > { %s15124_s18 = scalar_lea.hbm %s16014_s10, 1024  ;;  %p15130_p1 = scmp.lt.u32.totalorder %s16014_s10, %s17671_s14 }
 0x104   : > { %p15125_p4 = scmp.ne.s32.totalorder %s16014_s10, %s15124_s18  ;;  %p15131_p8 = scmp.lt.u32.totalorder %s15129_s1, %s15124_s18 }
 0x105   : > { %p15133_p9 = scmp.lt.u32.totalorder %s15124_s18, %s16014_s10 }
 0x106   : > { %p15127_p0 = pnand %p15125_p4, %p15955_p13  ;;  %p15132_p3 = por %p15131_p8, %p15130_p1 }
 0x108   : > { %p15128_p2 = pneg %p15127_p0  ;;  %p15134_p6 = por %p15133_p9, %p15132_p3 }
 0x10a   : > { %p15135_p11 = pnand %p15134_p6, %p15128_p2 }
 0x10c   : > { %15138 = shalt.err (!%p15135_p11)
}
 0x10d   : > { %s15139_s24 = scalar_lea.vmem %s16017_s7, 1024  ;;  %s15478_s17 = smov [#allocation16]  }
 0x10e   : > { %p15140_p10 = scmp.ne.s32.totalorder %s16017_s7, %s15139_s24  ;;  %s15144_s29 = sshll.u32 %s15478_s17, 4  ;;  %s15145_s29 = int_to_ptr.vmem [resolvable:$false] %s15144_s29 }
 0x10f   : > { %s15146_s11 = scalar_lea.vmem %s15145_s29, 2048  ;;  %p15147_p4 = scmp.lt.s32.totalorder %s16017_s7, %s15145_s29 }
 0x110   : > { %p15142_p5 = pnand %p15140_p10, %p15955_p13  ;;  %p15148_p0 = scmp.lt.s32.totalorder %s15146_s11, %s15139_s24 }
 0x112   : > { %p15143_p12 = pneg %p15142_p5  ;;  %p15149_p1 = por %p15148_p0, %p15147_p4 }
 0x114   : > { %p15150_p8 = pnand %p15149_p1, %p15143_p12 }
 0x116   : > { %15153 = shalt.err (!%p15150_p8)
}
 0x117   : > { %14144 = dma.hbm_to_vmem [thread:$0]  (!%p15938_p7), %s16014_s10, 1024, %s16017_s7, %s15769_s30, %s17659_s25, %s17659_s25, %s17658_s20  }
 0x118   : > { %s13040_s18 = sshll.u32 %s17734_s3, 14  ;;  %s17672_s15 = sld [smem:[#allocation58_spill]] }
 0x119   : > { %s991_s8 = scalar_lea.vmem [#allocation17], %s12105_s9 }
 0x11a   : > { %s1001_s2 = sshll.u32 %s991_s8, 4  ;;  %s16055_s2 = int_to_ptr.vmem [resolvable:$true] %s1001_s2 }
 0x11e   : > { %s16051_s1 = scalar_lea.hbm %s17672_s15, %s13040_s18  ;;  %s15159_s17 = scalar_lea.hbm %s17672_s15, 32768 }
 0x11f   : > { %s15154_s24 = scalar_lea.hbm %s16051_s1, 16384  ;;  %p15160_p6 = scmp.lt.u32.totalorder %s16051_s1, %s17672_s15 }
 0x120   : > { %p15155_p2 = scmp.ne.s32.totalorder %s16051_s1, %s15154_s24  ;;  %p15161_p11 = scmp.lt.u32.totalorder %s15159_s17, %s15154_s24 }
 0x121   : > { %p15163_p5 = scmp.lt.u32.totalorder %s15154_s24, %s16051_s1 }
 0x122   : > { %p15157_p3 = pnand %p15155_p2, %p15955_p13  ;;  %p15162_p10 = por %p15161_p11, %p15160_p6 }
 0x124   : > { %p15158_p9 = pneg %p15157_p3  ;;  %p15164_p12 = por %p15163_p5, %p15162_p10 }
 0x126   : > { %p15165_p4 = pnand %p15164_p12, %p15158_p9 }
 0x128   : > { %15168 = shalt.err (!%p15165_p4)
}
 0x129   : > { %s15169_s27 = scalar_lea.vmem %s16055_s2, 16384  ;;  %s15479_s19 = smov [#allocation17]  }
 0x12a   : > { %p15170_p0 = scmp.ne.s32.totalorder %s16055_s2, %s15169_s27  ;;  %s15174_s8 = sshll.u32 %s15479_s19, 4  ;;  %s15175_s8 = int_to_ptr.vmem [resolvable:$false] %s15174_s8 }
 0x12b   : > { %s15176_s10 = scalar_lea.vmem %s15175_s8, 32768  ;;  %p15177_p2 = scmp.lt.s32.totalorder %s16055_s2, %s15175_s8 }
 0x12c   : > { %p15172_p1 = pnand %p15170_p0, %p15955_p13  ;;  %p15178_p3 = scmp.lt.s32.totalorder %s15176_s10, %s15169_s27 }
 0x12e   : > { %p15173_p8 = pneg %p15172_p1  ;;  %p15179_p6 = por %p15178_p3, %p15177_p2 }
 0x130   : > { %p15180_p11 = pnand %p15179_p6, %p15173_p8 }
 0x132   : > { %15183 = shalt.err (!%p15180_p11)
}
 0x133   : > { %s17673_s24 = smov 1024   ;;  %s17674_s16 = sld [smem:[#allocation59_spill]] }
 0x134   : > { %14147 = dma.hbm_to_vmem [thread:$0]  (!%p15938_p7), %s16051_s1, 16384, %s16055_s2, %s15769_s30, %s17673_s24, %s17673_s24, %s17659_s25  }
 0x135   : > { %s1015_s11 = scalar_lea.vmem [#allocation18], %s12105_s9 }
 0x136   : > { %s1025_s27 = sshll.u32 %s1015_s11, 4  ;;  %s16091_s27 = int_to_ptr.vmem [resolvable:$true] %s1025_s27 }
 0x139   : > { %s16087_s29 = scalar_lea.hbm %s17674_s16, %s13040_s18  ;;  %s15189_s8 = scalar_lea.hbm %s17674_s16, 32768 }
 0x13a   : > { %s15184_s19 = scalar_lea.hbm %s16087_s29, 16384  ;;  %p15190_p12 = scmp.lt.u32.totalorder %s16087_s29, %s17674_s16 }
 0x13b   : > { %p15185_p9 = scmp.ne.s32.totalorder %s16087_s29, %s15184_s19  ;;  %p15191_p4 = scmp.lt.u32.totalorder %s15189_s8, %s15184_s19 }
 0x13c   : > { %p15193_p1 = scmp.lt.u32.totalorder %s15184_s19, %s16087_s29 }
 0x13d   : > { %p15187_p10 = pnand %p15185_p9, %p15955_p13  ;;  %p15192_p0 = por %p15191_p4, %p15190_p12 }
 0x13f   : > { %p15188_p5 = pneg %p15187_p10  ;;  %p15194_p8 = por %p15193_p1, %p15192_p0 }
 0x141   : > { %p15195_p2 = pnand %p15194_p8, %p15188_p5 }
 0x143   : > { %15198 = shalt.err (!%p15195_p2)
}
 0x144   : > { %s15199_s9 = scalar_lea.vmem %s16091_s27, 16384  ;;  %s15480_s24 = smov [#allocation18]  }
 0x145   : > { %p15200_p3 = scmp.ne.s32.totalorder %s16091_s27, %s15199_s9  ;;  %s15204_s7 = sshll.u32 %s15480_s24, 4  ;;  %s15205_s7 = int_to_ptr.vmem [resolvable:$false] %s15204_s7 }
 0x146   : > { %s15206_s17 = scalar_lea.vmem %s15205_s7, 32768  ;;  %p15207_p9 = scmp.lt.s32.totalorder %s16091_s27, %s15205_s7 }
 0x147   : > { %p15202_p6 = pnand %p15200_p3, %p15955_p13  ;;  %p15208_p10 = scmp.lt.s32.totalorder %s15206_s17, %s15199_s9 }
 0x149   : > { %p15203_p11 = pneg %p15202_p6  ;;  %p15209_p12 = por %p15208_p10, %p15207_p9 }
 0x14b   : > { %p15210_p4 = pnand %p15209_p12, %p15203_p11 }
 0x14d   : > { %15213 = shalt.err (!%p15210_p4)
}
 0x14e   : > { %s17675_s11 = sld [smem:[#allocation40_spill]]  ;;  %s15481_s19 = smov [#allocation8]  }
 0x14f   : > { %14150 = dma.hbm_to_vmem [thread:$0]  (!%p15938_p7), %s16087_s29, 16384, %s16091_s27, %s15769_s30, %s17659_s25, %s17659_s25, %s17658_s20  }
 0x150   : > { %s742_s1 = sshll.u32 %s15481_s19, 4  ;;  %s17603_s2 = sshll.u32 %s15910_s4, 4  ;;  %s743_s1 = int_to_ptr.vmem [resolvable:$true] %s742_s1 }
 0x151   : > { %s17676_s10 = sld [smem:[#allocation45_spill]] }
 0x154   : > { %p17677_p0 = scmp.ne.s32.totalorder %s17675_s11, 0 }
 0x157   : > { %s15214_s9 = scalar_lea.hbm %s17676_s10, 16 }
 0x158   : > { %p15215_p5 = scmp.ne.s32.totalorder %s17676_s10, %s15214_s9  ;;  %p15221_p2 = scmp.lt.u32.totalorder %s15214_s9, %s17676_s10 }
 0x15a   : > { %p15217_p1 = pnand %p15215_p5, %p17677_p0 }
 0x15c   : > { %p15218_p8 = pneg %p15217_p1 }
 0x15e   : > { %p15223_p3 = pnand %p15221_p2, %p15218_p8 }
 0x160   : > { %15226 = shalt.err (!%p15223_p3)
}
 0x161   : > { %s15227_s20 = scalar_lea.vmem %s743_s1, 16  ;;  %s15234_s25 = scalar_lea.vmem %s743_s1, 32 }
 0x162   : > { %p15228_p6 = scmp.ne.s32.totalorder %s743_s1, %s15227_s20  ;;  %p15235_p10 = scmp.lt.s32.totalorder %s743_s1, %s743_s1 }
 0x163   : > { %p15236_p12 = scmp.lt.s32.totalorder %s15234_s25, %s15227_s20 }
 0x164   : > { %p15230_p11 = pnand %p15228_p6, %p17677_p0 }
 0x165   : > { %p15237_p4 = por %p15236_p12, %p15235_p10 }
 0x166   : > { %p15231_p9 = pneg %p15230_p11 }
 0x168   : > { %p15238_p7 = pnand %p15237_p4, %p15231_p9 }
 0x16a   : > { %15241 = shalt.err (!%p15238_p7)
}
 0x16b   : > { %s17678_s29 = sld [smem:[#allocation38_spill]]  ;;  %s17604_s12 = sshll.u32 %s17734_s3, 8 }
 0x16c   : > { %s1039_s8 = scalar_lea.vmem [#allocation19], %s17603_s2  ;;  %s17680_s7 = sld [smem:[#allocation60_spill]] }
 0x16d   : > { %s1049_s18 = sshll.u32 %s1039_s8, 4  ;;  %s16147_s18 = int_to_ptr.vmem [resolvable:$true] %s1049_s18 }
 0x171   : > { %p17679_p5 = scmp.ne.s32.totalorder %s17678_s29, 0 }
 0x172   : > { %s17681_s17 = smov %s17680_s7  ;;  %s16145_s20 = scalar_lea.hbm %s17680_s7, %s17604_s12 }
 0x173   : > { %14116 = dma.hbm_to_vmem [thread:$0]  (!%p17679_p5), %s17676_s10, 16, %s743_s1, [#allocation9]  }
 0x174   : > { %s15242_s25 = scalar_lea.hbm %s16145_s20, 256  ;;  %s15247_s19 = scalar_lea.hbm %s17681_s17, 512 }
 0x175   : > { %p15243_p7 = scmp.ne.s32.totalorder %s16145_s20, %s15242_s25  ;;  %p15248_p2 = scmp.lt.u32.totalorder %s16145_s20, %s17681_s17 }
 0x176   : > { %p15249_p3 = scmp.lt.u32.totalorder %s15247_s19, %s15242_s25  ;;  %p15251_p11 = scmp.lt.u32.totalorder %s15242_s25, %s16145_s20 }
 0x177   : > { %p15245_p1 = pnand %p15243_p7, %p15955_p13 }
 0x178   : > { %p15250_p6 = por %p15249_p3, %p15248_p2 }
 0x179   : > { %p15246_p8 = pneg %p15245_p1 }
 0x17a   : > { %p15252_p9 = por %p15251_p11, %p15250_p6 }
 0x17c   : > { %p15253_p10 = pnand %p15252_p9, %p15246_p8 }
 0x17e   : > { %15256 = shalt.err (!%p15253_p10)
}
 0x17f   : > { %s15257_s9 = scalar_lea.vmem %s16147_s18, 256  ;;  %s15482_s24 = smov [#allocation19]  }
 0x180   : > { %p15258_p12 = scmp.ne.s32.totalorder %s16147_s18, %s15257_s9  ;;  %s15262_s7 = sshll.u32 %s15482_s24, 4  ;;  %s15263_s7 = int_to_ptr.vmem [resolvable:$false] %s15262_s7 }
 0x181   : > { %s15264_s2 = scalar_lea.vmem %s15263_s7, 512  ;;  %p15265_p1 = scmp.lt.s32.totalorder %s16147_s18, %s15263_s7 }
 0x182   : > { %p15260_p4 = pnand %p15258_p12, %p15955_p13  ;;  %p15266_p5 = scmp.lt.s32.totalorder %s15264_s2, %s15257_s9 }
 0x184   : > { %p15261_p7 = pneg %p15260_p4  ;;  %p15267_p2 = por %p15266_p5, %p15265_p1 }
 0x186   : > { %p15268_p3 = pnand %p15267_p2, %p15261_p7 }
 0x188   : > { %15271 = shalt.err (!%p15268_p3)
}
 0x189   : > { %s15483_s25 = smov 128   ;;  %s15484_s1 = smov 8  }
 0x18a   : > { %p17682_p8 = scmp.ne.s32.totalorder %s17668_s26, 0  ;;  %s15485_s27 = smov [#allocation21]  }
 0x18b   : > { %s762_s19 = sshll.u32 %s15485_s27, 4  ;;  %s15486_s8 = smov [#allocation22]   ;;  %s763_s19 = int_to_ptr.vmem [resolvable:$true] %s762_s19 }
 0x18c   : > { %14153 = dma.hbm_to_vmem [thread:$0]  (!%p17682_p8), %s16145_s20, 256, %s16147_s18, %s15769_s30, %s15483_s25, %s15483_s25, %s15484_s1  }
 0x18d   : > { %s773_s24 = sshll.u32 %s15486_s8, 4  ;;  %s17683_s2 = sld [smem:[#allocation63_spill]]  ;;  %s16171_s24 = int_to_ptr.vmem [resolvable:$true] %s773_s24 }
 0x193   : > { %s17684_s12 = smov %s17683_s2  ;;  %s15272_s10 = scalar_lea.hbm %s17683_s2, 16 }
 0x194   : > { %p15273_p5 = scmp.ne.s32.totalorder %s17684_s12, %s15272_s10  ;;  %p15279_p9 = scmp.lt.u32.totalorder %s15272_s10, %s17684_s12 }
 0x196   : > { %p15275_p6 = pnand %p15273_p5, %p17677_p0 }
 0x198   : > { %p15276_p11 = pneg %p15275_p6 }
 0x19a   : > { %p15281_p10 = pnand %p15279_p9, %p15276_p11 }
 0x19c   : > { %15284 = shalt.err (!%p15281_p10)
}
 0x19d   : > { %s15285_s20 = scalar_lea.vmem %s763_s19, 16  ;;  %s15292_s25 = scalar_lea.vmem %s763_s19, 32 }
 0x19e   : > { %p15286_p12 = scmp.ne.s32.totalorder %s763_s19, %s15285_s20  ;;  %p15293_p1 = scmp.lt.s32.totalorder %s763_s19, %s763_s19 }
 0x19f   : > { %p15294_p2 = scmp.lt.s32.totalorder %s15292_s25, %s15285_s20 }
 0x1a0   : > { %p15288_p4 = pnand %p15286_p12, %p17677_p0 }
 0x1a1   : > { %p15295_p3 = por %p15294_p2, %p15293_p1 }
 0x1a2   : > { %p15289_p7 = pneg %p15288_p4 }
 0x1a4   : > { %p15296_p8 = pnand %p15295_p3, %p15289_p7 }
 0x1a6   : > { %15299 = shalt.err (!%p15296_p8)
}
 0x1a7   : > { %p17685_p5 = scmp.ne.s32.totalorder %s17678_s29, 0  ;;  %s17686_s1 = sld [smem:[#allocation64_spill]] }
 0x1a9   : > { %14119 = dma.hbm_to_vmem [thread:$0]  (!%p17685_p5), %s17684_s12, 16, %s763_s19, [#allocation9]  }
 0x1ad   : > { %s15300_s27 = scalar_lea.hbm %s17686_s1, 16 }
 0x1ae   : > { %p15301_p6 = scmp.ne.s32.totalorder %s17686_s1, %s15300_s27  ;;  %p15307_p8 = scmp.lt.u32.totalorder %s15300_s27, %s17686_s1 }
 0x1b0   : > { %p15303_p11 = pnand %p15301_p6, %p17677_p0 }
 0x1b2   : > { %p15304_p9 = pneg %p15303_p11 }
 0x1b4   : > { %p15309_p10 = pnand %p15307_p8, %p15304_p9 }
 0x1b6   : > { %15312 = shalt.err (!%p15309_p10)
}
 0x1b7   : > { %s15313_s19 = scalar_lea.vmem %s16171_s24, 16  ;;  %s15320_s18 = scalar_lea.vmem %s16171_s24, 32 }
 0x1b8   : > { %p15314_p12 = scmp.ne.s32.totalorder %s16171_s24, %s15313_s19  ;;  %p15321_p1 = scmp.lt.s32.totalorder %s16171_s24, %s16171_s24 }
 0x1b9   : > { %p15322_p2 = scmp.lt.s32.totalorder %s15320_s18, %s15313_s19 }
 0x1ba   : > { %p15316_p4 = pnand %p15314_p12, %p17677_p0 }
 0x1bb   : > { %p15323_p3 = por %p15322_p2, %p15321_p1 }
 0x1bc   : > { %p15317_p7 = pneg %p15316_p4 }
 0x1be   : > { %p15324_p6 = pnand %p15323_p3, %p15317_p7 }
 0x1c0   : > { %15327 = shalt.err (!%p15324_p6)
}
 0x1c1   : > { %14122 = dma.hbm_to_vmem [thread:$0]  (!%p17685_p5), %s17686_s1, 16, %s16171_s24, [#allocation23]  }
 0x1c2   : > { %s17687_s11 = sshll.u32 %s17734_s3, 8  ;;  %s17688_s15 = sld [smem:[#allocation61_spill]] }
 0x1c3   : > { %s17689_s27 = sshll.u32 %s15910_s4, 4 }
 0x1c4   : > { %s1063_s29 = scalar_lea.vmem [#allocation20], %s17689_s27 }
 0x1c5   : > { %s1074_s8 = sshll.u32 %s1063_s29, 4  ;;  %s1075_s8 = int_to_ptr.vmem [resolvable:$true] %s1074_s8 }
 0x1c8   : > { %s16220_s10 = scalar_lea.hbm %s17688_s15, %s17687_s11  ;;  %s15333_s7 = scalar_lea.hbm %s17688_s15, 512 }
 0x1c9   : > { %s15328_s9 = scalar_lea.hbm %s16220_s10, 256  ;;  %p15334_p5 = scmp.lt.u32.totalorder %s16220_s10, %s17688_s15 }
 0x1ca   : > { %p15329_p0 = scmp.ne.s32.totalorder %s16220_s10, %s15328_s9  ;;  %p15335_p8 = scmp.lt.u32.totalorder %s15333_s7, %s15328_s9 }
 0x1cb   : > { %p15337_p12 = scmp.lt.u32.totalorder %s15328_s9, %s16220_s10 }
 0x1cc   : > { %p15331_p11 = pnand %p15329_p0, %p15955_p13  ;;  %p15336_p10 = por %p15335_p8, %p15334_p5 }
 0x1ce   : > { %p15332_p9 = pneg %p15331_p11  ;;  %p15338_p4 = por %p15337_p12, %p15336_p10 }
 0x1d0   : > { %p15339_p7 = pnand %p15338_p4, %p15332_p9 }
 0x1d2   : > { %15342 = shalt.err (!%p15339_p7)
}
 0x1d3   : > { %s15343_s4 = scalar_lea.vmem %s1075_s8, 256  ;;  %s15487_s18 = smov [#allocation20]  }
 0x1d4   : > { %p15344_p1 = scmp.ne.s32.totalorder %s1075_s8, %s15343_s4  ;;  %s15348_s20 = sshll.u32 %s15487_s18, 4  ;;  %s15349_s20 = int_to_ptr.vmem [resolvable:$false] %s15348_s20 }
 0x1d5   : > { %s15350_s25 = scalar_lea.vmem %s15349_s20, 512  ;;  %p15351_p6 = scmp.lt.s32.totalorder %s1075_s8, %s15349_s20 }
 0x1d6   : > { %p15346_p2 = pnand %p15344_p1, %p15955_p13  ;;  %p15352_p0 = scmp.lt.s32.totalorder %s15350_s25, %s15343_s4 }
 0x1d8   : > { %p15347_p3 = pneg %p15346_p2  ;;  %p15353_p11 = por %p15352_p0, %p15351_p6 }
 0x1da   : > { %p15354_p5 = pnand %p15353_p11, %p15347_p3 }
 0x1dc   : > { %15357 = shalt.err (!%p15354_p5)
}
 0x1dd   : > { %p17690_p8 = scmp.ne.s32.totalorder %s17668_s26, 0  ;;  %s17691_s11 = sld [smem:[#allocation37_spill]] }
 0x1df   : > { %14156 = dma.hbm_to_vmem [thread:$0]  (!%p17690_p8), %s16220_s10, 256, %s1075_s8, %s15769_s30  }
 0x1e3   : > { %p17692_p9 = scmp.ne.s32.totalorder %s17691_s11, 0 }
 0x1e4   : > { %s17693_s23 = sld [smem:[#allocation34_spill]] (!%p17692_p9) }
 0x1e5   : > { %1083 = sbr.rel (%p17692_p9) target bundleno = 7884 (0x1ecc), region = 112 }
 0x1ea   : > { %p17694_p13 = scmp.eq.s32.totalorder (!%p17692_p9), %s17693_s23, 0 }
 0x1ec   : > { %15413 = dma.done.wait (%p17694_p13), [#allocation6], 32768   ;;  %p17695_p10 = pmov %p17694_p13 }
 0x1ee   : > { %15415 = vsyncadd (%p17695_p10), [#allocation6], 4294934528  ;;  %p17696_p12 = pmov %p17695_p10 }
 0x1ef   : > { %p17697_p4 = pmov %p17695_p10 }
 0x1f0   : > { %15417 = dma.done.wait (%p17696_p12), [#allocation9], 16  }
 0x1f1   : > { %15419 = vsyncadd (%p17697_p4), [#allocation9], 4294967280  ;;  %s17698_s26 = sld [smem:[#allocation32_spill]]  ;;  %s17699_s13 = sld [smem:[#allocation35_spill]] }
 0x1f2   : > { %s1093_s14 = sand.u32 1, %s17693_s23  }
 0x1f3   : > { %s1094_s27 = scalar_lea.sflag [#allocation6], %s1093_s14 }
 0x1f7   : > { %s1095_s30 = sand.u32 1, %s17698_s26   ;;  %p17700_p7 = scmp.ne.s32.totalorder %s17699_s13, 0 }
 0x1f8   : > { %s12124_s10 = sshll.u32 %s1095_s30, 6 }
 0x1f9   : > { %s16254_s29 = scalar_lea.vmem [#allocation10], %s12124_s10 }
 0x1fa   : > { %15421 = dma.done.wait (%p17700_p7), %s1094_s27, 34816  }
 0x1fb   : > { %15423 = vsyncadd (%p17700_p7), %s1094_s27, 4294932480  ;;  %s17701_s8 = sld [smem:[#allocation36_spill]]  ;;  %s12126_s9 = sshll.u32 %s1095_s30, 10 }
 0x1fc   : > { %s1131_s24 = sand.u32 1, %s15446_s28   ;;  %s16261_s7 = scalar_lea.vmem [#allocation11], %s12124_s10 }
 0x1fd   : > { %s12128_s3 = sshll.u32 %s1131_s24, 6  ;;  %s16263_s2 = scalar_lea.vmem [#allocation12], %s12126_s9 }
 0x1fe   : > { %s16265_s19 = scalar_lea.vmem [#allocation13], %s12126_s9  ;;  %s16267_s4 = scalar_lea.vmem [#allocation14], %s12128_s3 }
 0x201   : > { %p17702_p1 = scmp.ne.s32.totalorder %s17701_s8, 0 }
 0x203   : > { %15425 = dma.done.wait (%p17702_p1), %s1094_s27, 36352  }
 0x204   : > { %15427 = vsyncadd (%p17702_p1), %s1094_s27, 4294930944  ;;  %s12131_s18 = sshll.u32 %s1131_s24, 10  ;;  %s12133_s20 = sshll.u32 %s1131_s24, 4 }
 0x205   : > { %s16273_s25 = scalar_lea.vmem [#allocation15], %s12128_s3  ;;  %s16275_s11 = scalar_lea.vmem [#allocation16], %s12128_s3 }
 0x206   : > { %s16277_s26 = scalar_lea.vmem [#allocation17], %s12131_s18  ;;  %s16279_s13 = scalar_lea.vmem [#allocation18], %s12131_s18 }
 0x207   : > { %s16281_s14 = scalar_lea.vmem [#allocation19], %s12133_s20  ;;  %s16283_s30 = scalar_lea.vmem [#allocation20], %s12133_s20 }
 0x208   : > { %p17703_p2 = pmov %p17697_p4 }
 0x20a   : > { %15429 = dma.done.wait (%p17703_p2), [#allocation9], 16   ;;  %p17704_p3 = pmov %p17703_p2 }
 0x20b   : > { %p17705_p6 = pmov %p17703_p2 }
 0x20c   : > { %15431 = vsyncadd (%p17704_p3), [#allocation9], 4294967280 }
 0x20d   : > { %15433 = dma.done.wait (%p17705_p6), [#allocation23], 16   ;;  %p17706_p0 = pmov %p17703_p2 }
 0x20e   : > { %p1333_p11 = scmp.lt.s32.totalorder %s17693_s23, 1  ;;  %s12145_s10 = sadd.s32 4294967294, %s17693_s23 }
 0x20f   : > { %15435 = vsyncadd (%p17706_p0), [#allocation23], 4294967280  ;;  %p1350_p5 = scmp.gt.s32.totalorder %s12145_s10, 0  ;;  %p12146_p8 = scmp.lt.s32.totalorder %s12145_s10, 1 }
 0x210   : > { %s1334_s27 = scalar_select %p1333_p11, %s17693_s23, 1 }
 0x211   : > { %s17736_s10 = smov (!%p1350_p5, %s12145_s10), 0  ;;  %s17707_s18 = sld [smem:[#allocation52_spill]] }
 0x212   : > { %s17738_s27 = smov (!%p1333_p11, %s1334_s27), 1  ;;  %s17740_s10 = smov (!%p12146_p8, %s17736_s10), 1 }
 0x213   : > { %s12140_s8 = sshll.u32 %s17738_s27, 3  ;;  %s12144_s9 = sshll.u32 %s17738_s27, 4 }
 0x214   : > { %s17708_s15 = sld [smem:[#allocation53_spill]]  ;;  %s14067_s17 = smul.u32 192, %s17740_s10 }
 0x215   : > { %s17709_s0 = sld [smem:[#allocation54_spill]]  ;;  %p17710_p9 = scmp.ne.s32.totalorder %s17693_s23, 0 }
 0x216   : > { %v14246_v1 = vld [vmem:[#allocation5 + $0x40] sm:$0xff] (!%p17710_p9)   ;;  %v14250_v5 = vld [vmem:[#allocation5 + $0x48] sm:$0xff] (!%p17710_p9)   ;;  %v14254_v9 = vld [vmem:[#allocation5 + $0x50] sm:$0xff] (!%p17710_p9)   ;;  %v1919_v29 = vlaneseq (!%p17710_p9)  ;;  %s17711_s21 = sld [smem:[#allocation43_spill]] (!%p17710_p9)  ;;  %v15488_v37 = vmov (!%p17710_p9), 1983009808  }
 0x217   : > { %s16299_s20 = scalar_lea.vmem %s17707_s18, %s12140_s8  ;;  %1385 = sbr.rel (%p17710_p9) target bundleno = 1014 (0x3f6), region = 176  ;;  %v14247_v2 = vld [vmem:[#allocation5 + $0xc0] sm:$0xff] (!%p17710_p9)   ;;  %13046 = vmatprep.subr.bf16.mxu0 (!%p17710_p9), %v14246_v1  ;;  %v14251_v6 = vld [vmem:[#allocation5 + $0xc8] sm:$0xff] (!%p17710_p9)   ;;  %v14255_v10 = vld [vmem:[#allocation5 + $0xd0] sm:$0xff] (!%p17710_p9)   ;;  %v1917_v38 = vunpack.c.l.s4 (!%p17710_p9), %v15488_v37 }
 0x218   : > { %v14248_v3 = vld [vmem:[#allocation5] sm:$0xff] (!%p17710_p9)   ;;  %13068 = vmatprep.subr.bf16.mxu1 (!%p17710_p9), %v14247_v2  ;;  %v14252_v7 = vld [vmem:[#allocation5 + $0x8] sm:$0xff] (!%p17710_p9)   ;;  %v14256_v11 = vld [vmem:[#allocation5 + $0x10] sm:$0xff] (!%p17710_p9)   ;;  %v1920_v34 = vshrl.u32 (!%p17710_p9), %v1919_v29, 7 }
 0x219   : > { %v14249_v4 = vld [vmem:[#allocation5 + $0x80] sm:$0xff] (!%p17710_p9)   ;;  %13047 = vmatpush3.bf16.msra.mxu0 (!%p17710_p9), %v14248_v3  ;;  %v14253_v8 = vld [vmem:[#allocation5 + $0x88] sm:$0xff] (!%p17710_p9)   ;;  %v14257_v12 = vld [vmem:[#allocation5 + $0x90] sm:$0xff] (!%p17710_p9)   ;;  %v1918_v40 = vunpack.c.0.s8 (!%p17710_p9), %v1917_v38 }
 0x21a   : > { %s16304_s16 = scalar_lea.vmem %s17708_s15, %s12144_s9  ;;  %13069 = vmatpush3.bf16.msra.mxu1 (!%p17710_p9), %v14249_v4  ;;  %13048 = vmatprep.subr.bf16.mxu0 (!%p17710_p9), %v14250_v5  ;;  %v14258_v13 = vld [vmem:[#allocation5 + $0x58] sm:$0xff] (!%p17710_p9)   ;;  %v14262_v17 = vld [vmem:[#allocation5 + $0x60] sm:$0xff] (!%p17710_p9)   ;;  %v14266_v21 = vld [vmem:[#allocation5 + $0x68] sm:$0xff] (!%p17710_p9)  }
 0x21b   : > { %s16309_s5 = scalar_lea.vmem %s17709_s0, %s14067_s17  ;;  %13070 = vmatprep.subr.bf16.mxu1 (!%p17710_p9), %v14251_v6  ;;  %v14259_v14 = vld [vmem:[#allocation5 + $0xd8] sm:$0xff] (!%p17710_p9)   ;;  %v14263_v18 = vld [vmem:[#allocation5 + $0xe0] sm:$0xff] (!%p17710_p9)   ;;  %v14267_v22 = vld [vmem:[#allocation5 + $0xe8] sm:$0xff] (!%p17710_p9)   ;;  %v16316_v42 = vsub.s32 (!%p17710_p9), %v1918_v40, %v1920_v34 }
 0x21c   : > { %v14260_v15 = vld [vmem:[#allocation5 + $0x18] sm:$0xff] (!%p17710_p9)   ;;  %v14264_v19 = vld [vmem:[#allocation5 + $0x20] sm:$0xff] (!%p17710_p9)   ;;  %v14268_v23 = vld [vmem:[#allocation5 + $0x28] sm:$0xff] (!%p17710_p9)  }
 0x21d   : > { %13049 = vmatpush3.bf16.msra.mxu0 (!%p17710_p9), %v14252_v7  ;;  %v14261_v16 = vld [vmem:[#allocation5 + $0x98] sm:$0xff] (!%p17710_p9)   ;;  %v14265_v20 = vld [vmem:[#allocation5 + $0xa0] sm:$0xff] (!%p17710_p9)   ;;  %v14269_v24 = vld [vmem:[#allocation5 + $0xa8] sm:$0xff] (!%p17710_p9)  }
 0x21e   : > { %13071 = vmatpush3.bf16.msra.mxu1 %v14253_v8  ;;  %13050 = vmatprep.subr.bf16.mxu0 %v14254_v9  ;;  %v14270_v25 = vld [vmem:[#allocation5 + $0x70] sm:$0xff]   ;;  %v14274_v30 = vld [vmem:[#allocation5 + $0x78] sm:$0xff]   ;;  %v14279_v36 = vld [vmem:[#allocation5 + $0x140] sm:$0xff]  }
 0x21f   : > { %13072 = vmatprep.subr.bf16.mxu1 %v14255_v10  ;;  %v14271_v26 = vld [vmem:[#allocation5 + $0xf0] sm:$0xff]   ;;  %v14275_v31 = vld [vmem:[#allocation5 + $0xf8] sm:$0xff]   ;;  %v14280_v39 = vld [vmem:[#allocation5 + $0x1c0] sm:$0xff]  }
 0x220   : > { %v14272_v27 = vld [vmem:[#allocation5 + $0x30] sm:$0xff]   ;;  %v14276_v32 = vld [vmem:[#allocation5 + $0x38] sm:$0xff]   ;;  %v14281_v47 = vld [vmem:[#allocation5 + $0x100] sm:$0xff]  }
 0x221   : > { %13051 = vmatpush3.bf16.msra.mxu0 %v14256_v11  ;;  %v14273_v28 = vld [vmem:[#allocation5 + $0xb0] sm:$0xff]   ;;  %v14277_v33 = vld [vmem:[#allocation5 + $0xb8] sm:$0xff]   ;;  %v14282_v50 = vld [vmem:[#allocation5 + $0x180] sm:$0xff]  }
 0x222   : > { %13073 = vmatpush3.bf16.msra.mxu1 %v14257_v12  ;;  %13052 = vmatprep.subr.bf16.mxu0 %v14258_v13  ;;  %v1386_v35 = vld [vmem:[%s17711_s21] sm:$0xff]  ;;  %v14291_v61 = vld [vmem:[#allocation5 + $0x158] sm:$0xff]   ;;  %v14295_v1 = vld [vmem:[#allocation5 + $0x160] sm:$0xff]  }
 0x223   : > { %13074 = vmatprep.subr.bf16.mxu1 %v14259_v14  ;;  %v1915_v41 = vcombine.high %v1386_v35, %v1386_v35  ;;  %v1922_v43 = vrot.slane %v1386_v35, %v16316_v42  ;;  %v14283_v53 = vld [vmem:[#allocation5 + $0x148] sm:$0xff]   ;;  %v14287_v57 = vld [vmem:[#allocation5 + $0x150] sm:$0xff]   ;;  %v14292_v62 = vld [vmem:[#allocation5 + $0x1d8] sm:$0xff]  }
 0x224   : > { %v14284_v54 = vld [vmem:[#allocation5 + $0x1c8] sm:$0xff]   ;;  %v14288_v58 = vld [vmem:[#allocation5 + $0x1d0] sm:$0xff]   ;;  %v14293_v63 = vld [vmem:[#allocation5 + $0x118] sm:$0xff]  }
 0x225   : > { %13053 = vmatpush3.bf16.msra.mxu0 %v14260_v15  ;;  %v1929_v44 = vrot.slane %v1915_v41, %v16316_v42  ;;  %v1930_v45 = vcombine.high %v1922_v43, %v1922_v43  ;;  %v2083_v48 = vpack.c.bf16 %v1922_v43, %v1922_v43  ;;  %v14285_v55 = vld [vmem:[#allocation5 + $0x108] sm:$0xff]   ;;  %v14289_v59 = vld [vmem:[#allocation5 + $0x110] sm:$0xff]   ;;  %v14294_v0 = vld [vmem:[#allocation5 + $0x198] sm:$0xff]  }
 0x226   : > { %13075 = vmatpush3.bf16.msra.mxu1 %v14261_v16  ;;  %13054 = vmatprep.subr.bf16.mxu0 %v14262_v17  ;;  %v14286_v56 = vld [vmem:[#allocation5 + $0x188] sm:$0xff]   ;;  %v14290_v60 = vld [vmem:[#allocation5 + $0x190] sm:$0xff]   ;;  %v14296_v2 = vld [vmem:[#allocation5 + $0x1e0] sm:$0xff]  }
 0x227   : > { %13076 = vmatprep.subr.bf16.mxu1 %v14263_v18  ;;  %v1931_v46 = vcombine.high %v1929_v44, %v1929_v44  ;;  %v2085_v49 = vpack.c.bf16 %v1929_v44, %v1929_v44  ;;  %v2084_v51 = vpack.c.bf16 %v1930_v45, %v1930_v45  ;;  %v14297_v3 = vld [vmem:[#allocation5 + $0x120] sm:$0xff]   ;;  %v14299_v5 = vld [vmem:[#allocation5 + $0x168] sm:$0xff]   ;;  %v14303_v9 = vld [vmem:[#allocation5 + $0x170] sm:$0xff]  }
 0x228   : > { %v14298_v4 = vld [vmem:[#allocation5 + $0x1a0] sm:$0xff]   ;;  %v14300_v6 = vld [vmem:[#allocation5 + $0x1e8] sm:$0xff]   ;;  %v14304_v10 = vld [vmem:[#allocation5 + $0x1f0] sm:$0xff]  }
 0x229   : > { %13055 = vmatpush3.bf16.msra.mxu0 %v14264_v19  ;;  %v2086_v52 = vpack.c.bf16 %v1931_v46, %v1931_v46  ;;  %3689 = vmatprep.mubr.bf16.mxu0 %v2084_v51  ;;  %v14301_v7 = vld [vmem:[#allocation5 + $0x128] sm:$0xff]   ;;  %v1387_v11 = vld [vmem:[%s17711_s21 + $0x8] sm:$0xff]  ;;  %v14328_v44 = vld [vmem:[#allocation5 + $0x260] sm:$0xff]  }
 0x22a   : > { %13077 = vmatpush3.bf16.msra.mxu1 %v14265_v20  ;;  %13056 = vmatprep.subr.bf16.mxu0 %v14266_v21  ;;  %v14302_v8 = vld [vmem:[#allocation5 + $0x1a8] sm:$0xff]   ;;  %v14305_v12 = vld [vmem:[#allocation5 + $0x130] sm:$0xff]   ;;  %v1939_v13 = vrot.slane %v1387_v11, %v16316_v42  ;;  %v1932_v14 = vcombine.high %v1387_v11, %v1387_v11  ;;  %v14307_v16 = vld [vmem:[#allocation5 + $0x178] sm:$0xff]  }
 0x22b   : > { %13078 = vmatprep.subr.bf16.mxu1 %v14267_v22  ;;  %3729 = vmatprep.mubr.bf16.mxu1 %v2086_v52  ;;  %v14306_v15 = vld [vmem:[#allocation5 + $0x1b0] sm:$0xff]   ;;  %v14308_v19 = vld [vmem:[#allocation5 + $0x1f8] sm:$0xff]   ;;  %v14319_v34 = vld [vmem:[#allocation5 + $0x288] sm:$0xff]  }
 0x22c   : > { %v1947_v17 = vcombine.high %v1939_v13, %v1939_v13  ;;  %v1946_v18 = vrot.slane %v1932_v14, %v16316_v42  ;;  %v14309_v20 = vld [vmem:[#allocation5 + $0x138] sm:$0xff]   ;;  %v14320_v35 = vld [vmem:[#allocation5 + $0x250] sm:$0xff]   ;;  %v14329_v45 = vld [vmem:[#allocation5 + $0x2e0] sm:$0xff]  }
 0x22d   : > { %13057 = vmatpush3.bf16.msra.mxu0 %v14268_v23  ;;  %v14310_v23 = vld [vmem:[#allocation5 + $0x1b8] sm:$0xff]   ;;  %v14322_v37 = vld [vmem:[#allocation5 + $0x210] sm:$0xff]   ;;  %v14330_v46 = vld [vmem:[#allocation5 + $0x220] sm:$0xff]  }
 0x22e   : > { %13079 = vmatpush3.bf16.msra.mxu1 %v14269_v24  ;;  %13058 = vmatprep.subr.bf16.mxu0 %v14270_v25  ;;  %v2088_v21 = vpack.c.bf16 %v1947_v17, %v1947_v17  ;;  %v1948_v22 = vcombine.high %v1946_v18, %v1946_v18  ;;  %v14312_v25 = vld [vmem:[#allocation5 + $0x240] sm:$0xff]   ;;  %v2089_v29 = vpack.c.bf16 %v1946_v18, %v1946_v18  ;;  %v14323_v38 = vld [vmem:[#allocation5 + $0x290] sm:$0xff]   ;;  %v14325_v40 = vld [vmem:[#allocation5 + $0x2d8] sm:$0xff]  }
 0x22f   : > { %13080 = vmatprep.subr.bf16.mxu1 %v14271_v26  ;;  %v14313_v26 = vld [vmem:[#allocation5 + $0x2c0] sm:$0xff]   ;;  %v14326_v41 = vld [vmem:[#allocation5 + $0x218] sm:$0xff]   ;;  %v14335_v51 = vld [vmem:[#allocation5 + $0x2a8] sm:$0xff]  }
 0x230   : > { %v2090_v24 = vpack.c.bf16 %v1948_v22, %v1948_v22  ;;  %v14327_v43 = vld [vmem:[#allocation5 + $0x298] sm:$0xff]   ;;  %v14336_v52 = vld [vmem:[#allocation5 + $0x270] sm:$0xff]   ;;  %v14350_v11 = vld [vmem:[#allocation5 + $0x3c8] sm:$0xff]  }
 0x231   : > { %13059 = vmatpush3.bf16.msra.mxu0 %v14272_v27  ;;  %v14314_v27 = vld [vmem:[#allocation5 + $0x200] sm:$0xff]   ;;  %v14353_v14 = vld [vmem:[#allocation5 + $0x350] sm:$0xff]   ;;  %v14357_v18 = vld [vmem:[#allocation5 + $0x358] sm:$0xff]  }
 0x232   : > { %13081 = vmatpush3.bf16.msra.mxu1 %v14273_v28  ;;  %13060 = vmatprep.subr.bf16.mxu0 %v14274_v30  ;;  %v2087_v28 = vpack.c.bf16 %v1939_v13, %v1939_v13  ;;  %v14315_v30 = vld [vmem:[#allocation5 + $0x280] sm:$0xff]   ;;  %v14352_v13 = vld [vmem:[#allocation5 + $0x388] sm:$0xff]   ;;  %v14356_v17 = vld [vmem:[#allocation5 + $0x390] sm:$0xff]  }
 0x233   : > { %13082 = vmatprep.subr.bf16.mxu1 %v14275_v31  ;;  %v14316_v31 = vld [vmem:[#allocation5 + $0x248] sm:$0xff]   ;;  %v14361_v22 = vld [vmem:[#allocation5 + $0x360] sm:$0xff]  }
 0x235   : > { %13061 = vmatpush3.bf16.msra.mxu0 %v14276_v32  ;;  %v14317_v32 = vld [vmem:[#allocation5 + $0x2c8] sm:$0xff]  }
 0x236   : > { %13083 = vmatpush3.bf16.msra.mxu1 %v14277_v33  ;;  %13090 = vmatprep.subr.bf16.mxu0 %v14279_v36  ;;  %v14318_v33 = vld [vmem:[#allocation5 + $0x208] sm:$0xff]   ;;  %v14321_v36 = vld [vmem:[#allocation5 + $0x2d0] sm:$0xff]  }
 0x237   : > { %13112 = vmatprep.subr.bf16.mxu1 %v14280_v39  ;;  %v14324_v39 = vld [vmem:[#allocation5 + $0x258] sm:$0xff]  }
 0x238   : > { %3690 = vmatmul.mubr.bf16.vlgmr.msra.gmra.mrb[0].mxu0 %v2083_v48  ;;  %v14332_v48 = vld [vmem:[#allocation5 + $0x268] sm:$0xff]  }
 0x239   : > { %3730 = vmatmul.mubr.bf16.vlgmr.msra.gmra.mrb[0].mxu1 %v2085_v49  ;;  %13091 = vmatpush3.bf16.msra.mxu0 %v14281_v47  ;;  %v14331_v47 = vld [vmem:[#allocation5 + $0x2a0] sm:$0xff]   ;;  %v14333_v49 = vld [vmem:[#allocation5 + $0x2e8] sm:$0xff]  }
 0x23a   : > { %13113 = vmatpush3.bf16.msra.mxu1 %v14282_v50  ;;  %13092 = vmatprep.subr.bf16.mxu0 %v14283_v53  ;;  %v14334_v50 = vld [vmem:[#allocation5 + $0x228] sm:$0xff]   ;;  %v14337_v53 = vld [vmem:[#allocation5 + $0x2f0] sm:$0xff]  }
 0x23b   : > { %13114 = vmatprep.subr.bf16.mxu1 %v14284_v54  ;;  %3769 = vmatprep.mubr.bf16.mxu0 %v2088_v21  ;;  %v1388_v54 = vld [vmem:[%s17711_s21 + $0x10] sm:$0xff] }
 0x23c   : > { %3809 = vmatprep.mubr.bf16.mxu1 %v2090_v24  ;;  %v14360_v21 = vld [vmem:[#allocation5 + $0x398] sm:$0xff]   ;;  %v14363_v24 = vld [vmem:[#allocation5 + $0x320] sm:$0xff]  }
 0x23d   : > { %13093 = vmatpush3.bf16.msra.mxu0 %v14285_v55  ;;  %v14338_v55 = vld [vmem:[#allocation5 + $0x230] sm:$0xff]  }
 0x23e   : > { %13115 = vmatpush3.bf16.msra.mxu1 %v14286_v56  ;;  %13094 = vmatprep.subr.bf16.mxu0 %v14287_v57  ;;  %v1956_v56 = vrot.slane %v1388_v54, %v16316_v42  ;;  %v1949_v57 = vcombine.high %v1388_v54, %v1388_v54  ;;  %v14383_v54 = vld [vmem:[#allocation5 + $0x4c8] sm:$0xff]  }
 0x23f   : > { %13116 = vmatprep.subr.bf16.mxu1 %v14288_v58  ;;  %v14339_v58 = vld [vmem:[#allocation5 + $0x2b0] sm:$0xff]  }
 0x241   : > { %13095 = vmatpush3.bf16.msra.mxu0 %v14289_v59  ;;  %v14340_v59 = vld [vmem:[#allocation5 + $0x278] sm:$0xff]  }
 0x242   : > { %13117 = vmatpush3.bf16.msra.mxu1 %v14290_v60  ;;  %13096 = vmatprep.subr.bf16.mxu0 %v14291_v61  ;;  %v1964_v60 = vcombine.high %v1956_v56, %v1956_v56  ;;  %v1963_v61 = vrot.slane %v1949_v57, %v16316_v42  ;;  %v14386_v57 = vld [vmem:[#allocation5 + $0x450] sm:$0xff]  }
 0x243   : > { %13118 = vmatprep.subr.bf16.mxu1 %v14292_v62  ;;  %v14341_v62 = vld [vmem:[#allocation5 + $0x2f8] sm:$0xff]  }
 0x245   : > { %13097 = vmatpush3.bf16.msra.mxu0 %v14293_v63  ;;  %v14342_v63 = vld [vmem:[#allocation5 + $0x238] sm:$0xff]  }
 0x246   : > { %13119 = vmatpush3.bf16.msra.mxu1 %v14294_v0  ;;  %13098 = vmatprep.subr.bf16.mxu0 %v14295_v1  ;;  %v2092_v0 = vpack.c.bf16 %v1964_v60, %v1964_v60  ;;  %v1965_v1 = vcombine.high %v1963_v61, %v1963_v61  ;;  %v14389_v60 = vld [vmem:[#allocation5 + $0x490] sm:$0xff]  }
 0x247   : > { %13120 = vmatprep.subr.bf16.mxu1 %v14296_v2  ;;  %v14343_v2 = vld [vmem:[#allocation5 + $0x2b8] sm:$0xff]  }
 0x249   : > { %13099 = vmatpush3.bf16.msra.mxu0 %v14297_v3  ;;  %v2094_v3 = vpack.c.bf16 %v1965_v1, %v1965_v1  ;;  %v14394_v1 = vld [vmem:[#allocation5 + $0x460] sm:$0xff]  }
 0x24a   : > { %13121 = vmatpush3.bf16.msra.mxu1 %v14298_v4  ;;  %13100 = vmatprep.subr.bf16.mxu0 %v14299_v5  ;;  %v14345_v4 = vld [vmem:[#allocation5 + $0x340] sm:$0xff]  }
 0x24b   : > { %13122 = vmatprep.subr.bf16.mxu1 %v14300_v6  ;;  %v14346_v5 = vld [vmem:[#allocation5 + $0x3c0] sm:$0xff]  }
 0x24c   : > { %v14347_v6 = vld [vmem:[#allocation5 + $0x300] sm:$0xff]  }
 0x24d   : > { %13101 = vmatpush3.bf16.msra.mxu0 %v14301_v7  ;;  %v2091_v7 = vpack.c.bf16 %v1956_v56, %v1956_v56  ;;  %v14385_v56 = vld [vmem:[#allocation5 + $0x488] sm:$0xff]  }
 0x24e   : > { %13123 = vmatpush3.bf16.msra.mxu1 %v14302_v8  ;;  %13102 = vmatprep.subr.bf16.mxu0 %v14303_v9  ;;  %v2093_v8 = vpack.c.bf16 %v1963_v61, %v1963_v61  ;;  %v14348_v9 = vld [vmem:[#allocation5 + $0x380] sm:$0xff]   ;;  %v14390_v61 = vld [vmem:[#allocation5 + $0x458] sm:$0xff]  }
 0x24f   : > { %13124 = vmatprep.subr.bf16.mxu1 %v14304_v10  ;;  %v14349_v10 = vld [vmem:[#allocation5 + $0x348] sm:$0xff]  }
 0x251   : > { %13103 = vmatpush3.bf16.msra.mxu0 %v14305_v12  ;;  %v14351_v12 = vld [vmem:[#allocation5 + $0x308] sm:$0xff]  }
 0x252   : > { %13125 = vmatpush3.bf16.msra.mxu1 %v14306_v15  ;;  %13104 = vmatprep.subr.bf16.mxu0 %v14307_v16  ;;  %v14354_v15 = vld [vmem:[#allocation5 + $0x3d0] sm:$0xff]  }
 0x253   : > { %13126 = vmatprep.subr.bf16.mxu1 %v14308_v19  ;;  %v14355_v16 = vld [vmem:[#allocation5 + $0x310] sm:$0xff]   ;;  %v14358_v19 = vld [vmem:[#allocation5 + $0x3d8] sm:$0xff]  }
 0x255   : > { %13105 = vmatpush3.bf16.msra.mxu0 %v14309_v20  ;;  %v14359_v20 = vld [vmem:[#allocation5 + $0x318] sm:$0xff]  }
 0x256   : > { %13127 = vmatpush3.bf16.msra.mxu1 %v14310_v23  ;;  %13134 = vmatprep.subr.bf16.mxu0 %v14312_v25  ;;  %v14362_v23 = vld [vmem:[#allocation5 + $0x3e0] sm:$0xff]  }
 0x257   : > { %13156 = vmatprep.subr.bf16.mxu1 %v14313_v26  ;;  %v14364_v25 = vld [vmem:[#allocation5 + $0x3a0] sm:$0xff]   ;;  %v14365_v26 = vld [vmem:[#allocation5 + $0x368] sm:$0xff]  }
 0x258   : > { %3770 = vmatmul.mubr.bf16.vlgmr.msra.gmra.mrb[4].mxu0 %v2087_v28  ;;  %v14367_v28 = vld [vmem:[#allocation5 + $0x328] sm:$0xff]  }
 0x259   : > { %3810 = vmatmul.mubr.bf16.vlgmr.msra.gmra.mrb[4].mxu1 %v2089_v29  ;;  %13135 = vmatpush3.bf16.msra.mxu0 %v14314_v27  ;;  %v14366_v27 = vld [vmem:[#allocation5 + $0x3e8] sm:$0xff]  }
 0x25a   : > { %13157 = vmatpush3.bf16.msra.mxu1 %v14315_v30  ;;  %13136 = vmatprep.subr.bf16.mxu0 %v14316_v31  ;;  %v14368_v29 = vld [vmem:[#allocation5 + $0x3a8] sm:$0xff]   ;;  %v14369_v30 = vld [vmem:[#allocation5 + $0x370] sm:$0xff]  }
 0x25b   : > { %13158 = vmatprep.subr.bf16.mxu1 %v14317_v32  ;;  %3849 = vmatprep.mubr.bf16.mxu0 %v2092_v0  ;;  %v14370_v31 = vld [vmem:[#allocation5 + $0x3f0] sm:$0xff]   ;;  %v14393_v0 = vld [vmem:[#allocation5 + $0x498] sm:$0xff]  }
 0x25c   : > { %3889 = vmatprep.mubr.bf16.mxu1 %v2094_v3  ;;  %v14371_v32 = vld [vmem:[#allocation5 + $0x330] sm:$0xff]   ;;  %v14396_v3 = vld [vmem:[#allocation5 + $0x420] sm:$0xff]  }
 0x25d   : > { %13137 = vmatpush3.bf16.msra.mxu0 %v14318_v33  ;;  %v1389_v33 = vld [vmem:[%s17711_s21 + $0x18] sm:$0xff] }
 0x25e   : > { %13159 = vmatpush3.bf16.msra.mxu1 %v14319_v34  ;;  %13138 = vmatprep.subr.bf16.mxu0 %v14320_v35  ;;  %v14372_v34 = vld [vmem:[#allocation5 + $0x3b0] sm:$0xff]   ;;  %v1973_v35 = vrot.slane %v1389_v33, %v16316_v42 }
 0x25f   : > { %13160 = vmatprep.subr.bf16.mxu1 %v14321_v36  ;;  %v1966_v36 = vcombine.high %v1389_v33, %v1389_v33  ;;  %v14417_v33 = vld [vmem:[#allocation5 + $0x508] sm:$0xff]  }
 0x261   : > { %13139 = vmatpush3.bf16.msra.mxu0 %v14322_v37  ;;  %v14373_v37 = vld [vmem:[#allocation5 + $0x378] sm:$0xff]  }
 0x262   : > { %13161 = vmatpush3.bf16.msra.mxu1 %v14323_v38  ;;  %13140 = vmatprep.subr.bf16.mxu0 %v14324_v39  ;;  %v14374_v38 = vld [vmem:[#allocation5 + $0x3f8] sm:$0xff]   ;;  %v1981_v39 = vcombine.high %v1973_v35, %v1973_v35 }
 0x263   : > { %13162 = vmatprep.subr.bf16.mxu1 %v14325_v40  ;;  %v1980_v40 = vrot.slane %v1966_v36, %v16316_v42  ;;  %v14420_v36 = vld [vmem:[#allocation5 + $0x5d0] sm:$0xff]  }
 0x265   : > { %13141 = vmatpush3.bf16.msra.mxu0 %v14326_v41  ;;  %v14375_v41 = vld [vmem:[#allocation5 + $0x338] sm:$0xff]  }
 0x266   : > { %13163 = vmatpush3.bf16.msra.mxu1 %v14327_v43  ;;  %13142 = vmatprep.subr.bf16.mxu0 %v14328_v44  ;;  %v14376_v43 = vld [vmem:[#allocation5 + $0x3b8] sm:$0xff]   ;;  %v2096_v44 = vpack.c.bf16 %v1981_v39, %v1981_v39 }
 0x267   : > { %13164 = vmatprep.subr.bf16.mxu1 %v14329_v45  ;;  %v1982_v45 = vcombine.high %v1980_v40, %v1980_v40  ;;  %v14423_v39 = vld [vmem:[#allocation5 + $0x558] sm:$0xff]  }
 0x269   : > { %13143 = vmatpush3.bf16.msra.mxu0 %v14330_v46  ;;  %v14378_v46 = vld [vmem:[#allocation5 + $0x440] sm:$0xff]  }
 0x26a   : > { %13165 = vmatpush3.bf16.msra.mxu1 %v14331_v47  ;;  %13144 = vmatprep.subr.bf16.mxu0 %v14332_v48  ;;  %v2098_v47 = vpack.c.bf16 %v1982_v45, %v1982_v45  ;;  %v14379_v48 = vld [vmem:[#allocation5 + $0x4c0] sm:$0xff]  }
 0x26b   : > { %13166 = vmatprep.subr.bf16.mxu1 %v14333_v49  ;;  %v14380_v49 = vld [vmem:[#allocation5 + $0x400] sm:$0xff]  }
 0x26c   : > { %v14428_v45 = vld [vmem:[#allocation5 + $0x5e0] sm:$0xff]  }
 0x26d   : > { %13145 = vmatpush3.bf16.msra.mxu0 %v14334_v50  ;;  %v2095_v50 = vpack.c.bf16 %v1973_v35, %v1973_v35  ;;  %v14419_v35 = vld [vmem:[#allocation5 + $0x550] sm:$0xff]  }
 0x26e   : > { %13167 = vmatpush3.bf16.msra.mxu1 %v14335_v51  ;;  %13146 = vmatprep.subr.bf16.mxu0 %v14336_v52  ;;  %v2097_v51 = vpack.c.bf16 %v1980_v40, %v1980_v40  ;;  %v14381_v52 = vld [vmem:[#allocation5 + $0x480] sm:$0xff]   ;;  %v14424_v40 = vld [vmem:[#allocation5 + $0x5d8] sm:$0xff]  }
 0x26f   : > { %13168 = vmatprep.subr.bf16.mxu1 %v14337_v53  ;;  %v14382_v53 = vld [vmem:[#allocation5 + $0x448] sm:$0xff]  }
 0x271   : > { %13147 = vmatpush3.bf16.msra.mxu0 %v14338_v55  ;;  %v14384_v55 = vld [vmem:[#allocation5 + $0x408] sm:$0xff]  }
 0x272   : > { %13169 = vmatpush3.bf16.msra.mxu1 %v14339_v58  ;;  %13148 = vmatprep.subr.bf16.mxu0 %v14340_v59  ;;  %v14387_v58 = vld [vmem:[#allocation5 + $0x4d0] sm:$0xff]  }
 0x273   : > { %13170 = vmatprep.subr.bf16.mxu1 %v14341_v62  ;;  %v14388_v59 = vld [vmem:[#allocation5 + $0x410] sm:$0xff]   ;;  %v14391_v62 = vld [vmem:[#allocation5 + $0x4d8] sm:$0xff]  }
 0x275   : > { %13149 = vmatpush3.bf16.msra.mxu0 %v14342_v63  ;;  %v14392_v63 = vld [vmem:[#allocation5 + $0x418] sm:$0xff]  }
 0x276   : > { %13171 = vmatpush3.bf16.msra.mxu1 %v14343_v2  ;;  %13178 = vmatprep.subr.bf16.mxu0 %v14345_v4  ;;  %v14395_v2 = vld [vmem:[#allocation5 + $0x4e0] sm:$0xff]  }
 0x277   : > { %13200 = vmatprep.subr.bf16.mxu1 %v14346_v5  ;;  %v14397_v4 = vld [vmem:[#allocation5 + $0x4a0] sm:$0xff]   ;;  %v14398_v5 = vld [vmem:[#allocation5 + $0x468] sm:$0xff]  }
 0x278   : > { %3850 = vmatmul.mubr.bf16.vlgmr.msra.gmra.mrb[8].mxu0 %v2091_v7  ;;  %v14400_v7 = vld [vmem:[#allocation5 + $0x428] sm:$0xff]  }
 0x279   : > { %3890 = vmatmul.mubr.bf16.vlgmr.msra.gmra.mrb[8].mxu1 %v2093_v8  ;;  %13179 = vmatpush3.bf16.msra.mxu0 %v14347_v6  ;;  %v14399_v6 = vld [vmem:[#allocation5 + $0x4e8] sm:$0xff]  }
 0x27a   : > { %13201 = vmatpush3.bf16.msra.mxu1 %v14348_v9  ;;  %13180 = vmatprep.subr.bf16.mxu0 %v14349_v10  ;;  %v14401_v8 = vld [vmem:[#allocation5 + $0x4a8] sm:$0xff]   ;;  %v14402_v9 = vld [vmem:[#allocation5 + $0x470] sm:$0xff]  }
 0x27b   : > { %13202 = vmatprep.subr.bf16.mxu1 %v14350_v11  ;;  %3929 = vmatprep.mubr.bf16.mxu0 %v2096_v44  ;;  %v14403_v10 = vld [vmem:[#allocation5 + $0x4f0] sm:$0xff]   ;;  %v14427_v44 = vld [vmem:[#allocation5 + $0x560] sm:$0xff]  }
 0x27c   : > { %3969 = vmatprep.mubr.bf16.mxu1 %v2098_v47  ;;  %v14404_v11 = vld [vmem:[#allocation5 + $0x430] sm:$0xff]   ;;  %v14430_v47 = vld [vmem:[#allocation5 + $0x5a0] sm:$0xff]  }
 0x27d   : > { %13181 = vmatpush3.bf16.msra.mxu0 %v14351_v12  ;;  %v1390_v12 = vld [vmem:[%s17711_s21 + $0x20] sm:$0xff] }
 0x27e   : > { %13203 = vmatpush3.bf16.msra.mxu1 %v14352_v13  ;;  %13182 = vmatprep.subr.bf16.mxu0 %v14353_v14  ;;  %v14405_v13 = vld [vmem:[#allocation5 + $0x4b0] sm:$0xff]   ;;  %v1990_v14 = vrot.slane %v1390_v12, %v16316_v42 }
 0x27f   : > { %13204 = vmatprep.subr.bf16.mxu1 %v14354_v15  ;;  %v1983_v15 = vcombine.high %v1390_v12, %v1390_v12  ;;  %v14450_v12 = vld [vmem:[#allocation5 + $0x608] sm:$0xff]  }
 0x281   : > { %13183 = vmatpush3.bf16.msra.mxu0 %v14355_v16  ;;  %v14406_v16 = vld [vmem:[#allocation5 + $0x478] sm:$0xff]  }
 0x282   : > { %13205 = vmatpush3.bf16.msra.mxu1 %v14356_v17  ;;  %13184 = vmatprep.subr.bf16.mxu0 %v14357_v18  ;;  %v14407_v17 = vld [vmem:[#allocation5 + $0x4f8] sm:$0xff]   ;;  %v1998_v18 = vcombine.high %v1990_v14, %v1990_v14 }
 0x283   : > { %13206 = vmatprep.subr.bf16.mxu1 %v14358_v19  ;;  %v1997_v19 = vrot.slane %v1983_v15, %v16316_v42  ;;  %v14453_v15 = vld [vmem:[#allocation5 + $0x6d0] sm:$0xff]  }
 0x285   : > { %13185 = vmatpush3.bf16.msra.mxu0 %v14359_v20  ;;  %v14408_v20 = vld [vmem:[#allocation5 + $0x438] sm:$0xff]  }
 0x286   : > { %13207 = vmatpush3.bf16.msra.mxu1 %v14360_v21  ;;  %13186 = vmatprep.subr.bf16.mxu0 %v14361_v22  ;;  %v14409_v21 = vld [vmem:[#allocation5 + $0x4b8] sm:$0xff]   ;;  %v2100_v22 = vpack.c.bf16 %v1998_v18, %v1998_v18 }
 0x287   : > { %13208 = vmatprep.subr.bf16.mxu1 %v14362_v23  ;;  %v1999_v23 = vcombine.high %v1997_v19, %v1997_v19  ;;  %v14456_v18 = vld [vmem:[#allocation5 + $0x658] sm:$0xff]  }
 0x289   : > { %13187 = vmatpush3.bf16.msra.mxu0 %v14363_v24  ;;  %v14411_v24 = vld [vmem:[#allocation5 + $0x540] sm:$0xff]  }
 0x28a   : > { %13209 = vmatpush3.bf16.msra.mxu1 %v14364_v25  ;;  %13188 = vmatprep.subr.bf16.mxu0 %v14365_v26  ;;  %v2102_v25 = vpack.c.bf16 %v1999_v23, %v1999_v23  ;;  %v14412_v26 = vld [vmem:[#allocation5 + $0x5c0] sm:$0xff]  }
 0x28b   : > { %13210 = vmatprep.subr.bf16.mxu1 %v14366_v27  ;;  %v14413_v27 = vld [vmem:[#allocation5 + $0x500] sm:$0xff]  }
 0x28c   : > { %v14461_v23 = vld [vmem:[#allocation5 + $0x6e0] sm:$0xff]  }
 0x28d   : > { %13189 = vmatpush3.bf16.msra.mxu0 %v14367_v28  ;;  %v2099_v28 = vpack.c.bf16 %v1990_v14, %v1990_v14  ;;  %v14452_v14 = vld [vmem:[#allocation5 + $0x650] sm:$0xff]  }
 0x28e   : > { %13211 = vmatpush3.bf16.msra.mxu1 %v14368_v29  ;;  %13190 = vmatprep.subr.bf16.mxu0 %v14369_v30  ;;  %v2101_v29 = vpack.c.bf16 %v1997_v19, %v1997_v19  ;;  %v14414_v30 = vld [vmem:[#allocation5 + $0x580] sm:$0xff]   ;;  %v14457_v19 = vld [vmem:[#allocation5 + $0x6d8] sm:$0xff]  }
 0x28f   : > { %13212 = vmatprep.subr.bf16.mxu1 %v14370_v31  ;;  %v14415_v31 = vld [vmem:[#allocation5 + $0x548] sm:$0xff]  }
 0x291   : > { %13191 = vmatpush3.bf16.msra.mxu0 %v14371_v32  ;;  %v14416_v32 = vld [vmem:[#allocation5 + $0x5c8] sm:$0xff]  }
 0x292   : > { %13213 = vmatpush3.bf16.msra.mxu1 %v14372_v34  ;;  %13192 = vmatprep.subr.bf16.mxu0 %v14373_v37  ;;  %v14418_v34 = vld [vmem:[#allocation5 + $0x588] sm:$0xff]   ;;  %v14421_v37 = vld [vmem:[#allocation5 + $0x510] sm:$0xff]  }
 0x293   : > { %13214 = vmatprep.subr.bf16.mxu1 %v14374_v38  ;;  %v14422_v38 = vld [vmem:[#allocation5 + $0x590] sm:$0xff]  }
 0x295   : > { %13193 = vmatpush3.bf16.msra.mxu0 %v14375_v41  ;;  %v14425_v41 = vld [vmem:[#allocation5 + $0x518] sm:$0xff]  }
 0x296   : > { %13215 = vmatpush3.bf16.msra.mxu1 %v14376_v43  ;;  %13222 = vmatprep.subr.bf16.mxu0 %v14378_v46  ;;  %v14426_v43 = vld [vmem:[#allocation5 + $0x598] sm:$0xff]   ;;  %v14429_v46 = vld [vmem:[#allocation5 + $0x520] sm:$0xff]  }
 0x297   : > { %13244 = vmatprep.subr.bf16.mxu1 %v14379_v48  ;;  %v14431_v48 = vld [vmem:[#allocation5 + $0x568] sm:$0xff]  }
 0x298   : > { %3930 = vmatmul.mubr.bf16.vlgmr.msra.gmra.mrb[12].mxu0 %v2095_v50  ;;  %v14433_v50 = vld [vmem:[#allocation5 + $0x528] sm:$0xff]  }
 0x299   : > { %3970 = vmatmul.mubr.bf16.vlgmr.msra.gmra.mrb[12].mxu1 %v2097_v51  ;;  %13223 = vmatpush3.bf16.msra.mxu0 %v14380_v49  ;;  %v14432_v49 = vld [vmem:[#allocation5 + $0x5e8] sm:$0xff]  }
 0x29a   : > { %13245 = vmatpush3.bf16.msra.mxu1 %v14381_v52  ;;  %13224 = vmatprep.subr.bf16.mxu0 %v14382_v53  ;;  %v14434_v51 = vld [vmem:[#allocation5 + $0x5a8] sm:$0xff]   ;;  %v14435_v52 = vld [vmem:[#allocation5 + $0x570] sm:$0xff]  }
 0x29b   : > { %13246 = vmatprep.subr.bf16.mxu1 %v14383_v54  ;;  %4009 = vmatprep.mubr.bf16.mxu0 %v2100_v22  ;;  %v14436_v53 = vld [vmem:[#allocation5 + $0x5f0] sm:$0xff]   ;;  %v14460_v22 = vld [vmem:[#allocation5 + $0x660] sm:$0xff]  }
 0x29c   : > { %4049 = vmatprep.mubr.bf16.mxu1 %v2102_v25  ;;  %v14437_v54 = vld [vmem:[#allocation5 + $0x530] sm:$0xff]   ;;  %v14463_v25 = vld [vmem:[#allocation5 + $0x6a0] sm:$0xff]  }
 0x29d   : > { %13225 = vmatpush3.bf16.msra.mxu0 %v14384_v55  ;;  %v1391_v55 = vld [vmem:[%s17711_s21 + $0x28] sm:$0xff] }
 0x29e   : > { %13247 = vmatpush3.bf16.msra.mxu1 %v14385_v56  ;;  %13226 = vmatprep.subr.bf16.mxu0 %v14386_v57  ;;  %v14438_v56 = vld [vmem:[#allocation5 + $0x5b0] sm:$0xff]   ;;  %v2007_v57 = vrot.slane %v1391_v55, %v16316_v42 }
 0x29f   : > { %13248 = vmatprep.subr.bf16.mxu1 %v14387_v58  ;;  %v2000_v58 = vcombine.high %v1391_v55, %v1391_v55  ;;  %v14483_v55 = vld [vmem:[#allocation5 + $0x708] sm:$0xff]  }
 0x2a1   : > { %13227 = vmatpush3.bf16.msra.mxu0 %v14388_v59  ;;  %v14439_v59 = vld [vmem:[#allocation5 + $0x578] sm:$0xff]  }
 0x2a2   : > { %13249 = vmatpush3.bf16.msra.mxu1 %v14389_v60  ;;  %13228 = vmatprep.subr.bf16.mxu0 %v14390_v61  ;;  %v14440_v60 = vld [vmem:[#allocation5 + $0x5f8] sm:$0xff]   ;;  %v2015_v61 = vcombine.high %v2007_v57, %v2007_v57 }
 0x2a3   : > { %13250 = vmatprep.subr.bf16.mxu1 %v14391_v62  ;;  %v2014_v62 = vrot.slane %v2000_v58, %v16316_v42  ;;  %v14486_v58 = vld [vmem:[#allocation5 + $0x7d0] sm:$0xff]  }
 0x2a5   : > { %13229 = vmatpush3.bf16.msra.mxu0 %v14392_v63  ;;  %v14441_v63 = vld [vmem:[#allocation5 + $0x538] sm:$0xff]  }
 0x2a6   : > { %13251 = vmatpush3.bf16.msra.mxu1 %v14393_v0  ;;  %13230 = vmatprep.subr.bf16.mxu0 %v14394_v1  ;;  %v14442_v0 = vld [vmem:[#allocation5 + $0x5b8] sm:$0xff]   ;;  %v2104_v1 = vpack.c.bf16 %v2015_v61, %v2015_v61 }
 0x2a7   : > { %13252 = vmatprep.subr.bf16.mxu1 %v14395_v2  ;;  %v2016_v2 = vcombine.high %v2014_v62, %v2014_v62  ;;  %v14489_v61 = vld [vmem:[#allocation5 + $0x758] sm:$0xff]  }
 0x2a9   : > { %13231 = vmatpush3.bf16.msra.mxu0 %v14396_v3  ;;  %v14444_v3 = vld [vmem:[#allocation5 + $0x640] sm:$0xff]  }
 0x2aa   : > { %13253 = vmatpush3.bf16.msra.mxu1 %v14397_v4  ;;  %13232 = vmatprep.subr.bf16.mxu0 %v14398_v5  ;;  %v2106_v4 = vpack.c.bf16 %v2016_v2, %v2016_v2  ;;  %v14445_v5 = vld [vmem:[#allocation5 + $0x6c0] sm:$0xff]  }
 0x2ab   : > { %13254 = vmatprep.subr.bf16.mxu1 %v14399_v6  ;;  %v14446_v6 = vld [vmem:[#allocation5 + $0x600] sm:$0xff]  }
 0x2ac   : > { %v14494_v2 = vld [vmem:[#allocation5 + $0x7e0] sm:$0xff]  }
 0x2ad   : > { %13233 = vmatpush3.bf16.msra.mxu0 %v14400_v7  ;;  %v2103_v7 = vpack.c.bf16 %v2007_v57, %v2007_v57  ;;  %v14485_v57 = vld [vmem:[#allocation5 + $0x750] sm:$0xff]  }
 0x2ae   : > { %13255 = vmatpush3.bf16.msra.mxu1 %v14401_v8  ;;  %13234 = vmatprep.subr.bf16.mxu0 %v14402_v9  ;;  %v2105_v8 = vpack.c.bf16 %v2014_v62, %v2014_v62  ;;  %v14447_v9 = vld [vmem:[#allocation5 + $0x680] sm:$0xff]   ;;  %v14490_v62 = vld [vmem:[#allocation5 + $0x7d8] sm:$0xff]  }
 0x2af   : > { %13256 = vmatprep.subr.bf16.mxu1 %v14403_v10  ;;  %v14448_v10 = vld [vmem:[#allocation5 + $0x648] sm:$0xff]  }
 0x2b1   : > { %13235 = vmatpush3.bf16.msra.mxu0 %v14404_v11  ;;  %v14449_v11 = vld [vmem:[#allocation5 + $0x6c8] sm:$0xff]  }
 0x2b2   : > { %13257 = vmatpush3.bf16.msra.mxu1 %v14405_v13  ;;  %13236 = vmatprep.subr.bf16.mxu0 %v14406_v16  ;;  %v14451_v13 = vld [vmem:[#allocation5 + $0x688] sm:$0xff]   ;;  %v14454_v16 = vld [vmem:[#allocation5 + $0x610] sm:$0xff]  }
 0x2b3   : > { %13258 = vmatprep.subr.bf16.mxu1 %v14407_v17  ;;  %v14455_v17 = vld [vmem:[#allocation5 + $0x690] sm:$0xff]  }
 0x2b5   : > { %13237 = vmatpush3.bf16.msra.mxu0 %v14408_v20  ;;  %v14458_v20 = vld [vmem:[#allocation5 + $0x618] sm:$0xff]  }
 0x2b6   : > { %13259 = vmatpush3.bf16.msra.mxu1 %v14409_v21  ;;  %13266 = vmatprep.subr.bf16.mxu0 %v14411_v24  ;;  %v14459_v21 = vld [vmem:[#allocation5 + $0x698] sm:$0xff]   ;;  %v14462_v24 = vld [vmem:[#allocation5 + $0x620] sm:$0xff]  }
 0x2b7   : > { %13288 = vmatprep.subr.bf16.mxu1 %v14412_v26  ;;  %v14464_v26 = vld [vmem:[#allocation5 + $0x668] sm:$0xff]  }
 0x2b8   : > { %4010 = vmatmul.mubr.bf16.vlgmr.msra.gmra.mrb[16].mxu0 %v2099_v28  ;;  %v14466_v28 = vld [vmem:[#allocation5 + $0x628] sm:$0xff]  }
 0x2b9   : > { %4050 = vmatmul.mubr.bf16.vlgmr.msra.gmra.mrb[16].mxu1 %v2101_v29  ;;  %13267 = vmatpush3.bf16.msra.mxu0 %v14413_v27  ;;  %v14465_v27 = vld [vmem:[#allocation5 + $0x6e8] sm:$0xff]  }
 0x2ba   : > { %13289 = vmatpush3.bf16.msra.mxu1 %v14414_v30  ;;  %13268 = vmatprep.subr.bf16.mxu0 %v14415_v31  ;;  %v14467_v29 = vld [vmem:[#allocation5 + $0x6a8] sm:$0xff]   ;;  %v14468_v30 = vld [vmem:[#allocation5 + $0x670] sm:$0xff]  }
 0x2bb   : > { %13290 = vmatprep.subr.bf16.mxu1 %v14416_v32  ;;  %4089 = vmatprep.mubr.bf16.mxu0 %v2104_v1  ;;  %v14469_v31 = vld [vmem:[#allocation5 + $0x6f0] sm:$0xff]   ;;  %v14493_v1 = vld [vmem:[#allocation5 + $0x760] sm:$0xff]  }
 0x2bc   : > { %4129 = vmatprep.mubr.bf16.mxu1 %v2106_v4  ;;  %v14470_v32 = vld [vmem:[#allocation5 + $0x630] sm:$0xff]   ;;  %v14496_v4 = vld [vmem:[#allocation5 + $0x7a0] sm:$0xff]  }
 0x2bd   : > { %13269 = vmatpush3.bf16.msra.mxu0 %v14417_v33  ;;  %v14471_v33 = vld [vmem:[#allocation5 + $0x6b0] sm:$0xff]  }
 0x2be   : > { %13291 = vmatpush3.bf16.msra.mxu1 %v14418_v34  ;;  %13270 = vmatprep.subr.bf16.mxu0 %v14419_v35  ;;  %v1392_v34 = vld [vmem:[%s17711_s21 + $0x30] sm:$0xff] }
 0x2bf   : > { %13292 = vmatprep.subr.bf16.mxu1 %v14420_v36  ;;  %v14472_v35 = vld [vmem:[#allocation5 + $0x678] sm:$0xff]   ;;  %v2024_v36 = vrot.slane %v1392_v34, %v16316_v42 }
 0x2c1   : > { %13271 = vmatpush3.bf16.msra.mxu0 %v14421_v37  ;;  %v2017_v37 = vcombine.high %v1392_v34, %v1392_v34  ;;  %v14508_v34 = vld [vmem:[#allocation5 + $0x7b8] sm:$0xff]  }
 0x2c2   : > { %13293 = vmatpush3.bf16.msra.mxu1 %v14422_v38  ;;  %13272 = vmatprep.subr.bf16.mxu0 %v14423_v39  ;;  %v14473_v38 = vld [vmem:[#allocation5 + $0x6f8] sm:$0xff]  }
 0x2c3   : > { %13294 = vmatprep.subr.bf16.mxu1 %v14424_v40  ;;  %v14474_v39 = vld [vmem:[#allocation5 + $0x638] sm:$0xff]   ;;  %v2032_v40 = vcombine.high %v2024_v36, %v2024_v36 }
 0x2c5   : > { %13273 = vmatpush3.bf16.msra.mxu0 %v14425_v41  ;;  %v2031_v41 = vrot.slane %v2017_v37, %v16316_v42 }
 0x2c6   : > { %13295 = vmatpush3.bf16.msra.mxu1 %v14426_v43  ;;  %13274 = vmatprep.subr.bf16.mxu0 %v14427_v44  ;;  %v14475_v43 = vld [vmem:[#allocation5 + $0x6b8] sm:$0xff]   ;;  %v2108_v44 = vpack.c.bf16 %v2032_v40, %v2032_v40 }
 0x2c7   : > { %13296 = vmatprep.subr.bf16.mxu1 %v14428_v45  ;;  %v2033_v45 = vcombine.high %v2031_v41, %v2031_v41 }
 0x2c9   : > { %13275 = vmatpush3.bf16.msra.mxu0 %v14429_v46  ;;  %v14477_v46 = vld [vmem:[#allocation5 + $0x740] sm:$0xff]  }
 0x2ca   : > { %13297 = vmatpush3.bf16.msra.mxu1 %v14430_v47  ;;  %13276 = vmatprep.subr.bf16.mxu0 %v14431_v48  ;;  %v14478_v47 = vld [vmem:[#allocation5 + $0x7c0] sm:$0xff]   ;;  %v2110_v48 = vpack.c.bf16 %v2033_v45, %v2033_v45 }
 0x2cb   : > { %13298 = vmatprep.subr.bf16.mxu1 %v14432_v49  ;;  %v14479_v49 = vld [vmem:[#allocation5 + $0x700] sm:$0xff]  }
 0x2cd   : > { %13277 = vmatpush3.bf16.msra.mxu0 %v14433_v50  ;;  %v2107_v50 = vpack.c.bf16 %v2024_v36, %v2024_v36 }
 0x2ce   : > { %13299 = vmatpush3.bf16.msra.mxu1 %v14434_v51  ;;  %13278 = vmatprep.subr.bf16.mxu0 %v14435_v52  ;;  %v2109_v51 = vpack.c.bf16 %v2031_v41, %v2031_v41  ;;  %v14480_v52 = vld [vmem:[#allocation5 + $0x780] sm:$0xff]  }
 0x2cf   : > { %13300 = vmatprep.subr.bf16.mxu1 %v14436_v53  ;;  %v14481_v53 = vld [vmem:[#allocation5 + $0x748] sm:$0xff]  }
 0x2d1   : > { %13279 = vmatpush3.bf16.msra.mxu0 %v14437_v54  ;;  %v14482_v54 = vld [vmem:[#allocation5 + $0x7c8] sm:$0xff]  }
 0x2d2   : > { %13301 = vmatpush3.bf16.msra.mxu1 %v14438_v56  ;;  %13280 = vmatprep.subr.bf16.mxu0 %v14439_v59  ;;  %v14484_v56 = vld [vmem:[#allocation5 + $0x788] sm:$0xff]   ;;  %v14487_v59 = vld [vmem:[#allocation5 + $0x710] sm:$0xff]  }
 0x2d3   : > { %13302 = vmatprep.subr.bf16.mxu1 %v14440_v60  ;;  %v14488_v60 = vld [vmem:[#allocation5 + $0x790] sm:$0xff]  }
 0x2d5   : > { %13281 = vmatpush3.bf16.msra.mxu0 %v14441_v63  ;;  %v14491_v63 = vld [vmem:[#allocation5 + $0x718] sm:$0xff]  }
 0x2d6   : > { %13303 = vmatpush3.bf16.msra.mxu1 %v14442_v0  ;;  %13310 = vmatprep.subr.bf16.mxu0 %v14444_v3  ;;  %v14492_v0 = vld [vmem:[#allocation5 + $0x798] sm:$0xff]   ;;  %v14495_v3 = vld [vmem:[#allocation5 + $0x720] sm:$0xff]  }
 0x2d7   : > { %13332 = vmatprep.subr.bf16.mxu1 %v14445_v5  ;;  %v14497_v5 = vld [vmem:[#allocation5 + $0x768] sm:$0xff]  }
 0x2d8   : > { %4090 = vmatmul.mubr.bf16.vlgmr.msra.gmra.mrb[20].mxu0 %v2103_v7  ;;  %v14499_v7 = vld [vmem:[#allocation5 + $0x728] sm:$0xff]  }
 0x2d9   : > { %4130 = vmatmul.mubr.bf16.vlgmr.msra.gmra.mrb[20].mxu1 %v2105_v8  ;;  %13311 = vmatpush3.bf16.msra.mxu0 %v14446_v6  ;;  %v14498_v6 = vld [vmem:[#allocation5 + $0x7e8] sm:$0xff]  }
 0x2da   : > { %13333 = vmatpush3.bf16.msra.mxu1 %v14447_v9  ;;  %13312 = vmatprep.subr.bf16.mxu0 %v14448_v10  ;;  %v14500_v8 = vld [vmem:[#allocation5 + $0x7a8] sm:$0xff]   ;;  %v14501_v9 = vld [vmem:[#allocation5 + $0x770] sm:$0xff]  }
 0x2db   : > { %13334 = vmatprep.subr.bf16.mxu1 %v14449_v11  ;;  %4169 = vmatprep.mubr.bf16.mxu0 %v2108_v44  ;;  %v14502_v10 = vld [vmem:[#allocation5 + $0x7f0] sm:$0xff]  }
 0x2dc   : > { %4209 = vmatprep.mubr.bf16.mxu1 %v2110_v48 }
 0x2dd   : > { %13313 = vmatpush3.bf16.msra.mxu0 %v14450_v12 }
 0x2de   : > { %13335 = vmatpush3.bf16.msra.mxu1 %v14451_v13  ;;  %13314 = vmatprep.subr.bf16.mxu0 %v14452_v14  ;;  %v12153_v13 = vld [vmem:[#allocation8] ss:$0 sm:$0xff] }
 0x2df   : > { %13336 = vmatprep.subr.bf16.mxu1 %v14453_v15 }
 0x2e1   : > { %13315 = vmatpush3.bf16.msra.mxu0 %v14454_v16 }
 0x2e2   : > { %13337 = vmatpush3.bf16.msra.mxu1 %v14455_v17  ;;  %13316 = vmatprep.subr.bf16.mxu0 %v14456_v18 }
 0x2e3   : > { %13338 = vmatprep.subr.bf16.mxu1 %v14457_v19 }
 0x2e5   : > { %13317 = vmatpush3.bf16.msra.mxu0 %v14458_v20  ;;  %v14503_v20 = vld [vmem:[#allocation5 + $0x730] sm:$0xff]  }
 0x2e6   : > { %13339 = vmatpush3.bf16.msra.mxu1 %v14459_v21  ;;  %13318 = vmatprep.subr.bf16.mxu0 %v14460_v22  ;;  %v14504_v21 = vld [vmem:[#allocation5 + $0x7b0] sm:$0xff]   ;;  %v1393_v22 = vld [vmem:[%s17711_s21 + $0x38] sm:$0xff] }
 0x2e7   : > { %13340 = vmatprep.subr.bf16.mxu1 %v14461_v23 }
 0x2e9   : > { %13319 = vmatpush3.bf16.msra.mxu0 %v14462_v24 }
 0x2ea   : > { %13341 = vmatpush3.bf16.msra.mxu1 %v14463_v25  ;;  %13320 = vmatprep.subr.bf16.mxu0 %v14464_v26  ;;  %v14505_v25 = vld [vmem:[#allocation5 + $0x778] sm:$0xff]  }
 0x2eb   : > { %13342 = vmatprep.subr.bf16.mxu1 %v14465_v27  ;;  %v14506_v26 = vld [vmem:[#allocation5 + $0x7f8] sm:$0xff]   ;;  %v2041_v27 = vrot.slane %v1393_v22, %v16316_v42 }
 0x2ed   : > { %13321 = vmatpush3.bf16.msra.mxu0 %v14466_v28  ;;  %v2034_v28 = vcombine.high %v1393_v22, %v1393_v22 }
 0x2ee   : > { %13343 = vmatpush3.bf16.msra.mxu1 %v14467_v29  ;;  %13322 = vmatprep.subr.bf16.mxu0 %v14468_v30  ;;  %v2049_v30 = vcombine.high %v2041_v27, %v2041_v27 }
 0x2ef   : > { %13344 = vmatprep.subr.bf16.mxu1 %v14469_v31  ;;  %v2048_v31 = vrot.slane %v2034_v28, %v16316_v42 }
 0x2f1   : > { %13323 = vmatpush3.bf16.msra.mxu0 %v14470_v32  ;;  %v2050_v36 = vcombine.high %v2048_v31, %v2048_v31 }
 0x2f2   : > { %13345 = vmatpush3.bf16.msra.mxu1 %v14471_v33  ;;  %13324 = vmatprep.subr.bf16.mxu0 %v14472_v35  ;;  %v14507_v33 = vld [vmem:[#allocation5 + $0x738] sm:$0xff]   ;;  %v2112_v35 = vpack.c.bf16 %v2049_v30, %v2049_v30 }
 0x2f3   : > { %13346 = vmatprep.subr.bf16.mxu1 %v14473_v38  ;;  %v2114_v37 = vpack.c.bf16 %v2050_v36, %v2050_v36  ;;  %v2111_v38 = vpack.c.bf16 %v2041_v27, %v2041_v27 }
 0x2f5   : > { %13325 = vmatpush3.bf16.msra.mxu0 %v14474_v39  ;;  %v2113_v39 = vpack.c.bf16 %v2048_v31, %v2048_v31 }
 0x2f6   : > { %13347 = vmatpush3.bf16.msra.mxu1 %v14475_v43  ;;  %13354 = vmatprep.subr.bf16.mxu0 %v14477_v46 }
 0x2f7   : > { %13376 = vmatprep.subr.bf16.mxu1 %v14478_v47 }
 0x2f8   : > { %4170 = vmatmul.mubr.bf16.vlgmr.msra.gmra.mrb[24].mxu0 %v2107_v50 }
 0x2f9   : > { %4210 = vmatmul.mubr.bf16.vlgmr.msra.gmra.mrb[24].mxu1 %v2109_v51  ;;  %13355 = vmatpush3.bf16.msra.mxu0 %v14479_v49 }
 0x2fa   : > { %13377 = vmatpush3.bf16.msra.mxu1 %v14480_v52  ;;  %13356 = vmatprep.subr.bf16.mxu0 %v14481_v53 }
 0x2fb   : > { %13378 = vmatprep.subr.bf16.mxu1 %v14482_v54  ;;  %4249 = vmatprep.mubr.bf16.mxu0 %v2112_v35 }
 0x2fc   : > { %4289 = vmatprep.mubr.bf16.mxu1 %v2114_v37 }
 0x2fd   : > { %13357 = vmatpush3.bf16.msra.mxu0 %v14483_v55 }
 0x2fe   : > { %13379 = vmatpush3.bf16.msra.mxu1 %v14484_v56  ;;  %13358 = vmatprep.subr.bf16.mxu0 %v14485_v57 }
 0x2ff   : > { %13380 = vmatprep.subr.bf16.mxu1 %v14486_v58 }
 0x301   : > { %13359 = vmatpush3.bf16.msra.mxu0 %v14487_v59 }
 0x302   : > { %13381 = vmatpush3.bf16.msra.mxu1 %v14488_v60  ;;  %13360 = vmatprep.subr.bf16.mxu0 %v14489_v61 }
 0x303   : > { %13382 = vmatprep.subr.bf16.mxu1 %v14490_v62 }
 0x305   : > { %13361 = vmatpush3.bf16.msra.mxu0 %v14491_v63 }
 0x306   : > { %13383 = vmatpush3.bf16.msra.mxu1 %v14492_v0  ;;  %13362 = vmatprep.subr.bf16.mxu0 %v14493_v1 }
 0x307   : > { %13384 = vmatprep.subr.bf16.mxu1 %v14494_v2 }
 0x309   : > { %13363 = vmatpush3.bf16.msra.mxu0 %v14495_v3 }
 0x30a   : > { %13385 = vmatpush3.bf16.msra.mxu1 %v14496_v4  ;;  %13364 = vmatprep.subr.bf16.mxu0 %v14497_v5 }
 0x30b   : > { %13386 = vmatprep.subr.bf16.mxu1 %v14498_v6  ;;  %v13062_v11 = vpop.f32.mrb[0].mxu0 }
 0x30c   : > { %v13084_v12 = vpop.f32.mrb[0].mxu1  ;;  %v13063_v14 = vpop.f32.mrb[1].mxu0 }
 0x30d   : > { %v13085_v15 = vpop.f32.mrb[1].mxu1  ;;  %v13064_v16 = vadd.f32 %v13063_v14, %v13062_v11  ;;  %v13065_v18 = vpop.f32.mrb[2].mxu0  ;;  %13365 = vmatpush3.bf16.msra.mxu0 %v14499_v7 }
 0x30e   : > { %v13086_v17 = vadd.f32 %v13085_v15, %v13084_v12  ;;  %v13087_v19 = vpop.f32.mrb[2].mxu1  ;;  %13387 = vmatpush3.bf16.msra.mxu1 %v14500_v8  ;;  %v13066_v23 = vpop.f32.mrb[3].mxu0  ;;  %13366 = vmatprep.subr.bf16.mxu0 %v14501_v9 }
 0x30f   : > { %v13088_v24 = vpop.f32.mrb[3].mxu1  ;;  %13388 = vmatprep.subr.bf16.mxu1 %v14502_v10  ;;  %v3692_v29 = vadd.f32 %v13064_v16, %v12153_v13 }
 0x311   : > { %v3732_v32 = vadd.f32 %v13086_v17, %v3692_v29  ;;  %13367 = vmatpush3.bf16.msra.mxu0 %v14503_v20 }
 0x312   : > { %13389 = vmatpush3.bf16.msra.mxu1 %v14504_v21  ;;  %13368 = vmatprep.subr.bf16.mxu0 %v14505_v25 }
 0x313   : > { %13390 = vmatprep.subr.bf16.mxu1 %v14506_v26 }
 0x315   : > { %13369 = vmatpush3.bf16.msra.mxu0 %v14507_v33 }
 0x316   : > { %13391 = vmatpush3.bf16.msra.mxu1 %v14508_v34 }
 0x318   : > { %4250 = vmatmul.mubr.bf16.vlgmr.msra.gmra.mrb[28].mxu0 %v2111_v38 }
 0x319   : > { %4290 = vmatmul.mubr.bf16.vlgmr.msra.gmra.mrb[28].mxu1 %v2113_v39 }
 0x32b   : > { %v13106_v40 = vpop.f32.mrb[4].mxu0 }
 0x32c   : > { %v13128_v42 = vpop.f32.mrb[4].mxu1  ;;  %v13107_v41 = vpop.f32.mrb[5].mxu0 }
 0x32d   : > { %v13129_v43 = vpop.f32.mrb[5].mxu1  ;;  %v13108_v44 = vadd.f32 %v13107_v41, %v13106_v40  ;;  %v13109_v46 = vpop.f32.mrb[6].mxu0 }
 0x32e   : > { %v13130_v45 = vadd.f32 %v13129_v43, %v13128_v42  ;;  %v13131_v47 = vpop.f32.mrb[6].mxu1  ;;  %v13110_v48 = vpop.f32.mrb[7].mxu0 }
 0x32f   : > { %v13132_v49 = vpop.f32.mrb[7].mxu1  ;;  %v3772_v50 = vadd.f32 %v13108_v44, %v3732_v32 }
 0x331   : > { %v3812_v51 = vadd.f32 %v13130_v45, %v3772_v50 }
 0x34b   : > { %v13150_v52 = vpop.f32.mrb[8].mxu0 }
 0x34c   : > { %v13172_v53 = vpop.f32.mrb[8].mxu1  ;;  %v13151_v54 = vpop.f32.mrb[9].mxu0 }
 0x34d   : > { %v13173_v55 = vpop.f32.mrb[9].mxu1  ;;  %v13152_v56 = vadd.f32 %v13151_v54, %v13150_v52  ;;  %v13153_v58 = vpop.f32.mrb[10].mxu0 }
 0x34e   : > { %v13174_v57 = vadd.f32 %v13173_v55, %v13172_v53  ;;  %v13175_v59 = vpop.f32.mrb[10].mxu1  ;;  %v13154_v60 = vpop.f32.mrb[11].mxu0 }
 0x34f   : > { %v13176_v61 = vpop.f32.mrb[11].mxu1  ;;  %v3852_v62 = vadd.f32 %v13152_v56, %v3812_v51 }
 0x351   : > { %v3892_v63 = vadd.f32 %v13174_v57, %v3852_v62 }
 0x36b   : > { %v13194_v0 = vpop.f32.mrb[12].mxu0 }
 0x36c   : > { %v13216_v1 = vpop.f32.mrb[12].mxu1  ;;  %v13195_v2 = vpop.f32.mrb[13].mxu0 }
 0x36d   : > { %v13217_v3 = vpop.f32.mrb[13].mxu1  ;;  %v13196_v4 = vadd.f32 %v13195_v2, %v13194_v0  ;;  %v13197_v6 = vpop.f32.mrb[14].mxu0 }
 0x36e   : > { %v13218_v5 = vadd.f32 %v13217_v3, %v13216_v1  ;;  %v13219_v7 = vpop.f32.mrb[14].mxu1  ;;  %v13198_v8 = vpop.f32.mrb[15].mxu0 }
 0x36f   : > { %v13220_v9 = vpop.f32.mrb[15].mxu1  ;;  %v3932_v10 = vadd.f32 %v13196_v4, %v3892_v63 }
 0x371   : > { %v3972_v11 = vadd.f32 %v13218_v5, %v3932_v10 }
 0x38b   : > { %v13238_v12 = vpop.f32.mrb[16].mxu0 }
 0x38c   : > { %v13260_v13 = vpop.f32.mrb[16].mxu1  ;;  %v13239_v14 = vpop.f32.mrb[17].mxu0 }
 0x38d   : > { %v13261_v15 = vpop.f32.mrb[17].mxu1  ;;  %v13240_v16 = vadd.f32 %v13239_v14, %v13238_v12  ;;  %v13241_v18 = vpop.f32.mrb[18].mxu0 }
 0x38e   : > { %v13262_v17 = vadd.f32 %v13261_v15, %v13260_v13  ;;  %v13263_v19 = vpop.f32.mrb[18].mxu1  ;;  %v13242_v20 = vpop.f32.mrb[19].mxu0 }
 0x38f   : > { %v13264_v21 = vpop.f32.mrb[19].mxu1  ;;  %v4012_v22 = vadd.f32 %v13240_v16, %v3972_v11 }
 0x391   : > { %v4052_v23 = vadd.f32 %v13262_v17, %v4012_v22 }
 0x3ab   : > { %v13282_v24 = vpop.f32.mrb[20].mxu0 }
 0x3ac   : > { %v13304_v25 = vpop.f32.mrb[20].mxu1  ;;  %v13283_v26 = vpop.f32.mrb[21].mxu0 }
 0x3ad   : > { %v13305_v27 = vpop.f32.mrb[21].mxu1  ;;  %v13284_v28 = vadd.f32 %v13283_v26, %v13282_v24  ;;  %v13285_v30 = vpop.f32.mrb[22].mxu0 }
 0x3ae   : > { %v13306_v29 = vadd.f32 %v13305_v27, %v13304_v25  ;;  %v13307_v31 = vpop.f32.mrb[22].mxu1  ;;  %v13286_v32 = vpop.f32.mrb[23].mxu0 }
 0x3af   : > { %v13308_v33 = vpop.f32.mrb[23].mxu1  ;;  %v4092_v34 = vadd.f32 %v13284_v28, %v4052_v23 }
 0x3b1   : > { %v4132_v35 = vadd.f32 %v13306_v29, %v4092_v34 }
 0x3cb   : > { %v13326_v36 = vpop.f32.mrb[24].mxu0 }
 0x3cc   : > { %v13348_v37 = vpop.f32.mrb[24].mxu1  ;;  %v13327_v38 = vpop.f32.mrb[25].mxu0 }
 0x3cd   : > { %v13349_v39 = vpop.f32.mrb[25].mxu1  ;;  %v13328_v40 = vadd.f32 %v13327_v38, %v13326_v36  ;;  %v13329_v41 = vpop.f32.mrb[26].mxu0 }
 0x3ce   : > { %v13350_v42 = vadd.f32 %v13349_v39, %v13348_v37  ;;  %v13351_v43 = vpop.f32.mrb[26].mxu1  ;;  %v13330_v44 = vpop.f32.mrb[27].mxu0 }
 0x3cf   : > { %v13352_v45 = vpop.f32.mrb[27].mxu1  ;;  %v4172_v46 = vadd.f32 %v13328_v40, %v4132_v35 }
 0x3d1   : > { %v4212_v47 = vadd.f32 %v13350_v42, %v4172_v46 }
 0x3eb   : > { %v13370_v48 = vpop.f32.mrb[28].mxu0 }
 0x3ec   : > { %v13392_v49 = vpop.f32.mrb[28].mxu1  ;;  %v13371_v50 = vpop.f32.mrb[29].mxu0 }
 0x3ed   : > { %v13393_v51 = vpop.f32.mrb[29].mxu1  ;;  %v13372_v52 = vadd.f32 %v13371_v50, %v13370_v48  ;;  %v13373_v54 = vpop.f32.mrb[30].mxu0 }
 0x3ee   : > { %v13394_v53 = vadd.f32 %v13393_v51, %v13392_v49  ;;  %v13395_v55 = vpop.f32.mrb[30].mxu1  ;;  %v13374_v56 = vpop.f32.mrb[31].mxu0 }
 0x3ef   : > { %v13396_v57 = vpop.f32.mrb[31].mxu1  ;;  %v4252_v58 = vadd.f32 %v13372_v52, %v4212_v47 }
 0x3f1   : > { %v4292_v59 = vadd.f32 %v13394_v53, %v4252_v58 }
 0x3f3   : > { %v4297_v60 = vmax.f32 %v4292_v59, 0.0 }
 0x3f5   : > { %4298 = vst [vmem:[#allocation2] sm:$0x3] %v4297_v60 }
 0x3f6 PF: > { %s17712_s12 = sld [smem:[#allocation34_spill]] }
 0x3fc   : > { %p12410_p13 = scmp.ge.s32.totalorder %s17712_s12, 2 }
 0x3fd   : > { %v14510_v61 = vld [vmem:[%s16254_s29] sm:$0xff] (!%p12410_p13)   ;;  %v15489_v62 = vmov (!%p12410_p13), 0.0   ;;  %v14511_v63 = vld [vmem:[%s16254_s29 + $0x8] sm:$0xff] (!%p12410_p13)   ;;  %vm15490_vm0 = vmmov (!%p12410_p13), 0   ;;  %v14512_v0 = vld [vmem:[%s16254_s29 + $0x10] sm:$0xff] (!%p12410_p13)   ;;  %v4322_v16 = vlaneseq (!%p12410_p13)  ;;  %vm4524_vm1 = vcmask (!%p12410_p13), 1041408  }
 0x3fe   : > { %4302 = sbr.rel (%p12410_p13) target bundleno = 2652 (0xa5c), region = 180  ;;  %13839 = vmatprep.subr.bf16.mxu0 (!%p12410_p13), %v15489_v62  ;;  %13859 = vmatprep.subr.bf16.mxu1 (!%p12410_p13), %v15489_v62  ;;  %v14518_v1 = vld [vmem:[%s16261_s7] sm:$0xff] (!%p12410_p13)   ;;  %v14513_v2 = vld [vmem:[%s16254_s29 + $0x18] sm:$0xff] (!%p12410_p13)   ;;  %v14519_v3 = vld [vmem:[%s16261_s7 + $0x8] sm:$0xff] (!%p12410_p13)  }
 0x3ff   : > { %13840 = vmatpush3.bf16.msra.mxu0 (!%p12410_p13), %v14510_v61  ;;  %13855 = vmatprep.mubr.msk.bf16.mxu0 (!%p12410_p13), %vm15490_vm0, %v15489_v62  ;;  %v14514_v4 = vld [vmem:[%s16254_s29 + $0x20] sm:$0xff] (!%p12410_p13)   ;;  %v14520_v5 = vld [vmem:[%s16261_s7 + $0x10] sm:$0xff] (!%p12410_p13)   ;;  %v14515_v6 = vld [vmem:[%s16254_s29 + $0x28] sm:$0xff] (!%p12410_p13)   ;;  %v16372_v17 = vshrl.u32 (!%p12410_p13), %v4322_v16, 7 }
 0x400   : > { %13841 = vmatprep.subr.bf16.mxu0 (!%p12410_p13), %v15489_v62  ;;  %13875 = vmatprep.mubr.msk.bf16.mxu1 (!%p12410_p13), %vm15490_vm0, %v15489_v62  ;;  %v14521_v7 = vld [vmem:[%s16261_s7 + $0x18] sm:$0xff] (!%p12410_p13)   ;;  %v14516_v8 = vld [vmem:[%s16254_s29 + $0x30] sm:$0xff] (!%p12410_p13)   ;;  %v14522_v9 = vld [vmem:[%s16261_s7 + $0x20] sm:$0xff] (!%p12410_p13)  }
 0x401   : > { %13860 = vmatpush3.bf16.msra.mxu1 (!%p12410_p13), %v14518_v1  ;;  %v14517_v10 = vld [vmem:[%s16254_s29 + $0x38] sm:$0xff] (!%p12410_p13)   ;;  %v4304_v11 = vld [vmem:[#allocation2] sm:$0x3] (!%p12410_p13)  ;;  %v14524_v14 = vld [vmem:[%s16261_s7 + $0x30] sm:$0xff] (!%p12410_p13)   ;;  %v16375_v18 = vsub.s32 (!%p12410_p13), 0, %v16372_v17  ;;  %v16383_v27 = vsub.s32 (!%p12410_p13), 1, %v16372_v17 }
 0x402   : > { %13861 = vmatprep.subr.bf16.mxu1 (!%p12410_p13), %v15489_v62  ;;  %v14523_v12 = vld [vmem:[%s16261_s7 + $0x28] sm:$0xff] (!%p12410_p13)   ;;  %v4321_v13 = vpack.c.bf16 (!%p12410_p13), %v4304_v11, %v4304_v11  ;;  %v14525_v15 = vld [vmem:[%s16261_s7 + $0x38] sm:$0xff] (!%p12410_p13)   ;;  %v4549_v36 = vld [vmem:[%s16263_s2] sm:$0xff] (!%p12410_p13) }
 0x403   : > { %13842 = vmatpush3.bf16.msra.mxu0 (!%p12410_p13), %v14511_v63  ;;  %v16378_v19 = vld [vmem:[%s16299_s20] sm:$0xff] (!%p12410_p13)  ;;  %v4557_v37 = vld [vmem:[%s16263_s2 + $0x40] sm:$0xff] (!%p12410_p13) }
 0x404   : > { %13843 = vmatprep.subr.bf16.mxu0 (!%p12410_p13), %v15489_v62  ;;  %v4325_v20 = vrot.slane (!%p12410_p13), %v16378_v19, %v16375_v18  ;;  %v4434_v28 = vrot.slane (!%p12410_p13), %v16378_v19, %v16383_v27  ;;  %v4550_v38 = vld [vmem:[%s16263_s2 + $0x8] sm:$0xff] (!%p12410_p13)  ;;  %v12427_v39 = vcombine.low (!%p12410_p13), %v4549_v36, %v4557_v37  ;;  %v12428_v40 = vcombine.high (!%p12410_p13), %v4549_v36, %v4557_v37  ;;  %v4565_v41 = vld [vmem:[%s16263_s2 + $0x80] sm:$0xff] (!%p12410_p13) }
 0x405   : > { %13862 = vmatpush3.bf16.msra.mxu1 %v14519_v3  ;;  %v4558_v42 = vld [vmem:[%s16263_s2 + $0x48] sm:$0xff]  ;;  %v4573_v43 = vld [vmem:[%s16263_s2 + $0xc0] sm:$0xff] }
 0x406   : > { %13863 = vmatprep.subr.bf16.mxu1 %v15489_v62  ;;  %v12429_v44 = vcombine.low %v4550_v38, %v4558_v42  ;;  %v12430_v45 = vcombine.high %v4550_v38, %v4558_v42  ;;  %v12444_v46 = vcombine.high %v4565_v41, %v4573_v43  ;;  %v4566_v47 = vld [vmem:[%s16263_s2 + $0x88] sm:$0xff]  ;;  %v4581_v49 = vld [vmem:[%s16263_s2 + $0x100] sm:$0xff]  ;;  %v12443_v54 = vcombine.low %v4565_v41, %v4573_v43 }
 0x407   : > { %13844 = vmatpush3.bf16.msra.mxu0 %v14512_v0  ;;  %v4574_v48 = vld [vmem:[%s16263_s2 + $0xc8] sm:$0xff]  ;;  %v4589_v51 = vld [vmem:[%s16263_s2 + $0x140] sm:$0xff] }
 0x408   : > { %13845 = vmatprep.subr.bf16.mxu0 %v15489_v62  ;;  %v12446_v50 = vcombine.high %v4566_v47, %v4574_v48  ;;  %v4582_v52 = vld [vmem:[%s16263_s2 + $0x108] sm:$0xff]  ;;  %v12445_v55 = vcombine.low %v4566_v47, %v4574_v48  ;;  %v12460_v56 = vcombine.high %v4581_v49, %v4589_v51  ;;  %v12459_v58 = vcombine.low %v4581_v49, %v4589_v51  ;;  %v4597_v1 = vld [vmem:[%s16263_s2 + $0x180] sm:$0xff]  ;;  %v4552_v47 = vld [vmem:[%s16263_s2 + $0x18] sm:$0xff] }
 0x409   : > { %13864 = vmatpush3.bf16.msra.mxu1 %v14520_v5  ;;  %v4590_v53 = vld [vmem:[%s16263_s2 + $0x148] sm:$0xff]  ;;  %v4661_v37 = vld [vmem:[%s16263_s2 + $0x380] sm:$0xff]  ;;  %v4560_v49 = vld [vmem:[%s16263_s2 + $0x58] sm:$0xff] }
 0x40a   : > { %13865 = vmatprep.subr.bf16.mxu1 %v15489_v62  ;;  %v12462_v57 = vcombine.high %v4582_v52, %v4590_v53  ;;  %v12461_v59 = vcombine.low %v4582_v52, %v4590_v53  ;;  %v4598_v3 = vld [vmem:[%s16263_s2 + $0x188] sm:$0xff]  ;;  %v4669_v38 = vld [vmem:[%s16263_s2 + $0x3c0] sm:$0xff]  ;;  %v12433_v51 = vcombine.low %v4552_v47, %v4560_v49  ;;  %v12434_v52 = vcombine.high %v4552_v47, %v4560_v49 }
 0x40b   : > { %13846 = vmatpush3.bf16.msra.mxu0 %v14513_v2  ;;  %v4605_v2 = vld [vmem:[%s16263_s2 + $0x1c0] sm:$0xff]  ;;  %v4606_v5 = vld [vmem:[%s16263_s2 + $0x1c8] sm:$0xff]  ;;  %v12539_v41 = vcombine.low %v4661_v37, %v4669_v38  ;;  %v15491_v53 = vmov 0  }
 0x40c   : > { %13847 = vmatprep.subr.bf16.mxu0 %v15489_v62  ;;  %v4670_v42 = vld [vmem:[%s16263_s2 + $0x3c8] sm:$0xff] }
 0x40d   : > { %13866 = vmatpush3.bf16.msra.mxu1 %v14521_v7  ;;  %v12477_v7 = vcombine.low %v4598_v3, %v4606_v5 }
 0x40e   : > { %13867 = vmatprep.subr.bf16.mxu1 %v15489_v62 }
 0x40f   : > { %13848 = vmatpush3.bf16.msra.mxu0 %v14514_v4  ;;  %v12476_v4 = vcombine.high %v4597_v1, %v4605_v2 }
 0x410   : > { %13849 = vmatprep.subr.bf16.mxu0 %v15489_v62 }
 0x411   : > { %13868 = vmatpush3.bf16.msra.mxu1 %v14522_v9  ;;  %v4613_v9 = vld [vmem:[%s16263_s2 + $0x200] sm:$0xff] }
 0x412   : > { %13869 = vmatprep.subr.bf16.mxu1 %v15489_v62 }
 0x413   : > { %13850 = vmatpush3.bf16.msra.mxu0 %v14515_v6  ;;  %v12475_v6 = vcombine.low %v4597_v1, %v4605_v2  ;;  %v4567_v1 = vld [vmem:[%s16263_s2 + $0x90] sm:$0xff] }
 0x414   : > { %13851 = vmatprep.subr.bf16.mxu0 %v15489_v62  ;;  %v4575_v2 = vld [vmem:[%s16263_s2 + $0xd0] sm:$0xff] }
 0x415   : > { %13870 = vmatpush3.bf16.msra.mxu1 %v14523_v12 }
 0x416   : > { %13871 = vmatprep.subr.bf16.mxu1 %v15489_v62 }
 0x417   : > { %13852 = vmatpush3.bf16.msra.mxu0 %v14516_v8  ;;  %v12478_v8 = vcombine.high %v4598_v3, %v4606_v5  ;;  %v4568_v3 = vld [vmem:[%s16263_s2 + $0x98] sm:$0xff] }
 0x418   : > { %13853 = vmatprep.subr.bf16.mxu0 %v15489_v62 }
 0x419   : > { %13872 = vmatpush3.bf16.msra.mxu1 %v14524_v14 }
 0x41a   : > { %13873 = vmatprep.subr.bf16.mxu1 %v15489_v62 }
 0x41b   : > { %13854 = vmatpush3.bf16.msra.mxu0 %v14517_v10  ;;  %v4621_v10 = vld [vmem:[%s16263_s2 + $0x240] sm:$0xff] }
 0x41c   : > { %5402 = vmatprep.subr.bf16.mxu0 %v12428_v40  ;;  %v12492_v12 = vcombine.high %v4613_v9, %v4621_v10  ;;  %v12491_v14 = vcombine.low %v4613_v9, %v4621_v10  ;;  %v12540_v40 = vcombine.high %v4661_v37, %v4669_v38  ;;  %v4583_v9 = vld [vmem:[%s16263_s2 + $0x110] sm:$0xff]  ;;  %v4592_v10 = vld [vmem:[%s16263_s2 + $0x158] sm:$0xff] }
 0x41d   : > { %13874 = vmatpush3.bf16.msra.mxu1 %v14525_v15  ;;  %v4632_v37 = vld [vmem:[%s16263_s2 + $0x298] sm:$0xff] }
 0x41e   : > { %13856 = vmatmul.mubr.bf16.vlgmr.msra.gmra.mrb[0].mxu0 %v4321_v13  ;;  %5443 = vmatprep.subr.bf16.mxu1 %v12430_v45  ;;  %v4622_v13 = vld [vmem:[%s16263_s2 + $0x248] sm:$0xff]  ;;  %v4551_v45 = vld [vmem:[%s16263_s2 + $0x10] sm:$0xff]  ;;  %v4640_v38 = vld [vmem:[%s16263_s2 + $0x2d8] sm:$0xff] }
 0x41f   : > { %5403 = vmatpush1.bf16.msra.mxu0 %v12427_v39  ;;  %v4662_v39 = vld [vmem:[%s16263_s2 + $0x388] sm:$0xff]  ;;  %5434 = vmatprep.mubr.bf16.mxu0 %v15491_v53 }
 0x420   : > { %5404 = vmatprep.subr.bf16.mxu0 %v12444_v46  ;;  %v12541_v43 = vcombine.low %v4662_v39, %v4670_v42  ;;  %v4559_v46 = vld [vmem:[%s16263_s2 + $0x50] sm:$0xff] }
 0x421   : > { %v12432_v48 = vcombine.high %v4551_v45, %v4559_v46 }
 0x423   : > { %5405 = vmatpush1.bf16.msra.mxu0 %v12443_v54 }
 0x424   : > { %5406 = vmatprep.subr.bf16.mxu0 %v12460_v56 }
 0x427   : > { %5407 = vmatpush1.bf16.msra.mxu0 %v12459_v58  ;;  %v16435_v58 = vsub.s32 3, %v16372_v17 }
 0x428   : > { %5408 = vmatprep.subr.bf16.mxu0 %v12476_v4  ;;  %v4576_v4 = vld [vmem:[%s16263_s2 + $0xd8] sm:$0xff] }
 0x42b   : > { %5409 = vmatpush1.bf16.msra.mxu0 %v12475_v6 }
 0x42c   : > { %5410 = vmatprep.subr.bf16.mxu0 %v12492_v12  ;;  %v12449_v12 = vcombine.low %v4568_v3, %v4576_v4 }
 0x42f   : > { %5411 = vmatpush1.bf16.msra.mxu0 %v12491_v14 }
 0x4f1   : > { %v4408_v21 = vpop.f32.mrb[0].mxu0 }
 0x4f2   : > { %v4409_v22 = vadd.f32 %v4408_v21, %v4325_v20  ;;  %v13857_v23 = vpop.f32.mrb[1].mxu0  ;;  %v4629_v20 = vld [vmem:[%s16263_s2 + $0x280] sm:$0xff] }
 0x4f3   : > { %v4411_v24 = vpop.f32.mrb[2].mxu0  ;;  %v4637_v21 = vld [vmem:[%s16263_s2 + $0x2c0] sm:$0xff] }
 0x4f4   : > { %v4430_v25 = vpack.c.bf16 %v4409_v22, %v4409_v22  ;;  %v13858_v26 = vpop.f32.mrb[3].mxu0  ;;  %v4630_v22 = vld [vmem:[%s16263_s2 + $0x288] sm:$0xff]  ;;  %v12508_v23 = vcombine.high %v4629_v20, %v4637_v21 }
 0x4f5   : > { %v4638_v24 = vld [vmem:[%s16263_s2 + $0x2c8] sm:$0xff] }
 0x4f6   : > { %13876 = vmatmul.mubr.bf16.vlgmr.msra.gmra.mrb[0].mxu1 %v4430_v25  ;;  %v12507_v25 = vcombine.low %v4629_v20, %v4637_v21  ;;  %v12509_v26 = vcombine.low %v4630_v22, %v4638_v24  ;;  %5412 = vmatprep.subr.bf16.mxu0 %v12508_v23  ;;  %v4600_v20 = vld [vmem:[%s16263_s2 + $0x198] sm:$0xff] }
 0x4f7   : > { %5444 = vmatpush1.bf16.msra.mxu1 %v12429_v44  ;;  %v12542_v44 = vcombine.high %v4662_v39, %v4670_v42  ;;  %5475 = vmatprep.mubr.bf16.mxu1 %v15491_v53  ;;  %v4608_v21 = vld [vmem:[%s16263_s2 + $0x1d8] sm:$0xff] }
 0x4f8   : > { %5445 = vmatprep.subr.bf16.mxu1 %v12446_v50  ;;  %5413 = vmatpush1.bf16.msra.mxu0 %v12507_v25  ;;  %v12431_v50 = vcombine.low %v4551_v45, %v4559_v46  ;;  %v12482_v25 = vcombine.high %v4600_v20, %v4608_v21  ;;  %v4648_v45 = vld [vmem:[%s16263_s2 + $0x318] sm:$0xff] }
 0x4f9   : > { %v4656_v46 = vld [vmem:[%s16263_s2 + $0x358] sm:$0xff] }
 0x4fb   : > { %5446 = vmatpush1.bf16.msra.mxu1 %v12445_v55 }
 0x4fc   : > { %5447 = vmatprep.subr.bf16.mxu1 %v12462_v57  ;;  %v16432_v57 = vsub.s32 2, %v16372_v17 }
 0x4ff   : > { %5448 = vmatpush1.bf16.msra.mxu1 %v12461_v59  ;;  %v4542_v59 = vrot.slane %v16378_v19, %v16432_v57 }
 0x500   : > { %5449 = vmatprep.subr.bf16.mxu1 %v12478_v8  ;;  %v12450_v8 = vcombine.high %v4568_v3, %v4576_v4 }
 0x503   : > { %5450 = vmatpush1.bf16.msra.mxu1 %v12477_v7  ;;  %v12448_v7 = vcombine.high %v4567_v1, %v4575_v2 }
 0x5c9   : > { %v4517_v29 = vpop.f32.mrb[0].mxu1 }
 0x5ca   : > { %v4518_v30 = vadd.f32 %v4517_v29, %v4434_v28  ;;  %v13877_v31 = vpop.f32.mrb[1].mxu1  ;;  %v12510_v28 = vcombine.high %v4630_v22, %v4638_v24  ;;  %v4645_v29 = vld [vmem:[%s16263_s2 + $0x300] sm:$0xff] }
 0x5cb   : > { %v4520_v32 = vpop.f32.mrb[2].mxu1  ;;  %v4646_v31 = vld [vmem:[%s16263_s2 + $0x308] sm:$0xff] }
 0x5cc   : > { %v13878_v33 = vpop.f32.mrb[3].mxu1  ;;  %v4523_v34 = vadd.f32 %v4518_v30, %v4304_v11  ;;  %v4614_v11 = vld [vmem:[%s16263_s2 + $0x208] sm:$0xff]  ;;  %v4653_v30 = vld [vmem:[%s16263_s2 + $0x340] sm:$0xff] }
 0x5cd   : > { %v12493_v15 = vcombine.low %v4614_v11, %v4622_v13  ;;  %v12494_v16 = vcombine.high %v4614_v11, %v4622_v13  ;;  %v12524_v32 = vcombine.high %v4645_v29, %v4653_v30  ;;  %v4654_v33 = vld [vmem:[%s16263_s2 + $0x348] sm:$0xff]  ;;  %v12447_v11 = vcombine.low %v4567_v1, %v4575_v2 }
 0x5ce   : > { %v4525_v35 = vsel %vm4524_vm1, %v4523_v34, 0.0  ;;  %v12526_v36 = vcombine.high %v4646_v31, %v4654_v33  ;;  %v4554_v1 = vld [vmem:[%s16263_s2 + $0x28] sm:$0xff] }
 0x5cf   : > { %4526 = vadd.xlane.f32.xlu0 %v4525_v35  ;;  %5451 = vmatprep.subr.bf16.mxu1 %v12494_v16  ;;  %v12525_v35 = vcombine.low %v4646_v31, %v4654_v33  ;;  %v4607_v16 = vld [vmem:[%s16263_s2 + $0x1d0] sm:$0xff]  ;;  %v4562_v2 = vld [vmem:[%s16263_s2 + $0x68] sm:$0xff] }
 0x5d0   : > { %5452 = vmatpush1.bf16.msra.mxu1 %v12493_v15  ;;  %5414 = vmatprep.subr.bf16.mxu0 %v12524_v32  ;;  %v4599_v15 = vld [vmem:[%s16263_s2 + $0x190] sm:$0xff]  ;;  %v12481_v32 = vcombine.low %v4600_v20, %v4608_v21  ;;  %v4586_v20 = vld [vmem:[%s16263_s2 + $0x128] sm:$0xff] }
 0x5d1   : > { %5453 = vmatprep.subr.bf16.mxu1 %v12510_v28  ;;  %v12480_v24 = vcombine.high %v4599_v15, %v4607_v16  ;;  %v4623_v28 = vld [vmem:[%s16263_s2 + $0x250] sm:$0xff]  ;;  %v12479_v31 = vcombine.low %v4599_v15, %v4607_v16  ;;  %v4585_v15 = vld [vmem:[%s16263_s2 + $0x120] sm:$0xff]  ;;  %v4594_v21 = vld [vmem:[%s16263_s2 + $0x168] sm:$0xff] }
 0x5d2   : > { %v4593_v16 = vld [vmem:[%s16263_s2 + $0x160] sm:$0xff] }
 0x5d4   : > { %5454 = vmatpush1.bf16.msra.mxu1 %v12509_v26  ;;  %v4615_v26 = vld [vmem:[%s16263_s2 + $0x210] sm:$0xff] }
 0x5d5   : > { %5455 = vmatprep.subr.bf16.mxu1 %v12526_v36  ;;  %v12496_v33 = vcombine.high %v4615_v26, %v4623_v28  ;;  %v4639_v36 = vld [vmem:[%s16263_s2 + $0x2d0] sm:$0xff]  ;;  %v12495_v39 = vcombine.low %v4615_v26, %v4623_v28  ;;  %v4601_v26 = vld [vmem:[%s16263_s2 + $0x1a0] sm:$0xff] }
 0x5d6   : > { %v4609_v28 = vld [vmem:[%s16263_s2 + $0x1e0] sm:$0xff] }
 0x5d8   : > { %5456 = vmatpush1.bf16.msra.mxu1 %v12525_v35  ;;  %v4631_v35 = vld [vmem:[%s16263_s2 + $0x290] sm:$0xff] }
 0x5d9   : > { %5457 = vmatprep.subr.bf16.mxu1 %v12542_v44  ;;  %v12512_v42 = vcombine.high %v4631_v35, %v4639_v36  ;;  %v4655_v44 = vld [vmem:[%s16263_s2 + $0x350] sm:$0xff]  ;;  %v12511_v47 = vcombine.low %v4631_v35, %v4639_v36  ;;  %v4617_v35 = vld [vmem:[%s16263_s2 + $0x220] sm:$0xff] }
 0x5da   : > { %v4625_v36 = vld [vmem:[%s16263_s2 + $0x260] sm:$0xff] }
 0x5dc   : > { %5458 = vmatpush1.bf16.msra.mxu1 %v12541_v43  ;;  %v4647_v43 = vld [vmem:[%s16263_s2 + $0x310] sm:$0xff] }
 0x5dd   : > { %5525 = vmatprep.subr.bf16.mxu1 %v12434_v52  ;;  %v12528_v49 = vcombine.high %v4647_v43, %v4655_v44  ;;  %v4671_v52 = vld [vmem:[%s16263_s2 + $0x3d0] sm:$0xff] }
 0x65c   : > { %v4527_v60 = vpop.xlane.xlu0 %4526 }
 0x65d   : > { %v4529_v61 = vmul.f32 0.0078125, %v4527_v60 }
 0x65f   : > { %v16400_v62 = vsub.f32 %v4523_v34, %v4529_v61  ;;  %v12523_v34 = vcombine.low %v4645_v29, %v4653_v30  ;;  %v4547_v61 = vrot.slane %v16378_v19, %v16435_v58  ;;  %v4591_v19 = vld [vmem:[%s16263_s2 + $0x150] sm:$0xff]  ;;  %v4616_v29 = vld [vmem:[%s16263_s2 + $0x218] sm:$0xff] }
 0x660   : > { %v12464_v13 = vcombine.high %v4583_v9, %v4591_v19  ;;  %v12463_v22 = vcombine.low %v4583_v9, %v4591_v19  ;;  %v4624_v30 = vld [vmem:[%s16263_s2 + $0x258] sm:$0xff]  ;;  %v4569_v9 = vld [vmem:[%s16263_s2 + $0xa0] sm:$0xff] }
 0x661   : > { %v4531_v63 = vmul.f32 %v16400_v62, %v16400_v62  ;;  %5415 = vmatpush1.bf16.msra.mxu0 %v12523_v34  ;;  %v12498_v34 = vcombine.high %v4616_v29, %v4624_v30  ;;  %v4577_v19 = vld [vmem:[%s16263_s2 + $0xe0] sm:$0xff] }
 0x662   : > { %5416 = vmatprep.subr.bf16.mxu0 %v12540_v40  ;;  %v12497_v40 = vcombine.low %v4616_v29, %v4624_v30  ;;  %v4602_v29 = vld [vmem:[%s16263_s2 + $0x1a8] sm:$0xff] }
 0x663   : > { %v4532_v0 = vsel %vm4524_vm1, %v4531_v63, 0.0  ;;  %v4610_v30 = vld [vmem:[%s16263_s2 + $0x1e8] sm:$0xff] }
 0x664   : > { %4533 = vadd.xlane.f32.xlu0 %v4532_v0 }
 0x665   : > { %5417 = vmatpush1.bf16.msra.mxu0 %v12539_v41  ;;  %v12514_v41 = vcombine.high %v4632_v37, %v4640_v38 }
 0x666   : > { %5484 = vmatprep.subr.bf16.mxu0 %v12432_v48  ;;  %v12513_v48 = vcombine.low %v4632_v37, %v4640_v38  ;;  %v4618_v37 = vld [vmem:[%s16263_s2 + $0x228] sm:$0xff] }
 0x667   : > { %v4626_v38 = vld [vmem:[%s16263_s2 + $0x268] sm:$0xff] }
 0x6f1   : > { %v4534_v54 = vpop.xlane.xlu0 %4533 }
 0x6f2   : > { %v4535_v55 = vmul.f32 0.0078125, %v4534_v54  ;;  %v4664_v54 = vld [vmem:[%s16263_s2 + $0x398] sm:$0xff] }
 0x6f4   : > { %v4536_v56 = vadd.f32 1e-05, %v4535_v55  ;;  %v4672_v55 = vld [vmem:[%s16263_s2 + $0x3d8] sm:$0xff] }
 0x6f5   : > { %v12545_v4 = vcombine.low %v4664_v54, %v4672_v55 }
 0x6f6   : > { %14654 = vrsqrt.f32 %v4536_v56  ;;  %v12527_v56 = vcombine.low %v4647_v43, %v4655_v44  ;;  %v4633_v43 = vld [vmem:[%s16263_s2 + $0x2a0] sm:$0xff] }
 0x6f7   : > { %v4641_v44 = vld [vmem:[%s16263_s2 + $0x2e0] sm:$0xff] }
 0x700   : > { %v14655_v60 = vpop.eup %14654 }
 0x701   : > { %v4538_v63 = vmul.f32 %v14655_v60, %v16400_v62  ;;  %v4584_v62 = vld [vmem:[%s16263_s2 + $0x118] sm:$0xff] }
 0x702   : > { %v12466_v14 = vcombine.high %v4584_v62, %v4592_v10  ;;  %v12465_v23 = vcombine.low %v4584_v62, %v4592_v10  ;;  %v4570_v62 = vld [vmem:[%s16263_s2 + $0xa8] sm:$0xff] }
 0x703   : > { %v4543_v0 = vmul.f32 %v4542_v59, %v4538_v63  ;;  %v12529_v59 = vcombine.low %v4648_v45, %v4656_v46  ;;  %v4553_v63 = vld [vmem:[%s16263_s2 + $0x20] sm:$0xff]  ;;  %v4578_v10 = vld [vmem:[%s16263_s2 + $0xe8] sm:$0xff] }
 0x705   : > { %v16446_v5 = vadd.f32 %v4547_v61, %v4543_v0  ;;  %v12546_v61 = vcombine.high %v4664_v54, %v4672_v55  ;;  %v4561_v0 = vld [vmem:[%s16263_s2 + $0x60] sm:$0xff]  ;;  %v4650_v54 = vld [vmem:[%s16263_s2 + $0x328] sm:$0xff] }
 0x706   : > { %v4658_v55 = vld [vmem:[%s16263_s2 + $0x368] sm:$0xff] }
 0x707   : > { %v16450_v6 = vpack.c.bf16 %v16446_v5, %v16446_v5 }
 0x709   : > { %5435 = vmatmul.mubr.bf16.vlgmr.msra.gmra.mrb[4].mxu0 %v16450_v6  ;;  %5476 = vmatmul.mubr.bf16.vlgmr.msra.gmra.mrb[4].mxu1 %v16450_v6 }
 0x70a   : > { %5485 = vmatpush1.bf16.msra.mxu0 %v12431_v50  ;;  %5526 = vmatpush1.bf16.msra.mxu1 %v12433_v51  ;;  %v12530_v50 = vcombine.high %v4648_v45, %v4656_v46  ;;  %v4663_v51 = vld [vmem:[%s16263_s2 + $0x390] sm:$0xff]  ;;  %v4634_v45 = vld [vmem:[%s16263_s2 + $0x2a8] sm:$0xff] }
 0x70b   : > { %5486 = vmatprep.subr.bf16.mxu0 %v12448_v7  ;;  %5527 = vmatprep.subr.bf16.mxu1 %v12450_v8  ;;  %v12544_v60 = vcombine.high %v4663_v51, %v4671_v52  ;;  %v12543_v3 = vcombine.low %v4663_v51, %v4671_v52  ;;  %v12436_v7 = vcombine.high %v4553_v63, %v4561_v0  ;;  %v4642_v46 = vld [vmem:[%s16263_s2 + $0x2e8] sm:$0xff]  ;;  %v4649_v51 = vld [vmem:[%s16263_s2 + $0x320] sm:$0xff] }
 0x70c   : > { %5516 = vmatprep.mubr.bf16.mxu0 %v15491_v53  ;;  %5557 = vmatprep.mubr.bf16.mxu1 %v15491_v53  ;;  %v12438_v8 = vcombine.high %v4554_v1, %v4562_v2  ;;  %v4657_v52 = vld [vmem:[%s16263_s2 + $0x360] sm:$0xff] }
 0x70e   : > { %5487 = vmatpush1.bf16.msra.mxu0 %v12447_v11  ;;  %5528 = vmatpush1.bf16.msra.mxu1 %v12449_v12  ;;  %v12435_v11 = vcombine.low %v4553_v63, %v4561_v0  ;;  %v12437_v12 = vcombine.low %v4554_v1, %v4562_v2  ;;  %v4665_v63 = vld [vmem:[%s16263_s2 + $0x3a0] sm:$0xff]  ;;  %v4666_v1 = vld [vmem:[%s16263_s2 + $0x3a8] sm:$0xff] }
 0x70f   : > { %5488 = vmatprep.subr.bf16.mxu0 %v12464_v13  ;;  %5529 = vmatprep.subr.bf16.mxu1 %v12466_v14  ;;  %v12452_v13 = vcombine.high %v4569_v9, %v4577_v19  ;;  %v12454_v14 = vcombine.high %v4570_v62, %v4578_v10  ;;  %v4673_v0 = vld [vmem:[%s16263_s2 + $0x3e0] sm:$0xff]  ;;  %v4674_v2 = vld [vmem:[%s16263_s2 + $0x3e8] sm:$0xff] }
 0x712   : > { %5489 = vmatpush1.bf16.msra.mxu0 %v12463_v22  ;;  %5530 = vmatpush1.bf16.msra.mxu1 %v12465_v23  ;;  %v12451_v22 = vcombine.low %v4569_v9, %v4577_v19  ;;  %v12453_v23 = vcombine.low %v4570_v62, %v4578_v10  ;;  %v4555_v9 = vld [vmem:[%s16263_s2 + $0x30] sm:$0xff]  ;;  %v4556_v62 = vld [vmem:[%s16263_s2 + $0x38] sm:$0xff] }
 0x713   : > { %5490 = vmatprep.subr.bf16.mxu0 %v12480_v24  ;;  %5531 = vmatprep.subr.bf16.mxu1 %v12482_v25  ;;  %v12468_v24 = vcombine.high %v4585_v15, %v4593_v16  ;;  %v12470_v25 = vcombine.high %v4586_v20, %v4594_v21  ;;  %v4563_v19 = vld [vmem:[%s16263_s2 + $0x70] sm:$0xff]  ;;  %v4564_v10 = vld [vmem:[%s16263_s2 + $0x78] sm:$0xff] }
 0x716   : > { %5491 = vmatpush1.bf16.msra.mxu0 %v12479_v31  ;;  %5532 = vmatpush1.bf16.msra.mxu1 %v12481_v32  ;;  %v12467_v31 = vcombine.low %v4585_v15, %v4593_v16  ;;  %v12469_v32 = vcombine.low %v4586_v20, %v4594_v21  ;;  %v4571_v15 = vld [vmem:[%s16263_s2 + $0xb0] sm:$0xff]  ;;  %v4572_v20 = vld [vmem:[%s16263_s2 + $0xb8] sm:$0xff] }
 0x717   : > { %5492 = vmatprep.subr.bf16.mxu0 %v12496_v33  ;;  %5533 = vmatprep.subr.bf16.mxu1 %v12498_v34  ;;  %v12484_v33 = vcombine.high %v4601_v26, %v4609_v28  ;;  %v12486_v34 = vcombine.high %v4602_v29, %v4610_v30  ;;  %v4579_v16 = vld [vmem:[%s16263_s2 + $0xf0] sm:$0xff]  ;;  %v4580_v21 = vld [vmem:[%s16263_s2 + $0xf8] sm:$0xff] }
 0x71a   : > { %5493 = vmatpush1.bf16.msra.mxu0 %v12495_v39  ;;  %5534 = vmatpush1.bf16.msra.mxu1 %v12497_v40  ;;  %v12483_v39 = vcombine.low %v4601_v26, %v4609_v28  ;;  %v12485_v40 = vcombine.low %v4602_v29, %v4610_v30  ;;  %v4587_v26 = vld [vmem:[%s16263_s2 + $0x130] sm:$0xff]  ;;  %v4588_v29 = vld [vmem:[%s16263_s2 + $0x138] sm:$0xff] }
 0x71b   : > { %5494 = vmatprep.subr.bf16.mxu0 %v12512_v42  ;;  %5535 = vmatprep.subr.bf16.mxu1 %v12514_v41  ;;  %v12500_v42 = vcombine.high %v4617_v35, %v4625_v36  ;;  %v12502_v41 = vcombine.high %v4618_v37, %v4626_v38  ;;  %v4595_v28 = vld [vmem:[%s16263_s2 + $0x170] sm:$0xff]  ;;  %v4596_v30 = vld [vmem:[%s16263_s2 + $0x178] sm:$0xff] }
 0x71e   : > { %5495 = vmatpush1.bf16.msra.mxu0 %v12511_v47  ;;  %5536 = vmatpush1.bf16.msra.mxu1 %v12513_v48  ;;  %v12499_v47 = vcombine.low %v4617_v35, %v4625_v36  ;;  %v12501_v48 = vcombine.low %v4618_v37, %v4626_v38  ;;  %v4603_v35 = vld [vmem:[%s16263_s2 + $0x1b0] sm:$0xff]  ;;  %v4604_v37 = vld [vmem:[%s16263_s2 + $0x1b8] sm:$0xff] }
 0x71f   : > { %5496 = vmatprep.subr.bf16.mxu0 %v12528_v49  ;;  %5537 = vmatprep.subr.bf16.mxu1 %v12530_v50  ;;  %v12516_v49 = vcombine.high %v4633_v43, %v4641_v44  ;;  %v12518_v50 = vcombine.high %v4634_v45, %v4642_v46  ;;  %v4611_v36 = vld [vmem:[%s16263_s2 + $0x1f0] sm:$0xff]  ;;  %v4612_v38 = vld [vmem:[%s16263_s2 + $0x1f8] sm:$0xff] }
 0x722   : > { %5497 = vmatpush1.bf16.msra.mxu0 %v12527_v56  ;;  %5538 = vmatpush1.bf16.msra.mxu1 %v12529_v59  ;;  %v12515_v56 = vcombine.low %v4633_v43, %v4641_v44  ;;  %v12517_v59 = vcombine.low %v4634_v45, %v4642_v46  ;;  %v4619_v43 = vld [vmem:[%s16263_s2 + $0x230] sm:$0xff]  ;;  %v4620_v45 = vld [vmem:[%s16263_s2 + $0x238] sm:$0xff] }
 0x723   : > { %5498 = vmatprep.subr.bf16.mxu0 %v12544_v60  ;;  %5539 = vmatprep.subr.bf16.mxu1 %v12546_v61  ;;  %v12532_v60 = vcombine.high %v4649_v51, %v4657_v52  ;;  %v12534_v61 = vcombine.high %v4650_v54, %v4658_v55  ;;  %v4627_v44 = vld [vmem:[%s16263_s2 + $0x270] sm:$0xff]  ;;  %v4628_v46 = vld [vmem:[%s16263_s2 + $0x278] sm:$0xff] }
 0x726   : > { %5499 = vmatpush1.bf16.msra.mxu0 %v12543_v3  ;;  %5540 = vmatpush1.bf16.msra.mxu1 %v12545_v4  ;;  %v12531_v3 = vcombine.low %v4649_v51, %v4657_v52  ;;  %v12533_v4 = vcombine.low %v4650_v54, %v4658_v55  ;;  %v4643_v51 = vld [vmem:[%s16263_s2 + $0x2f0] sm:$0xff]  ;;  %v4636_v52 = vld [vmem:[%s16263_s2 + $0x2b8] sm:$0xff]  ;;  %v12503_v55 = vcombine.low %v4619_v43, %v4627_v44 }
 0x727   : > { %5566 = vmatprep.subr.bf16.mxu0 %v12436_v7  ;;  %5607 = vmatprep.subr.bf16.mxu1 %v12438_v8  ;;  %v12548_v7 = vcombine.high %v4665_v63, %v4673_v0  ;;  %v12550_v8 = vcombine.high %v4666_v1, %v4674_v2  ;;  %v4644_v54 = vld [vmem:[%s16263_s2 + $0x2f8] sm:$0xff] }
 0x729   : > { %5517 = vmatmul.mubr.bf16.vlgmr.msra.gmra.mrb[8].mxu0 %v16450_v6  ;;  %5558 = vmatmul.mubr.bf16.vlgmr.msra.gmra.mrb[8].mxu1 %v16450_v6 }
 0x72a   : > { %5567 = vmatpush1.bf16.msra.mxu0 %v12435_v11  ;;  %5608 = vmatpush1.bf16.msra.mxu1 %v12437_v12  ;;  %v12547_v11 = vcombine.low %v4665_v63, %v4673_v0  ;;  %v12549_v12 = vcombine.low %v4666_v1, %v4674_v2  ;;  %v4659_v63 = vld [vmem:[%s16263_s2 + $0x370] sm:$0xff]  ;;  %v4652_v0 = vld [vmem:[%s16263_s2 + $0x338] sm:$0xff] }
 0x72b   : > { %5568 = vmatprep.subr.bf16.mxu0 %v12452_v13  ;;  %5609 = vmatprep.subr.bf16.mxu1 %v12454_v14  ;;  %v12440_v13 = vcombine.high %v4555_v9, %v4563_v19  ;;  %v12442_v14 = vcombine.high %v4556_v62, %v4564_v10  ;;  %v4660_v1 = vld [vmem:[%s16263_s2 + $0x378] sm:$0xff] }
 0x72c   : > { %5598 = vmatprep.mubr.bf16.mxu0 %v15491_v53  ;;  %5639 = vmatprep.mubr.bf16.mxu1 %v15491_v53 }
 0x72e   : > { %5569 = vmatpush1.bf16.msra.mxu0 %v12451_v22  ;;  %5610 = vmatpush1.bf16.msra.mxu1 %v12453_v23  ;;  %v12439_v22 = vcombine.low %v4555_v9, %v4563_v19  ;;  %v12441_v23 = vcombine.low %v4556_v62, %v4564_v10  ;;  %v4675_v9 = vld [vmem:[%s16263_s2 + $0x3f0] sm:$0xff]  ;;  %v4668_v19 = vld [vmem:[%s16263_s2 + $0x3b8] sm:$0xff] }
 0x72f   : > { %5570 = vmatprep.subr.bf16.mxu0 %v12468_v24  ;;  %5611 = vmatprep.subr.bf16.mxu1 %v12470_v25  ;;  %v12456_v24 = vcombine.high %v4571_v15, %v4579_v16  ;;  %v12458_v25 = vcombine.high %v4572_v20, %v4580_v21  ;;  %v4676_v62 = vld [vmem:[%s16263_s2 + $0x3f8] sm:$0xff] }
 0x732   : > { %5571 = vmatpush1.bf16.msra.mxu0 %v12467_v31  ;;  %5612 = vmatpush1.bf16.msra.mxu1 %v12469_v32  ;;  %v12455_v31 = vcombine.low %v4571_v15, %v4579_v16  ;;  %v12457_v32 = vcombine.low %v4572_v20, %v4580_v21  ;;  %v12553_v15 = vcombine.low %v4668_v19, %v4676_v62  ;;  %v14526_v16 = vld [vmem:[%s16265_s19 + $0x40] sm:$0xff]  }
 0x733   : > { %5572 = vmatprep.subr.bf16.mxu0 %v12484_v33  ;;  %5613 = vmatprep.subr.bf16.mxu1 %v12486_v34  ;;  %v12472_v33 = vcombine.high %v4587_v26, %v4595_v28  ;;  %v12474_v34 = vcombine.high %v4588_v29, %v4596_v30  ;;  %v14527_v20 = vld [vmem:[%s16265_s19 + $0xc0] sm:$0xff]  }
 0x734   : > { %v14528_v21 = vld [vmem:[%s16265_s19] sm:$0xff]  }
 0x736   : > { %5573 = vmatpush1.bf16.msra.mxu0 %v12483_v39  ;;  %5614 = vmatpush1.bf16.msra.mxu1 %v12485_v40  ;;  %v12471_v39 = vcombine.low %v4587_v26, %v4595_v28  ;;  %v12473_v40 = vcombine.low %v4588_v29, %v4596_v30  ;;  %v14533_v26 = vld [vmem:[%s16265_s19 + $0x88] sm:$0xff]   ;;  %v14534_v28 = vld [vmem:[%s16265_s19 + $0x50] sm:$0xff]  }
 0x737   : > { %5574 = vmatprep.subr.bf16.mxu0 %v12500_v42  ;;  %5615 = vmatprep.subr.bf16.mxu1 %v12502_v41  ;;  %v12488_v42 = vcombine.high %v4603_v35, %v4611_v36  ;;  %v12490_v41 = vcombine.high %v4604_v37, %v4612_v38  ;;  %v14535_v29 = vld [vmem:[%s16265_s19 + $0xd0] sm:$0xff]  }
 0x738   : > { %v14536_v30 = vld [vmem:[%s16265_s19 + $0x10] sm:$0xff]  }
 0x73a   : > { %5575 = vmatpush1.bf16.msra.mxu0 %v12499_v47  ;;  %5616 = vmatpush1.bf16.msra.mxu1 %v12501_v48  ;;  %v12487_v47 = vcombine.low %v4603_v35, %v4611_v36  ;;  %v12504_v48 = vcombine.high %v4619_v43, %v4627_v44  ;;  %v14542_v35 = vld [vmem:[%s16265_s19 + $0x60] sm:$0xff]   ;;  %v14550_v43 = vld [vmem:[%s16265_s19 + $0x70] sm:$0xff]  }
 0x73b   : > { %5576 = vmatprep.subr.bf16.mxu0 %v12516_v49  ;;  %5617 = vmatprep.subr.bf16.mxu1 %v12518_v50  ;;  %v12506_v49 = vcombine.high %v4620_v45, %v4628_v46  ;;  %v4635_v50 = vld [vmem:[%s16263_s2 + $0x2b0] sm:$0xff]  ;;  %v14543_v36 = vld [vmem:[%s16265_s19 + $0xe0] sm:$0xff]  }
 0x73c   : > { %v12519_v2 = vcombine.low %v4635_v50, %v4643_v51  ;;  %v14551_v44 = vld [vmem:[%s16265_s19 + $0xf0] sm:$0xff]  }
 0x73e   : > { %5577 = vmatpush1.bf16.msra.mxu0 %v12515_v56  ;;  %5618 = vmatpush1.bf16.msra.mxu1 %v12517_v59  ;;  %v12505_v56 = vcombine.low %v4620_v45, %v4628_v46  ;;  %v12520_v59 = vcombine.high %v4635_v50, %v4643_v51  ;;  %v14552_v45 = vld [vmem:[%s16265_s19 + $0x30] sm:$0xff]   ;;  %v14558_v50 = vld [vmem:[%s16265_s19 + $0x140] sm:$0xff]  }
 0x73f   : > { %5578 = vmatprep.subr.bf16.mxu0 %v12532_v60  ;;  %5619 = vmatprep.subr.bf16.mxu1 %v12534_v61  ;;  %v12522_v60 = vcombine.high %v4636_v52, %v4644_v54  ;;  %v4651_v61 = vld [vmem:[%s16263_s2 + $0x330] sm:$0xff]  ;;  %v14559_v51 = vld [vmem:[%s16265_s19 + $0x1c0] sm:$0xff]  }
 0x740   : > { %v12535_v10 = vcombine.low %v4651_v61, %v4659_v63  ;;  %v14553_v46 = vld [vmem:[%s16265_s19 + $0xb0] sm:$0xff]  }
 0x742   : > { %5579 = vmatpush1.bf16.msra.mxu0 %v12531_v3  ;;  %5620 = vmatpush1.bf16.msra.mxu1 %v12533_v4  ;;  %v12521_v3 = vcombine.low %v4636_v52, %v4644_v54  ;;  %v12536_v4 = vcombine.high %v4651_v61, %v4659_v63  ;;  %v16589_v52 = vld [vmem:[%s16304_s16] sm:$0xff] }
 0x743   : > { %5580 = vmatprep.subr.bf16.mxu0 %v12548_v7  ;;  %5621 = vmatprep.subr.bf16.mxu1 %v12550_v8  ;;  %v12538_v7 = vcombine.high %v4652_v0, %v4660_v1  ;;  %v4667_v8 = vld [vmem:[%s16263_s2 + $0x3b0] sm:$0xff]  ;;  %v4685_v54 = vrot.slane %v16589_v52, %v16375_v18 }
 0x746   : > { %5581 = vmatpush1.bf16.msra.mxu0 %v12547_v11  ;;  %5622 = vmatpush1.bf16.msra.mxu1 %v12549_v12  ;;  %v12537_v11 = vcombine.low %v4652_v0, %v4660_v1  ;;  %v12552_v12 = vcombine.high %v4667_v8, %v4675_v9 }
 0x747   : > { %5648 = vmatprep.subr.bf16.mxu0 %v12440_v13  ;;  %5689 = vmatprep.subr.bf16.mxu1 %v12442_v14  ;;  %v12554_v13 = vcombine.high %v4668_v19, %v4676_v62  ;;  %v12551_v14 = vcombine.low %v4667_v8, %v4675_v9 }
 0x749   : > { %5599 = vmatmul.mubr.bf16.vlgmr.msra.gmra.mrb[12].mxu0 %v16450_v6  ;;  %5640 = vmatmul.mubr.bf16.vlgmr.msra.gmra.mrb[12].mxu1 %v16450_v6 }
 0x74a   : > { %5649 = vmatpush1.bf16.msra.mxu0 %v12439_v22  ;;  %5690 = vmatpush1.bf16.msra.mxu1 %v12441_v23  ;;  %v14529_v22 = vld [vmem:[%s16265_s19 + $0x80] sm:$0xff]   ;;  %v14530_v23 = vld [vmem:[%s16265_s19 + $0x48] sm:$0xff]  }
 0x74b   : > { %5650 = vmatprep.subr.bf16.mxu0 %v12456_v24  ;;  %5691 = vmatprep.subr.bf16.mxu1 %v12458_v25  ;;  %v14531_v24 = vld [vmem:[%s16265_s19 + $0xc8] sm:$0xff]  }
 0x74c   : > { %5680 = vmatprep.mubr.bf16.mxu0 %v15491_v53  ;;  %5721 = vmatprep.mubr.bf16.mxu1 %v15491_v53  ;;  %v12489_v53 = vcombine.low %v4604_v37, %v4612_v38  ;;  %v14532_v25 = vld [vmem:[%s16265_s19 + $0x8] sm:$0xff]   ;;  %v14544_v37 = vld [vmem:[%s16265_s19 + $0x20] sm:$0xff]  }
 0x74d   : > { %v14545_v38 = vld [vmem:[%s16265_s19 + $0xa0] sm:$0xff]  }
 0x74e   : > { %5651 = vmatpush1.bf16.msra.mxu0 %v12455_v31  ;;  %5692 = vmatpush1.bf16.msra.mxu1 %v12457_v32  ;;  %v14537_v31 = vld [vmem:[%s16265_s19 + $0x90] sm:$0xff]   ;;  %v14539_v32 = vld [vmem:[%s16265_s19 + $0xd8] sm:$0xff]  }
 0x74f   : > { %5652 = vmatprep.subr.bf16.mxu0 %v12472_v33  ;;  %5693 = vmatprep.subr.bf16.mxu1 %v12474_v34  ;;  %v14540_v33 = vld [vmem:[%s16265_s19 + $0x18] sm:$0xff]  }
 0x750   : > { %v14541_v34 = vld [vmem:[%s16265_s19 + $0x98] sm:$0xff]  }
 0x752   : > { %5653 = vmatpush1.bf16.msra.mxu0 %v12471_v39  ;;  %5694 = vmatpush1.bf16.msra.mxu1 %v12473_v40  ;;  %v14546_v39 = vld [vmem:[%s16265_s19 + $0x68] sm:$0xff]  }
 0x753   : > { %5654 = vmatprep.subr.bf16.mxu0 %v12488_v42  ;;  %5695 = vmatprep.subr.bf16.mxu1 %v12490_v41  ;;  %v14547_v40 = vld [vmem:[%s16265_s19 + $0xe8] sm:$0xff]  }
 0x754   : > { %v14548_v42 = vld [vmem:[%s16265_s19 + $0x28] sm:$0xff]  }
 0x755   : > { %v14549_v41 = vld [vmem:[%s16265_s19 + $0xa8] sm:$0xff]  }
 0x756   : > { %5655 = vmatpush1.bf16.msra.mxu0 %v12487_v47  ;;  %5696 = vmatpush1.bf16.msra.mxu1 %v12489_v53  ;;  %v14554_v47 = vld [vmem:[%s16265_s19 + $0x78] sm:$0xff]  }
 0x757   : > { %5656 = vmatprep.subr.bf16.mxu0 %v12504_v48  ;;  %5697 = vmatprep.subr.bf16.mxu1 %v12506_v49  ;;  %v14555_v53 = vld [vmem:[%s16265_s19 + $0xf8] sm:$0xff]  }
 0x758   : > { %v14556_v48 = vld [vmem:[%s16265_s19 + $0x38] sm:$0xff]  }
 0x759   : > { %v14557_v49 = vld [vmem:[%s16265_s19 + $0xb8] sm:$0xff]  }
 0x75a   : > { %5657 = vmatpush1.bf16.msra.mxu0 %v12503_v55  ;;  %5698 = vmatpush1.bf16.msra.mxu1 %v12505_v56  ;;  %v4693_v55 = vrot.slane %v16589_v52, %v16432_v57  ;;  %v4689_v56 = vrot.slane %v16589_v52, %v16383_v27 }
 0x75b   : > { %5658 = vmatprep.subr.bf16.mxu0 %v12520_v59  ;;  %5699 = vmatprep.subr.bf16.mxu1 %v12522_v60  ;;  %v4697_v59 = vrot.slane %v16589_v52, %v16435_v58 }
 0x75e   : > { %5659 = vmatpush1.bf16.msra.mxu0 %v12519_v2  ;;  %5700 = vmatpush1.bf16.msra.mxu1 %v12521_v3 }
 0x75f   : > { %5660 = vmatprep.subr.bf16.mxu0 %v12536_v4  ;;  %5701 = vmatprep.subr.bf16.mxu1 %v12538_v7 }
 0x762   : > { %5661 = vmatpush1.bf16.msra.mxu0 %v12535_v10  ;;  %5702 = vmatpush1.bf16.msra.mxu1 %v12537_v11 }
 0x763   : > { %5662 = vmatprep.subr.bf16.mxu0 %v12552_v12  ;;  %5703 = vmatprep.subr.bf16.mxu1 %v12554_v13 }
 0x766   : > { %5663 = vmatpush1.bf16.msra.mxu0 %v12551_v14  ;;  %5704 = vmatpush1.bf16.msra.mxu1 %v12553_v15  ;;  %v14560_v15 = vld [vmem:[%s16265_s19 + $0x100] sm:$0xff]  }
 0x767   : > { %13416 = vmatprep.subr.bf16.mxu0 %v14526_v16  ;;  %13438 = vmatprep.subr.bf16.mxu1 %v14527_v20  ;;  %v14561_v16 = vld [vmem:[%s16265_s19 + $0x180] sm:$0xff]  }
 0x769   : > { %5681 = vmatmul.mubr.bf16.vlgmr.msra.gmra.mrb[16].mxu0 %v16450_v6  ;;  %5722 = vmatmul.mubr.bf16.vlgmr.msra.gmra.mrb[16].mxu1 %v16450_v6  ;;  %v14538_v6 = vld [vmem:[%s16265_s19 + $0x58] sm:$0xff]  }
 0x76a   : > { %13417 = vmatpush3.bf16.msra.mxu0 %v14528_v21  ;;  %13439 = vmatpush3.bf16.msra.mxu1 %v14529_v22  ;;  %v14562_v22 = vld [vmem:[%s16265_s19 + $0x148] sm:$0xff]  }
 0x76b   : > { %13418 = vmatprep.subr.bf16.mxu0 %v14530_v23  ;;  %13440 = vmatprep.subr.bf16.mxu1 %v14531_v24  ;;  %v14563_v23 = vld [vmem:[%s16265_s19 + $0x1c8] sm:$0xff]  }
 0x76c   : > { %v14564_v24 = vld [vmem:[%s16265_s19 + $0x108] sm:$0xff]  }
 0x76e   : > { %13419 = vmatpush3.bf16.msra.mxu0 %v14532_v25  ;;  %13441 = vmatpush3.bf16.msra.mxu1 %v14533_v26  ;;  %v14565_v25 = vld [vmem:[%s16265_s19 + $0x188] sm:$0xff]   ;;  %v14566_v26 = vld [vmem:[%s16265_s19 + $0x150] sm:$0xff]  }
 0x76f   : > { %13420 = vmatprep.subr.bf16.mxu0 %v14534_v28  ;;  %13442 = vmatprep.subr.bf16.mxu1 %v14535_v29  ;;  %v14567_v28 = vld [vmem:[%s16265_s19 + $0x1d0] sm:$0xff]  }
 0x770   : > { %v14568_v29 = vld [vmem:[%s16265_s19 + $0x110] sm:$0xff]  }
 0x772   : > { %13421 = vmatpush3.bf16.msra.mxu0 %v14536_v30  ;;  %13443 = vmatpush3.bf16.msra.mxu1 %v14537_v31  ;;  %v14569_v30 = vld [vmem:[%s16265_s19 + $0x190] sm:$0xff]   ;;  %v14570_v31 = vld [vmem:[%s16265_s19 + $0x158] sm:$0xff]  }
 0x773   : > { %13422 = vmatprep.subr.bf16.mxu0 %v14538_v6  ;;  %13444 = vmatprep.subr.bf16.mxu1 %v14539_v32  ;;  %v14571_v6 = vld [vmem:[%s16265_s19 + $0x1d8] sm:$0xff]  }
 0x774   : > { %v14572_v32 = vld [vmem:[%s16265_s19 + $0x118] sm:$0xff]  }
 0x776   : > { %13423 = vmatpush3.bf16.msra.mxu0 %v14540_v33  ;;  %13445 = vmatpush3.bf16.msra.mxu1 %v14541_v34  ;;  %v14573_v33 = vld [vmem:[%s16265_s19 + $0x198] sm:$0xff]   ;;  %v14574_v34 = vld [vmem:[%s16265_s19 + $0x160] sm:$0xff]  }
 0x777   : > { %13424 = vmatprep.subr.bf16.mxu0 %v14542_v35  ;;  %13446 = vmatprep.subr.bf16.mxu1 %v14543_v36  ;;  %v14575_v35 = vld [vmem:[%s16265_s19 + $0x1e0] sm:$0xff]  }
 0x778   : > { %v14576_v36 = vld [vmem:[%s16265_s19 + $0x120] sm:$0xff]  }
 0x77a   : > { %13425 = vmatpush3.bf16.msra.mxu0 %v14544_v37  ;;  %13447 = vmatpush3.bf16.msra.mxu1 %v14545_v38  ;;  %v14577_v37 = vld [vmem:[%s16265_s19 + $0x1a0] sm:$0xff]   ;;  %v14578_v38 = vld [vmem:[%s16265_s19 + $0x168] sm:$0xff]  }
 0x77b   : > { %13426 = vmatprep.subr.bf16.mxu0 %v14546_v39  ;;  %13448 = vmatprep.subr.bf16.mxu1 %v14547_v40  ;;  %v14579_v39 = vld [vmem:[%s16265_s19 + $0x1e8] sm:$0xff]   ;;  %v16620_v40 = vsub.s32 4, %v16372_v17 }
 0x77e   : > { %13427 = vmatpush3.bf16.msra.mxu0 %v14548_v42  ;;  %13449 = vmatpush3.bf16.msra.mxu1 %v14549_v41  ;;  %v16623_v42 = vsub.s32 6, %v16372_v17  ;;  %v14580_v41 = vld [vmem:[%s16265_s19 + $0x128] sm:$0xff]  }
 0x77f   : > { %13428 = vmatprep.subr.bf16.mxu0 %v14550_v43  ;;  %13450 = vmatprep.subr.bf16.mxu1 %v14551_v44  ;;  %v14581_v43 = vld [vmem:[%s16265_s19 + $0x1a8] sm:$0xff]   ;;  %v16628_v44 = vsub.s32 5, %v16372_v17 }
 0x782   : > { %13429 = vmatpush3.bf16.msra.mxu0 %v14552_v45  ;;  %13451 = vmatpush3.bf16.msra.mxu1 %v14553_v46  ;;  %v4712_v45 = vsub.s32 7, %v16372_v17  ;;  %v14582_v46 = vld [vmem:[%s16265_s19 + $0x170] sm:$0xff]  }
 0x783   : > { %13430 = vmatprep.subr.bf16.mxu0 %v14554_v47  ;;  %13452 = vmatprep.subr.bf16.mxu1 %v14555_v53  ;;  %v14583_v47 = vld [vmem:[%s16265_s19 + $0x1f0] sm:$0xff]   ;;  %v4701_v53 = vrot.slane %v16589_v52, %v16620_v40 }
 0x786   : > { %13431 = vmatpush3.bf16.msra.mxu0 %v14556_v48  ;;  %13453 = vmatpush3.bf16.msra.mxu1 %v14557_v49  ;;  %v4709_v48 = vrot.slane %v16589_v52, %v16623_v42  ;;  %v4705_v49 = vrot.slane %v16589_v52, %v16628_v44 }
 0x787   : > { %13460 = vmatprep.subr.bf16.mxu0 %v14558_v50  ;;  %13482 = vmatprep.subr.bf16.mxu1 %v14559_v51  ;;  %v4713_v50 = vrot.slane %v16589_v52, %v4712_v45  ;;  %v14584_v51 = vld [vmem:[%s16265_s19 + $0x130] sm:$0xff]  }
 0x7dc   : > { %v5436_v60 = vpop.f32.mrb[4].mxu0  ;;  %v5477_v61 = vpop.f32.mrb[4].mxu1 }
 0x7dd   : > { %v5437_v63 = vadd.f32 %v5436_v60, %v4685_v54  ;;  %v5478_v0 = vadd.f32 %v5477_v61, %v4693_v55  ;;  %v5438_v1 = vpop.f32.mrb[5].mxu0  ;;  %v5479_v2 = vpop.f32.mrb[5].mxu1  ;;  %v14585_v54 = vld [vmem:[%s16265_s19 + $0x1b0] sm:$0xff]   ;;  %v14586_v55 = vld [vmem:[%s16265_s19 + $0x178] sm:$0xff]  }
 0x7de   : > { %v5439_v3 = vadd.f32 %v5438_v1, %v4689_v56  ;;  %v5480_v4 = vadd.f32 %v5479_v2, %v4697_v59  ;;  %v5440_v7 = vpop.f32.mrb[6].mxu0  ;;  %v5481_v8 = vpop.f32.mrb[6].mxu1  ;;  %v14587_v56 = vld [vmem:[%s16265_s19 + $0x1f8] sm:$0xff]  }
 0x7df   : > { %v5730_v9 = vmax.f32 %v5437_v63, 0.0  ;;  %v5732_v19 = vmax.f32 %v5478_v0, 0.0  ;;  %v5441_v62 = vpop.f32.mrb[7].mxu0  ;;  %v5482_v10 = vpop.f32.mrb[7].mxu1  ;;  %v14588_v7 = vld [vmem:[%s16265_s19 + $0x138] sm:$0xff]  }
 0x7e0   : > { %v5731_v11 = vmax.f32 %v5439_v3, 0.0  ;;  %v5733_v12 = vmax.f32 %v5480_v4, 0.0  ;;  %v14589_v8 = vld [vmem:[%s16265_s19 + $0x1b8] sm:$0xff]  }
 0x7e1   : > { %v6002_v20 = vpack.c.bf16 %v5730_v9, %v5730_v9  ;;  %v6004_v21 = vpack.c.bf16 %v5732_v19, %v5732_v19 }
 0x7e2   : > { %v6003_v13 = vpack.c.bf16 %v5731_v11, %v5731_v11  ;;  %v6005_v14 = vpack.c.bf16 %v5733_v12, %v5733_v12  ;;  %v14590_v11 = vld [vmem:[%s16265_s19 + $0x240] sm:$0xff]  }
 0x7e3   : > { %v14591_v12 = vld [vmem:[%s16265_s19 + $0x2c0] sm:$0xff]  }
 0x7e4   : > { %6822 = vmatprep.mubr.bf16.mxu0 %v6003_v13  ;;  %6862 = vmatprep.mubr.bf16.mxu1 %v6005_v14 }
 0x7e5   : > { %6823 = vmatmul.mubr.bf16.vlgmr.msra.gmra.mrb[20].mxu0 %v6002_v20  ;;  %6863 = vmatmul.mubr.bf16.vlgmr.msra.gmra.mrb[20].mxu1 %v6004_v21  ;;  %v14592_v20 = vld [vmem:[%s16265_s19 + $0x200] sm:$0xff]  }
 0x7e6   : > { %13461 = vmatpush3.bf16.msra.mxu0 %v14560_v15  ;;  %13483 = vmatpush3.bf16.msra.mxu1 %v14561_v16  ;;  %v14593_v21 = vld [vmem:[%s16265_s19 + $0x280] sm:$0xff]  }
 0x7e7   : > { %13462 = vmatprep.subr.bf16.mxu0 %v14562_v22  ;;  %13484 = vmatprep.subr.bf16.mxu1 %v14563_v23 }
 0x7ea   : > { %13463 = vmatpush3.bf16.msra.mxu0 %v14564_v24  ;;  %13485 = vmatpush3.bf16.msra.mxu1 %v14565_v25  ;;  %v14594_v24 = vld [vmem:[%s16265_s19 + $0x248] sm:$0xff]  }
 0x7eb   : > { %13464 = vmatprep.subr.bf16.mxu0 %v14566_v26  ;;  %13486 = vmatprep.subr.bf16.mxu1 %v14567_v28  ;;  %v14595_v25 = vld [vmem:[%s16265_s19 + $0x2c8] sm:$0xff]  }
 0x7ec   : > { %v14596_v26 = vld [vmem:[%s16265_s19 + $0x208] sm:$0xff]  }
 0x7ed   : > { %v14597_v28 = vld [vmem:[%s16265_s19 + $0x288] sm:$0xff]  }
 0x7ee   : > { %13465 = vmatpush3.bf16.msra.mxu0 %v14568_v29  ;;  %13487 = vmatpush3.bf16.msra.mxu1 %v14569_v30  ;;  %v14598_v29 = vld [vmem:[%s16265_s19 + $0x250] sm:$0xff]  }
 0x7ef   : > { %13466 = vmatprep.subr.bf16.mxu0 %v14570_v31  ;;  %13488 = vmatprep.subr.bf16.mxu1 %v14571_v6  ;;  %v14599_v30 = vld [vmem:[%s16265_s19 + $0x2d0] sm:$0xff]  }
 0x7f0   : > { %v14600_v31 = vld [vmem:[%s16265_s19 + $0x210] sm:$0xff]  }
 0x7f1   : > { %v14601_v6 = vld [vmem:[%s16265_s19 + $0x290] sm:$0xff]  }
 0x7f2   : > { %13467 = vmatpush3.bf16.msra.mxu0 %v14572_v32  ;;  %13489 = vmatpush3.bf16.msra.mxu1 %v14573_v33  ;;  %v14602_v32 = vld [vmem:[%s16265_s19 + $0x258] sm:$0xff]  }
 0x7f3   : > { %13468 = vmatprep.subr.bf16.mxu0 %v14574_v34  ;;  %13490 = vmatprep.subr.bf16.mxu1 %v14575_v35  ;;  %v14603_v33 = vld [vmem:[%s16265_s19 + $0x2d8] sm:$0xff]  }
 0x7f4   : > { %v14604_v34 = vld [vmem:[%s16265_s19 + $0x218] sm:$0xff]  }
 0x7f5   : > { %v14605_v35 = vld [vmem:[%s16265_s19 + $0x298] sm:$0xff]  }
 0x7f6   : > { %13469 = vmatpush3.bf16.msra.mxu0 %v14576_v36  ;;  %13491 = vmatpush3.bf16.msra.mxu1 %v14577_v37  ;;  %v14606_v36 = vld [vmem:[%s16265_s19 + $0x260] sm:$0xff]  }
 0x7f7   : > { %13470 = vmatprep.subr.bf16.mxu0 %v14578_v38  ;;  %13492 = vmatprep.subr.bf16.mxu1 %v14579_v39  ;;  %v14607_v37 = vld [vmem:[%s16265_s19 + $0x2e0] sm:$0xff]  }
 0x7f8   : > { %v14608_v38 = vld [vmem:[%s16265_s19 + $0x220] sm:$0xff]  }
 0x7f9   : > { %v14609_v39 = vld [vmem:[%s16265_s19 + $0x2a0] sm:$0xff]  }
 0x7fa   : > { %13471 = vmatpush3.bf16.msra.mxu0 %v14580_v41  ;;  %13493 = vmatpush3.bf16.msra.mxu1 %v14581_v43  ;;  %v14610_v41 = vld [vmem:[%s16265_s19 + $0x268] sm:$0xff]  }
 0x7fb   : > { %13472 = vmatprep.subr.bf16.mxu0 %v14582_v46  ;;  %13494 = vmatprep.subr.bf16.mxu1 %v14583_v47  ;;  %v14611_v43 = vld [vmem:[%s16265_s19 + $0x2e8] sm:$0xff]  }
 0x7fc   : > { %v5518_v59 = vpop.f32.mrb[8].mxu0  ;;  %v5559_v60 = vpop.f32.mrb[8].mxu1  ;;  %v14612_v46 = vld [vmem:[%s16265_s19 + $0x228] sm:$0xff]  }
 0x7fd   : > { %v5519_v61 = vadd.f32 %v5518_v59, %v4701_v53  ;;  %v5560_v63 = vadd.f32 %v5559_v60, %v4709_v48  ;;  %v5520_v0 = vpop.f32.mrb[9].mxu0  ;;  %v5561_v1 = vpop.f32.mrb[9].mxu1  ;;  %v14613_v47 = vld [vmem:[%s16265_s19 + $0x2a8] sm:$0xff]   ;;  %v16673_v53 = vld [vmem:[%s16304_s16 + $0x8] sm:$0xff] }
 0x7fe   : > { %v5521_v2 = vadd.f32 %v5520_v0, %v4705_v49  ;;  %v5562_v3 = vadd.f32 %v5561_v1, %v4713_v50  ;;  %v5522_v4 = vpop.f32.mrb[10].mxu0  ;;  %v5563_v52 = vpop.f32.mrb[10].mxu1  ;;  %13473 = vmatpush3.bf16.msra.mxu0 %v14584_v51  ;;  %13495 = vmatpush3.bf16.msra.mxu1 %v14585_v54  ;;  %v14614_v48 = vld [vmem:[%s16265_s19 + $0x270] sm:$0xff]   ;;  %v4717_v50 = vrot.slane %v16673_v53, %v16375_v18  ;;  %v14618_v60 = vld [vmem:[%s16265_s19 + $0x278] sm:$0xff]  }
 0x7ff   : > { %v5734_v9 = vmax.f32 %v5519_v61, 0.0  ;;  %v5736_v19 = vmax.f32 %v5560_v63, 0.0  ;;  %v5523_v62 = vpop.f32.mrb[11].mxu0  ;;  %v5564_v10 = vpop.f32.mrb[11].mxu1  ;;  %13474 = vmatprep.subr.bf16.mxu0 %v14586_v55  ;;  %13496 = vmatprep.subr.bf16.mxu1 %v14587_v56  ;;  %v14615_v49 = vld [vmem:[%s16265_s19 + $0x2f0] sm:$0xff]   ;;  %v4725_v51 = vrot.slane %v16673_v53, %v16432_v57  ;;  %v4721_v54 = vrot.slane %v16673_v53, %v16383_v27  ;;  %v14619_v61 = vld [vmem:[%s16265_s19 + $0x2f8] sm:$0xff]  }
 0x800   : > { %v5735_v13 = vmax.f32 %v5521_v2, 0.0  ;;  %v5737_v14 = vmax.f32 %v5562_v3, 0.0  ;;  %v4729_v55 = vrot.slane %v16673_v53, %v16435_v58  ;;  %v14616_v56 = vld [vmem:[%s16265_s19 + $0x230] sm:$0xff]   ;;  %v14620_v52 = vld [vmem:[%s16265_s19 + $0x238] sm:$0xff]   ;;  %v14622_v10 = vld [vmem:[%s16265_s19 + $0x340] sm:$0xff]  }
 0x801   : > { %v6006_v22 = vpack.c.bf16 %v5734_v9, %v5734_v9  ;;  %v6008_v23 = vpack.c.bf16 %v5736_v19, %v5736_v19  ;;  %v14617_v59 = vld [vmem:[%s16265_s19 + $0x2b0] sm:$0xff]  }
 0x802   : > { %v6007_v15 = vpack.c.bf16 %v5735_v13, %v5735_v13  ;;  %v6009_v16 = vpack.c.bf16 %v5737_v14, %v5737_v14  ;;  %13475 = vmatpush3.bf16.msra.mxu0 %v14588_v7  ;;  %13497 = vmatpush3.bf16.msra.mxu1 %v14589_v8  ;;  %v14621_v7 = vld [vmem:[%s16265_s19 + $0x2b8] sm:$0xff]  }
 0x803   : > { %13504 = vmatprep.subr.bf16.mxu0 %v14590_v11  ;;  %13526 = vmatprep.subr.bf16.mxu1 %v14591_v12  ;;  %v14623_v11 = vld [vmem:[%s16265_s19 + $0x3c0] sm:$0xff]  }
 0x804   : > { %6902 = vmatprep.mubr.bf16.mxu0 %v6007_v15  ;;  %6942 = vmatprep.mubr.bf16.mxu1 %v6009_v16  ;;  %v14624_v16 = vld [vmem:[%s16265_s19 + $0x300] sm:$0xff]  }
 0x805   : > { %6903 = vmatmul.mubr.bf16.vlgmr.msra.gmra.mrb[24].mxu0 %v6006_v22  ;;  %6943 = vmatmul.mubr.bf16.vlgmr.msra.gmra.mrb[24].mxu1 %v6008_v23  ;;  %v14626_v23 = vld [vmem:[%s16265_s19 + $0x348] sm:$0xff]  }
 0x806   : > { %13505 = vmatpush3.bf16.msra.mxu0 %v14592_v20  ;;  %13527 = vmatpush3.bf16.msra.mxu1 %v14593_v21  ;;  %v14625_v20 = vld [vmem:[%s16265_s19 + $0x380] sm:$0xff]  }
 0x807   : > { %13506 = vmatprep.subr.bf16.mxu0 %v14594_v24  ;;  %13528 = vmatprep.subr.bf16.mxu1 %v14595_v25  ;;  %v14627_v24 = vld [vmem:[%s16265_s19 + $0x3c8] sm:$0xff]  }
 0x808   : > { %v14628_v25 = vld [vmem:[%s16265_s19 + $0x308] sm:$0xff]  }
 0x80a   : > { %13507 = vmatpush3.bf16.msra.mxu0 %v14596_v26  ;;  %13529 = vmatpush3.bf16.msra.mxu1 %v14597_v28  ;;  %v14629_v26 = vld [vmem:[%s16265_s19 + $0x388] sm:$0xff]   ;;  %v14630_v28 = vld [vmem:[%s16265_s19 + $0x350] sm:$0xff]  }
 0x80b   : > { %13508 = vmatprep.subr.bf16.mxu0 %v14598_v29  ;;  %13530 = vmatprep.subr.bf16.mxu1 %v14599_v30  ;;  %v14631_v29 = vld [vmem:[%s16265_s19 + $0x3d0] sm:$0xff]  }
 0x80c   : > { %v14632_v30 = vld [vmem:[%s16265_s19 + $0x310] sm:$0xff]  }
 0x80e   : > { %13509 = vmatpush3.bf16.msra.mxu0 %v14600_v31  ;;  %13531 = vmatpush3.bf16.msra.mxu1 %v14601_v6  ;;  %v14633_v31 = vld [vmem:[%s16265_s19 + $0x390] sm:$0xff]   ;;  %v14634_v6 = vld [vmem:[%s16265_s19 + $0x358] sm:$0xff]  }
 0x80f   : > { %13510 = vmatprep.subr.bf16.mxu0 %v14602_v32  ;;  %13532 = vmatprep.subr.bf16.mxu1 %v14603_v33  ;;  %v14635_v32 = vld [vmem:[%s16265_s19 + $0x3d8] sm:$0xff]  }
 0x810   : > { %v14636_v33 = vld [vmem:[%s16265_s19 + $0x318] sm:$0xff]  }
 0x812   : > { %13511 = vmatpush3.bf16.msra.mxu0 %v14604_v34  ;;  %13533 = vmatpush3.bf16.msra.mxu1 %v14605_v35  ;;  %v14637_v34 = vld [vmem:[%s16265_s19 + $0x398] sm:$0xff]   ;;  %v14638_v35 = vld [vmem:[%s16265_s19 + $0x360] sm:$0xff]  }
 0x813   : > { %13512 = vmatprep.subr.bf16.mxu0 %v14606_v36  ;;  %13534 = vmatprep.subr.bf16.mxu1 %v14607_v37  ;;  %v14639_v36 = vld [vmem:[%s16265_s19 + $0x3e0] sm:$0xff]  }
 0x814   : > { %v14640_v37 = vld [vmem:[%s16265_s19 + $0x320] sm:$0xff]  }
 0x816   : > { %13513 = vmatpush3.bf16.msra.mxu0 %v14608_v38  ;;  %13535 = vmatpush3.bf16.msra.mxu1 %v14609_v39  ;;  %v14641_v38 = vld [vmem:[%s16265_s19 + $0x3a0] sm:$0xff]   ;;  %v14642_v39 = vld [vmem:[%s16265_s19 + $0x368] sm:$0xff]  }
 0x817   : > { %13514 = vmatprep.subr.bf16.mxu0 %v14610_v41  ;;  %13536 = vmatprep.subr.bf16.mxu1 %v14611_v43  ;;  %v14643_v41 = vld [vmem:[%s16265_s19 + $0x3e8] sm:$0xff]  }
 0x818   : > { %v14644_v43 = vld [vmem:[%s16265_s19 + $0x328] sm:$0xff]  }
 0x81a   : > { %13515 = vmatpush3.bf16.msra.mxu0 %v14612_v46  ;;  %13537 = vmatpush3.bf16.msra.mxu1 %v14613_v47  ;;  %v14645_v46 = vld [vmem:[%s16265_s19 + $0x3a8] sm:$0xff]   ;;  %v14646_v47 = vld [vmem:[%s16265_s19 + $0x370] sm:$0xff]  }
 0x81b   : > { %13516 = vmatprep.subr.bf16.mxu0 %v14614_v48  ;;  %13538 = vmatprep.subr.bf16.mxu1 %v14615_v49  ;;  %v14647_v48 = vld [vmem:[%s16265_s19 + $0x3f0] sm:$0xff]   ;;  %v4733_v49 = vrot.slane %v16673_v53, %v16620_v40 }
 0x81c   : > { %v5600_v18 = vpop.f32.mrb[12].mxu0  ;;  %v5641_v63 = vpop.f32.mrb[12].mxu1 }
 0x81d   : > { %v5601_v0 = vadd.f32 %v5600_v18, %v4717_v50  ;;  %v5642_v57 = vadd.f32 %v5641_v63, %v4725_v51  ;;  %v5602_v1 = vpop.f32.mrb[13].mxu0  ;;  %v5643_v2 = vpop.f32.mrb[13].mxu1  ;;  %v4741_v50 = vrot.slane %v16673_v53, %v16623_v42  ;;  %v4737_v51 = vrot.slane %v16673_v53, %v16628_v44 }
 0x81e   : > { %v5603_v27 = vadd.f32 %v5602_v1, %v4721_v54  ;;  %v5644_v3 = vadd.f32 %v5643_v2, %v4729_v55  ;;  %v5604_v4 = vpop.f32.mrb[14].mxu0  ;;  %v5645_v58 = vpop.f32.mrb[14].mxu1  ;;  %13517 = vmatpush3.bf16.msra.mxu0 %v14616_v56  ;;  %13539 = vmatpush3.bf16.msra.mxu1 %v14617_v59  ;;  %v4745_v54 = vrot.slane %v16673_v53, %v4712_v45  ;;  %v14648_v55 = vld [vmem:[%s16265_s19 + $0x330] sm:$0xff]   ;;  %v14650_v59 = vld [vmem:[%s16265_s19 + $0x378] sm:$0xff]  }
 0x81f   : > { %v5738_v8 = vmax.f32 %v5601_v0, 0.0  ;;  %v5740_v9 = vmax.f32 %v5642_v57, 0.0  ;;  %v5605_v19 = vpop.f32.mrb[15].mxu0  ;;  %v5646_v62 = vpop.f32.mrb[15].mxu1  ;;  %13518 = vmatprep.subr.bf16.mxu0 %v14618_v60  ;;  %13540 = vmatprep.subr.bf16.mxu1 %v14619_v61  ;;  %v14649_v56 = vld [vmem:[%s16265_s19 + $0x3b0] sm:$0xff]   ;;  %v14651_v60 = vld [vmem:[%s16265_s19 + $0x3f8] sm:$0xff]  }
 0x820   : > { %v5739_v12 = vmax.f32 %v5603_v27, 0.0  ;;  %v5741_v13 = vmax.f32 %v5644_v3, 0.0  ;;  %v14652_v45 = vld [vmem:[%s16265_s19 + $0x338] sm:$0xff]  }
 0x821   : > { %v6010_v21 = vpack.c.bf16 %v5738_v8, %v5738_v8  ;;  %v6012_v22 = vpack.c.bf16 %v5740_v9, %v5740_v9  ;;  %v14653_v53 = vld [vmem:[%s16265_s19 + $0x3b8] sm:$0xff]  }
 0x822   : > { %v6011_v14 = vpack.c.bf16 %v5739_v12, %v5739_v12  ;;  %v6013_v15 = vpack.c.bf16 %v5741_v13, %v5741_v13  ;;  %13519 = vmatpush3.bf16.msra.mxu0 %v14620_v52  ;;  %13541 = vmatpush3.bf16.msra.mxu1 %v14621_v7 }
 0x823   : > { %13548 = vmatprep.subr.bf16.mxu0 %v14622_v10  ;;  %13570 = vmatprep.subr.bf16.mxu1 %v14623_v11 }
 0x824   : > { %6982 = vmatprep.mubr.bf16.mxu0 %v6011_v14  ;;  %7022 = vmatprep.mubr.bf16.mxu1 %v6013_v15  ;;  %v16733_v14 = vld [vmem:[%s16299_s20] sm:$0xff] }
 0x825   : > { %6983 = vmatmul.mubr.bf16.vlgmr.msra.gmra.mrb[28].mxu0 %v6010_v21  ;;  %7023 = vmatmul.mubr.bf16.vlgmr.msra.gmra.mrb[28].mxu1 %v6012_v22  ;;  %v6021_v15 = vrot.slane %v16733_v14, %v16620_v40 }
 0x826   : > { %13549 = vmatpush3.bf16.msra.mxu0 %v14624_v16  ;;  %13571 = vmatpush3.bf16.msra.mxu1 %v14625_v20 }
 0x827   : > { %13550 = vmatprep.subr.bf16.mxu0 %v14626_v23  ;;  %13572 = vmatprep.subr.bf16.mxu1 %v14627_v24 }
 0x82a   : > { %13551 = vmatpush3.bf16.msra.mxu0 %v14628_v25  ;;  %13573 = vmatpush3.bf16.msra.mxu1 %v14629_v26 }
 0x82b   : > { %13552 = vmatprep.subr.bf16.mxu0 %v14630_v28  ;;  %13574 = vmatprep.subr.bf16.mxu1 %v14631_v29 }
 0x82e   : > { %13553 = vmatpush3.bf16.msra.mxu0 %v14632_v30  ;;  %13575 = vmatpush3.bf16.msra.mxu1 %v14633_v31 }
 0x82f   : > { %13554 = vmatprep.subr.bf16.mxu0 %v14634_v6  ;;  %13576 = vmatprep.subr.bf16.mxu1 %v14635_v32 }
 0x832   : > { %13555 = vmatpush3.bf16.msra.mxu0 %v14636_v33  ;;  %13577 = vmatpush3.bf16.msra.mxu1 %v14637_v34 }
 0x833   : > { %13556 = vmatprep.subr.bf16.mxu0 %v14638_v35  ;;  %13578 = vmatprep.subr.bf16.mxu1 %v14639_v36 }
 0x836   : > { %13557 = vmatpush3.bf16.msra.mxu0 %v14640_v37  ;;  %13579 = vmatpush3.bf16.msra.mxu1 %v14641_v38 }
 0x837   : > { %13558 = vmatprep.subr.bf16.mxu0 %v14642_v39  ;;  %13580 = vmatprep.subr.bf16.mxu1 %v14643_v41 }
 0x83a   : > { %13559 = vmatpush3.bf16.msra.mxu0 %v14644_v43  ;;  %13581 = vmatpush3.bf16.msra.mxu1 %v14645_v46 }
 0x83b   : > { %13560 = vmatprep.subr.bf16.mxu0 %v14646_v47  ;;  %13582 = vmatprep.subr.bf16.mxu1 %v14647_v48 }
 0x83c   : > { %v5682_v61 = vpop.f32.mrb[16].mxu0  ;;  %v5723_v18 = vpop.f32.mrb[16].mxu1 }
 0x83d   : > { %v5683_v63 = vadd.f32 %v5682_v61, %v4733_v49  ;;  %v5724_v0 = vadd.f32 %v5723_v18, %v4741_v50  ;;  %v5684_v57 = vpop.f32.mrb[17].mxu0  ;;  %v5725_v1 = vpop.f32.mrb[17].mxu1 }
 0x83e   : > { %v5685_v2 = vadd.f32 %v5684_v57, %v4737_v51  ;;  %v5726_v27 = vadd.f32 %v5725_v1, %v4745_v54  ;;  %v5686_v3 = vpop.f32.mrb[18].mxu0  ;;  %v5727_v17 = vpop.f32.mrb[18].mxu1  ;;  %13561 = vmatpush3.bf16.msra.mxu0 %v14648_v55  ;;  %13583 = vmatpush3.bf16.msra.mxu1 %v14649_v56 }
 0x83f   : > { %v5742_v4 = vmax.f32 %v5683_v63, 0.0  ;;  %v5744_v58 = vmax.f32 %v5724_v0, 0.0  ;;  %v5687_v52 = vpop.f32.mrb[19].mxu0  ;;  %v5728_v7 = vpop.f32.mrb[19].mxu1  ;;  %13562 = vmatprep.subr.bf16.mxu0 %v14650_v59  ;;  %13584 = vmatprep.subr.bf16.mxu1 %v14651_v60 }
 0x840   : > { %v5743_v8 = vmax.f32 %v5685_v2, 0.0  ;;  %v5745_v9 = vmax.f32 %v5726_v27, 0.0 }
 0x841   : > { %v6014_v10 = vpack.c.bf16 %v5742_v4, %v5742_v4  ;;  %v6016_v11 = vpack.c.bf16 %v5744_v58, %v5744_v58 }
 0x842   : > { %v6015_v19 = vpack.c.bf16 %v5743_v8, %v5743_v8  ;;  %v6017_v62 = vpack.c.bf16 %v5745_v9, %v5745_v9  ;;  %13563 = vmatpush3.bf16.msra.mxu0 %v14652_v45  ;;  %13585 = vmatpush3.bf16.msra.mxu1 %v14653_v53 }
 0x844   : > { %7062 = vmatprep.mubr.bf16.mxu0 %v6015_v19  ;;  %7102 = vmatprep.mubr.bf16.mxu1 %v6017_v62 }
 0x845   : > { %7063 = vmatmul.mubr.bf16.vlgmr.msra.gmra.mrb[32].mxu0 %v6014_v10  ;;  %7103 = vmatmul.mubr.bf16.vlgmr.msra.gmra.mrb[32].mxu1 %v6016_v11  ;;  %v7127_v11 = vrot.slane %v16733_v14, %v16628_v44 }
 0x8b8   : > { %v13432_v12 = vpop.f32.mrb[20].mxu0  ;;  %v13454_v13 = vpop.f32.mrb[20].mxu1 }
 0x8b9   : > { %v13433_v16 = vpop.f32.mrb[21].mxu0  ;;  %v13455_v20 = vpop.f32.mrb[21].mxu1 }
 0x8ba   : > { %v13434_v21 = vadd.f32 %v13433_v16, %v13432_v12  ;;  %v13456_v22 = vadd.f32 %v13455_v20, %v13454_v13  ;;  %v13435_v23 = vpop.f32.mrb[22].mxu0  ;;  %v13457_v24 = vpop.f32.mrb[22].mxu1 }
 0x8bb   : > { %v13436_v25 = vpop.f32.mrb[23].mxu0  ;;  %v13458_v26 = vpop.f32.mrb[23].mxu1 }
 0x8bc   : > { %v6825_v28 = vadd.f32 %v13434_v21, %v6021_v15 }
 0x8be   : > { %v6865_v29 = vadd.f32 %v13456_v22, %v6825_v28 }
 0x8d8   : > { %v13476_v30 = vpop.f32.mrb[24].mxu0  ;;  %v13498_v31 = vpop.f32.mrb[24].mxu1 }
 0x8d9   : > { %v13477_v6 = vpop.f32.mrb[25].mxu0  ;;  %v13499_v32 = vpop.f32.mrb[25].mxu1 }
 0x8da   : > { %v13478_v33 = vadd.f32 %v13477_v6, %v13476_v30  ;;  %v13500_v34 = vadd.f32 %v13499_v32, %v13498_v31  ;;  %v13479_v35 = vpop.f32.mrb[26].mxu0  ;;  %v13501_v36 = vpop.f32.mrb[26].mxu1 }
 0x8db   : > { %v13480_v37 = vpop.f32.mrb[27].mxu0  ;;  %v13502_v40 = vpop.f32.mrb[27].mxu1 }
 0x8dc   : > { %v6905_v38 = vadd.f32 %v13478_v33, %v6865_v29 }
 0x8de   : > { %v6945_v39 = vadd.f32 %v13500_v34, %v6905_v38 }
 0x8f8   : > { %v13520_v41 = vpop.f32.mrb[28].mxu0  ;;  %v13542_v43 = vpop.f32.mrb[28].mxu1 }
 0x8f9   : > { %v13521_v46 = vpop.f32.mrb[29].mxu0  ;;  %v13543_v47 = vpop.f32.mrb[29].mxu1 }
 0x8fa   : > { %v13522_v48 = vadd.f32 %v13521_v46, %v13520_v41  ;;  %v13544_v49 = vadd.f32 %v13543_v47, %v13542_v43  ;;  %v13523_v50 = vpop.f32.mrb[30].mxu0  ;;  %v13545_v51 = vpop.f32.mrb[30].mxu1 }
 0x8fb   : > { %v13524_v54 = vpop.f32.mrb[31].mxu0  ;;  %v13546_v55 = vpop.f32.mrb[31].mxu1 }
 0x8fc   : > { %v6985_v56 = vadd.f32 %v13522_v48, %v6945_v39 }
 0x8fe   : > { %v7025_v59 = vadd.f32 %v13544_v49, %v6985_v56 }
 0x918   : > { %v13564_v60 = vpop.f32.mrb[32].mxu0  ;;  %v13586_v61 = vpop.f32.mrb[32].mxu1 }
 0x919   : > { %v13565_v18 = vpop.f32.mrb[33].mxu0  ;;  %v13587_v63 = vpop.f32.mrb[33].mxu1 }
 0x91a   : > { %v13566_v0 = vadd.f32 %v13565_v18, %v13564_v60  ;;  %v13588_v57 = vadd.f32 %v13587_v63, %v13586_v61  ;;  %v13567_v1 = vpop.f32.mrb[34].mxu0  ;;  %v13589_v2 = vpop.f32.mrb[34].mxu1 }
 0x91b   : > { %v13568_v27 = vpop.f32.mrb[35].mxu0  ;;  %v13590_v3 = vpop.f32.mrb[35].mxu1 }
 0x91c   : > { %v7065_v17 = vadd.f32 %v13566_v0, %v7025_v59 }
 0x91e   : > { %v7105_v45 = vadd.f32 %v13588_v57, %v7065_v17 }
 0x920   : > { %v7110_v53 = vadd.f32 %v7105_v45, %v16446_v5  ;;  %v7132_v5 = vrot.slane %v16733_v14, %v16623_v42 }
 0x922   : > { %v7111_v4 = vsel %vm4524_vm1, %v7110_v53, 0.0 }
 0x923   : > { %7112 = vadd.xlane.f32.xlu1 %v7111_v4 }
 0x9b0   : > { %v7113_v58 = vpop.xlane.xlu1 %7112 }
 0x9b1   : > { %v7114_v52 = vmul.f32 0.0078125, %v7113_v58 }
 0x9b3   : > { %v7115_v7 = vsub.f32 %v7110_v53, %v7114_v52 }
 0x9b5   : > { %v7116_v8 = vmul.f32 %v7115_v7, %v7115_v7 }
 0x9b7   : > { %v7117_v9 = vsel %vm4524_vm1, %v7116_v8, 0.0 }
 0x9b8   : > { %7118 = vadd.xlane.f32.xlu1 %v7117_v9 }
 0xa45   : > { %v7119_v19 = vpop.xlane.xlu1 %7118 }
 0xa46   : > { %v7120_v62 = vmul.f32 0.0078125, %v7119_v19 }
 0xa48   : > { %v7121_v10 = vadd.f32 1e-05, %v7120_v62 }
 0xa4a   : > { %14656 = vrsqrt.f32 %v7121_v10 }
 0xa54   : > { %v14657_v12 = vpop.eup %14656 }
 0xa55   : > { %v7123_v13 = vmul.f32 %v14657_v12, %v7115_v7 }
 0xa57   : > { %v7128_v15 = vmul.f32 %v7127_v11, %v7123_v13 }
 0xa59   : > { %v7133_v16 = vadd.f32 %v7132_v5, %v7128_v15 }
 0xa5b   : > { %7134 = vst [vmem:[#allocation2] sm:$0x3] %v7133_v16 }
 0xa5c PF: > { %s17713_s16 = sld [smem:[#allocation34_spill]] }
 0xa62   : > { %p12683_p10 = scmp.ne.s32.totalorder %s17713_s16, 2 }
 0xa63   : > { %s17714_s2 = sld [smem:[#allocation46_spill]] (!%p12683_p10) }
 0xa64   : > { %7138 = sbr.rel (%p12683_p10) target bundleno = 2668 (0xa6c), region = 184 }
 0xa69   : > { %s17715_s19 = smov (!%p12683_p10), %s17714_s2  ;;  %v7139_v20 = vld [vmem:[%s17714_s2] sm:$0xff] (!%p12683_p10) }
 0xa6a   : > { %v7140_v44 = vld [vmem:[%s17715_s19 + $0x8] sm:$0xff] (!%p12683_p10)  ;;  %7141 = vst [vmem:[#allocation3] sm:$0xff] (!%p12683_p10), %v7139_v20 }
 0xa6b   : > { %7142 = vst [vmem:[#allocation3 + $0x8] sm:$0xff] %v7140_v44 }
 0xa6c PF: > { %s17716_s1 = sld [smem:[#allocation34_spill]] }
 0xa72   : > { %p12684_p12 = scmp.lt.s32.totalorder %s17716_s1, 2 }
 0xa73   : > { %v14659_v42 = vld [vmem:[%s16309_s5 + $0x4] ss:$12 sps:$4 sm:$0xff] (!%p12684_p12)   ;;  %v14661_v14 = vld [vmem:[%s16309_s5] ss:$12 sps:$4 sm:$0xff] (!%p12684_p12)   ;;  %v15492_v21 = vmov (!%p12684_p12), 0   ;;  %v15493_v22 = vmov (!%p12684_p12), 0.0   ;;  %v7398_v51 = vlaneseq (!%p12684_p12) }
 0xa74   : > { %7146 = sbr.rel (%p12684_p12) target bundleno = 7431 (0x1d07), region = 188  ;;  %7346 = vmatprep.mubr.bf16.mxu0 (!%p12684_p12), %v15492_v21  ;;  %13879 = vmatprep.subr.bf16.mxu1 (!%p12684_p12), %v15493_v22  ;;  %v14662_v23 = vld [vmem:[%s16309_s5 + $0x1c] ss:$12 sps:$4 sm:$0xff] (!%p12684_p12)   ;;  %v14664_v24 = vld [vmem:[%s16309_s5 + $0x18] ss:$12 sps:$4 sm:$0xff] (!%p12684_p12)   ;;  %vm15494_vm2 = vmmov (!%p12684_p12), 0  }
 0xa75   : > { %7314 = vmatprep.subr.bf16.mxu0 (!%p12684_p12), %v14659_v42  ;;  %v14665_v25 = vld [vmem:[%s16309_s5 + $0x34] ss:$12 sps:$4 sm:$0xff] (!%p12684_p12)   ;;  %v14667_v26 = vld [vmem:[%s16309_s5 + $0x30] ss:$12 sps:$4 sm:$0xff] (!%p12684_p12)   ;;  %v14668_v28 = vld [vmem:[%s16309_s5 + $0x4c] ss:$12 sps:$4 sm:$0xff] (!%p12684_p12)   ;;  %13895 = vmatprep.mubr.msk.bf16.mxu1 (!%p12684_p12), %vm15494_vm2, %v15493_v22 }
 0xa76   : > { %7315 = vmatpush1.bf16.msra.mxu0 (!%p12684_p12), %v14661_v14  ;;  %v14670_v29 = vld [vmem:[%s16309_s5 + $0x48] ss:$12 sps:$4 sm:$0xff] (!%p12684_p12)   ;;  %v14671_v30 = vld [vmem:[%s16309_s5 + $0x64] ss:$12 sps:$4 sm:$0xff] (!%p12684_p12)   ;;  %v14684_v6 = vld [vmem:[%s16309_s5 + $0x20] ss:$12 sps:$4 sm:$0xff] (!%p12684_p12)  }
 0xa77   : > { %7316 = vmatprep.subr.bf16.mxu0 (!%p12684_p12), %v14662_v23  ;;  %v14683_v31 = vld [vmem:[%s16309_s5 + $0x8] ss:$12 sps:$4 sm:$0xff] (!%p12684_p12)   ;;  %v14673_v32 = vld [vmem:[%s16309_s5 + $0x60] ss:$12 sps:$4 sm:$0xff] (!%p12684_p12)   ;;  %v14676_v34 = vld [vmem:[%s16309_s5 + $0x78] ss:$12 sps:$4 sm:$0xff] (!%p12684_p12)  }
 0xa78   : > { %13880 = vmatpush3.bf16.msra.mxu1 (!%p12684_p12), %v14683_v31  ;;  %v14674_v33 = vld [vmem:[%s16309_s5 + $0x7c] ss:$12 sps:$4 sm:$0xff] (!%p12684_p12)   ;;  %v14677_v35 = vld [vmem:[%s16309_s5 + $0x94] ss:$12 sps:$4 sm:$0xff] (!%p12684_p12)   ;;  %v14685_v36 = vld [vmem:[%s16309_s5 + $0x38] ss:$12 sps:$4 sm:$0xff] (!%p12684_p12)  }
 0xa79   : > { %13881 = vmatprep.subr.bf16.mxu1 (!%p12684_p12), %v15493_v22  ;;  %v14686_v37 = vld [vmem:[%s16309_s5 + $0x50] ss:$12 sps:$4 sm:$0xff] (!%p12684_p12)   ;;  %v14680_v38 = vld [vmem:[%s16309_s5 + $0xac] ss:$12 sps:$4 sm:$0xff] (!%p12684_p12)   ;;  %v14687_v39 = vld [vmem:[%s16309_s5 + $0x68] ss:$12 sps:$4 sm:$0xff] (!%p12684_p12)  }
 0xa7a   : > { %7317 = vmatpush1.bf16.msra.mxu0 (!%p12684_p12), %v14664_v24  ;;  %v14679_v40 = vld [vmem:[%s16309_s5 + $0x90] ss:$12 sps:$4 sm:$0xff] (!%p12684_p12)   ;;  %v14682_v41 = vld [vmem:[%s16309_s5 + $0xa8] ss:$12 sps:$4 sm:$0xff] (!%p12684_p12)   ;;  %v14688_v47 = vld [vmem:[%s16309_s5 + $0x80] ss:$12 sps:$4 sm:$0xff] (!%p12684_p12)  }
 0xa7b   : > { %7318 = vmatprep.subr.bf16.mxu0 %v14665_v25  ;;  %v7149_v43 = vld [vmem:[#allocation3] sm:$0xff]  ;;  %v7150_v46 = vld [vmem:[#allocation3 + $0x8] sm:$0xff]  ;;  %v16793_v54 = vshrl.u32 %v7398_v51, 7  ;;  %vm7422_vm3 = vcmask 261120   ;;  %vm7547_vm4 = vcmask 1043456   ;;  %s17717_s10 = sld [smem:[#allocation47_spill]] }
 0xa7c   : > { %13882 = vmatpush3.bf16.msra.mxu1 %v14684_v6  ;;  %v7185_v48 = vpack.c.bf16 %v7150_v46, %v7149_v43  ;;  %v14689_v49 = vld [vmem:[%s16309_s5 + $0x98] ss:$12 sps:$4 sm:$0xff]   ;;  %v14690_v50 = vld [vmem:[%s16309_s5 + $0xb0] ss:$12 sps:$4 sm:$0xff]   ;;  %s15495_s5 = smov 96   ;;  %vm7519_vm5 = vcmask 64512  }
 0xa7d   : > { %13883 = vmatprep.subr.bf16.mxu1 %v15493_v22  ;;  %v16796_v55 = vsub.s32 1, %v16793_v54  ;;  %v16799_v56 = vld [vmem:[%s16281_s14] sm:$0xff]  ;;  %v16804_v61 = vsub.s32 0, %v16793_v54  ;;  %v16833_v7 = vsub.s32 2, %v16793_v54  ;;  %s15496_s9 = smov 64   ;;  %s15497_s24 = smov 32  }
 0xa7e   : > { %7319 = vmatpush1.bf16.msra.mxu0 %v14667_v26 }
 0xa7f   : > { %7320 = vmatprep.subr.bf16.mxu0 %v14668_v28  ;;  %v7407_v59 = vrot.slane %v16799_v56, %v16796_v55  ;;  %v7401_v1 = vrot.slane %v16799_v56, %v16804_v61  ;;  %v7413_v8 = vrot.slane %v16799_v56, %v16833_v7 }
 0xa80   : > { %13884 = vmatpush3.bf16.msra.mxu1 %v14685_v36 }
 0xa81   : > { %13885 = vmatprep.subr.bf16.mxu1 %v15493_v22  ;;  %v16850_v44 = vld [vmem:[%s17717_s10] sm:$0xff]  ;;  %v16855_v25 = vld [vmem:[%s17717_s10 + $0x8] sm:$0xff] }
 0xa82   : > { %7321 = vmatpush1.bf16.msra.mxu0 %v14670_v29 }
 0xa83   : > { %7322 = vmatprep.subr.bf16.mxu0 %v14671_v30 }
 0xa84   : > { %13886 = vmatpush3.bf16.msra.mxu1 %v14686_v37 }
 0xa85   : > { %13887 = vmatprep.subr.bf16.mxu1 %v15493_v22 }
 0xa86   : > { %7323 = vmatpush1.bf16.msra.mxu0 %v14673_v32 }
 0xa87   : > { %7324 = vmatprep.subr.bf16.mxu0 %v14674_v33 }
 0xa88   : > { %13888 = vmatpush3.bf16.msra.mxu1 %v14687_v39 }
 0xa89   : > { %13889 = vmatprep.subr.bf16.mxu1 %v15493_v22 }
 0xa8a   : > { %7325 = vmatpush1.bf16.msra.mxu0 %v14676_v34 }
 0xa8b   : > { %7326 = vmatprep.subr.bf16.mxu0 %v14677_v35 }
 0xa8c   : > { %13890 = vmatpush3.bf16.msra.mxu1 %v14688_v47 }
 0xa8d   : > { %13891 = vmatprep.subr.bf16.mxu1 %v15493_v22 }
 0xa8e   : > { %7327 = vmatpush1.bf16.msra.mxu0 %v14679_v40 }
 0xa8f   : > { %7328 = vmatprep.subr.bf16.mxu0 %v14680_v38 }
 0xa90   : > { %13892 = vmatpush3.bf16.msra.mxu1 %v14689_v49 }
 0xa91   : > { %13893 = vmatprep.subr.bf16.mxu1 %v15493_v22 }
 0xa92   : > { %7329 = vmatpush1.bf16.msra.mxu0 %v14682_v41 }
 0xa93   : > { %13899 = vmatprep.subr.bf16.mxu0 %v15493_v22 }
 0xa94   : > { %13894 = vmatpush3.bf16.msra.mxu1 %v14690_v50 }
 0xa95   : > { %7347 = vmatmul.mubr.bf16.vlgmr.msra.gmra.mrb[0].mxu0 %v7185_v48  ;;  %13905 = vmatprep.subr.bf16.mxu1 %v15493_v22 }
 0xa96   : > { %13901 = vmatprep.mubr.msk.bf16.mxu0 %vm15494_vm2, %v15493_v22 }
 0xa97   : > { %13896 = vmatmul.mubr.bf16.vlgmr.msra.gmra.mrb[0].mxu1 %v7185_v48 }
 0xa98   : > { %13907 = vmatprep.mubr.msk.bf16.mxu1 %vm15494_vm2, %v15493_v22 }
 0xb68   : > { %v7348_v60 = vpop.f32.mrb[0].mxu0 }
 0xb69   : > { %v7350_v18 = vpop.f32.mrb[1].mxu0  ;;  %v7402_v45 = vadd.f32 %v7401_v1, %v7348_v60 }
 0xb6a   : > { %v7408_v63 = vadd.f32 %v7407_v59, %v7350_v18  ;;  %v7352_v0 = vpop.f32.mrb[2].mxu0  ;;  %v7391_v9 = vpop.f32.mrb[0].mxu1 }
 0xb6b   : > { %v7354_v57 = vpop.f32.mrb[3].mxu0  ;;  %v7403_v4 = vadd.f32 %v7401_v1, %v7352_v0  ;;  %v16820_v58 = vpack.c.bf16 %v7402_v45, %v7402_v45  ;;  %v7414_v19 = vadd.f32 %v7413_v8, %v7391_v9  ;;  %v13897_v62 = vpop.f32.mrb[1].mxu1 }
 0xb6c   : > { %v16808_v2 = vpack.c.bf16 %v7408_v63, %v7408_v63  ;;  %v7409_v27 = vadd.f32 %v7407_v59, %v7354_v57  ;;  %v7394_v10 = vpop.f32.mrb[2].mxu1 }
 0xb6d   : > { %v16822_v52 = vpack.c.bf16 %v7403_v4, %v7403_v4  ;;  %v7415_v11 = vadd.f32 %v7413_v8, %v7394_v10  ;;  %v13898_v12 = vpop.f32.mrb[3].mxu1  ;;  %v16837_v5 = vpack.c.bf16 %v7414_v19, %v7414_v19 }
 0xb6e   : > { %v16810_v3 = vpack.c.bf16 %v7409_v27, %v7409_v27  ;;  %v7427_v17 = vsel %vm7422_vm3, %v16808_v2, 0 }
 0xb6f   : > { %13900 = vmatpush3.bf16.xpose.msra.mxu0 %v7427_v17  ;;  %v16839_v13 = vpack.c.bf16 %v7415_v11, %v7415_v11  ;;  %v7549_v15 = vsel %vm7547_vm4, %v16837_v5, 0 }
 0xb70   : > { %7698 = vrot.lane.b32.xlu1 %v16810_v3, %s15495_s5  ;;  %v7473_v53 = vsel %vm7422_vm3, %v16810_v3, 0  ;;  %13911 = vmatprep.subr.bf16.mxu0 %v15493_v22 }
 0xb71   : > { %13906 = vmatpush3.bf16.xpose.msra.mxu1 %v7473_v53  ;;  %v7595_v16 = vsel %vm7547_vm4, %v16839_v13, 0 }
 0xb72   : > { %13917 = vmatprep.subr.bf16.mxu1 %v15493_v22 }
 0xb76   : > { %13902 = vmatmul.mubr.msk.bf16.vlgmr.msra.gmra.mrb[4].mxu0 %vm7422_vm3, %v16820_v58 }
 0xb77   : > { %13913 = vmatprep.mubr.msk.bf16.mxu0 %vm15494_vm2, %v15493_v22  ;;  %13912 = vmatpush3.bf16.msra.mxu0 %v7549_v15 }
 0xb78   : > { %13908 = vmatmul.mubr.msk.bf16.vlgmr.msra.gmra.mrb[4].mxu1 %vm7422_vm3, %v16822_v52  ;;  %13923 = vmatprep.subr.bf16.mxu0 %v15493_v22 }
 0xb79   : > { %13919 = vmatprep.mubr.msk.bf16.mxu1 %vm15494_vm2, %v15493_v22  ;;  %13918 = vmatpush3.bf16.msra.mxu1 %v7595_v16 }
 0xb7a   : > { %13929 = vmatprep.subr.bf16.mxu1 %v15493_v22 }
 0xbe2   : > { %v7699_v48 = vpop.permute.xlu1 %7698 }
 0xbe3   : > { %v7704_v27 = vsel %vm7422_vm3, %v7699_v48, 0 }
 0xc49   : > { %v7463_v20 = vpop.f32.mrb[4].mxu0 }
 0xc4a   : > { %v7515_v42 = vmul.f32 0.17677669, %v7463_v20  ;;  %v13903_v14 = vpop.f32.mrb[5].mxu0 }
 0xc4b   : > { %v7466_v23 = vpop.f32.mrb[6].mxu0  ;;  %v7509_v24 = vpop.f32.mrb[4].mxu1 }
 0xc4c   : > { %v7516_v26 = vmul.f32 0.17677669, %v7509_v24  ;;  %v13904_v28 = vpop.f32.mrb[7].mxu0  ;;  %v13909_v29 = vpop.f32.mrb[5].mxu1  ;;  %v7517_v30 = vadd.f32 %v7515_v42, %v16850_v44 }
 0xc4d   : > { %v7512_v31 = vpop.f32.mrb[6].mxu1 }
 0xc4e   : > { %v13910_v6 = vpop.f32.mrb[7].mxu1  ;;  %v7520_v32 = vsel %vm7519_vm5, %v7517_v30, -inf  ;;  %v7518_v33 = vadd.f32 %v7516_v26, %v16855_v25 }
 0xc4f   : > { %7521 = vmax.xlane.f32.xlu0 %v7520_v32 }
 0xc50   : > { %v7523_v34 = vsel %vm7519_vm5, %v7518_v33, -inf }
 0xc53   : > { %7524 = vmax.xlane.f32.xlu0 %v7523_v34 }
 0xc69   : > { %7646 = vrot.lane.b32.xlu0 %v16808_v2, %s15495_s5 }
 0xcdc   : > { %v7522_v35 = vpop.xlane.xlu0 %7521 }
 0xcdd   : > { %v7526_v36 = vsub.f32 %v7517_v30, %v7522_v35 }
 0xcdf   : > { %v7528_v37 = vmul.f32 1.442695, %v7526_v36 }
 0xce0   : > { %v7525_v40 = vpop.xlane.xlu0 %7524 }
 0xce1   : > { %14843 = vpow2.f32 %v7528_v37  ;;  %v7527_v38 = vsub.f32 %v7518_v33, %v7525_v40 }
 0xce3   : > { %v7530_v39 = vmul.f32 1.442695, %v7527_v38 }
 0xce4   : > { %v7647_v60 = vpop.permute.xlu0 %7646 }
 0xce5   : > { %14845 = vpow2.f32 %v7530_v39  ;;  %v7652_v0 = vsel %vm7422_vm3, %v7647_v60, 0 }
 0xceb   : > { %v14844_v41 = vpop.eup %14843 }
 0xcec   : > { %v7532_v43 = vsel %vm7519_vm5, %v14844_v41, 0.0 }
 0xced   : > { %7533 = vadd.xlane.f32.xlu1 %v7532_v43 }
 0xcef   : > { %v14846_v46 = vpop.eup %14845 }
 0xcf0   : > { %v7535_v47 = vsel %vm7519_vm5, %v14846_v46, 0.0 }
 0xcf1   : > { %7536 = vadd.xlane.f32.xlu1 %v7535_v47 }
 0xd02   : > { %7643 = vrot.lane.b32.xlu1 %v16820_v58, %s15495_s5 }
 0xd06   : > { %7695 = vrot.lane.b32.xlu1 %v16822_v52, %s15495_s5 }
 0xd7a   : > { %v7534_v49 = vpop.xlane.xlu1 %7533 }
 0xd7b   : > { %14847 = vrcp.f32 %v7534_v49 }
 0xd7e   : > { %v7537_v50 = vpop.xlane.xlu1 %7536 }
 0xd7f   : > { %14849 = vrcp.f32 %v7537_v50 }
 0xd82   : > { %v7644_v17 = vpop.permute.xlu1 %7643 }
 0xd85   : > { %v14848_v51 = vpop.eup %14847 }
 0xd86   : > { %v7540_v59 = vmul.f32 %v14848_v51, %v14844_v41  ;;  %v7696_v45 = vpop.permute.xlu1 %7695 }
 0xd88   : > { %v7542_v18 = vpack.c.bf16 %v7540_v59, %v7540_v59 }
 0xd89   : > { %v14850_v63 = vpop.eup %14849 }
 0xd8a   : > { %v7541_v57 = vmul.f32 %v14850_v63, %v14846_v46  ;;  %13914 = vmatmul.mubr.msk.bf16.vlgmr.msra.gmra.mrb[8].mxu0 %vm7519_vm5, %v7542_v18  ;;  %v14693_v18 = vld [vmem:[%s16267_s4 + $0x10] sm:$0xff]  }
 0xd8b   : > { %13924 = vmatpush3.bf16.xpose.msra.mxu0 %v7652_v0  ;;  %13925 = vmatprep.mubr.msk.bf16.mxu0 %vm15494_vm2, %v15493_v22 }
 0xd8c   : > { %v7543_v1 = vpack.c.bf16 %v7541_v57, %v7541_v57  ;;  %13935 = vmatprep.subr.bf16.mxu0 %v15493_v22 }
 0xd8e   : > { %13920 = vmatmul.mubr.msk.bf16.vlgmr.msra.gmra.mrb[8].mxu1 %vm7519_vm5, %v7543_v1  ;;  %v14691_v1 = vld [vmem:[%s16267_s4] sm:$0xff]  }
 0xd8f   : > { %13930 = vmatpush3.bf16.xpose.msra.mxu1 %v7704_v27  ;;  %13931 = vmatprep.mubr.msk.bf16.mxu1 %vm15494_vm2, %v15493_v22 }
 0xd90   : > { %13941 = vmatprep.subr.bf16.mxu1 %v15493_v22 }
 0xd92   : > { %13926 = vmatmul.mubr.msk.bf16.vlgmr.msra.gmra.mrb[12].mxu0 %vm7422_vm3, %v7644_v17  ;;  %v14694_v17 = vld [vmem:[%s16267_s4 + $0x18] sm:$0xff]  }
 0xd93   : > { %13937 = vmatprep.mubr.msk.bf16.mxu0 %vm15494_vm2, %v15493_v22 }
 0xd96   : > { %13932 = vmatmul.mubr.msk.bf16.vlgmr.msra.gmra.mrb[12].mxu1 %vm7422_vm3, %v7696_v45  ;;  %v14692_v45 = vld [vmem:[%s16267_s4 + $0x8] sm:$0xff]  }
 0xd97   : > { %13943 = vmatprep.mubr.msk.bf16.mxu1 %vm15494_vm2, %v15493_v22 }
 0xe5d   : > { %v16885_v53 = vpop.f32.mrb[8].mxu0 }
 0xe5e   : > { %v13915_v4 = vpop.f32.mrb[9].mxu0 }
 0xe5f   : > { %v7588_v8 = vpop.f32.mrb[10].mxu0 }
 0xe60   : > { %v13916_v9 = vpop.f32.mrb[11].mxu0 }
 0xe61   : > { %v16887_v19 = vpop.f32.mrb[8].mxu1 }
 0xe62   : > { %v7641_v62 = vpack.c.bf16 %v16887_v19, %v16885_v53  ;;  %v13921_v10 = vpop.f32.mrb[9].mxu1 }
 0xe63   : > { %v7634_v11 = vpop.f32.mrb[10].mxu1 }
 0xe64   : > { %v13922_v12 = vpop.f32.mrb[11].mxu1 }
 0xe65   : > { %v7688_v15 = vpop.f32.mrb[12].mxu0 }
 0xe66   : > { %v7746_v16 = vmul.f32 0.17677669, %v7688_v15  ;;  %v13927_v20 = vpop.f32.mrb[13].mxu0 }
 0xe67   : > { %v7691_v42 = vpop.f32.mrb[14].mxu0 }
 0xe68   : > { %v13928_v14 = vpop.f32.mrb[15].mxu0  ;;  %v7748_v23 = vadd.f32 %v7746_v16, %v16850_v44 }
 0xe69   : > { %v7740_v24 = vpop.f32.mrb[12].mxu1 }
 0xe6a   : > { %v7747_v26 = vmul.f32 0.17677669, %v7740_v24  ;;  %v13933_v28 = vpop.f32.mrb[13].mxu1  ;;  %v7750_v29 = vsel %vm7519_vm5, %v7748_v23, -inf }
 0xe6b   : > { %v7743_v30 = vpop.f32.mrb[14].mxu1  ;;  %7751 = vmax.xlane.f32.xlu0 %v7750_v29 }
 0xe6c   : > { %v13934_v31 = vpop.f32.mrb[15].mxu1  ;;  %v7749_v6 = vadd.f32 %v7747_v26, %v16855_v25 }
 0xe6e   : > { %v7753_v32 = vsel %vm7519_vm5, %v7749_v6, -inf }
 0xe6f   : > { %7754 = vmax.xlane.f32.xlu1 %v7753_v32 }
 0xe80   : > { %7824 = vrot.lane.b32.xlu1 %v16839_v13, %s15495_s5 }
 0xe84   : > { %7991 = vrot.lane.b32.xlu1 %v16808_v2, %s15496_s9 }
 0xe88   : > { %8041 = vrot.lane.b32.xlu1 %v16810_v3, %s15496_s9 }
 0xe8c   : > { %8039 = vrot.lane.b32.xlu1 %v16822_v52, %s15496_s9 }
 0xef8   : > { %v7752_v33 = vpop.xlane.xlu0 %7751 }
 0xef9   : > { %v7756_v34 = vsub.f32 %v7748_v23, %v7752_v33 }
 0xefb   : > { %v7758_v35 = vmul.f32 1.442695, %v7756_v34 }
 0xefc   : > { %v7755_v36 = vpop.xlane.xlu1 %7754 }
 0xefd   : > { %14851 = vpow2.f32 %v7758_v35  ;;  %v7757_v37 = vsub.f32 %v7749_v6, %v7755_v36 }
 0xeff   : > { %v7760_v40 = vmul.f32 1.442695, %v7757_v37 }
 0xf00   : > { %v7825_v38 = vpop.permute.xlu1 %7824 }
 0xf01   : > { %14853 = vpow2.f32 %v7760_v40  ;;  %v7830_v39 = vsel %vm7547_vm4, %v7825_v38, 0 }
 0xf02   : > { %13942 = vmatpush3.bf16.msra.mxu1 %v7830_v39 }
 0xf03   : > { %13955 = vmatprep.subr.bf16.mxu1 %v15493_v22 }
 0xf04   : > { %v7992_v4 = vpop.permute.xlu1 %7991 }
 0xf05   : > { %v7997_v42 = vsel %vm7422_vm3, %v7992_v4, 0 }
 0xf07   : > { %v14852_v41 = vpop.eup %14851 }
 0xf08   : > { %v7762_v43 = vsel %vm7519_vm5, %v14852_v41, 0.0  ;;  %v8042_v8 = vpop.permute.xlu1 %8041 }
 0xf09   : > { %7763 = vadd.xlane.f32.xlu0 %v7762_v43  ;;  %v8047_v9 = vsel %vm7422_vm3, %v8042_v8, 0 }
 0xf0b   : > { %v14854_v46 = vpop.eup %14853 }
 0xf0c   : > { %v7765_v47 = vsel %vm7519_vm5, %v14854_v46, 0.0  ;;  %v8040_v10 = vpop.permute.xlu1 %8039 }
 0xf0d   : > { %7766 = vadd.xlane.f32.xlu0 %v7765_v47 }
 0xf23   : > { %7775 = vrot.lane.b32.xlu0 %v16837_v5, %s15495_s5 }
 0xf27   : > { %7989 = vrot.lane.b32.xlu0 %v16820_v58, %s15496_s9 }
 0xf96   : > { %v7764_v48 = vpop.xlane.xlu0 %7763 }
 0xf97   : > { %14855 = vrcp.f32 %v7764_v48 }
 0xf9a   : > { %v7767_v49 = vpop.xlane.xlu0 %7766 }
 0xf9b   : > { %14857 = vrcp.f32 %v7767_v49 }
 0xf9e   : > { %v7776_v50 = vpop.permute.xlu0 %7775 }
 0xf9f   : > { %v7781_v51 = vsel %vm7547_vm4, %v7776_v50, 0 }
 0xfa0   : > { %13936 = vmatpush3.bf16.msra.mxu0 %v7781_v51 }
 0xfa1   : > { %v14856_v59 = vpop.eup %14855  ;;  %13947 = vmatprep.subr.bf16.mxu0 %v15493_v22 }
 0xfa2   : > { %v7770_v60 = vmul.f32 %v14856_v59, %v14852_v41  ;;  %v7990_v26 = vpop.permute.xlu0 %7989 }
 0xfa4   : > { %v7772_v63 = vpack.c.bf16 %v7770_v60, %v7770_v60 }
 0xfa5   : > { %v14858_v0 = vpop.eup %14857 }
 0xfa6   : > { %v7771_v57 = vmul.f32 %v14858_v0, %v14854_v46  ;;  %13938 = vmatmul.mubr.msk.bf16.vlgmr.msra.gmra.mrb[16].mxu0 %vm7519_vm5, %v7772_v63 }
 0xfa7   : > { %13948 = vmatpush3.bf16.msra.mxu0 %v14693_v18  ;;  %13951 = vmatprep.mubr.msk.bf16.mxu0 %vm15494_vm2, %v15493_v22 }
 0xfa8   : > { %v7773_v27 = vpack.c.bf16 %v7771_v57, %v7771_v57  ;;  %13949 = vmatprep.subr.bf16.mxu0 %v15493_v22 }
 0xfaa   : > { %13944 = vmatmul.mubr.msk.bf16.vlgmr.msra.gmra.mrb[16].mxu1 %vm7519_vm5, %v7773_v27 }
 0xfab   : > { %13956 = vmatpush3.bf16.msra.mxu1 %v14691_v1  ;;  %13959 = vmatprep.mubr.msk.bf16.mxu1 %vm15494_vm2, %v15493_v22 }
 0xfac   : > { %13957 = vmatprep.subr.bf16.mxu1 %v15493_v22  ;;  %13950 = vmatpush3.bf16.msra.mxu0 %v14694_v17 }
 0xfad   : > { %13963 = vmatprep.subr.bf16.mxu0 %v15493_v22 }
 0xfaf   : > { %13958 = vmatpush3.bf16.msra.mxu1 %v14692_v45 }
 0xfb0   : > { %13969 = vmatprep.subr.bf16.mxu1 %v15493_v22 }
 0xfb2   : > { %13960 = vmatmul.mubr.msk.bf16.vlgmr.msra.gmra.mrb[20].mxu1 %vm7422_vm3, %v7641_v62 }
 0xfb3   : > { %13971 = vmatprep.mubr.msk.bf16.mxu1 %vm15494_vm2, %v15493_v22 }
 0xfb8   : > { %13970 = vmatpush3.bf16.xpose.msra.mxu1 %v8047_v9 }
 0xfb9   : > { %13981 = vmatprep.subr.bf16.mxu1 %v15493_v22 }
 0xfbf   : > { %13972 = vmatmul.mubr.msk.bf16.vlgmr.msra.gmra.mrb[24].mxu1 %vm7422_vm3, %v8040_v10 }
 0xfc0   : > { %13983 = vmatprep.mubr.msk.bf16.mxu1 %vm15494_vm2, %v15493_v22 }
0x1079   : > { %v7817_v11 = vpop.f32.mrb[16].mxu0 }
0x107a   : > { %v13939_v12 = vpop.f32.mrb[17].mxu0 }
0x107b   : > { %v7820_v53 = vpop.f32.mrb[18].mxu0 }
0x107c   : > { %v13940_v19 = vpop.f32.mrb[19].mxu0 }
0x107d   : > { %v7866_v62 = vpop.f32.mrb[16].mxu1 }
0x107e   : > { %v7876_v15 = vpack.c.bf16 %v7866_v62, %v7817_v11  ;;  %v13945_v16 = vpop.f32.mrb[17].mxu1 }
0x107f   : > { %v7869_v20 = vpop.f32.mrb[18].mxu1 }
0x1080   : > { %v13946_v14 = vpop.f32.mrb[19].mxu1  ;;  %13952 = vmatmul.mubr.msk.bf16.vlgmr.msra.gmra.mrb[20].mxu0 %vm7422_vm3, %v7876_v15  ;;  %v14695_v20 = vld [vmem:[%s16267_s4 + $0x20] sm:$0xff]  }
0x1081   : > { %13964 = vmatpush3.bf16.xpose.msra.mxu0 %v7997_v42  ;;  %13965 = vmatprep.mubr.msk.bf16.mxu0 %vm15494_vm2, %v15493_v22 }
0x1082   : > { %13975 = vmatprep.subr.bf16.mxu0 %v15493_v22 }
0x1085   : > { %v7982_v23 = vpop.f32.mrb[20].mxu1 }
0x1086   : > { %v13961_v24 = vpop.f32.mrb[21].mxu1 }
0x1087   : > { %v7985_v28 = vpop.f32.mrb[22].mxu1 }
0x1088   : > { %v13962_v29 = vpop.f32.mrb[23].mxu1  ;;  %13966 = vmatmul.mubr.msk.bf16.vlgmr.msra.gmra.mrb[24].mxu0 %vm7422_vm3, %v7990_v26  ;;  %v14696_v26 = vld [vmem:[%s16267_s4 + $0x28] sm:$0xff]  }
0x1089   : > { %13977 = vmatprep.mubr.msk.bf16.mxu0 %vm15494_vm2, %v15493_v22 }
0x1092   : > { %v8083_v30 = vpop.f32.mrb[24].mxu1 }
0x1093   : > { %v8090_v31 = vmul.f32 0.17677669, %v8083_v30  ;;  %v13973_v6 = vpop.f32.mrb[25].mxu1 }
0x1094   : > { %v8086_v32 = vpop.f32.mrb[26].mxu1 }
0x1095   : > { %v13974_v33 = vpop.f32.mrb[27].mxu1  ;;  %v8092_v34 = vadd.f32 %v8090_v31, %v16855_v25 }
0x1097   : > { %v8096_v35 = vsel %vm7519_vm5, %v8092_v34, -inf }
0x1098   : > { %8097 = vmax.xlane.f32.xlu1 %v8096_v35 }
0x10a9   : > { %8165 = vrot.lane.b32.xlu1 %v16839_v13, %s15496_s9 }
0x10ad   : > { %8278 = vrot.lane.b32.xlu1 %v16808_v2, %s15497_s24 }
0x10b1   : > { %8328 = vrot.lane.b32.xlu1 %v16810_v3, %s15497_s24 }
0x10b5   : > { %8326 = vrot.lane.b32.xlu1 %v16822_v52, %s15497_s24 }
0x1125   : > { %v8098_v36 = vpop.xlane.xlu1 %8097 }
0x1126   : > { %v8100_v38 = vsub.f32 %v8092_v34, %v8098_v36 }
0x1128   : > { %v8103_v39 = vmul.f32 1.442695, %v8100_v38 }
0x1129   : > { %v8166_v37 = vpop.permute.xlu1 %8165 }
0x112a   : > { %v8171_v40 = vsel %vm7547_vm4, %v8166_v37, 0  ;;  %14859 = vpow2.f32 %v8103_v39 }
0x112b   : > { %13982 = vmatpush3.bf16.msra.mxu1 %v8171_v40 }
0x112c   : > { %13995 = vmatprep.subr.bf16.mxu1 %v15493_v22 }
0x112d   : > { %v8279_v9 = vpop.permute.xlu1 %8278 }
0x112e   : > { %v8284_v11 = vsel %vm7422_vm3, %v8279_v9, 0 }
0x1131   : > { %v8329_v34 = vpop.permute.xlu1 %8328 }
0x1132   : > { %v8334_v38 = vsel %vm7422_vm3, %v8329_v34, 0 }
0x1134   : > { %v14860_v18 = vpop.eup %14859 }
0x1135   : > { %v8108_v63 = vsel %vm7519_vm5, %v14860_v18, 0.0 }
0x1153   : > { %v7926_v41 = vpop.f32.mrb[20].mxu0 }
0x1154   : > { %v16958_v43 = vadd.f32 %v7982_v23, %v7926_v41  ;;  %v13953_v46 = vpop.f32.mrb[21].mxu0 }
0x1155   : > { %v7929_v2 = vpop.f32.mrb[22].mxu0 }
0x1156   : > { %v16960_v47 = vadd.f32 %v7985_v28, %v7929_v2  ;;  %v13954_v3 = vpop.f32.mrb[23].mxu0 }
0x115b   : > { %v8033_v48 = vpop.f32.mrb[24].mxu0 }
0x115c   : > { %v8089_v52 = vmul.f32 0.17677669, %v8033_v48  ;;  %v13967_v49 = vpop.f32.mrb[25].mxu0 }
0x115d   : > { %v8036_v50 = vpop.f32.mrb[26].mxu0 }
0x115e   : > { %v13968_v51 = vpop.f32.mrb[27].mxu0  ;;  %v8091_v59 = vadd.f32 %v8089_v52, %v16850_v44 }
0x1160   : > { %v8093_v60 = vsel %vm7519_vm5, %v8091_v59, -inf }
0x1161   : > { %8094 = vmax.xlane.f32.xlu0 %v8093_v60 }
0x1165   : > { %8109 = vadd.xlane.f32.xlu0 %v8108_v63 }
0x11ee   : > { %v8095_v0 = vpop.xlane.xlu0 %8094 }
0x11ef   : > { %v8099_v57 = vsub.f32 %v8091_v59, %v8095_v0 }
0x11f1   : > { %v8101_v1 = vmul.f32 1.442695, %v8099_v57 }
0x11f2   : > { %v8110_v27 = vpop.xlane.xlu0 %8109 }
0x11f3   : > { %14861 = vpow2.f32 %v8101_v1 }
0x11f4   : > { %14863 = vrcp.f32 %v8110_v27 }
0x11fd   : > { %v14862_v17 = vpop.eup %14861 }
0x11fe   : > { %v14864_v45 = vpop.eup %14863  ;;  %v8105_v4 = vsel %vm7519_vm5, %v14862_v17, 0.0 }
0x11ff   : > { %v8114_v8 = vmul.f32 %v14864_v45, %v14860_v18  ;;  %8106 = vadd.xlane.f32.xlu0 %v8105_v4 }
0x1201   : > { %v8116_v10 = vpack.c.bf16 %v8114_v8, %v8114_v8 }
0x1203   : > { %13984 = vmatmul.mubr.msk.bf16.vlgmr.msra.gmra.mrb[28].mxu1 %vm7519_vm5, %v8116_v10 }
0x1204   : > { %13996 = vmatpush3.bf16.xpose.msra.mxu1 %v8284_v11  ;;  %13997 = vmatprep.mubr.msk.bf16.mxu1 %vm15494_vm2, %v15493_v22 }
0x1205   : > { %14007 = vmatprep.subr.bf16.mxu1 %v15493_v22 }
0x1215   : > { %8117 = vrot.lane.b32.xlu0 %v16837_v5, %s15496_s9 }
0x1219   : > { %8276 = vrot.lane.b32.xlu0 %v16820_v58, %s15497_s24 }
0x128c   : > { %v8107_v12 = vpop.xlane.xlu0 %8106 }
0x128d   : > { %14865 = vrcp.f32 %v8107_v12 }
0x1290   : > { %v8118_v53 = vpop.permute.xlu0 %8117 }
0x1291   : > { %v8123_v19 = vsel %vm7547_vm4, %v8118_v53, 0 }
0x1292   : > { %13976 = vmatpush3.bf16.msra.mxu0 %v8123_v19 }
0x1293   : > { %13987 = vmatprep.subr.bf16.mxu0 %v15493_v22 }
0x1294   : > { %v8277_v62 = vpop.permute.xlu0 %8276 }
0x1295   : > { %13998 = vmatmul.mubr.msk.bf16.vlgmr.msra.gmra.mrb[32].mxu1 %vm7422_vm3, %v8277_v62 }
0x1296   : > { %14009 = vmatprep.mubr.msk.bf16.mxu1 %vm15494_vm2, %v15493_v22 }
0x1297   : > { %v14866_v15 = vpop.eup %14865 }
0x1298   : > { %v8113_v16 = vmul.f32 %v14866_v15, %v14862_v17 }
0x129a   : > { %v8115_v42 = vpack.c.bf16 %v8113_v16, %v8113_v16 }
0x129c   : > { %13978 = vmatmul.mubr.msk.bf16.vlgmr.msra.gmra.mrb[28].mxu0 %vm7519_vm5, %v8115_v42  ;;  %v14698_v42 = vld [vmem:[%s16267_s4 + $0x38] sm:$0xff]  }
0x129d   : > { %13988 = vmatpush3.bf16.msra.mxu0 %v14695_v20  ;;  %13991 = vmatprep.mubr.msk.bf16.mxu0 %vm15494_vm2, %v15493_v22  ;;  %v14697_v20 = vld [vmem:[%s16267_s4 + $0x30] sm:$0xff]  }
0x129e   : > { %13989 = vmatprep.subr.bf16.mxu0 %v15493_v22 }
0x12a1   : > { %13990 = vmatpush3.bf16.msra.mxu0 %v14696_v26  ;;  %v14703_v26 = vld [vmem:[%s16273_s25 + $0x20] sm:$0xff]  }
0x12a2   : > { %14001 = vmatprep.subr.bf16.mxu0 %v15493_v22 }
0x12d6   : > { %v8207_v58 = vpop.f32.mrb[28].mxu1 }
0x12d7   : > { %v13985_v14 = vpop.f32.mrb[29].mxu1 }
0x12d8   : > { %v8210_v23 = vpop.f32.mrb[30].mxu1  ;;  %v14700_v14 = vld [vmem:[%s16273_s25 + $0x8] sm:$0xff]  }
0x12d9   : > { %v13986_v24 = vpop.f32.mrb[31].mxu1  ;;  %v14701_v23 = vld [vmem:[%s16273_s25 + $0x10] sm:$0xff]  }
0x12da   : > { %v14702_v24 = vld [vmem:[%s16273_s25 + $0x18] sm:$0xff]  }
0x1368   : > { %v8320_v28 = vpop.f32.mrb[32].mxu1 }
0x1369   : > { %v8376_v29 = vmul.f32 0.17677669, %v8320_v28  ;;  %v13999_v30 = vpop.f32.mrb[33].mxu1  ;;  %v14704_v28 = vld [vmem:[%s16273_s25 + $0x28] sm:$0xff]  }
0x136a   : > { %v8323_v31 = vpop.f32.mrb[34].mxu1  ;;  %v14706_v30 = vld [vmem:[%s16273_s25 + $0x38] sm:$0xff]  }
0x136b   : > { %v14000_v6 = vpop.f32.mrb[35].mxu1  ;;  %v8378_v32 = vadd.f32 %v8376_v29, %v16850_v44  ;;  %v8327_v44 = vpop.permute.xlu1 %8326  ;;  %v14705_v29 = vld [vmem:[%s16273_s25 + $0x30] sm:$0xff]   ;;  %v8606_v31 = vld [vmem:[#allocation2] sm:$0x3] }
0x136c   : > { %v8623_v6 = vpack.c.bf16 %v8606_v31, %v8606_v31 }
0x136d   : > { %v8380_v33 = vsel %vm7519_vm5, %v8378_v32, -inf }
0x136e   : > { %8381 = vmax.xlane.f32.xlu0 %v8380_v33 }
0x136f   : > { %v8159_v35 = vpop.f32.mrb[28].mxu0 }
0x1370   : > { %v8217_v36 = vpack.c.bf16 %v8207_v58, %v8159_v35  ;;  %v13979_v37 = vpop.f32.mrb[29].mxu0  ;;  %v14699_v58 = vld [vmem:[%s16273_s25] sm:$0xff]  }
0x1371   : > { %v8162_v40 = vpop.f32.mrb[30].mxu0 }
0x1372   : > { %v13980_v39 = vpop.f32.mrb[31].mxu0  ;;  %13992 = vmatmul.mubr.msk.bf16.vlgmr.msra.gmra.mrb[32].mxu0 %vm7422_vm3, %v8217_v36 }
0x1373   : > { %14002 = vmatpush3.bf16.xpose.msra.mxu0 %v8334_v38  ;;  %14003 = vmatprep.mubr.msk.bf16.mxu0 %vm15494_vm2, %v15493_v22 }
0x1374   : > { %14013 = vmatprep.subr.bf16.mxu0 %v15493_v22 }
0x137a   : > { %14004 = vmatmul.mubr.msk.bf16.vlgmr.msra.gmra.mrb[36].mxu0 %vm7422_vm3, %v8327_v44  ;;  %v14707_v44 = vld [vmem:[%s16275_s11] sm:$0xff]  }
0x137b   : > { %14015 = vmatprep.mubr.msk.bf16.mxu0 %vm15494_vm2, %v15493_v22 }
0x13fb   : > { %v8382_v41 = vpop.xlane.xlu0 %8381 }
0x13fc   : > { %v8386_v46 = vsub.f32 %v8378_v32, %v8382_v41  ;;  %v14708_v41 = vld [vmem:[%s16275_s11 + $0x8] sm:$0xff]  }
0x13fe   : > { %v8388_v2 = vmul.f32 1.442695, %v8386_v46  ;;  %v14709_v46 = vld [vmem:[%s16275_s11 + $0x10] sm:$0xff]  }
0x1400   : > { %14867 = vpow2.f32 %v8388_v2  ;;  %v14710_v2 = vld [vmem:[%s16275_s11 + $0x18] sm:$0xff]  }
0x140a   : > { %v14868_v3 = vpop.eup %14867 }
0x140b   : > { %v8392_v48 = vsel %vm7519_vm5, %v14868_v3, 0.0 }
0x140c   : > { %8393 = vadd.xlane.f32.xlu0 %v8392_v48  ;;  %v17054_v48 = vsub.s32 6, %v16793_v54 }
0x1445   : > { %v8267_v52 = vpop.f32.mrb[32].mxu0 }
0x1446   : > { %v16999_v49 = vadd.f32 %v8267_v52, %v16958_v43  ;;  %v13993_v50 = vpop.f32.mrb[33].mxu0  ;;  %v14712_v52 = vld [vmem:[%s16275_s11 + $0x28] sm:$0xff]  }
0x1447   : > { %v8270_v51 = vpop.f32.mrb[34].mxu0  ;;  %v8627_v50 = vrot.slane %v16799_v56, %v17054_v48 }
0x1448   : > { %v17002_v59 = vadd.f32 %v8270_v51, %v16960_v47  ;;  %v13994_v60 = vpop.f32.mrb[35].mxu0  ;;  %v14713_v51 = vld [vmem:[%s16275_s11 + $0x30] sm:$0xff]  }
0x144d   : > { %v8370_v18 = vpop.f32.mrb[36].mxu0 }
0x144e   : > { %v8377_v63 = vmul.f32 0.17677669, %v8370_v18  ;;  %v14005_v0 = vpop.f32.mrb[37].mxu0 }
0x144f   : > { %v8373_v57 = vpop.f32.mrb[38].mxu0 }
0x1450   : > { %v14006_v1 = vpop.f32.mrb[39].mxu0  ;;  %v8379_v27 = vadd.f32 %v8377_v63, %v16855_v25  ;;  %v14714_v57 = vld [vmem:[%s16275_s11 + $0x38] sm:$0xff]  }
0x1452   : > { %v8383_v17 = vsel %vm7519_vm5, %v8379_v27, -inf }
0x1453   : > { %8384 = vmax.xlane.f32.xlu1 %v8383_v17  ;;  %v17066_v17 = vsub.s32 3, %v16793_v54 }
0x1464   : > { %8452 = vrot.lane.b32.xlu1 %v16839_v13, %s15497_s24 }
0x1499   : > { %v8394_v25 = vpop.xlane.xlu0 %8393 }
0x14e0   : > { %v8385_v43 = vpop.xlane.xlu1 %8384 }
0x14e1   : > { %v8387_v45 = vsub.f32 %v8379_v27, %v8385_v43  ;;  %v8566_v43 = vrot.slane %v16799_v56, %v17066_v17 }
0x14e3   : > { %v8390_v4 = vmul.f32 1.442695, %v8387_v45 }
0x14e4   : > { %v8453_v8 = vpop.permute.xlu1 %8452 }
0x14e5   : > { %14869 = vpow2.f32 %v8390_v4  ;;  %v8458_v47 = vsel %vm7547_vm4, %v8453_v8, 0 }
0x14e6   : > { %14014 = vmatpush3.bf16.msra.mxu0 %v8458_v47  ;;  %14871 = vrcp.f32 %v8394_v25 }
0x14e7   : > { %14027 = vmatprep.subr.bf16.mxu0 %v15493_v22 }
0x14ef   : > { %v14870_v9 = vpop.eup %14869 }
0x14f0   : > { %v8395_v10 = vsel %vm7519_vm5, %v14870_v9, 0.0  ;;  %v14872_v13 = vpop.eup %14871 }
0x14f1   : > { %8396 = vadd.xlane.f32.xlu0 %v8395_v10  ;;  %v8400_v12 = vmul.f32 %v14872_v13, %v14868_v3  ;;  %v14711_v3 = vld [vmem:[%s16275_s11 + $0x20] sm:$0xff]   ;;  %v14887_v13 = vld [vmem:[#allocation3] sm:$0xff] }
0x14f3   : > { %v8402_v62 = vpack.c.bf16 %v8400_v12, %v8400_v12  ;;  %v14888_v12 = vld [vmem:[#allocation3 + $0x8] sm:$0xff] }
0x1507   : > { %8404 = vrot.lane.b32.xlu0 %v16837_v5, %s15497_s24 }
0x157e   : > { %v8397_v11 = vpop.xlane.xlu0 %8396 }
0x157f   : > { %14873 = vrcp.f32 %v8397_v11 }
0x1582   : > { %v8405_v53 = vpop.permute.xlu0 %8404 }
0x1583   : > { %v8410_v19 = vsel %vm7547_vm4, %v8405_v53, 0 }
0x1584   : > { %14008 = vmatpush3.bf16.msra.mxu1 %v8410_v19 }
0x1585   : > { %14019 = vmatprep.subr.bf16.mxu1 %v15493_v22 }
0x1587   : > { %14010 = vmatmul.mubr.msk.bf16.vlgmr.msra.gmra.mrb[36].mxu1 %vm7519_vm5, %v8402_v62 }
0x1588   : > { %14023 = vmatprep.mubr.msk.bf16.mxu1 %vm15494_vm2, %v15493_v22  ;;  %14020 = vmatpush3.bf16.msra.mxu1 %v14697_v20 }
0x1589   : > { %v14874_v5 = vpop.eup %14873  ;;  %14021 = vmatprep.subr.bf16.mxu1 %v15493_v22 }
0x158a   : > { %v8401_v15 = vmul.f32 %v14874_v5, %v14870_v9 }
0x158c   : > { %v8403_v16 = vpack.c.bf16 %v8401_v15, %v8401_v15  ;;  %14022 = vmatpush3.bf16.msra.mxu1 %v14698_v42 }
0x158d   : > { %14047 = vmatprep.subr.bf16.mxu1 %v15493_v22 }
0x158e   : > { %14016 = vmatmul.mubr.msk.bf16.vlgmr.msra.gmra.mrb[40].mxu0 %vm7519_vm5, %v8403_v16 }
0x158f   : > { %14043 = vmatprep.mubr.msk.bf16.mxu0 %vm15494_vm2, %v15493_v22  ;;  %14028 = vmatpush3.bf16.msra.mxu0 %v14699_v58 }
0x1590   : > { %14029 = vmatprep.subr.bf16.mxu0 %v15493_v22 }
0x1593   : > { %14030 = vmatpush3.bf16.msra.mxu0 %v14700_v14 }
0x1594   : > { %14031 = vmatprep.subr.bf16.mxu0 %v15493_v22 }
0x1597   : > { %14032 = vmatpush3.bf16.msra.mxu0 %v14701_v23 }
0x1598   : > { %14033 = vmatprep.subr.bf16.mxu0 %v15493_v22 }
0x159b   : > { %14034 = vmatpush3.bf16.msra.mxu0 %v14702_v24  ;;  %v17073_v24 = vsub.s32 7, %v16793_v54 }
0x159c   : > { %14035 = vmatprep.subr.bf16.mxu0 %v15493_v22 }
0x159f   : > { %14036 = vmatpush3.bf16.msra.mxu0 %v14703_v26  ;;  %v15498_v26 = vmov 1966171168  }
0x15a0   : > { %14037 = vmatprep.subr.bf16.mxu0 %v15493_v22 }
0x15a3   : > { %14038 = vmatpush3.bf16.msra.mxu0 %v14704_v28  ;;  %v8827_v28 = vunpack.c.l.s4 %v15498_v26  ;;  %v8934_v26 = vld [vmem:[%s16277_s26 + $0x140] sm:$0xff] }
0x15a4   : > { %14039 = vmatprep.subr.bf16.mxu0 %v15493_v22 }
0x15a5   : > { %v8828_v31 = vunpack.c.0.s8 %v8827_v28  ;;  %v8927_v28 = vld [vmem:[%s16277_s26 + $0x108] sm:$0xff] }
0x15a7   : > { %14040 = vmatpush3.bf16.msra.mxu0 %v14705_v29 }
0x15a8   : > { %14041 = vmatprep.subr.bf16.mxu0 %v15493_v22 }
0x15ab   : > { %14042 = vmatpush3.bf16.msra.mxu0 %v14706_v30  ;;  %v8736_v30 = vrot.slane %v16799_v56, %v17073_v24 }
0x15ae   : > { %14044 = vmatmul.mubr.bf16.vlgmr.msra.gmra.mrb[44].mxu0 %v8623_v6 }
0x15af   : > { %9779 = vmatprep.mubr.bf16.mxu0 %v15492_v21 }
0x165a   : > { %v8446_v32 = vpop.f32.mrb[36].mxu1 }
0x165b   : > { %v14011_v33 = vpop.f32.mrb[37].mxu1 }
0x165c   : > { %v8449_v34 = vpop.f32.mrb[38].mxu1 }
0x165d   : > { %v14012_v35 = vpop.f32.mrb[39].mxu1 }
0x1661   : > { %v8494_v36 = vpop.f32.mrb[40].mxu0 }
0x1662   : > { %v8504_v37 = vpack.c.bf16 %v8494_v36, %v8446_v32  ;;  %v14017_v40 = vpop.f32.mrb[41].mxu0  ;;  %v8831_v36 = vsub.s32 %v8828_v31, %v16793_v54 }
0x1663   : > { %v8497_v38 = vpop.f32.mrb[42].mxu0 }
0x1664   : > { %v14018_v39 = vpop.f32.mrb[43].mxu0  ;;  %14024 = vmatmul.mubr.msk.bf16.vlgmr.msra.gmra.mrb[40].mxu1 %vm7422_vm3, %v8504_v37  ;;  %v17079_v38 = vsub.s32 4, %v16793_v54 }
0x1665   : > { %14063 = vmatprep.mubr.msk.bf16.mxu1 %vm15494_vm2, %v15493_v22  ;;  %14048 = vmatpush3.bf16.msra.mxu1 %v14707_v44  ;;  %v17082_v44 = vsub.s32 5, %v16793_v54 }
0x1666   : > { %14049 = vmatprep.subr.bf16.mxu1 %v15493_v22 }
0x1669   : > { %14050 = vmatpush3.bf16.msra.mxu1 %v14708_v41 }
0x166a   : > { %14051 = vmatprep.subr.bf16.mxu1 %v15493_v22 }
0x166d   : > { %14052 = vmatpush3.bf16.msra.mxu1 %v14709_v46  ;;  %v8597_v46 = vrot.slane %v16799_v56, %v17079_v38 }
0x166e   : > { %14053 = vmatprep.subr.bf16.mxu1 %v15493_v22 }
0x1671   : > { %14054 = vmatpush3.bf16.msra.mxu1 %v14710_v2 }
0x1672   : > { %14055 = vmatprep.subr.bf16.mxu1 %v15493_v22 }
0x1675   : > { %14056 = vmatpush3.bf16.msra.mxu1 %v14711_v3 }
0x1676   : > { %14057 = vmatprep.subr.bf16.mxu1 %v15493_v22 }
0x1679   : > { %14058 = vmatpush3.bf16.msra.mxu1 %v14712_v52  ;;  %v8603_v52 = vrot.slane %v16799_v56, %v17082_v44 }
0x167a   : > { %14059 = vmatprep.subr.bf16.mxu1 %v15493_v22 }
0x167d   : > { %14060 = vmatpush3.bf16.msra.mxu1 %v14713_v51 }
0x167e   : > { %14061 = vmatprep.subr.bf16.mxu1 %v15493_v22 }
0x1681   : > { %v8710_v60 = vpop.f32.mrb[44].mxu0  ;;  %14062 = vmatpush3.bf16.msra.mxu1 %v14714_v57 }
0x1682   : > { %v8711_v18 = vadd.f32 %v8710_v60, %v8627_v50  ;;  %v14045_v63 = vpop.f32.mrb[45].mxu0 }
0x1683   : > { %v8713_v0 = vpop.f32.mrb[46].mxu0 }
0x1684   : > { %v14046_v1 = vpop.f32.mrb[47].mxu0  ;;  %v8732_v27 = vpack.c.bf16 %v8711_v18, %v8711_v18 }
0x1686   : > { %14064 = vmatmul.mubr.bf16.vlgmr.msra.gmra.mrb[44].mxu1 %v8732_v27 }
0x1687   : > { %9822 = vmatprep.mubr.bf16.mxu1 %v15492_v21 }
0x1737   : > { %v8554_v45 = vpop.f32.mrb[40].mxu1 }
0x1738   : > { %v8561_v4 = vadd.f32 %v8554_v45, %v16999_v49  ;;  %v14025_v8 = vpop.f32.mrb[41].mxu1  ;;  %v8902_v45 = vld [vmem:[%s16277_s26 + $0x40] sm:$0xff] }
0x1739   : > { %v8557_v47 = vpop.f32.mrb[42].mxu1 }
0x173a   : > { %v8567_v9 = vadd.f32 %v8566_v43, %v8561_v4  ;;  %v8562_v22 = vadd.f32 %v8557_v47, %v17002_v59  ;;  %v14026_v10 = vpop.f32.mrb[43].mxu1  ;;  %v8895_v4 = vld [vmem:[%s16277_s26 + $0x8] sm:$0xff] }
0x173b   : > { %v8918_v10 = vld [vmem:[%s16277_s26 + $0xc0] sm:$0xff] }
0x173c   : > { %v8568_v25 = vadd.f32 %v8566_v43, %v8562_v22  ;;  %v8569_v11 = vadd.f32 %v14887_v13, %v8567_v9  ;;  %v8894_v43 = vld [vmem:[%s16277_s26] sm:$0xff]  ;;  %v8903_v9 = vld [vmem:[%s16277_s26 + $0x48] sm:$0xff] }
0x173d   : > { %v12753_v8 = vcombine.low %v8894_v43, %v8902_v45  ;;  %v12754_v47 = vcombine.high %v8894_v43, %v8902_v45  ;;  %v8910_v22 = vld [vmem:[%s16277_s26 + $0x80] sm:$0xff]  ;;  %v12756_v13 = vcombine.high %v8895_v4, %v8903_v9 }
0x173e   : > { %8571 = vadd.xlane.f32.xlu1 %v8569_v11  ;;  %v8570_v53 = vadd.f32 %v14888_v12, %v8568_v25  ;;  %v12755_v25 = vcombine.low %v8895_v4, %v8903_v9  ;;  %v8911_v12 = vld [vmem:[%s16277_s26 + $0x88] sm:$0xff]  ;;  %v8990_v45 = vld [vmem:[%s16277_s26 + $0x300] sm:$0xff] }
0x173f   : > { %9747 = vmatprep.subr.bf16.mxu0 %v12754_v47  ;;  %9790 = vmatprep.subr.bf16.mxu1 %v12756_v13  ;;  %v8998_v4 = vld [vmem:[%s16277_s26 + $0x340] sm:$0xff]  ;;  %v8999_v9 = vld [vmem:[%s16277_s26 + $0x348] sm:$0xff] }
0x1740   : > { %8573 = vadd.xlane.f32.xlu0 %v8570_v53  ;;  %9748 = vmatpush1.bf16.msra.mxu0 %v12753_v8  ;;  %v8991_v8 = vld [vmem:[%s16277_s26 + $0x308] sm:$0xff]  ;;  %v12850_v47 = vcombine.high %v8990_v45, %v8998_v4  ;;  %v9006_v13 = vld [vmem:[%s16277_s26 + $0x380] sm:$0xff] }
0x1741   : > { %9791 = vmatpush1.bf16.msra.mxu1 %v12755_v25  ;;  %v12852_v25 = vcombine.high %v8991_v8, %v8999_v9 }
0x1759   : > { %v8819_v58 = vpop.f32.mrb[44].mxu1 }
0x175a   : > { %v14065_v59 = vpop.f32.mrb[45].mxu1  ;;  %v8820_v35 = vadd.f32 %v8819_v58, %v8736_v30  ;;  %v8935_v30 = vld [vmem:[%s16277_s26 + $0x148] sm:$0xff] }
0x175b   : > { %v8822_v14 = vpop.f32.mrb[46].mxu1 }
0x175c   : > { %v14066_v23 = vpop.f32.mrb[47].mxu1  ;;  %v8832_v40 = vrot.slane %v8820_v35, %v8831_v36  ;;  %v8943_v35 = vld [vmem:[%s16277_s26 + $0x188] sm:$0xff] }
0x175d   : > { %v8926_v23 = vld [vmem:[%s16277_s26 + $0x100] sm:$0xff] }
0x175e   : > { %v8833_v39 = vcombine.high %v8832_v40, %v8832_v40  ;;  %v8840_v41 = vrot.slane %v8832_v40, %v8831_v36  ;;  %v12785_v31 = vcombine.low %v8926_v23, %v8934_v26 }
0x1760   : > { %v8847_v50 = vrot.slane %v8833_v39, %v8831_v36  ;;  %v8851_v18 = vrot.slane %v8840_v41, %v16804_v61 }
0x1762   : > { %v8855_v57 = vrot.slane %v8847_v50, %v16804_v61  ;;  %v8967_v50 = vld [vmem:[%s16277_s26 + $0x248] sm:$0xff] }
0x17cb   : > { %v8572_v19 = vpop.xlane.xlu1 %8571 }
0x17cc   : > { %v8576_v62 = vmul.f32 0.0078125, %v8572_v19 }
0x17cd   : > { %v8574_v5 = vpop.xlane.xlu0 %8573 }
0x17ce   : > { %v8578_v15 = vsub.f32 %v8569_v11, %v8576_v62  ;;  %v8577_v16 = vmul.f32 0.0078125, %v8574_v5  ;;  %v12770_v11 = vcombine.high %v8910_v22, %v8918_v10  ;;  %v12769_v62 = vcombine.low %v8910_v22, %v8918_v10 }
0x17cf   : > { %v12849_v22 = vcombine.low %v8990_v45, %v8998_v4  ;;  %v12851_v10 = vcombine.low %v8991_v8, %v8999_v9  ;;  %v8944_v4 = vld [vmem:[%s16277_s26 + $0x190] sm:$0xff]  ;;  %v8953_v9 = vld [vmem:[%s16277_s26 + $0x1d8] sm:$0xff] }
0x17d0   : > { %v8579_v20 = vsub.f32 %v8570_v53, %v8577_v16  ;;  %v8580_v49 = vmul.f32 %v8578_v15, %v8578_v15  ;;  %v8919_v53 = vld [vmem:[%s16277_s26 + $0xc8] sm:$0xff]  ;;  %9749 = vmatprep.subr.bf16.mxu0 %v12770_v11  ;;  %v9014_v11 = vld [vmem:[%s16277_s26 + $0x3c0] sm:$0xff]  ;;  %v8952_v8 = vld [vmem:[%s16277_s26 + $0x1d0] sm:$0xff] }
0x17d1   : > { %v12772_v19 = vcombine.high %v8911_v12, %v8919_v53  ;;  %v12771_v5 = vcombine.low %v8911_v12, %v8919_v53  ;;  %9750 = vmatpush1.bf16.msra.mxu0 %v12769_v62  ;;  %v9007_v12 = vld [vmem:[%s16277_s26 + $0x388] sm:$0xff]  ;;  %v12866_v53 = vcombine.high %v9006_v13, %v9014_v11  ;;  %v12865_v62 = vcombine.low %v9006_v13, %v9014_v11  ;;  %v8960_v11 = vld [vmem:[%s16277_s26 + $0x210] sm:$0xff] }
0x17d2   : > { %8582 = vadd.xlane.f32.xlu0 %v8580_v49  ;;  %v8581_v42 = vmul.f32 %v8579_v20, %v8579_v20 }
0x17d3   : > { %9792 = vmatprep.subr.bf16.mxu1 %v12772_v19  ;;  %v9015_v19 = vld [vmem:[%s16277_s26 + $0x3c8] sm:$0xff] }
0x17d4   : > { %8584 = vadd.xlane.f32.xlu1 %v8581_v42  ;;  %9793 = vmatpush1.bf16.msra.mxu1 %v12771_v5  ;;  %v12867_v5 = vcombine.low %v9007_v12, %v9015_v19 }
0x185f   : > { %v8583_v29 = vpop.xlane.xlu0 %8582 }
0x1860   : > { %v8586_v6 = vmul.f32 0.0078125, %v8583_v29  ;;  %v12786_v29 = vcombine.high %v8926_v23, %v8934_v26  ;;  %v8905_v23 = vld [vmem:[%s16277_s26 + $0x58] sm:$0xff] }
0x1861   : > { %v8585_v32 = vpop.xlane.xlu1 %8584 }
0x1862   : > { %v8588_v33 = vadd.f32 1e-05, %v8586_v6  ;;  %v8587_v34 = vmul.f32 0.0078125, %v8585_v32  ;;  %v12787_v6 = vcombine.low %v8927_v28, %v8935_v30  ;;  %v12788_v32 = vcombine.high %v8927_v28, %v8935_v30  ;;  %9751 = vmatprep.subr.bf16.mxu0 %v12786_v29 }
0x1863   : > { %9752 = vmatpush1.bf16.msra.mxu0 %v12785_v31 }
0x1864   : > { %14875 = vrsqrt.f32 %v8588_v33  ;;  %v8589_v37 = vadd.f32 1e-05, %v8587_v34  ;;  %9794 = vmatprep.subr.bf16.mxu1 %v12788_v32  ;;  %v8942_v33 = vld [vmem:[%s16277_s26 + $0x180] sm:$0xff] }
0x1865   : > { %v8950_v34 = vld [vmem:[%s16277_s26 + $0x1c0] sm:$0xff]  ;;  %9795 = vmatpush1.bf16.msra.mxu1 %v12787_v6 }
0x1866   : > { %14877 = vrsqrt.f32 %v8589_v37  ;;  %v12802_v36 = vcombine.high %v8942_v33, %v8950_v34  ;;  %v8951_v37 = vld [vmem:[%s16277_s26 + $0x1c8] sm:$0xff]  ;;  %v12801_v40 = vcombine.low %v8942_v33, %v8950_v34 }
0x1867   : > { %v12803_v39 = vcombine.low %v8943_v35, %v8951_v37  ;;  %v12804_v41 = vcombine.high %v8943_v35, %v8951_v37  ;;  %v7148_v34 = vld [vmem:[%s16281_s14 + $0x8] sm:$0xff] }
0x1868   : > { %9753 = vmatprep.subr.bf16.mxu0 %v12802_v36  ;;  %v8885_v35 = vrot.slane %v7148_v34, %v16804_v61 }
0x1869   : > { %9796 = vmatprep.subr.bf16.mxu1 %v12804_v41  ;;  %9754 = vmatpush1.bf16.msra.mxu0 %v12801_v40 }
0x186a   : > { %9797 = vmatpush1.bf16.msra.mxu1 %v12803_v39  ;;  %v8891_v39 = vrot.slane %v7148_v34, %v16796_v55 }
0x186e   : > { %v14876_v2 = vpop.eup %14875 }
0x186f   : > { %v8592_v3 = vmul.f32 %v14876_v2, %v8578_v15  ;;  %v8966_v2 = vld [vmem:[%s16277_s26 + $0x240] sm:$0xff] }
0x1870   : > { %v14878_v51 = vpop.eup %14877 }
0x1871   : > { %v8598_v60 = vmul.f32 %v8597_v46, %v8592_v3  ;;  %v8593_v54 = vmul.f32 %v14878_v51, %v8579_v20  ;;  %v8959_v3 = vld [vmem:[%s16277_s26 + $0x208] sm:$0xff] }
0x1873   : > { %v8604_v63 = vadd.f32 %v8603_v52, %v8598_v60  ;;  %v8599_v0 = vmul.f32 %v8597_v46, %v8593_v54  ;;  %v8958_v46 = vld [vmem:[%s16277_s26 + $0x200] sm:$0xff]  ;;  %v12819_v60 = vcombine.low %v8959_v3, %v8967_v50 }
0x1874   : > { %v12817_v51 = vcombine.low %v8958_v46, %v8966_v2  ;;  %v8974_v54 = vld [vmem:[%s16277_s26 + $0x280] sm:$0xff] }
0x1875   : > { %v8858_v1 = vadd.f32 %v8851_v18, %v8604_v63  ;;  %v8605_v27 = vadd.f32 %v8603_v52, %v8599_v0  ;;  %v12818_v52 = vcombine.high %v8958_v46, %v8966_v2  ;;  %v12820_v18 = vcombine.high %v8959_v3, %v8967_v50  ;;  %v8982_v63 = vld [vmem:[%s16277_s26 + $0x2c0] sm:$0xff]  ;;  %v8975_v0 = vld [vmem:[%s16277_s26 + $0x288] sm:$0xff]  ;;  %v8912_v3 = vld [vmem:[%s16277_s26 + $0x90] sm:$0xff] }
0x1876   : > { %v8913_v50 = vld [vmem:[%s16277_s26 + $0x98] sm:$0xff] }
0x1877   : > { %8860 = vadd.xlane.f32.xlu0 %v8858_v1  ;;  %v8859_v56 = vadd.f32 %v8855_v57, %v8605_v27  ;;  %9755 = vmatprep.subr.bf16.mxu0 %v12818_v52  ;;  %v12834_v57 = vcombine.high %v8974_v54, %v8982_v63  ;;  %v12833_v27 = vcombine.low %v8974_v54, %v8982_v63  ;;  %v8920_v52 = vld [vmem:[%s16277_s26 + $0xd0] sm:$0xff] }
0x1878   : > { %9798 = vmatprep.subr.bf16.mxu1 %v12820_v18  ;;  %9756 = vmatpush1.bf16.msra.mxu0 %v12817_v51  ;;  %v8921_v51 = vld [vmem:[%s16277_s26 + $0xd8] sm:$0xff]  ;;  %v12774_v54 = vcombine.high %v8912_v3, %v8920_v52 }
0x1879   : > { %8862 = vadd.xlane.f32.xlu1 %v8859_v56  ;;  %9799 = vmatpush1.bf16.msra.mxu1 %v12819_v60  ;;  %v12776_v63 = vcombine.high %v8913_v50, %v8921_v51 }
0x187a   : > { %9757 = vmatprep.subr.bf16.mxu0 %v12834_v57  ;;  %v8929_v57 = vld [vmem:[%s16277_s26 + $0x118] sm:$0xff] }
0x187c   : > { %9758 = vmatpush1.bf16.msra.mxu0 %v12833_v27  ;;  %v12773_v27 = vcombine.low %v8912_v3, %v8920_v52 }
0x187d   : > { %9759 = vmatprep.subr.bf16.mxu0 %v12850_v47  ;;  %v8945_v47 = vld [vmem:[%s16277_s26 + $0x198] sm:$0xff] }
0x187e   : > { %v12808_v13 = vcombine.high %v8945_v47, %v8953_v9 }
0x1880   : > { %9760 = vmatpush1.bf16.msra.mxu0 %v12849_v22 }
0x1881   : > { %9761 = vmatprep.subr.bf16.mxu0 %v12866_v53  ;;  %v8961_v53 = vld [vmem:[%s16277_s26 + $0x218] sm:$0xff] }
0x1884   : > { %9762 = vmatpush1.bf16.msra.mxu0 %v12865_v62  ;;  %v12805_v62 = vcombine.low %v8944_v4, %v8952_v8 }
0x1904   : > { %v8861_v15 = vpop.xlane.xlu0 %8860 }
0x1905   : > { %v8864_v16 = vmul.f32 0.0078125, %v8861_v15  ;;  %v12868_v15 = vcombine.high %v9007_v12, %v9015_v19  ;;  %v8968_v12 = vld [vmem:[%s16277_s26 + $0x250] sm:$0xff]  ;;  %v8969_v19 = vld [vmem:[%s16277_s26 + $0x258] sm:$0xff] }
0x1906   : > { %v8863_v20 = vpop.xlane.xlu1 %8862 }
0x1907   : > { %v17098_v49 = vsub.f32 %v8858_v1, %v8864_v16  ;;  %v8865_v42 = vmul.f32 0.0078125, %v8863_v20  ;;  %v8983_v1 = vld [vmem:[%s16277_s26 + $0x2c8] sm:$0xff]  ;;  %v8896_v16 = vld [vmem:[%s16277_s26 + $0x10] sm:$0xff] }
0x1908   : > { %v12836_v43 = vcombine.high %v8975_v0, %v8983_v1  ;;  %v8904_v20 = vld [vmem:[%s16277_s26 + $0x50] sm:$0xff] }
0x1909   : > { %v17100_v58 = vsub.f32 %v8859_v56, %v8865_v42  ;;  %v8868_v59 = vmul.f32 %v17098_v49, %v17098_v49  ;;  %v12835_v56 = vcombine.low %v8975_v0, %v8983_v1  ;;  %v8897_v42 = vld [vmem:[%s16277_s26 + $0x18] sm:$0xff]  ;;  %v8928_v0 = vld [vmem:[%s16277_s26 + $0x110] sm:$0xff] }
0x190a   : > { %9800 = vmatprep.subr.bf16.mxu1 %v12836_v43  ;;  %v12759_v26 = vcombine.low %v8897_v42, %v8905_v23  ;;  %v12760_v28 = vcombine.high %v8897_v42, %v8905_v23  ;;  %v8937_v1 = vld [vmem:[%s16277_s26 + $0x158] sm:$0xff]  ;;  %v8984_v42 = vld [vmem:[%s16277_s26 + $0x2d0] sm:$0xff]  ;;  %v12821_v23 = vcombine.low %v8960_v11, %v8968_v12 }
0x190b   : > { %8870 = vadd.xlane.f32.xlu0 %v8868_v59  ;;  %v8869_v14 = vmul.f32 %v17100_v58, %v17100_v58  ;;  %9801 = vmatpush1.bf16.msra.mxu1 %v12835_v56  ;;  %v12757_v59 = vcombine.low %v8896_v16, %v8904_v20  ;;  %v12775_v56 = vcombine.low %v8913_v50, %v8921_v51  ;;  %v8898_v50 = vld [vmem:[%s16277_s26 + $0x20] sm:$0xff] }
0x190c   : > { %9802 = vmatprep.subr.bf16.mxu1 %v12852_v25  ;;  %v12792_v45 = vcombine.high %v8929_v57, %v8937_v1  ;;  %v12806_v25 = vcombine.high %v8944_v4, %v8952_v8  ;;  %v8906_v51 = vld [vmem:[%s16277_s26 + $0x60] sm:$0xff] }
0x190d   : > { %8872 = vadd.xlane.f32.xlu1 %v8869_v14  ;;  %v12758_v14 = vcombine.high %v8896_v16, %v8904_v20  ;;  %v12824_v16 = vcombine.high %v8961_v53, %v8969_v19  ;;  %v8976_v20 = vld [vmem:[%s16277_s26 + $0x290] sm:$0xff]  ;;  %v12761_v4 = vcombine.low %v8898_v50, %v8906_v51 }
0x190f   : > { %9803 = vmatpush1.bf16.msra.mxu1 %v12851_v10  ;;  %9833 = vmatprep.subr.bf16.mxu0 %v12758_v14  ;;  %v12791_v10 = vcombine.low %v8929_v57, %v8937_v1  ;;  %v8985_v14 = vld [vmem:[%s16277_s26 + $0x2d8] sm:$0xff]  ;;  %v12762_v57 = vcombine.high %v8898_v50, %v8906_v51 }
0x1910   : > { %9804 = vmatprep.subr.bf16.mxu1 %v12868_v15  ;;  %v12822_v15 = vcombine.high %v8960_v11, %v8968_v12 }
0x1913   : > { %9805 = vmatpush1.bf16.msra.mxu1 %v12867_v5  ;;  %v12807_v5 = vcombine.low %v8945_v47, %v8953_v9 }
0x1914   : > { %9876 = vmatprep.subr.bf16.mxu1 %v12760_v28  ;;  %v12838_v28 = vcombine.high %v8976_v20, %v8984_v42 }
0x1998   : > { %v8871_v29 = vpop.xlane.xlu0 %8870 }
0x1999   : > { %v8874_v30 = vmul.f32 0.0078125, %v8871_v29 }
0x199a   : > { %v8873_v31 = vpop.xlane.xlu1 %8872 }
0x199b   : > { %v8876_v6 = vadd.f32 1e-05, %v8874_v30  ;;  %v8875_v32 = vmul.f32 0.0078125, %v8873_v31  ;;  %v8992_v30 = vld [vmem:[%s16277_s26 + $0x310] sm:$0xff] }
0x199c   : > { %v9000_v31 = vld [vmem:[%s16277_s26 + $0x350] sm:$0xff] }
0x199d   : > { %14879 = vrsqrt.f32 %v8876_v6  ;;  %v8877_v33 = vadd.f32 1e-05, %v8875_v32  ;;  %v8993_v6 = vld [vmem:[%s16277_s26 + $0x318] sm:$0xff] }
0x199e   : > { %v9001_v32 = vld [vmem:[%s16277_s26 + $0x358] sm:$0xff] }
0x199f   : > { %14881 = vrsqrt.f32 %v8877_v33  ;;  %v12837_v33 = vcombine.low %v8976_v20, %v8984_v42 }
0x19a7   : > { %v14880_v36 = vpop.eup %14879 }
0x19a8   : > { %v8880_v37 = vmul.f32 %v14880_v36, %v17098_v49  ;;  %v12856_v36 = vcombine.high %v8993_v6, %v9001_v32 }
0x19a9   : > { %v14882_v40 = vpop.eup %14881 }
0x19aa   : > { %v8886_v41 = vmul.f32 %v8885_v35, %v8880_v37  ;;  %v8881_v46 = vmul.f32 %v14882_v40, %v17100_v58  ;;  %v8936_v58 = vld [vmem:[%s16277_s26 + $0x150] sm:$0xff] }
0x19ab   : > { %v12790_v43 = vcombine.high %v8928_v0, %v8936_v58  ;;  %v12789_v22 = vcombine.low %v8928_v0, %v8936_v58  ;;  %v9008_v37 = vld [vmem:[%s16277_s26 + $0x390] sm:$0xff] }
0x19ac   : > { %v8887_v2 = vmul.f32 %v8885_v35, %v8881_v46  ;;  %v17143_v60 = vadd.f32 %v8891_v39, %v8886_v41  ;;  %v12854_v35 = vcombine.high %v8992_v30, %v9000_v31  ;;  %v9016_v40 = vld [vmem:[%s16277_s26 + $0x3d0] sm:$0xff]  ;;  %v9017_v41 = vld [vmem:[%s16277_s26 + $0x3d8] sm:$0xff]  ;;  %v12853_v46 = vcombine.low %v8992_v30, %v9000_v31 }
0x19ad   : > { %v12870_v3 = vcombine.high %v9008_v37, %v9016_v40  ;;  %v12869_v0 = vcombine.low %v9008_v37, %v9016_v40 }
0x19ae   : > { %v17145_v18 = vadd.f32 %v8891_v39, %v8887_v2  ;;  %v9009_v39 = vld [vmem:[%s16277_s26 + $0x398] sm:$0xff]  ;;  %v12855_v2 = vcombine.low %v8993_v6, %v9001_v32 }
0x19af   : > { %v12872_v52 = vcombine.high %v9009_v39, %v9017_v41  ;;  %v12871_v58 = vcombine.low %v9009_v39, %v9017_v41 }
0x19b0   : > { %v17149_v49 = vpack.c.bf16 %v17145_v18, %v17143_v60 }
0x19b2   : > { %9780 = vmatmul.mubr.bf16.vlgmr.msra.gmra.mrb[48].mxu0 %v17149_v49  ;;  %9823 = vmatmul.mubr.bf16.vlgmr.msra.gmra.mrb[48].mxu1 %v17149_v49 }
0x19b3   : > { %9834 = vmatpush1.bf16.msra.mxu0 %v12757_v59  ;;  %9877 = vmatpush1.bf16.msra.mxu1 %v12759_v26  ;;  %v8977_v59 = vld [vmem:[%s16277_s26 + $0x298] sm:$0xff]  ;;  %v12823_v26 = vcombine.low %v8961_v53, %v8969_v19 }
0x19b4   : > { %9835 = vmatprep.subr.bf16.mxu0 %v12774_v54  ;;  %9878 = vmatprep.subr.bf16.mxu1 %v12776_v63  ;;  %v12840_v29 = vcombine.high %v8977_v59, %v8985_v14  ;;  %v12839_v34 = vcombine.low %v8977_v59, %v8985_v14  ;;  %v8899_v54 = vld [vmem:[%s16277_s26 + $0x28] sm:$0xff] }
0x19b5   : > { %9865 = vmatprep.mubr.bf16.mxu0 %v15492_v21  ;;  %9908 = vmatprep.mubr.bf16.mxu1 %v15492_v21  ;;  %v8907_v63 = vld [vmem:[%s16277_s26 + $0x68] sm:$0xff] }
0x19b6   : > { %v12764_v1 = vcombine.high %v8899_v54, %v8907_v63  ;;  %v12763_v8 = vcombine.low %v8899_v54, %v8907_v63 }
0x19b7   : > { %9836 = vmatpush1.bf16.msra.mxu0 %v12773_v27  ;;  %9879 = vmatpush1.bf16.msra.mxu1 %v12775_v56  ;;  %v8914_v27 = vld [vmem:[%s16277_s26 + $0xa0] sm:$0xff] }
0x19b8   : > { %9837 = vmatprep.subr.bf16.mxu0 %v12790_v43  ;;  %9880 = vmatprep.subr.bf16.mxu1 %v12792_v45  ;;  %v8922_v56 = vld [vmem:[%s16277_s26 + $0xe0] sm:$0xff]  ;;  %v8915_v43 = vld [vmem:[%s16277_s26 + $0xa8] sm:$0xff] }
0x19b9   : > { %v8923_v45 = vld [vmem:[%s16277_s26 + $0xe8] sm:$0xff]  ;;  %v12778_v47 = vcombine.high %v8914_v27, %v8922_v56  ;;  %v12777_v11 = vcombine.low %v8914_v27, %v8922_v56 }
0x19ba   : > { %v12780_v9 = vcombine.high %v8915_v43, %v8923_v45  ;;  %v12779_v12 = vcombine.low %v8915_v43, %v8923_v45 }
0x19bb   : > { %9838 = vmatpush1.bf16.msra.mxu0 %v12789_v22  ;;  %9881 = vmatpush1.bf16.msra.mxu1 %v12791_v10  ;;  %v8930_v22 = vld [vmem:[%s16277_s26 + $0x120] sm:$0xff] }
0x19bc   : > { %9839 = vmatprep.subr.bf16.mxu0 %v12806_v25  ;;  %9882 = vmatprep.subr.bf16.mxu1 %v12808_v13  ;;  %v8938_v10 = vld [vmem:[%s16277_s26 + $0x160] sm:$0xff]  ;;  %v8931_v25 = vld [vmem:[%s16277_s26 + $0x128] sm:$0xff] }
0x19bd   : > { %v8939_v13 = vld [vmem:[%s16277_s26 + $0x168] sm:$0xff]  ;;  %v12794_v53 = vcombine.high %v8930_v22, %v8938_v10  ;;  %v12793_v20 = vcombine.low %v8930_v22, %v8938_v10 }
0x19be   : > { %v12796_v19 = vcombine.high %v8931_v25, %v8939_v13  ;;  %v12795_v42 = vcombine.low %v8931_v25, %v8939_v13 }
0x19bf   : > { %9840 = vmatpush1.bf16.msra.mxu0 %v12805_v62  ;;  %9883 = vmatpush1.bf16.msra.mxu1 %v12807_v5  ;;  %v8946_v62 = vld [vmem:[%s16277_s26 + $0x1a0] sm:$0xff] }
0x19c0   : > { %9841 = vmatprep.subr.bf16.mxu0 %v12822_v15  ;;  %9884 = vmatprep.subr.bf16.mxu1 %v12824_v16  ;;  %v8954_v5 = vld [vmem:[%s16277_s26 + $0x1e0] sm:$0xff]  ;;  %v8947_v15 = vld [vmem:[%s16277_s26 + $0x1a8] sm:$0xff] }
0x19c1   : > { %v8955_v16 = vld [vmem:[%s16277_s26 + $0x1e8] sm:$0xff]  ;;  %v12810_v59 = vcombine.high %v8946_v62, %v8954_v5  ;;  %v12809_v30 = vcombine.low %v8946_v62, %v8954_v5 }
0x19c2   : > { %v12812_v14 = vcombine.high %v8947_v15, %v8955_v16  ;;  %v12811_v31 = vcombine.low %v8947_v15, %v8955_v16 }
0x19c3   : > { %9842 = vmatpush1.bf16.msra.mxu0 %v12821_v23  ;;  %9885 = vmatpush1.bf16.msra.mxu1 %v12823_v26  ;;  %v8962_v23 = vld [vmem:[%s16277_s26 + $0x220] sm:$0xff] }
0x19c4   : > { %9843 = vmatprep.subr.bf16.mxu0 %v12838_v28  ;;  %9886 = vmatprep.subr.bf16.mxu1 %v12840_v29  ;;  %v8970_v26 = vld [vmem:[%s16277_s26 + $0x260] sm:$0xff]  ;;  %v8963_v28 = vld [vmem:[%s16277_s26 + $0x228] sm:$0xff] }
0x19c5   : > { %v8971_v29 = vld [vmem:[%s16277_s26 + $0x268] sm:$0xff]  ;;  %v12826_v6 = vcombine.high %v8962_v23, %v8970_v26  ;;  %v12825_v37 = vcombine.low %v8962_v23, %v8970_v26 }
0x19c6   : > { %v12828_v32 = vcombine.high %v8963_v28, %v8971_v29  ;;  %v12827_v40 = vcombine.low %v8963_v28, %v8971_v29 }
0x19c7   : > { %9844 = vmatpush1.bf16.msra.mxu0 %v12837_v33  ;;  %9887 = vmatpush1.bf16.msra.mxu1 %v12839_v34  ;;  %v8978_v33 = vld [vmem:[%s16277_s26 + $0x2a0] sm:$0xff] }
0x19c8   : > { %9845 = vmatprep.subr.bf16.mxu0 %v12854_v35  ;;  %9888 = vmatprep.subr.bf16.mxu1 %v12856_v36  ;;  %v8986_v34 = vld [vmem:[%s16277_s26 + $0x2e0] sm:$0xff]  ;;  %v8979_v35 = vld [vmem:[%s16277_s26 + $0x2a8] sm:$0xff] }
0x19c9   : > { %v8987_v36 = vld [vmem:[%s16277_s26 + $0x2e8] sm:$0xff]  ;;  %v12842_v39 = vcombine.high %v8978_v33, %v8986_v34  ;;  %v12841_v50 = vcombine.low %v8978_v33, %v8986_v34 }
0x19ca   : > { %v12844_v41 = vcombine.high %v8979_v35, %v8987_v36  ;;  %v12843_v51 = vcombine.low %v8979_v35, %v8987_v36 }
0x19cb   : > { %9846 = vmatpush1.bf16.msra.mxu0 %v12853_v46  ;;  %9889 = vmatpush1.bf16.msra.mxu1 %v12855_v2  ;;  %v8994_v46 = vld [vmem:[%s16277_s26 + $0x320] sm:$0xff] }
0x19cc   : > { %9847 = vmatprep.subr.bf16.mxu0 %v12870_v3  ;;  %9890 = vmatprep.subr.bf16.mxu1 %v12872_v52  ;;  %v9002_v2 = vld [vmem:[%s16277_s26 + $0x360] sm:$0xff]  ;;  %v8995_v3 = vld [vmem:[%s16277_s26 + $0x328] sm:$0xff] }
0x19cd   : > { %v9003_v52 = vld [vmem:[%s16277_s26 + $0x368] sm:$0xff]  ;;  %v12858_v54 = vcombine.high %v8994_v46, %v9002_v2  ;;  %v12857_v27 = vcombine.low %v8994_v46, %v9002_v2 }
0x19ce   : > { %v12860_v63 = vcombine.high %v8995_v3, %v9003_v52  ;;  %v12859_v56 = vcombine.low %v8995_v3, %v9003_v52  ;;  %v8980_v52 = vld [vmem:[%s16277_s26 + $0x2b0] sm:$0xff] }
0x19cf   : > { %9848 = vmatpush1.bf16.msra.mxu0 %v12869_v0  ;;  %9891 = vmatpush1.bf16.msra.mxu1 %v12871_v58  ;;  %v9010_v0 = vld [vmem:[%s16277_s26 + $0x3a0] sm:$0xff] }
0x19d0   : > { %9919 = vmatprep.subr.bf16.mxu0 %v12762_v57  ;;  %9962 = vmatprep.subr.bf16.mxu1 %v12764_v1  ;;  %v9018_v58 = vld [vmem:[%s16277_s26 + $0x3e0] sm:$0xff]  ;;  %v9011_v57 = vld [vmem:[%s16277_s26 + $0x3a8] sm:$0xff] }
0x19d1   : > { %v9019_v1 = vld [vmem:[%s16277_s26 + $0x3e8] sm:$0xff]  ;;  %v12874_v43 = vcombine.high %v9010_v0, %v9018_v58  ;;  %v12873_v22 = vcombine.low %v9010_v0, %v9018_v58 }
0x19d2   : > { %9866 = vmatmul.mubr.bf16.vlgmr.msra.gmra.mrb[52].mxu0 %v17149_v49  ;;  %9909 = vmatmul.mubr.bf16.vlgmr.msra.gmra.mrb[52].mxu1 %v17149_v49  ;;  %v12876_v45 = vcombine.high %v9011_v57, %v9019_v1  ;;  %v12875_v10 = vcombine.low %v9011_v57, %v9019_v1  ;;  %v8996_v1 = vld [vmem:[%s16277_s26 + $0x330] sm:$0xff] }
0x19d3   : > { %9920 = vmatpush1.bf16.msra.mxu0 %v12761_v4  ;;  %9963 = vmatpush1.bf16.msra.mxu1 %v12763_v8  ;;  %v8900_v4 = vld [vmem:[%s16277_s26 + $0x30] sm:$0xff] }
0x19d4   : > { %9921 = vmatprep.subr.bf16.mxu0 %v12778_v47  ;;  %9964 = vmatprep.subr.bf16.mxu1 %v12780_v9  ;;  %v8908_v8 = vld [vmem:[%s16277_s26 + $0x70] sm:$0xff]  ;;  %v8901_v47 = vld [vmem:[%s16277_s26 + $0x38] sm:$0xff] }
0x19d5   : > { %9951 = vmatprep.mubr.bf16.mxu0 %v15492_v21  ;;  %9994 = vmatprep.mubr.bf16.mxu1 %v15492_v21  ;;  %v8909_v9 = vld [vmem:[%s16277_s26 + $0x78] sm:$0xff]  ;;  %v12766_v25 = vcombine.high %v8900_v4, %v8908_v8  ;;  %v12765_v62 = vcombine.low %v8900_v4, %v8908_v8 }
0x19d6   : > { %v12768_v13 = vcombine.high %v8901_v47, %v8909_v9  ;;  %v12767_v5 = vcombine.low %v8901_v47, %v8909_v9  ;;  %v9012_v9 = vld [vmem:[%s16277_s26 + $0x3b0] sm:$0xff] }
0x19d7   : > { %9922 = vmatpush1.bf16.msra.mxu0 %v12777_v11  ;;  %9965 = vmatpush1.bf16.msra.mxu1 %v12779_v12  ;;  %v8916_v11 = vld [vmem:[%s16277_s26 + $0xb0] sm:$0xff] }
0x19d8   : > { %9923 = vmatprep.subr.bf16.mxu0 %v12794_v53  ;;  %9966 = vmatprep.subr.bf16.mxu1 %v12796_v19  ;;  %v8924_v12 = vld [vmem:[%s16277_s26 + $0xf0] sm:$0xff]  ;;  %v8917_v53 = vld [vmem:[%s16277_s26 + $0xb8] sm:$0xff] }
0x19d9   : > { %v8925_v19 = vld [vmem:[%s16277_s26 + $0xf8] sm:$0xff]  ;;  %v12782_v15 = vcombine.high %v8916_v11, %v8924_v12  ;;  %v12781_v23 = vcombine.low %v8916_v11, %v8924_v12 }
0x19da   : > { %v12784_v16 = vcombine.high %v8917_v53, %v8925_v19  ;;  %v12783_v26 = vcombine.low %v8917_v53, %v8925_v19 }
0x19db   : > { %9924 = vmatpush1.bf16.msra.mxu0 %v12793_v20  ;;  %9967 = vmatpush1.bf16.msra.mxu1 %v12795_v42  ;;  %v8932_v20 = vld [vmem:[%s16277_s26 + $0x130] sm:$0xff] }
0x19dc   : > { %9925 = vmatprep.subr.bf16.mxu0 %v12810_v59  ;;  %9968 = vmatprep.subr.bf16.mxu1 %v12812_v14  ;;  %v8940_v42 = vld [vmem:[%s16277_s26 + $0x170] sm:$0xff]  ;;  %v8933_v59 = vld [vmem:[%s16277_s26 + $0x138] sm:$0xff] }
0x19dd   : > { %v8941_v14 = vld [vmem:[%s16277_s26 + $0x178] sm:$0xff]  ;;  %v12798_v28 = vcombine.high %v8932_v20, %v8940_v42  ;;  %v12797_v33 = vcombine.low %v8932_v20, %v8940_v42  ;;  %v14718_v20 = vld [vmem:[%s16279_s13 + $0x80] sm:$0xff]   ;;  %v14719_v42 = vld [vmem:[%s16279_s13 + $0x48] sm:$0xff]  }
0x19de   : > { %v12800_v29 = vcombine.high %v8933_v59, %v8941_v14  ;;  %v12799_v34 = vcombine.low %v8933_v59, %v8941_v14  ;;  %v14720_v59 = vld [vmem:[%s16279_s13 + $0xc8] sm:$0xff]  }
0x19df   : > { %9926 = vmatpush1.bf16.msra.mxu0 %v12809_v30  ;;  %9969 = vmatpush1.bf16.msra.mxu1 %v12811_v31  ;;  %v8948_v30 = vld [vmem:[%s16277_s26 + $0x1b0] sm:$0xff]  ;;  %v14721_v14 = vld [vmem:[%s16279_s13 + $0x8] sm:$0xff]  }
0x19e0   : > { %9927 = vmatprep.subr.bf16.mxu0 %v12826_v6  ;;  %9970 = vmatprep.subr.bf16.mxu1 %v12828_v32  ;;  %v8956_v31 = vld [vmem:[%s16277_s26 + $0x1f0] sm:$0xff]  ;;  %v8949_v6 = vld [vmem:[%s16277_s26 + $0x1b8] sm:$0xff] }
0x19e1   : > { %v8957_v32 = vld [vmem:[%s16277_s26 + $0x1f8] sm:$0xff]  ;;  %v12814_v35 = vcombine.high %v8948_v30, %v8956_v31  ;;  %v12813_v46 = vcombine.low %v8948_v30, %v8956_v31  ;;  %v14726_v30 = vld [vmem:[%s16279_s13 + $0x90] sm:$0xff]  }
0x19e2   : > { %v12816_v36 = vcombine.high %v8949_v6, %v8957_v32  ;;  %v14728_v31 = vld [vmem:[%s16279_s13 + $0xd8] sm:$0xff]  }
0x19e3   : > { %9928 = vmatpush1.bf16.msra.mxu0 %v12825_v37  ;;  %9971 = vmatpush1.bf16.msra.mxu1 %v12827_v40  ;;  %v8964_v37 = vld [vmem:[%s16277_s26 + $0x230] sm:$0xff] }
0x19e4   : > { %9929 = vmatprep.subr.bf16.mxu0 %v12842_v39  ;;  %9972 = vmatprep.subr.bf16.mxu1 %v12844_v41  ;;  %v8972_v40 = vld [vmem:[%s16277_s26 + $0x270] sm:$0xff]  ;;  %v8965_v39 = vld [vmem:[%s16277_s26 + $0x238] sm:$0xff] }
0x19e5   : > { %v8973_v41 = vld [vmem:[%s16277_s26 + $0x278] sm:$0xff]  ;;  %v12830_v2 = vcombine.high %v8964_v37, %v8972_v40 }
0x19e6   : > { %v12832_v3 = vcombine.high %v8965_v39, %v8973_v41  ;;  %v12831_v0 = vcombine.low %v8965_v39, %v8973_v41  ;;  %v14737_v39 = vld [vmem:[%s16279_s13 + $0x28] sm:$0xff]  }
0x19e7   : > { %9930 = vmatpush1.bf16.msra.mxu0 %v12841_v50  ;;  %9973 = vmatpush1.bf16.msra.mxu1 %v12843_v51  ;;  %v8988_v50 = vld [vmem:[%s16277_s26 + $0x2f0] sm:$0xff]  ;;  %v8981_v51 = vld [vmem:[%s16277_s26 + $0x2b8] sm:$0xff]  ;;  %v14738_v41 = vld [vmem:[%s16279_s13 + $0xa8] sm:$0xff]  }
0x19e8   : > { %9931 = vmatprep.subr.bf16.mxu0 %v12858_v54  ;;  %9974 = vmatprep.subr.bf16.mxu1 %v12860_v63  ;;  %v8989_v54 = vld [vmem:[%s16277_s26 + $0x2f8] sm:$0xff]  ;;  %v12829_v63 = vcombine.low %v8964_v37, %v8972_v40  ;;  %v12846_v58 = vcombine.high %v8980_v52, %v8988_v50  ;;  %v14735_v37 = vld [vmem:[%s16279_s13 + $0x68] sm:$0xff]  }
0x19e9   : > { %v12848_v57 = vcombine.high %v8981_v51, %v8989_v54  ;;  %v12847_v4 = vcombine.low %v8981_v51, %v8989_v54  ;;  %v14736_v40 = vld [vmem:[%s16279_s13 + $0xe8] sm:$0xff]   ;;  %v14745_v51 = vld [vmem:[%s16279_s13 + $0x38] sm:$0xff]  }
0x19ea   : > { %v14746_v54 = vld [vmem:[%s16279_s13 + $0xb8] sm:$0xff]  }
0x19eb   : > { %9932 = vmatpush1.bf16.msra.mxu0 %v12857_v27  ;;  %9975 = vmatpush1.bf16.msra.mxu1 %v12859_v56  ;;  %v9004_v27 = vld [vmem:[%s16277_s26 + $0x370] sm:$0xff]  ;;  %v8997_v56 = vld [vmem:[%s16277_s26 + $0x338] sm:$0xff] }
0x19ec   : > { %9933 = vmatprep.subr.bf16.mxu0 %v12874_v43  ;;  %9976 = vmatprep.subr.bf16.mxu1 %v12876_v45  ;;  %v9005_v43 = vld [vmem:[%s16277_s26 + $0x378] sm:$0xff]  ;;  %v12845_v45 = vcombine.low %v8980_v52, %v8988_v50  ;;  %v12862_v8 = vcombine.high %v8996_v1, %v9004_v27 }
0x19ed   : > { %v12864_v47 = vcombine.high %v8997_v56, %v9005_v43  ;;  %v12863_v11 = vcombine.low %v8997_v56, %v9005_v43  ;;  %v14743_v52 = vld [vmem:[%s16279_s13 + $0x78] sm:$0xff]  }
0x19ee   : > { %v14744_v50 = vld [vmem:[%s16279_s13 + $0xf8] sm:$0xff]  }
0x19ef   : > { %9934 = vmatpush1.bf16.msra.mxu0 %v12873_v22  ;;  %9977 = vmatpush1.bf16.msra.mxu1 %v12875_v10  ;;  %v9020_v22 = vld [vmem:[%s16277_s26 + $0x3f0] sm:$0xff]  ;;  %v9013_v10 = vld [vmem:[%s16277_s26 + $0x3b8] sm:$0xff] }
0x19f0   : > { %10005 = vmatprep.subr.bf16.mxu0 %v12766_v25  ;;  %10048 = vmatprep.subr.bf16.mxu1 %v12768_v13  ;;  %v9021_v25 = vld [vmem:[%s16277_s26 + $0x3f8] sm:$0xff]  ;;  %v12861_v13 = vcombine.low %v8996_v1, %v9004_v27  ;;  %v12878_v12 = vcombine.high %v9012_v9, %v9020_v22  ;;  %v12877_v19 = vcombine.low %v9012_v9, %v9020_v22 }
0x19f1   : > { %v12880_v53 = vcombine.high %v9013_v10, %v9021_v25 }
0x19f2   : > { %9952 = vmatmul.mubr.bf16.vlgmr.msra.gmra.mrb[56].mxu0 %v17149_v49  ;;  %9995 = vmatmul.mubr.bf16.vlgmr.msra.gmra.mrb[56].mxu1 %v17149_v49 }
0x19f3   : > { %10006 = vmatpush1.bf16.msra.mxu0 %v12765_v62  ;;  %10049 = vmatpush1.bf16.msra.mxu1 %v12767_v5  ;;  %v12879_v62 = vcombine.low %v9013_v10, %v9021_v25  ;;  %v14715_v5 = vld [vmem:[%s16279_s13 + $0x40] sm:$0xff]  }
0x19f4   : > { %10007 = vmatprep.subr.bf16.mxu0 %v12782_v15  ;;  %10050 = vmatprep.subr.bf16.mxu1 %v12784_v16  ;;  %v14716_v15 = vld [vmem:[%s16279_s13 + $0xc0] sm:$0xff]  }
0x19f5   : > { %10037 = vmatprep.mubr.bf16.mxu0 %v15492_v21  ;;  %10080 = vmatprep.mubr.bf16.mxu1 %v15492_v21  ;;  %v12815_v21 = vcombine.low %v8949_v6, %v8957_v32  ;;  %v14717_v16 = vld [vmem:[%s16279_s13] sm:$0xff]   ;;  %v14729_v6 = vld [vmem:[%s16279_s13 + $0x18] sm:$0xff]  }
0x19f6   : > { %v14730_v32 = vld [vmem:[%s16279_s13 + $0x98] sm:$0xff]  }
0x19f7   : > { %10008 = vmatpush1.bf16.msra.mxu0 %v12781_v23  ;;  %10051 = vmatpush1.bf16.msra.mxu1 %v12783_v26  ;;  %v14722_v23 = vld [vmem:[%s16279_s13 + $0x88] sm:$0xff]   ;;  %v14723_v26 = vld [vmem:[%s16279_s13 + $0x50] sm:$0xff]  }
0x19f8   : > { %10009 = vmatprep.subr.bf16.mxu0 %v12798_v28  ;;  %10052 = vmatprep.subr.bf16.mxu1 %v12800_v29  ;;  %v14724_v28 = vld [vmem:[%s16279_s13 + $0xd0] sm:$0xff]  }
0x19f9   : > { %v14725_v29 = vld [vmem:[%s16279_s13 + $0x10] sm:$0xff]  }
0x19fb   : > { %10010 = vmatpush1.bf16.msra.mxu0 %v12797_v33  ;;  %10053 = vmatpush1.bf16.msra.mxu1 %v12799_v34  ;;  %v14731_v33 = vld [vmem:[%s16279_s13 + $0x60] sm:$0xff]  }
0x19fc   : > { %10011 = vmatprep.subr.bf16.mxu0 %v12814_v35  ;;  %10054 = vmatprep.subr.bf16.mxu1 %v12816_v36  ;;  %v14732_v34 = vld [vmem:[%s16279_s13 + $0xe0] sm:$0xff]  }
0x19fd   : > { %v14733_v35 = vld [vmem:[%s16279_s13 + $0x20] sm:$0xff]  }
0x19fe   : > { %v14734_v36 = vld [vmem:[%s16279_s13 + $0xa0] sm:$0xff]  }
0x19ff   : > { %10012 = vmatpush1.bf16.msra.mxu0 %v12813_v46  ;;  %10055 = vmatpush1.bf16.msra.mxu1 %v12815_v21  ;;  %v14739_v46 = vld [vmem:[%s16279_s13 + $0x70] sm:$0xff]  }
0x1a00   : > { %10013 = vmatprep.subr.bf16.mxu0 %v12830_v2  ;;  %10056 = vmatprep.subr.bf16.mxu1 %v12832_v3  ;;  %v14740_v21 = vld [vmem:[%s16279_s13 + $0xf0] sm:$0xff]  }
0x1a01   : > { %v14741_v2 = vld [vmem:[%s16279_s13 + $0x30] sm:$0xff]  }
0x1a02   : > { %v14742_v3 = vld [vmem:[%s16279_s13 + $0xb0] sm:$0xff]  }
0x1a03   : > { %10014 = vmatpush1.bf16.msra.mxu0 %v12829_v63  ;;  %10057 = vmatpush1.bf16.msra.mxu1 %v12831_v0  ;;  %v14747_v63 = vld [vmem:[%s16279_s13 + $0x140] sm:$0xff]  }
0x1a04   : > { %10015 = vmatprep.subr.bf16.mxu0 %v12846_v58  ;;  %10058 = vmatprep.subr.bf16.mxu1 %v12848_v57  ;;  %v14748_v0 = vld [vmem:[%s16279_s13 + $0x1c0] sm:$0xff]  }
0x1a05   : > { %v17288_v58 = vld [vmem:[%s16283_s30] sm:$0xff] }
0x1a06   : > { %v9030_v57 = vrot.slane %v17288_v58, %v16804_v61  ;;  %v9038_v1 = vrot.slane %v17288_v58, %v16833_v7  ;;  %v9034_v27 = vrot.slane %v17288_v58, %v16796_v55  ;;  %v9042_v56 = vrot.slane %v17288_v58, %v17066_v17 }
0x1a07   : > { %10016 = vmatpush1.bf16.msra.mxu0 %v12845_v45  ;;  %10059 = vmatpush1.bf16.msra.mxu1 %v12847_v4 }
0x1a08   : > { %10017 = vmatprep.subr.bf16.mxu0 %v12862_v8  ;;  %10060 = vmatprep.subr.bf16.mxu1 %v12864_v47 }
0x1a0b   : > { %10018 = vmatpush1.bf16.msra.mxu0 %v12861_v13  ;;  %10061 = vmatpush1.bf16.msra.mxu1 %v12863_v11 }
0x1a0c   : > { %10019 = vmatprep.subr.bf16.mxu0 %v12878_v12  ;;  %10062 = vmatprep.subr.bf16.mxu1 %v12880_v53 }
0x1a0f   : > { %10020 = vmatpush1.bf16.msra.mxu0 %v12877_v19  ;;  %10063 = vmatpush1.bf16.msra.mxu1 %v12879_v62 }
0x1a10   : > { %13663 = vmatprep.subr.bf16.mxu0 %v14715_v5  ;;  %13685 = vmatprep.subr.bf16.mxu1 %v14716_v15 }
0x1a12   : > { %10038 = vmatmul.mubr.bf16.vlgmr.msra.gmra.mrb[60].mxu0 %v17149_v49  ;;  %10081 = vmatmul.mubr.bf16.vlgmr.msra.gmra.mrb[60].mxu1 %v17149_v49  ;;  %v14727_v49 = vld [vmem:[%s16279_s13 + $0x58] sm:$0xff]  }
0x1a13   : > { %13664 = vmatpush3.bf16.msra.mxu0 %v14717_v16  ;;  %13686 = vmatpush3.bf16.msra.mxu1 %v14718_v20 }
0x1a14   : > { %13665 = vmatprep.subr.bf16.mxu0 %v14719_v42  ;;  %13687 = vmatprep.subr.bf16.mxu1 %v14720_v59 }
0x1a17   : > { %13666 = vmatpush3.bf16.msra.mxu0 %v14721_v14  ;;  %13688 = vmatpush3.bf16.msra.mxu1 %v14722_v23 }
0x1a18   : > { %13667 = vmatprep.subr.bf16.mxu0 %v14723_v26  ;;  %13689 = vmatprep.subr.bf16.mxu1 %v14724_v28 }
0x1a1b   : > { %13668 = vmatpush3.bf16.msra.mxu0 %v14725_v29  ;;  %13690 = vmatpush3.bf16.msra.mxu1 %v14726_v30 }
0x1a1c   : > { %13669 = vmatprep.subr.bf16.mxu0 %v14727_v49  ;;  %13691 = vmatprep.subr.bf16.mxu1 %v14728_v31  ;;  %v14749_v31 = vld [vmem:[%s16279_s13 + $0x100] sm:$0xff]  }
0x1a1f   : > { %13670 = vmatpush3.bf16.msra.mxu0 %v14729_v6  ;;  %13692 = vmatpush3.bf16.msra.mxu1 %v14730_v32  ;;  %v14750_v6 = vld [vmem:[%s16279_s13 + $0x180] sm:$0xff]   ;;  %v14751_v32 = vld [vmem:[%s16279_s13 + $0x148] sm:$0xff]  }
0x1a20   : > { %13671 = vmatprep.subr.bf16.mxu0 %v14731_v33  ;;  %13693 = vmatprep.subr.bf16.mxu1 %v14732_v34  ;;  %v14752_v33 = vld [vmem:[%s16279_s13 + $0x1c8] sm:$0xff]  }
0x1a21   : > { %v14753_v34 = vld [vmem:[%s16279_s13 + $0x108] sm:$0xff]  }
0x1a23   : > { %13672 = vmatpush3.bf16.msra.mxu0 %v14733_v35  ;;  %13694 = vmatpush3.bf16.msra.mxu1 %v14734_v36  ;;  %v14754_v35 = vld [vmem:[%s16279_s13 + $0x188] sm:$0xff]   ;;  %v14755_v36 = vld [vmem:[%s16279_s13 + $0x150] sm:$0xff]  }
0x1a24   : > { %13673 = vmatprep.subr.bf16.mxu0 %v14735_v37  ;;  %13695 = vmatprep.subr.bf16.mxu1 %v14736_v40  ;;  %v14756_v37 = vld [vmem:[%s16279_s13 + $0x1d0] sm:$0xff]  }
0x1a25   : > { %v14757_v40 = vld [vmem:[%s16279_s13 + $0x110] sm:$0xff]  }
0x1a27   : > { %13674 = vmatpush3.bf16.msra.mxu0 %v14737_v39  ;;  %13696 = vmatpush3.bf16.msra.mxu1 %v14738_v41  ;;  %v14758_v39 = vld [vmem:[%s16279_s13 + $0x190] sm:$0xff]   ;;  %v14759_v41 = vld [vmem:[%s16279_s13 + $0x158] sm:$0xff]  }
0x1a28   : > { %13675 = vmatprep.subr.bf16.mxu0 %v14739_v46  ;;  %13697 = vmatprep.subr.bf16.mxu1 %v14740_v21  ;;  %v14760_v46 = vld [vmem:[%s16279_s13 + $0x1d8] sm:$0xff]  }
0x1a29   : > { %v14761_v21 = vld [vmem:[%s16279_s13 + $0x118] sm:$0xff]  }
0x1a2b   : > { %13676 = vmatpush3.bf16.msra.mxu0 %v14741_v2  ;;  %13698 = vmatpush3.bf16.msra.mxu1 %v14742_v3  ;;  %v14762_v2 = vld [vmem:[%s16279_s13 + $0x198] sm:$0xff]   ;;  %v14763_v3 = vld [vmem:[%s16279_s13 + $0x160] sm:$0xff]  }
0x1a2c   : > { %13677 = vmatprep.subr.bf16.mxu0 %v14743_v52  ;;  %13699 = vmatprep.subr.bf16.mxu1 %v14744_v50  ;;  %v14764_v52 = vld [vmem:[%s16279_s13 + $0x1e0] sm:$0xff]  }
0x1a2d   : > { %v14765_v50 = vld [vmem:[%s16279_s13 + $0x120] sm:$0xff]  }
0x1a2f   : > { %13678 = vmatpush3.bf16.msra.mxu0 %v14745_v51  ;;  %13700 = vmatpush3.bf16.msra.mxu1 %v14746_v54  ;;  %v14766_v51 = vld [vmem:[%s16279_s13 + $0x1a0] sm:$0xff]   ;;  %v14767_v54 = vld [vmem:[%s16279_s13 + $0x168] sm:$0xff]  }
0x1a30   : > { %13707 = vmatprep.subr.bf16.mxu0 %v14747_v63  ;;  %13729 = vmatprep.subr.bf16.mxu1 %v14748_v0  ;;  %v14768_v63 = vld [vmem:[%s16279_s13 + $0x1e8] sm:$0xff]  }
0x1a31   : > { %v14769_v0 = vld [vmem:[%s16279_s13 + $0x128] sm:$0xff]  }
0x1a85   : > { %v9781_v43 = vpop.f32.mrb[48].mxu0  ;;  %v9824_v45 = vpop.f32.mrb[48].mxu1 }
0x1a86   : > { %v9782_v4 = vadd.f32 %v9781_v43, %v9030_v57  ;;  %v9825_v8 = vadd.f32 %v9824_v45, %v9038_v1  ;;  %v9783_v47 = vpop.f32.mrb[49].mxu0  ;;  %v9826_v9 = vpop.f32.mrb[49].mxu1  ;;  %v14772_v43 = vld [vmem:[%s16279_s13 + $0x1f0] sm:$0xff]   ;;  %v9050_v45 = vrot.slane %v17288_v58, %v17082_v44 }
0x1a87   : > { %v9784_v22 = vadd.f32 %v9783_v47, %v9034_v27  ;;  %v9827_v10 = vadd.f32 %v9826_v9, %v9042_v56  ;;  %v9785_v25 = vpop.f32.mrb[50].mxu0  ;;  %v9828_v13 = vpop.f32.mrb[50].mxu1  ;;  %v14773_v9 = vld [vmem:[%s16279_s13 + $0x130] sm:$0xff]  }
0x1a88   : > { %v9786_v11 = vadd.f32 %v9785_v25, %v9030_v57  ;;  %v9829_v12 = vadd.f32 %v9828_v13, %v9038_v1  ;;  %v9787_v53 = vpop.f32.mrb[51].mxu0  ;;  %v9830_v19 = vpop.f32.mrb[51].mxu1  ;;  %v10091_v15 = vmax.f32 %v9782_v4, 0.0  ;;  %v10093_v16 = vmax.f32 %v9825_v8, 0.0  ;;  %v14770_v57 = vld [vmem:[%s16279_s13 + $0x1a8] sm:$0xff]  }
0x1a89   : > { %v9788_v62 = vadd.f32 %v9787_v53, %v9034_v27  ;;  %v9831_v5 = vadd.f32 %v9830_v19, %v9042_v56  ;;  %v10092_v59 = vmax.f32 %v9784_v22, 0.0  ;;  %v10094_v14 = vmax.f32 %v9827_v10, 0.0  ;;  %v14771_v56 = vld [vmem:[%s16279_s13 + $0x170] sm:$0xff]   ;;  %v14776_v53 = vld [vmem:[%s16279_s13 + $0x1f8] sm:$0xff]  }
0x1a8a   : > { %v10107_v20 = vmax.f32 %v9786_v11, 0.0  ;;  %v10109_v42 = vmax.f32 %v9829_v12, 0.0  ;;  %v9046_v1 = vrot.slane %v17288_v58, %v17079_v38  ;;  %v9054_v27 = vrot.slane %v17288_v58, %v17054_v48  ;;  %v14774_v22 = vld [vmem:[%s16279_s13 + $0x1b0] sm:$0xff]   ;;  %v14775_v12 = vld [vmem:[%s16279_s13 + $0x178] sm:$0xff]  }
0x1a8b   : > { %v10108_v23 = vmax.f32 %v9788_v62, 0.0  ;;  %v10110_v26 = vmax.f32 %v9831_v5, 0.0  ;;  %v9058_v4 = vrot.slane %v17288_v58, %v17073_v24 }
0x1a8c   : > { %v10379_v28 = vpack.c.bf16 %v10107_v20, %v10091_v15  ;;  %v10381_v29 = vpack.c.bf16 %v10109_v42, %v10093_v16 }
0x1a8d   : > { %v10380_v30 = vpack.c.bf16 %v10108_v23, %v10092_v59  ;;  %v10382_v49 = vpack.c.bf16 %v10110_v26, %v10094_v14  ;;  %v14777_v23 = vld [vmem:[%s16279_s13 + $0x138] sm:$0xff]  }
0x1a8e   : > { %v14778_v26 = vld [vmem:[%s16279_s13 + $0x1b8] sm:$0xff]  }
0x1a8f   : > { %11199 = vmatprep.mubr.bf16.mxu0 %v10380_v30  ;;  %11240 = vmatprep.mubr.bf16.mxu1 %v10382_v49 }
0x1a90   : > { %11200 = vmatmul.mubr.bf16.vlgmr.msra.gmra.mrb[64].mxu0 %v10379_v28  ;;  %11241 = vmatmul.mubr.bf16.vlgmr.msra.gmra.mrb[64].mxu1 %v10381_v29 }
0x1a91   : > { %13708 = vmatpush3.bf16.msra.mxu0 %v14749_v31  ;;  %13730 = vmatpush3.bf16.msra.mxu1 %v14750_v6  ;;  %v14779_v31 = vld [vmem:[%s16279_s13 + $0x240] sm:$0xff]  }
0x1a92   : > { %13709 = vmatprep.subr.bf16.mxu0 %v14751_v32  ;;  %13731 = vmatprep.subr.bf16.mxu1 %v14752_v33  ;;  %v14780_v6 = vld [vmem:[%s16279_s13 + $0x2c0] sm:$0xff]  }
0x1a95   : > { %13710 = vmatpush3.bf16.msra.mxu0 %v14753_v34  ;;  %13732 = vmatpush3.bf16.msra.mxu1 %v14754_v35 }
0x1a96   : > { %13711 = vmatprep.subr.bf16.mxu0 %v14755_v36  ;;  %13733 = vmatprep.subr.bf16.mxu1 %v14756_v37 }
0x1a99   : > { %13712 = vmatpush3.bf16.msra.mxu0 %v14757_v40  ;;  %13734 = vmatpush3.bf16.msra.mxu1 %v14758_v39 }
0x1a9a   : > { %13713 = vmatprep.subr.bf16.mxu0 %v14759_v41  ;;  %13735 = vmatprep.subr.bf16.mxu1 %v14760_v46  ;;  %v14781_v41 = vld [vmem:[%s16279_s13 + $0x200] sm:$0xff]  }
0x1a9b   : > { %v14782_v46 = vld [vmem:[%s16279_s13 + $0x280] sm:$0xff]  }
0x1a9d   : > { %13714 = vmatpush3.bf16.msra.mxu0 %v14761_v21  ;;  %13736 = vmatpush3.bf16.msra.mxu1 %v14762_v2  ;;  %v14783_v21 = vld [vmem:[%s16279_s13 + $0x248] sm:$0xff]  }
0x1a9e   : > { %13715 = vmatprep.subr.bf16.mxu0 %v14763_v3  ;;  %13737 = vmatprep.subr.bf16.mxu1 %v14764_v52  ;;  %v14784_v2 = vld [vmem:[%s16279_s13 + $0x2c8] sm:$0xff]  }
0x1a9f   : > { %v14785_v3 = vld [vmem:[%s16279_s13 + $0x208] sm:$0xff]  }
0x1aa0   : > { %v14786_v52 = vld [vmem:[%s16279_s13 + $0x288] sm:$0xff]  }
0x1aa1   : > { %13716 = vmatpush3.bf16.msra.mxu0 %v14765_v50  ;;  %13738 = vmatpush3.bf16.msra.mxu1 %v14766_v51  ;;  %v14787_v50 = vld [vmem:[%s16279_s13 + $0x250] sm:$0xff]  }
0x1aa2   : > { %13717 = vmatprep.subr.bf16.mxu0 %v14767_v54  ;;  %13739 = vmatprep.subr.bf16.mxu1 %v14768_v63  ;;  %v14788_v51 = vld [vmem:[%s16279_s13 + $0x2d0] sm:$0xff]  }
0x1aa3   : > { %v14789_v54 = vld [vmem:[%s16279_s13 + $0x210] sm:$0xff]  }
0x1aa4   : > { %v14790_v63 = vld [vmem:[%s16279_s13 + $0x290] sm:$0xff]  }
0x1aa5   : > { %v9867_v8 = vpop.f32.mrb[52].mxu0  ;;  %v9910_v47 = vpop.f32.mrb[52].mxu1  ;;  %13718 = vmatpush3.bf16.msra.mxu0 %v14769_v0  ;;  %13740 = vmatpush3.bf16.msra.mxu1 %v14770_v57  ;;  %v14791_v0 = vld [vmem:[%s16279_s13 + $0x258] sm:$0xff]  }
0x1aa6   : > { %v9868_v10 = vadd.f32 %v9867_v8, %v9046_v1  ;;  %v9911_v25 = vadd.f32 %v9910_v47, %v9054_v27  ;;  %v9869_v13 = vpop.f32.mrb[53].mxu0  ;;  %v9912_v11 = vpop.f32.mrb[53].mxu1  ;;  %13719 = vmatprep.subr.bf16.mxu0 %v14771_v56  ;;  %13741 = vmatprep.subr.bf16.mxu1 %v14772_v43  ;;  %v14792_v57 = vld [vmem:[%s16279_s13 + $0x2d8] sm:$0xff]   ;;  %v14795_v56 = vld [vmem:[%s16279_s13 + $0x260] sm:$0xff]   ;;  %v14799_v8 = vld [vmem:[%s16279_s13 + $0x268] sm:$0xff]  }
0x1aa7   : > { %v9870_v19 = vadd.f32 %v9869_v13, %v9050_v45  ;;  %v9913_v62 = vadd.f32 %v9912_v11, %v9058_v4  ;;  %v9871_v5 = vpop.f32.mrb[54].mxu0  ;;  %v9914_v58 = vpop.f32.mrb[54].mxu1  ;;  %v14796_v43 = vld [vmem:[%s16279_s13 + $0x2e0] sm:$0xff]   ;;  %v14800_v47 = vld [vmem:[%s16279_s13 + $0x2e8] sm:$0xff]   ;;  %v14803_v11 = vld [vmem:[%s16279_s13 + $0x270] sm:$0xff]  }
0x1aa8   : > { %v9872_v15 = vadd.f32 %v9871_v5, %v9046_v1  ;;  %v9915_v16 = vadd.f32 %v9914_v58, %v9054_v27  ;;  %v9873_v20 = vpop.f32.mrb[55].mxu0  ;;  %v9916_v42 = vpop.f32.mrb[55].mxu1  ;;  %v10095_v28 = vmax.f32 %v9868_v10, 0.0  ;;  %v10097_v29 = vmax.f32 %v9911_v25, 0.0  ;;  %v14793_v1 = vld [vmem:[%s16279_s13 + $0x218] sm:$0xff]   ;;  %v14802_v10 = vld [vmem:[%s16279_s13 + $0x2a8] sm:$0xff]  }
0x1aa9   : > { %v9874_v59 = vadd.f32 %v9873_v20, %v9050_v45  ;;  %v9917_v14 = vadd.f32 %v9916_v42, %v9058_v4  ;;  %13720 = vmatpush3.bf16.msra.mxu0 %v14773_v9  ;;  %13742 = vmatpush3.bf16.msra.mxu1 %v14774_v22  ;;  %v10096_v32 = vmax.f32 %v9870_v19, 0.0  ;;  %v10098_v33 = vmax.f32 %v9913_v62, 0.0  ;;  %v14794_v27 = vld [vmem:[%s16279_s13 + $0x298] sm:$0xff]   ;;  %v14797_v45 = vld [vmem:[%s16279_s13 + $0x220] sm:$0xff]   ;;  %v14801_v22 = vld [vmem:[%s16279_s13 + $0x228] sm:$0xff]  }
0x1aaa   : > { %v10111_v30 = vmax.f32 %v9872_v15, 0.0  ;;  %v10113_v49 = vmax.f32 %v9915_v16, 0.0  ;;  %13721 = vmatprep.subr.bf16.mxu0 %v14775_v12  ;;  %13743 = vmatprep.subr.bf16.mxu1 %v14776_v53  ;;  %v14798_v4 = vld [vmem:[%s16279_s13 + $0x2a0] sm:$0xff]   ;;  %v17359_v9 = vld [vmem:[%s16283_s30 + $0x8] sm:$0xff]  ;;  %v14804_v12 = vld [vmem:[%s16279_s13 + $0x2f0] sm:$0xff]  }
0x1aab   : > { %v10112_v34 = vmax.f32 %v9874_v59, 0.0  ;;  %v10114_v35 = vmax.f32 %v9917_v14, 0.0  ;;  %v9062_v25 = vrot.slane %v17359_v9, %v16804_v61  ;;  %v9070_v13 = vrot.slane %v17359_v9, %v16833_v7  ;;  %v14805_v58 = vld [vmem:[%s16279_s13 + $0x230] sm:$0xff]   ;;  %v14807_v59 = vld [vmem:[%s16279_s13 + $0x278] sm:$0xff]  }
0x1aac   : > { %v10383_v36 = vpack.c.bf16 %v10111_v30, %v10095_v28  ;;  %v10385_v37 = vpack.c.bf16 %v10113_v49, %v10097_v29  ;;  %v9066_v53 = vrot.slane %v17359_v9, %v16796_v55  ;;  %v9074_v19 = vrot.slane %v17359_v9, %v17066_v17  ;;  %v14806_v15 = vld [vmem:[%s16279_s13 + $0x2b0] sm:$0xff]   ;;  %v14808_v14 = vld [vmem:[%s16279_s13 + $0x2f8] sm:$0xff]  }
0x1aad   : > { %v10384_v40 = vpack.c.bf16 %v10112_v34, %v10096_v32  ;;  %v10386_v39 = vpack.c.bf16 %v10114_v35, %v10098_v33  ;;  %13722 = vmatpush3.bf16.msra.mxu0 %v14777_v23  ;;  %13744 = vmatpush3.bf16.msra.mxu1 %v14778_v26  ;;  %v14809_v33 = vld [vmem:[%s16279_s13 + $0x238] sm:$0xff]  }
0x1aae   : > { %13751 = vmatprep.subr.bf16.mxu0 %v14779_v31  ;;  %13773 = vmatprep.subr.bf16.mxu1 %v14780_v6  ;;  %v14810_v34 = vld [vmem:[%s16279_s13 + $0x2b8] sm:$0xff]  }
0x1aaf   : > { %11281 = vmatprep.mubr.bf16.mxu0 %v10384_v40  ;;  %11322 = vmatprep.mubr.bf16.mxu1 %v10386_v39  ;;  %v14811_v39 = vld [vmem:[%s16279_s13 + $0x340] sm:$0xff]  }
0x1ab0   : > { %11282 = vmatmul.mubr.bf16.vlgmr.msra.gmra.mrb[68].mxu0 %v10383_v36  ;;  %11323 = vmatmul.mubr.bf16.vlgmr.msra.gmra.mrb[68].mxu1 %v10385_v37 }
0x1ab1   : > { %13752 = vmatpush3.bf16.msra.mxu0 %v14781_v41  ;;  %13774 = vmatpush3.bf16.msra.mxu1 %v14782_v46  ;;  %v14812_v41 = vld [vmem:[%s16279_s13 + $0x3c0] sm:$0xff]  }
0x1ab2   : > { %13753 = vmatprep.subr.bf16.mxu0 %v14783_v21  ;;  %13775 = vmatprep.subr.bf16.mxu1 %v14784_v2 }
0x1ab5   : > { %13754 = vmatpush3.bf16.msra.mxu0 %v14785_v3  ;;  %13776 = vmatpush3.bf16.msra.mxu1 %v14786_v52 }
0x1ab6   : > { %13755 = vmatprep.subr.bf16.mxu0 %v14787_v50  ;;  %13777 = vmatprep.subr.bf16.mxu1 %v14788_v51 }
0x1ab9   : > { %13756 = vmatpush3.bf16.msra.mxu0 %v14789_v54  ;;  %13778 = vmatpush3.bf16.msra.mxu1 %v14790_v63  ;;  %v14813_v63 = vld [vmem:[%s16279_s13 + $0x300] sm:$0xff]  }
0x1aba   : > { %13757 = vmatprep.subr.bf16.mxu0 %v14791_v0  ;;  %13779 = vmatprep.subr.bf16.mxu1 %v14792_v57  ;;  %v14814_v0 = vld [vmem:[%s16279_s13 + $0x380] sm:$0xff]   ;;  %v14815_v57 = vld [vmem:[%s16279_s13 + $0x348] sm:$0xff]  }
0x1abd   : > { %13758 = vmatpush3.bf16.msra.mxu0 %v14793_v1  ;;  %13780 = vmatpush3.bf16.msra.mxu1 %v14794_v27  ;;  %v14816_v1 = vld [vmem:[%s16279_s13 + $0x3c8] sm:$0xff]  }
0x1abe   : > { %13759 = vmatprep.subr.bf16.mxu0 %v14795_v56  ;;  %13781 = vmatprep.subr.bf16.mxu1 %v14796_v43  ;;  %v14817_v27 = vld [vmem:[%s16279_s13 + $0x308] sm:$0xff]   ;;  %v14819_v43 = vld [vmem:[%s16279_s13 + $0x350] sm:$0xff]  }
0x1abf   : > { %v14818_v56 = vld [vmem:[%s16279_s13 + $0x388] sm:$0xff]  }
0x1ac1   : > { %13760 = vmatpush3.bf16.msra.mxu0 %v14797_v45  ;;  %13782 = vmatpush3.bf16.msra.mxu1 %v14798_v4  ;;  %v14820_v45 = vld [vmem:[%s16279_s13 + $0x3d0] sm:$0xff]  }
0x1ac2   : > { %13761 = vmatprep.subr.bf16.mxu0 %v14799_v8  ;;  %13783 = vmatprep.subr.bf16.mxu1 %v14800_v47  ;;  %v14821_v4 = vld [vmem:[%s16279_s13 + $0x310] sm:$0xff]   ;;  %v14823_v47 = vld [vmem:[%s16279_s13 + $0x358] sm:$0xff]  }
0x1ac3   : > { %v14822_v8 = vld [vmem:[%s16279_s13 + $0x390] sm:$0xff]  }
0x1ac5   : > { %v9953_v62 = vpop.f32.mrb[56].mxu0  ;;  %v9996_v5 = vpop.f32.mrb[56].mxu1  ;;  %13762 = vmatpush3.bf16.msra.mxu0 %v14801_v22  ;;  %13784 = vmatpush3.bf16.msra.mxu1 %v14802_v10  ;;  %v14824_v22 = vld [vmem:[%s16279_s13 + $0x3d8] sm:$0xff]  }
0x1ac6   : > { %v9954_v61 = vadd.f32 %v9953_v62, %v9062_v25  ;;  %v9997_v16 = vadd.f32 %v9996_v5, %v9070_v13  ;;  %v9955_v20 = vpop.f32.mrb[57].mxu0  ;;  %v9998_v42 = vpop.f32.mrb[57].mxu1  ;;  %13763 = vmatprep.subr.bf16.mxu0 %v14803_v11  ;;  %13785 = vmatprep.subr.bf16.mxu1 %v14804_v12  ;;  %v14825_v10 = vld [vmem:[%s16279_s13 + $0x318] sm:$0xff]   ;;  %v14828_v11 = vld [vmem:[%s16279_s13 + $0x3e0] sm:$0xff]   ;;  %v14832_v62 = vld [vmem:[%s16279_s13 + $0x3e8] sm:$0xff]  }
0x1ac7   : > { %v9956_v55 = vadd.f32 %v9955_v20, %v9066_v53  ;;  %v9999_v23 = vadd.f32 %v9998_v42, %v9074_v19  ;;  %v9957_v26 = vpop.f32.mrb[58].mxu0  ;;  %v10000_v28 = vpop.f32.mrb[58].mxu1  ;;  %v14829_v12 = vld [vmem:[%s16279_s13 + $0x320] sm:$0xff]   ;;  %v14833_v5 = vld [vmem:[%s16279_s13 + $0x328] sm:$0xff]   ;;  %v14836_v20 = vld [vmem:[%s16279_s13 + $0x3f0] sm:$0xff]   ;;  %v9082_v42 = vrot.slane %v17359_v9, %v17082_v44 }
0x1ac8   : > { %v9958_v29 = vadd.f32 %v9957_v26, %v9062_v25  ;;  %v10001_v30 = vadd.f32 %v10000_v28, %v9070_v13  ;;  %v9959_v49 = vpop.f32.mrb[59].mxu0  ;;  %v10002_v31 = vpop.f32.mrb[59].mxu1  ;;  %v10099_v35 = vmax.f32 %v9954_v61, 0.0  ;;  %v10101_v36 = vmax.f32 %v9997_v16, 0.0  ;;  %v14826_v25 = vld [vmem:[%s16279_s13 + $0x398] sm:$0xff]   ;;  %v14827_v13 = vld [vmem:[%s16279_s13 + $0x360] sm:$0xff]  }
0x1ac9   : > { %v9960_v6 = vadd.f32 %v9959_v49, %v9066_v53  ;;  %v10003_v32 = vadd.f32 %v10002_v31, %v9074_v19  ;;  %13764 = vmatpush3.bf16.msra.mxu0 %v14805_v58  ;;  %13786 = vmatpush3.bf16.msra.mxu1 %v14806_v15  ;;  %v10100_v46 = vmax.f32 %v9956_v55, 0.0  ;;  %v10102_v21 = vmax.f32 %v9999_v23, 0.0  ;;  %v14830_v53 = vld [vmem:[%s16279_s13 + $0x3a0] sm:$0xff]   ;;  %v14831_v19 = vld [vmem:[%s16279_s13 + $0x368] sm:$0xff]   ;;  %v14835_v16 = vld [vmem:[%s16279_s13 + $0x370] sm:$0xff]  }
0x1aca   : > { %v10115_v37 = vmax.f32 %v9958_v29, 0.0  ;;  %v10117_v40 = vmax.f32 %v10001_v30, 0.0  ;;  %13765 = vmatprep.subr.bf16.mxu0 %v14807_v59  ;;  %13787 = vmatprep.subr.bf16.mxu1 %v14808_v14  ;;  %v14834_v58 = vld [vmem:[%s16279_s13 + $0x3a8] sm:$0xff]   ;;  %v9078_v15 = vrot.slane %v17359_v9, %v17079_v38  ;;  %v9086_v61 = vrot.slane %v17359_v9, %v17054_v48  ;;  %v14837_v23 = vld [vmem:[%s16279_s13 + $0x330] sm:$0xff]   ;;  %v14839_v49 = vld [vmem:[%s16279_s13 + $0x378] sm:$0xff]  }
0x1acb   : > { %v10116_v2 = vmax.f32 %v9960_v6, 0.0  ;;  %v10118_v3 = vmax.f32 %v10003_v32, 0.0  ;;  %v9090_v59 = vrot.slane %v17359_v9, %v17073_v24  ;;  %v14838_v26 = vld [vmem:[%s16279_s13 + $0x3b0] sm:$0xff]   ;;  %v14840_v31 = vld [vmem:[%s16279_s13 + $0x3f8] sm:$0xff]  }
0x1acc   : > { %v10387_v52 = vpack.c.bf16 %v10115_v37, %v10099_v35  ;;  %v10389_v50 = vpack.c.bf16 %v10117_v40, %v10101_v36  ;;  %v14841_v40 = vld [vmem:[%s16279_s13 + $0x338] sm:$0xff]  }
0x1acd   : > { %v10388_v51 = vpack.c.bf16 %v10116_v2, %v10100_v46  ;;  %v10390_v54 = vpack.c.bf16 %v10118_v3, %v10102_v21  ;;  %13766 = vmatpush3.bf16.msra.mxu0 %v14809_v33  ;;  %13788 = vmatpush3.bf16.msra.mxu1 %v14810_v34 }
0x1ace   : > { %13795 = vmatprep.subr.bf16.mxu0 %v14811_v39  ;;  %13817 = vmatprep.subr.bf16.mxu1 %v14812_v41  ;;  %v14842_v39 = vld [vmem:[%s16279_s13 + $0x3b8] sm:$0xff]  }
0x1acf   : > { %11363 = vmatprep.mubr.bf16.mxu0 %v10388_v51  ;;  %11404 = vmatprep.mubr.bf16.mxu1 %v10390_v54 }
0x1ad0   : > { %11364 = vmatmul.mubr.bf16.vlgmr.msra.gmra.mrb[72].mxu0 %v10387_v52  ;;  %11405 = vmatmul.mubr.bf16.vlgmr.msra.gmra.mrb[72].mxu1 %v10389_v50 }
0x1ad1   : > { %13796 = vmatpush3.bf16.msra.mxu0 %v14813_v63  ;;  %13818 = vmatpush3.bf16.msra.mxu1 %v14814_v0 }
0x1ad2   : > { %13797 = vmatprep.subr.bf16.mxu0 %v14815_v57  ;;  %13819 = vmatprep.subr.bf16.mxu1 %v14816_v1 }
0x1ad5   : > { %13798 = vmatpush3.bf16.msra.mxu0 %v14817_v27  ;;  %13820 = vmatpush3.bf16.msra.mxu1 %v14818_v56  ;;  %v17420_v56 = vld [vmem:[%s16281_s14 + $0x8] sm:$0xff] }
0x1ad6   : > { %13799 = vmatprep.subr.bf16.mxu0 %v14819_v43  ;;  %13821 = vmatprep.subr.bf16.mxu1 %v14820_v45  ;;  %v10398_v43 = vrot.slane %v17420_v56, %v16833_v7 }
0x1ad9   : > { %13800 = vmatpush3.bf16.msra.mxu0 %v14821_v4  ;;  %13822 = vmatpush3.bf16.msra.mxu1 %v14822_v8 }
0x1ada   : > { %13801 = vmatprep.subr.bf16.mxu0 %v14823_v47  ;;  %13823 = vmatprep.subr.bf16.mxu1 %v14824_v22 }
0x1add   : > { %13802 = vmatpush3.bf16.msra.mxu0 %v14825_v10  ;;  %13824 = vmatpush3.bf16.msra.mxu1 %v14826_v25 }
0x1ade   : > { %13803 = vmatprep.subr.bf16.mxu0 %v14827_v13  ;;  %13825 = vmatprep.subr.bf16.mxu1 %v14828_v11 }
0x1ae1   : > { %13804 = vmatpush3.bf16.msra.mxu0 %v14829_v12  ;;  %13826 = vmatpush3.bf16.msra.mxu1 %v14830_v53 }
0x1ae2   : > { %13805 = vmatprep.subr.bf16.mxu0 %v14831_v19  ;;  %13827 = vmatprep.subr.bf16.mxu1 %v14832_v62 }
0x1ae5   : > { %v10039_v14 = vpop.f32.mrb[60].mxu0  ;;  %v10082_v55 = vpop.f32.mrb[60].mxu1  ;;  %13806 = vmatpush3.bf16.msra.mxu0 %v14833_v5  ;;  %13828 = vmatpush3.bf16.msra.mxu1 %v14834_v58 }
0x1ae6   : > { %v10040_v28 = vadd.f32 %v10039_v14, %v9078_v15  ;;  %v10083_v29 = vadd.f32 %v10082_v55, %v9086_v61  ;;  %v10041_v30 = vpop.f32.mrb[61].mxu0  ;;  %v10084_v48 = vpop.f32.mrb[61].mxu1  ;;  %13807 = vmatprep.subr.bf16.mxu0 %v14835_v16  ;;  %13829 = vmatprep.subr.bf16.mxu1 %v14836_v20 }
0x1ae7   : > { %v10042_v44 = vadd.f32 %v10041_v30, %v9082_v42  ;;  %v10085_v6 = vadd.f32 %v10084_v48, %v9090_v59  ;;  %v10043_v32 = vpop.f32.mrb[62].mxu0  ;;  %v10086_v24 = vpop.f32.mrb[62].mxu1 }
0x1ae8   : > { %v10044_v9 = vadd.f32 %v10043_v32, %v9078_v15  ;;  %v10087_v33 = vadd.f32 %v10086_v24, %v9086_v61  ;;  %v10045_v34 = vpop.f32.mrb[63].mxu0  ;;  %v10088_v35 = vpop.f32.mrb[63].mxu1  ;;  %v10103_v41 = vmax.f32 %v10040_v28, 0.0  ;;  %v10105_v46 = vmax.f32 %v10083_v29, 0.0 }
0x1ae9   : > { %v10046_v36 = vadd.f32 %v10045_v34, %v9082_v42  ;;  %v10089_v37 = vadd.f32 %v10088_v35, %v9090_v59  ;;  %13808 = vmatpush3.bf16.msra.mxu0 %v14837_v23  ;;  %13830 = vmatpush3.bf16.msra.mxu1 %v14838_v26  ;;  %v10104_v3 = vmax.f32 %v10042_v44, 0.0  ;;  %v10106_v52 = vmax.f32 %v10085_v6, 0.0 }
0x1aea   : > { %v10119_v21 = vmax.f32 %v10044_v9, 0.0  ;;  %v10121_v2 = vmax.f32 %v10087_v33, 0.0  ;;  %13809 = vmatprep.subr.bf16.mxu0 %v14839_v49  ;;  %13831 = vmatprep.subr.bf16.mxu1 %v14840_v31 }
0x1aeb   : > { %v10120_v50 = vmax.f32 %v10046_v36, 0.0  ;;  %v10122_v51 = vmax.f32 %v10089_v37, 0.0 }
0x1aec   : > { %v10391_v54 = vpack.c.bf16 %v10119_v21, %v10103_v41  ;;  %v10393_v63 = vpack.c.bf16 %v10121_v2, %v10105_v46 }
0x1aed   : > { %v10392_v0 = vpack.c.bf16 %v10120_v50, %v10104_v3  ;;  %v10394_v57 = vpack.c.bf16 %v10122_v51, %v10106_v52  ;;  %13810 = vmatpush3.bf16.msra.mxu0 %v14841_v40  ;;  %13832 = vmatpush3.bf16.msra.mxu1 %v14842_v39 }
0x1aef   : > { %11445 = vmatprep.mubr.bf16.mxu0 %v10392_v0  ;;  %11486 = vmatprep.mubr.bf16.mxu1 %v10394_v57 }
0x1af0   : > { %11446 = vmatmul.mubr.bf16.vlgmr.msra.gmra.mrb[76].mxu0 %v10391_v54  ;;  %11487 = vmatmul.mubr.bf16.vlgmr.msra.gmra.mrb[76].mxu1 %v10393_v63 }
0x1b63   : > { %v13679_v1 = vpop.f32.mrb[64].mxu0  ;;  %v13701_v27 = vpop.f32.mrb[64].mxu1 }
0x1b64   : > { %v13680_v45 = vpop.f32.mrb[65].mxu0  ;;  %v13702_v4 = vpop.f32.mrb[65].mxu1 }
0x1b65   : > { %v13681_v8 = vadd.f32 %v13680_v45, %v13679_v1  ;;  %v13703_v47 = vadd.f32 %v13702_v4, %v13701_v27  ;;  %v13682_v22 = vpop.f32.mrb[66].mxu0  ;;  %v13704_v10 = vpop.f32.mrb[66].mxu1 }
0x1b66   : > { %v13683_v25 = vpop.f32.mrb[67].mxu0  ;;  %v13705_v13 = vpop.f32.mrb[67].mxu1 }
0x1b67   : > { %v11202_v11 = vadd.f32 %v13681_v8, %v10398_v43  ;;  %v13684_v12 = vadd.f32 %v13683_v25, %v13682_v22  ;;  %v13706_v53 = vadd.f32 %v13705_v13, %v13704_v10 }
0x1b69   : > { %v11243_v19 = vadd.f32 %v13703_v47, %v11202_v11  ;;  %v11205_v62 = vadd.f32 %v13684_v12, %v10398_v43 }
0x1b6b   : > { %v11246_v5 = vadd.f32 %v13706_v53, %v11205_v62 }
0x1b83   : > { %v13723_v58 = vpop.f32.mrb[68].mxu0  ;;  %v13745_v15 = vpop.f32.mrb[68].mxu1 }
0x1b84   : > { %v13724_v61 = vpop.f32.mrb[69].mxu0  ;;  %v13746_v16 = vpop.f32.mrb[69].mxu1 }
0x1b85   : > { %v13725_v20 = vadd.f32 %v13724_v61, %v13723_v58  ;;  %v13747_v7 = vadd.f32 %v13746_v16, %v13745_v15  ;;  %v13726_v42 = vpop.f32.mrb[70].mxu0  ;;  %v13748_v59 = vpop.f32.mrb[70].mxu1 }
0x1b86   : > { %v13727_v14 = vpop.f32.mrb[71].mxu0  ;;  %v13749_v55 = vpop.f32.mrb[71].mxu1 }
0x1b87   : > { %v11284_v23 = vadd.f32 %v13725_v20, %v11243_v19  ;;  %v13728_v26 = vadd.f32 %v13727_v14, %v13726_v42  ;;  %v13750_v28 = vadd.f32 %v13749_v55, %v13748_v59 }
0x1b89   : > { %v11325_v29 = vadd.f32 %v13747_v7, %v11284_v23  ;;  %v11287_v30 = vadd.f32 %v13728_v26, %v11246_v5  ;;  %v11528_v7 = vrot.slane %v17420_v56, %v17079_v38 }
0x1b8b   : > { %v11328_v48 = vadd.f32 %v13750_v28, %v11287_v30 }
0x1ba3   : > { %v13767_v49 = vpop.f32.mrb[72].mxu0  ;;  %v13789_v31 = vpop.f32.mrb[72].mxu1 }
0x1ba4   : > { %v13768_v44 = vpop.f32.mrb[73].mxu0  ;;  %v13790_v6 = vpop.f32.mrb[73].mxu1 }
0x1ba5   : > { %v13769_v32 = vadd.f32 %v13768_v44, %v13767_v49  ;;  %v13791_v24 = vadd.f32 %v13790_v6, %v13789_v31  ;;  %v13770_v9 = vpop.f32.mrb[74].mxu0  ;;  %v13792_v33 = vpop.f32.mrb[74].mxu1 }
0x1ba6   : > { %v13771_v34 = vpop.f32.mrb[75].mxu0  ;;  %v13793_v35 = vpop.f32.mrb[75].mxu1 }
0x1ba7   : > { %v11366_v36 = vadd.f32 %v13769_v32, %v11325_v29  ;;  %v13772_v37 = vadd.f32 %v13771_v34, %v13770_v9  ;;  %v13794_v40 = vadd.f32 %v13793_v35, %v13792_v33 }
0x1ba9   : > { %v11407_v39 = vadd.f32 %v13791_v24, %v11366_v36  ;;  %v11369_v41 = vadd.f32 %v13772_v37, %v11328_v48 }
0x1bab   : > { %v11410_v46 = vadd.f32 %v13794_v40, %v11369_v41 }
0x1bc3   : > { %v13811_v21 = vpop.f32.mrb[76].mxu0  ;;  %v13833_v2 = vpop.f32.mrb[76].mxu1 }
0x1bc4   : > { %v13812_v3 = vpop.f32.mrb[77].mxu0  ;;  %v13834_v52 = vpop.f32.mrb[77].mxu1 }
0x1bc5   : > { %v13813_v50 = vadd.f32 %v13812_v3, %v13811_v21  ;;  %v13835_v51 = vadd.f32 %v13834_v52, %v13833_v2  ;;  %v13814_v54 = vpop.f32.mrb[78].mxu0  ;;  %v13836_v63 = vpop.f32.mrb[78].mxu1 }
0x1bc6   : > { %v13815_v0 = vpop.f32.mrb[79].mxu0  ;;  %v13837_v57 = vpop.f32.mrb[79].mxu1 }
0x1bc7   : > { %v11448_v1 = vadd.f32 %v13813_v50, %v11407_v39  ;;  %v13816_v27 = vadd.f32 %v13815_v0, %v13814_v54  ;;  %v13838_v43 = vadd.f32 %v13837_v57, %v13836_v63 }
0x1bc9   : > { %v11489_v45 = vadd.f32 %v13835_v51, %v11448_v1  ;;  %v11451_v4 = vadd.f32 %v13816_v27, %v11410_v46 }
0x1bcb   : > { %v11492_v8 = vadd.f32 %v13838_v43, %v11451_v4  ;;  %v11495_v47 = vadd.f32 %v11489_v45, %v17143_v60 }
0x1bcd   : > { %11497 = vadd.xlane.f32.xlu0 %v11495_v47  ;;  %v11496_v22 = vadd.f32 %v11492_v8, %v17145_v18  ;;  %v11522_v18 = vrot.slane %v17420_v56, %v17066_v17 }
0x1bcf   : > { %11499 = vadd.xlane.f32.xlu1 %v11496_v22 }
0x1c5a   : > { %v11498_v10 = vpop.xlane.xlu0 %11497 }
0x1c5b   : > { %v11501_v25 = vmul.f32 0.0078125, %v11498_v10 }
0x1c5c   : > { %v11500_v13 = vpop.xlane.xlu1 %11499 }
0x1c5d   : > { %v11503_v11 = vsub.f32 %v11495_v47, %v11501_v25  ;;  %v11502_v12 = vmul.f32 0.0078125, %v11500_v13 }
0x1c5f   : > { %v11504_v53 = vsub.f32 %v11496_v22, %v11502_v12  ;;  %v11505_v19 = vmul.f32 %v11503_v11, %v11503_v11 }
0x1c61   : > { %11507 = vadd.xlane.f32.xlu0 %v11505_v19  ;;  %v11506_v62 = vmul.f32 %v11504_v53, %v11504_v53 }
0x1c63   : > { %11509 = vadd.xlane.f32.xlu1 %v11506_v62 }
0x1cee   : > { %v11508_v5 = vpop.xlane.xlu0 %11507 }
0x1cef   : > { %v11511_v58 = vmul.f32 0.0078125, %v11508_v5 }
0x1cf0   : > { %v11510_v15 = vpop.xlane.xlu1 %11509 }
0x1cf1   : > { %v11513_v61 = vadd.f32 1e-05, %v11511_v58  ;;  %v11512_v16 = vmul.f32 0.0078125, %v11510_v15 }
0x1cf3   : > { %14883 = vrsqrt.f32 %v11513_v61  ;;  %v11514_v60 = vadd.f32 1e-05, %v11512_v16 }
0x1cf5   : > { %14885 = vrsqrt.f32 %v11514_v60 }
0x1cfd   : > { %v14884_v20 = vpop.eup %14883 }
0x1cfe   : > { %v11517_v42 = vmul.f32 %v14884_v20, %v11503_v11 }
0x1cff   : > { %v14886_v59 = vpop.eup %14885 }
0x1d00   : > { %v11523_v14 = vmul.f32 %v11522_v18, %v11517_v42  ;;  %v11518_v55 = vmul.f32 %v14886_v59, %v11504_v53 }
0x1d02   : > { %v11529_v23 = vadd.f32 %v11528_v7, %v11523_v14  ;;  %v11524_v26 = vmul.f32 %v11522_v18, %v11518_v55 }
0x1d04   : > { %11531 = vst [vmem:[#allocation3] sm:$0xff] %v11529_v23  ;;  %v11530_v28 = vadd.f32 %v11528_v7, %v11524_v26 }
0x1d06   : > { %11532 = vst [vmem:[#allocation3 + $0x8] sm:$0xff] %v11530_v28 }
0x1d07 PF: > { %s17718_s4 = sld [smem:[#allocation34_spill]] }
0x1d0d   : > { %p13009_p4 = scmp.ne.s32.totalorder %s17718_s4, 3 }
0x1d0e   : > { %s17719_s26 = sld [smem:[#allocation62_spill]] (!%p13009_p4)  ;;  %v15499_v56 = vmov (!%p13009_p4), 0   ;;  %v11537_v32 = vld [vmem:[#allocation3] sm:$0xff] (!%p13009_p4)  ;;  %v11538_v24 = vld [vmem:[#allocation3 + $0x8] sm:$0xff] (!%p13009_p4)  ;;  %vm11563_vm6 = vcmask (!%p13009_p4), 1041409   ;;  %vm11688_vm7 = vcmask (!%p13009_p4), 254976  }
0x1d0f   : > { %11536 = sbr.rel (%p13009_p4) target bundleno = 7850 (0x1eaa), region = 192  ;;  %11679 = vmatprep.mubr.bf16.mxu0 (!%p13009_p4), %v15499_v56  ;;  %v11555_v33 = vpack.c.bf16 (!%p13009_p4), %v11537_v32, %v11537_v32  ;;  %v11556_v34 = vpack.c.bf16 (!%p13009_p4), %v11538_v24, %v11538_v24  ;;  %v13026_v51 = vld [vmem:[#allocation21] ss:$0 sm:$0xff] (!%p13009_p4)  ;;  %v13027_v27 = vld [vmem:[#allocation22] ss:$0 sm:$0xff] (!%p13009_p4)  ;;  %vm11707_vm8 = vcmask (!%p13009_p4), 1041408  }
0x1d10   : > { %v13028_v8 = vld [vmem:[#allocation4] ss:$0 sm:$0xff] (!%p13009_p4)  ;;  %vm11719_vm9 = vcmask (!%p13009_p4), 1024   ;;  %s17720_s12 = sld [smem:[#allocation66_spill]] (!%p13009_p4) }
0x1d11   : > { %v11559_v37 = vunpack.c.l.b16 (!%p13009_p4), %v11555_v33  ;;  %v11560_v40 = vunpack.c.l.b16 (!%p13009_p4), %v11556_v34 }
0x1d13   : > { %v11561_v46 = vrot.slane (!%p13009_p4), %v11559_v37, 7  ;;  %v11562_v21 = vrot.slane (!%p13009_p4), %v11560_v40, 6 }
0x1d14   : > { %v14890_v17 = vld [vmem:[%s17719_s26 + $0x4] ss:$8 sps:$4 sm:$0xff] (!%p13009_p4)   ;;  %v14892_v38 = vld [vmem:[%s17719_s26] ss:$8 sps:$4 sm:$0xff] (!%p13009_p4)   ;;  %v14893_v29 = vld [vmem:[%s17719_s26 + $0x14] ss:$8 sps:$4 sm:$0xff] (!%p13009_p4)  }
0x1d15   : > { %11647 = vmatprep.subr.bf16.mxu0 (!%p13009_p4), %v14890_v17  ;;  %v14895_v30 = vld [vmem:[%s17719_s26 + $0x10] ss:$8 sps:$4 sm:$0xff] (!%p13009_p4)   ;;  %v14896_v48 = vld [vmem:[%s17719_s26 + $0x24] ss:$8 sps:$4 sm:$0xff] (!%p13009_p4)   ;;  %v14898_v49 = vld [vmem:[%s17719_s26 + $0x20] ss:$8 sps:$4 sm:$0xff] (!%p13009_p4)   ;;  %v11564_v52 = vsel (!%p13009_p4), %vm11563_vm6, %v11562_v21, %v11561_v46 }
0x1d16   : > { %11648 = vmatpush1.bf16.msra.mxu0 %v14892_v38  ;;  %v14899_v31 = vld [vmem:[%s17719_s26 + $0x34] ss:$8 sps:$4 sm:$0xff]   ;;  %v14901_v44 = vld [vmem:[%s17719_s26 + $0x30] ss:$8 sps:$4 sm:$0xff]   ;;  %v14902_v6 = vld [vmem:[%s17719_s26 + $0x44] ss:$8 sps:$4 sm:$0xff]   ;;  %v11565_v50 = vpack.c.b16 %v11564_v52, %v11564_v52 }
0x1d17   : > { %11649 = vmatprep.subr.bf16.mxu0 %v14893_v29  ;;  %v14904_v9 = vld [vmem:[%s17719_s26 + $0x40] ss:$8 sps:$4 sm:$0xff]   ;;  %v14905_v35 = vld [vmem:[%s17719_s26 + $0x54] ss:$8 sps:$4 sm:$0xff]   ;;  %v14907_v36 = vld [vmem:[%s17719_s26 + $0x50] ss:$8 sps:$4 sm:$0xff]  }
0x1d18   : > { %v14908_v39 = vld [vmem:[%s17719_s26 + $0x64] ss:$8 sps:$4 sm:$0xff]   ;;  %v14910_v41 = vld [vmem:[%s17719_s26 + $0x60] ss:$8 sps:$4 sm:$0xff]   ;;  %v14911_v2 = vld [vmem:[%s17719_s26 + $0x74] ss:$8 sps:$4 sm:$0xff]  }
0x1d19   : > { %v14913_v3 = vld [vmem:[%s17719_s26 + $0x70] ss:$8 sps:$4 sm:$0xff]  }
0x1d1a   : > { %11650 = vmatpush1.bf16.msra.mxu0 %v14895_v30 }
0x1d1b   : > { %11651 = vmatprep.subr.bf16.mxu0 %v14896_v48 }
0x1d1e   : > { %11652 = vmatpush1.bf16.msra.mxu0 %v14898_v49 }
0x1d1f   : > { %11653 = vmatprep.subr.bf16.mxu0 %v14899_v31 }
0x1d22   : > { %11654 = vmatpush1.bf16.msra.mxu0 %v14901_v44 }
0x1d23   : > { %11655 = vmatprep.subr.bf16.mxu0 %v14902_v6 }
0x1d26   : > { %11656 = vmatpush1.bf16.msra.mxu0 %v14904_v9 }
0x1d27   : > { %11657 = vmatprep.subr.bf16.mxu0 %v14905_v35 }
0x1d2a   : > { %11658 = vmatpush1.bf16.msra.mxu0 %v14907_v36 }
0x1d2b   : > { %11659 = vmatprep.subr.bf16.mxu0 %v14908_v39 }
0x1d2e   : > { %11660 = vmatpush1.bf16.msra.mxu0 %v14910_v41 }
0x1d2f   : > { %11661 = vmatprep.subr.bf16.mxu0 %v14911_v2 }
0x1d32   : > { %11662 = vmatpush1.bf16.msra.mxu0 %v14913_v3 }
0x1d35   : > { %11680 = vmatmul.mubr.bf16.vlgmr.msra.gmra.mrb[0].mxu0 %v11565_v50 }
0x1e08   : > { %v11681_v54 = vpop.f32.mrb[0].mxu0 }
0x1e09   : > { %v11697_v63 = vadd.f32 %v13026_v51, %v11681_v54  ;;  %v11683_v0 = vpop.f32.mrb[1].mxu0 }
0x1e0a   : > { %11689 = vst.msk [vmem:[#allocation24] sm:$0x3] %vm11688_vm7, %v11683_v0  ;;  %v11685_v57 = vpop.f32.mrb[2].mxu0 }
0x1e0b   : > { %14914 = vtanh.f32 %v11697_v63  ;;  %v11686_v1 = vpop.f32.mrb[3].mxu0 }
0x1e15   : > { %v14915_v43 = vpop.eup %14914 }
0x1e16   : > { %v11706_v45 = vmul.f32 %v14915_v43, %v13027_v27 }
0x1e18   : > { %v11708_v4 = vsel %vm11707_vm8, %v11706_v45, 0.0 }
0x1e19   : > { %11709 = vadd.xlane.f32.xlu0 %v11708_v4 }
0x1ea6   : > { %v11710_v47 = vpop.xlane.xlu0 %11709 }
0x1ea7   : > { %v11718_v22 = vadd.f32 %v13028_v8, %v11710_v47 }
0x1ea9   : > { %11720 = vst.msk [vmem:[%s17720_s12] sm:$0x3] %vm11719_vm9, %v11718_v22 }
0x1eaa PF: > { %s17721_s16 = sld [smem:[#allocation34_spill]]  ;;  %s15500_s29 = smov [#allocation24]  }
0x1eab   : > { %s11728_s7 = sshll.u32 %s15500_s29, 4  ;;  %s11729_s7 = int_to_ptr.vmem [resolvable:$true] %s11728_s7 }
0x1eac   : > { %s15358_s2 = scalar_lea.vmem %s11729_s7, 32  ;;  %p15365_p6 = scmp.lt.s32.totalorder %s11729_s7, %s11729_s7 }
0x1ead   : > { %p15359_p1 = scmp.ne.s32.totalorder %s11729_s7, %s15358_s2  ;;  %p15366_p0 = scmp.lt.s32.totalorder %s15358_s2, %s15358_s2 }
0x1eaf   : > { %p15367_p11 = por %p15366_p0, %p15365_p6 }
0x1eb0   : > { %p14166_p7 = scmp.eq.s32.totalorder %s17721_s16, 3 }
0x1eb2   : > { %p15360_p2 = pnand %p15359_p1, %p14166_p7 }
0x1eb4   : > { %p15361_p3 = pneg %p15360_p2 }
0x1eb6   : > { %p15368_p5 = pnand %p15367_p11, %p15361_p3 }
0x1eb8   : > { %15371 = shalt.err (!%p15368_p5)
}
0x1eb9   : > { %s17722_s1 = sld [smem:[#allocation65_spill]] }
0x1ebf   : > { %s15372_s5 = scalar_lea.hbm %s17722_s1, 32 }
0x1ec0   : > { %p15373_p8 = scmp.ne.s32.totalorder %s17722_s1, %s15372_s5  ;;  %p15378_p10 = scmp.lt.u32.totalorder %s15372_s5, %s17722_s1 }
0x1ec2   : > { %p15374_p9 = pnand %p15373_p8, %p14166_p7 }
0x1ec4   : > { %p15375_p13 = pneg %p15374_p9 }
0x1ec6   : > { %p15380_p12 = pnand %p15378_p10, %p15375_p13 }
0x1ec8   : > { %15383 = shalt.err (!%p15380_p12)
}
0x1ec9   : > { %14107 = dma.vmem_to_hbm [thread:$0]  (%p14166_p7), %s11729_s7, 32, %s17722_s1, [#allocation7]  }
0x1eca   : > { %15437 = dma.done.wait (%p14166_p7), [#allocation7], 32  }
0x1ecb   : > { %15439 = vsyncadd (%p14166_p7), [#allocation7], 4294967264 }
0x1ecc PF: > { %s17723_s7 = sld [smem:[#allocation39_spill]]  ;;  %s17724_s4 = sld [smem:[#allocation42_spill]] }
0x1ecd   : > { %s17725_s2 = sld [smem:[#allocation32_spill]]  ;;  %s17726_s29 = sld [smem:[#allocation33_spill]] }
0x1ece   : > { %s17727_s0 = sld [smem:[#allocation41_spill]]  ;;  %s17728_s27 = smov %s15446_s28 }
0x1ecf   : > { %s17729_s28 = smov %s15450_s6 }
0x1ed2   : > { %p38_p4 = scmp.ge.s32.totalorder %s17723_s7, 6   ;;  %s17730_s6 = smov %s17724_s4 }
0x1ed4   :  { %40 = sbr.rel (!%p38_p4) target bundleno = 32 (0x20), region = 311 }
0x1edb   :  { %11747 = vsyncpa [#allocation6], 1 }
0x1edc   :  { %11749 = vsyncpa [#allocation6 + $0x1], 1 }
0x1edd   :  { %11750 = vsyncpa [#allocation9], 1 }
0x1ede   :  { %11751 = vsyncpa [#allocation23], 1 }
0x1edf   :  { %11752 = vsyncpa [#allocation7], 1 }
0x1ee0   :  { %11754 = vsyncpa [#allocation7 + $0x1], 1 }

</bundles_post_ra>
